<compile_context>
chip_gen: v5e
topology: v5e:2x2
jax: 0.10.0
libtpu: 0.0.40
codegen_flags: <defaults>
</compile_context>

<pallas_src>
import functools

import jax
import jax.numpy as jnp
from jax.experimental import pallas as pl
from jax.experimental.pallas import tpu as pltpu


def _round_up(x, m):
    return ((x + m - 1) // m) * m


def _aligned(idx, mult):
    """pl.multiple_of alignment hint that also tolerates concrete Python ints."""
    if isinstance(idx, int):
        return idx
    return pl.multiple_of(idx, mult)


def encoder_gru_kernel(tok_ref, emb_ref, h0_ref, wih_ref, whh_ref, bih_ref,
                       bhh_ref, y_ref, hT_ref, x_buf, gi_buf,
                       *, B, T, B_pad, H_pad, F_pad, num_layers):
    """Fused embedding lookup + multi-layer GRU. No grid; everything in VMEM.

    Layouts:
      x_buf  : (T*B_pad, F_pad)      time-major rows (row = t*B_pad + b)
      gi_buf : (T*B_pad, 3*H_pad)    precomputed x @ W_ih + b_ih for a layer
      y_ref  : (B_pad, T*H_pad)      lane-dense output slab (batch_first-friendly)
      hT_ref : (L, B_pad, H_pad)     final hidden per layer
    """
    # ---- embedding gather, laid out time-major (fuses the wrapper transpose) --
    x_buf[...] = jnp.zeros_like(x_buf)
    for t in range(T):
        for b in range(B):
            tok = tok_ref[b, t]                              # scalar from SMEM
            x_buf[pl.ds(t * B_pad + b, 1), :] = emb_ref[tok]  # (1, F_pad) row

    for layer in range(num_layers):
        # Input projection for ALL timesteps at once (off the serial path).
        gi_buf[...] = (
            jnp.dot(x_buf[...], wih_ref[layer],
                    preferred_element_type=jnp.float32)
            + bih_ref[layer])

        h0 = h0_ref[layer].astype(jnp.float32)               # (B_pad, H_pad)
        last = layer == num_layers - 1

        def step(t, h, layer=layer, last=last):
            row = _aligned(t * B_pad, B_pad)
            gi = gi_buf[pl.ds(row, B_pad), :]                # (B_pad, 3*H_pad)
            gh = (jnp.dot(h, whh_ref[layer],
                          preferred_element_type=jnp.float32)
                  + bhh_ref[layer])
            # PyTorch gate order [r | z | n]; each gate block is H_pad wide.
            r = jax.nn.sigmoid(gi[:, 0:H_pad] + gh[:, 0:H_pad])
            z = jax.nn.sigmoid(gi[:, H_pad:2 * H_pad] + gh[:, H_pad:2 * H_pad])
            n = jnp.tanh(gi[:, 2 * H_pad:3 * H_pad]
                         + r * gh[:, 2 * H_pad:3 * H_pad])
            h_new = (1.0 - z) * n + z * h
            if last:
                # Lane-dense slab write: (B_pad, H_pad) block at column t*H_pad.
                col = _aligned(t * H_pad, H_pad)
                y_ref[:, pl.ds(col, H_pad)] = h_new.astype(y_ref.dtype)
            else:
                # Feed next layer in place (cols >= H_pad hit zero W_ih rows).
                x_buf[pl.ds(row, B_pad), 0:H_pad] = h_new
            return h_new

        h_final = jax.lax.fori_loop(0, T, step, h0, unroll=True)
        hT_ref[layer] = h_final.astype(hT_ref.dtype)


class EncoderPallas:
    """JAX/Pallas equivalent of the PyTorch Encoder (eval-mode forward)."""

    def __init__(self, embeddings, hidden_size=32, num_layers=3, dropout=0.5,
                 seed=0):
        # TODO(synk): PyTorch applies dropout between GRU layers only in
        # training mode; eval-mode forward (no dropout) is implemented here.
        self.embeddings = jnp.asarray(embeddings, jnp.float32)   # (vocab, E)
        vocab, E = self.embeddings.shape
        self.embedding_size = E
        self.hidden_size = hidden_size
        self.num_layers = num_layers
        self.dropout_p = dropout

        H = hidden_size
        self.H_pad = _round_up(H, 128)
        self.F_pad = max(_round_up(E, 128), self.H_pad)

        key = jax.random.PRNGKey(seed)
        k = 1.0 / jnp.sqrt(H)
        self.ref_params = []          # unpadded params for the pure-JAX reference
        wih_p, whh_p, bih_p, bhh_p = [], [], [], []
        for layer in range(num_layers):
            in_size = E if layer == 0 else H
            key, k1, k2, k3, k4 = jax.random.split(key, 5)
            w_ih = jax.random.uniform(k1, (3 * H, in_size), minval=-k, maxval=k,
                                      dtype=jnp.float32)
            w_hh = jax.random.uniform(k2, (3 * H, H), minval=-k, maxval=k,
                                      dtype=jnp.float32)
            b_ih = jax.random.uniform(k3, (3 * H,), minval=-k, maxval=k,
                                      dtype=jnp.float32)
            b_hh = jax.random.uniform(k4, (3 * H,), minval=-k, maxval=k,
                                      dtype=jnp.float32)
            self.ref_params.append((w_ih.T, w_hh.T, b_ih, b_hh))
            wih_p.append(self._pad_w(w_ih.T, self.F_pad))
            whh_p.append(self._pad_w(w_hh.T, self.H_pad))
            bih_p.append(self._pad_b(b_ih))
            bhh_p.append(self._pad_b(b_hh))
        self.w_ih = jnp.stack(wih_p)       # (L, F_pad, 3*H_pad)
        self.w_hh = jnp.stack(whh_p)       # (L, H_pad, 3*H_pad)
        self.b_ih = jnp.stack(bih_p)       # (L, 1, 3*H_pad)
        self.b_hh = jnp.stack(bhh_p)       # (L, 1, 3*H_pad)

        # Embedding table padded to F_pad lanes, shaped (vocab, 1, F_pad) so the
        # kernel gathers rows with a dynamic leading-dim index.
        # TODO(synk): for large vocabularies keep the table in HBM and DMA-gather.
        self.emb_pad = (jnp.zeros((vocab, 1, self.F_pad), jnp.float32)
                        .at[:, 0, :E].set(self.embeddings))

    def _pad_w(self, w_t, in_pad):
        """(in_size, 3H) -> (in_pad, 3*H_pad) with each gate in its own 128-block."""
        H, H_pad = self.hidden_size, self.H_pad
        in_size = w_t.shape[0]
        out = jnp.zeros((in_pad, 3 * H_pad), jnp.float32)
        for g in range(3):
            out = out.at[:in_size, g * H_pad:g * H_pad + H].set(
                w_t[:, g * H:(g + 1) * H])
        return out

    def _pad_b(self, b):
        H, H_pad = self.hidden_size, self.H_pad
        out = jnp.zeros((1, 3 * H_pad), jnp.float32)
        for g in range(3):
            out = out.at[0, g * H_pad:g * H_pad + H].set(b[g * H:(g + 1) * H])
        return out

    def init_hidden(self, batch_size):
        return jnp.zeros((self.num_layers, batch_size, self.hidden_size),
                         dtype=jnp.float32)

    def __call__(self, input_tensor, hidden):
        B, T = input_tensor.shape
        H, H_pad, F_pad, L = (self.hidden_size, self.H_pad, self.F_pad,
                              self.num_layers)
        B_pad = _round_up(B, 8)

        tokens = input_tensor.astype(jnp.int32)
        h0 = (jnp.zeros((L, B_pad, H_pad), jnp.float32)
              .at[:, :B, :H].set(hidden.astype(jnp.float32)))

        kernel = functools.partial(
            encoder_gru_kernel, B=B, T=T, B_pad=B_pad, H_pad=H_pad,
            F_pad=F_pad, num_layers=L)

        y_flat, hT = pl.pallas_call(
            kernel,
            out_shape=(
                jax.ShapeDtypeStruct((B_pad, T * H_pad), jnp.float32),
                jax.ShapeDtypeStruct((L, B_pad, H_pad), jnp.float32),
            ),
            in_specs=(
                pl.BlockSpec(memory_space=pltpu.MemorySpace.SMEM),   # tokens
                pl.BlockSpec(memory_space=pltpu.MemorySpace.VMEM),   # embeddings
                pl.BlockSpec(memory_space=pltpu.MemorySpace.VMEM),   # h0
                pl.BlockSpec(memory_space=pltpu.MemorySpace.VMEM),   # W_ih
                pl.BlockSpec(memory_space=pltpu.MemorySpace.VMEM),   # W_hh
                pl.BlockSpec(memory_space=pltpu.MemorySpace.VMEM),   # b_ih
                pl.BlockSpec(memory_space=pltpu.MemorySpace.VMEM),   # b_hh
            ),
            out_specs=(
                pl.BlockSpec(memory_space=pltpu.MemorySpace.VMEM),
                pl.BlockSpec(memory_space=pltpu.MemorySpace.VMEM),
            ),
            scratch_shapes=(
                pltpu.VMEM((T * B_pad, F_pad), jnp.float32),       # x / y staging
                pltpu.VMEM((T * B_pad, 3 * H_pad), jnp.float32),   # gi = x@W_ih
            ),
            compiler_params=pltpu.CompilerParams(
                vmem_limit_bytes=32 * 1024 * 1024),
        )(tokens, self.emb_pad, h0, self.w_ih, self.w_hh, self.b_ih, self.b_hh)

        # (B_pad, T*H_pad) slab -> batch_first (B, T, H); final hidden (L, B, H).
        output = y_flat.reshape(B_pad, T, H_pad)[:B, :, :H]
        hidden_out = hT[:, :B, :H]
        return output, hidden_out


def _gru_reference(enc, input_tensor, hidden):
    """Pure-JAX reference (lax.scan) matching PyTorch GRU semantics."""
    emb = jnp.take(enc.embeddings, input_tensor, axis=0)    # (B, T, E)
    x = jnp.transpose(emb, (1, 0, 2))                       # (T, B, E)
    H = enc.hidden_size
    finals = []
    for layer in range(enc.num_layers):
        w_ih_t, w_hh_t, b_ih, b_hh = enc.ref_params[layer]

        def step(h, x_t, w_ih_t=w_ih_t, w_hh_t=w_hh_t, b_ih=b_ih, b_hh=b_hh):
            gi = x_t @ w_ih_t + b_ih
            gh = h @ w_hh_t + b_hh
            r = jax.nn.sigmoid(gi[:, :H] + gh[:, :H])
            z = jax.nn.sigmoid(gi[:, H:2 * H] + gh[:, H:2 * H])
            n = jnp.tanh(gi[:, 2 * H:] + r * gh[:, 2 * H:])
            h_new = (1.0 - z) * n + z * h
            return h_new, h_new

        hT, ys = jax.lax.scan(step, hidden[layer], x)
        x = ys
        finals.append(hT)
    return jnp.transpose(x, (1, 0, 2)), jnp.stack(finals, axis=0)


if __name__ == "__main__":
    vocab_size = 20
    embedding_size = 16
    hidden_size = 32
    batch = 2
    seq = 8

    key = jax.random.PRNGKey(0)
    k_emb, k_tok = jax.random.split(key)
    embeddings = jax.random.normal(k_emb, (vocab_size, embedding_size),
                                   dtype=jnp.float32)
    input_tensor = jax.random.randint(k_tok, (batch, seq), 0, vocab_size,
                                      dtype=jnp.int32)

    enc = EncoderPallas(embeddings, hidden_size=hidden_size, num_layers=3, seed=0)
    hidden0 = enc.init_hidden(batch)

    output, hidden = enc(input_tensor, hidden0)
    jax.block_until_ready((output, hidden))

    assert output.shape == (batch, seq, hidden_size)
    assert hidden.shape == (3, batch, hidden_size)

    ref_out, ref_hid = _gru_reference(enc, input_tensor, hidden0)
    assert jnp.allclose(output, ref_out, atol=1e-4, rtol=1e-4), \
        float(jnp.max(jnp.abs(output - ref_out)))
    assert jnp.allclose(hidden, ref_hid, atol=1e-4, rtol=1e-4), \
        float(jnp.max(jnp.abs(hidden - ref_hid)))

    print("KERNEL_OK")
</pallas_src>

<mosaic_0001>
module attributes {stable_mosaic.version = 11 : i64} {
  func.func @encoder_gru_kernel(%arg0: memref<2x8xi32, #tpu.memory_space<smem>>, %arg1: memref<20x1x128xf32, #tpu.memory_space<vmem>>, %arg2: memref<3x8x128xf32, #tpu.memory_space<vmem>>, %arg3: memref<3x128x384xf32, #tpu.memory_space<vmem>>, %arg4: memref<3x128x384xf32, #tpu.memory_space<vmem>>, %arg5: memref<3x1x384xf32, #tpu.memory_space<vmem>>, %arg6: memref<3x1x384xf32, #tpu.memory_space<vmem>>, %arg7: memref<8x1024xf32, #tpu.memory_space<vmem>>, %arg8: memref<3x8x128xf32, #tpu.memory_space<vmem>>, %arg9: memref<64x128xf32, #tpu.memory_space<vmem>>, %arg10: memref<64x384xf32, #tpu.memory_space<vmem>>) attributes {dimension_semantics = [], scalar_prefetch = 0 : i64, scratch_operands = 2 : i64, tpu.core_type = #tpu.core_type<tc>} {
    %cst = arith.constant 0.000000e+00 : f32
    %0 = vector.broadcast %cst : f32 to vector<64x128xf32>
    %c0 = arith.constant 0 : index
    %c0_0 = arith.constant 0 : index
    %1 = vector.load %arg9[%c0, %c0_0] : memref<64x128xf32, #tpu.memory_space<vmem>>, vector<64x128xf32>
    tpu.vector_store %arg9[%c0, %c0_0], %0 {strides = array<i32>} : memref<64x128xf32, #tpu.memory_space<vmem>>, vector<64x128xf32>,
    %c0_1 = arith.constant 0 : index
    %c0_2 = arith.constant 0 : index
    %2 = memref.load %arg0[%c0_1, %c0_2] : memref<2x8xi32, #tpu.memory_space<smem>>
    %3 = arith.index_cast %2 : i32 to index
    %c0_3 = arith.constant 0 : index
    %c0_4 = arith.constant 0 : index
    %4 = vector.load %arg1[%3, %c0_3, %c0_4] : memref<20x1x128xf32, #tpu.memory_space<vmem>>, vector<1x1x128xf32>
    %5 = vector.shape_cast %4 : vector<1x1x128xf32> to vector<1x128xf32>
    %c0_5 = arith.constant 0 : index
    %c0_6 = arith.constant 0 : index
    %6 = vector.load %arg9[%c0_5, %c0_6] : memref<64x128xf32, #tpu.memory_space<vmem>>, vector<1x128xf32>
    tpu.vector_store %arg9[%c0_5, %c0_6], %5 {strides = array<i32>} : memref<64x128xf32, #tpu.memory_space<vmem>>, vector<1x128xf32>,
    %c1 = arith.constant 1 : index
    %c0_7 = arith.constant 0 : index
    %7 = memref.load %arg0[%c1, %c0_7] : memref<2x8xi32, #tpu.memory_space<smem>>
    %8 = arith.index_cast %7 : i32 to index
    %c0_8 = arith.constant 0 : index
    %c0_9 = arith.constant 0 : index
    %9 = vector.load %arg1[%8, %c0_8, %c0_9] : memref<20x1x128xf32, #tpu.memory_space<vmem>>, vector<1x1x128xf32>
    %10 = vector.shape_cast %9 : vector<1x1x128xf32> to vector<1x128xf32>
    %c1_10 = arith.constant 1 : index
    %c0_11 = arith.constant 0 : index
    %11 = vector.load %arg9[%c1_10, %c0_11] : memref<64x128xf32, #tpu.memory_space<vmem>>, vector<1x128xf32>
    tpu.vector_store %arg9[%c1_10, %c0_11], %10 {strides = array<i32>} : memref<64x128xf32, #tpu.memory_space<vmem>>, vector<1x128xf32>,
    %c0_12 = arith.constant 0 : index
    %c1_13 = arith.constant 1 : index
    %12 = memref.load %arg0[%c0_12, %c1_13] : memref<2x8xi32, #tpu.memory_space<smem>>
    %13 = arith.index_cast %12 : i32 to index
    %c0_14 = arith.constant 0 : index
    %c0_15 = arith.constant 0 : index
    %14 = vector.load %arg1[%13, %c0_14, %c0_15] : memref<20x1x128xf32, #tpu.memory_space<vmem>>, vector<1x1x128xf32>
    %15 = vector.shape_cast %14 : vector<1x1x128xf32> to vector<1x128xf32>
    %c8 = arith.constant 8 : index
    %c0_16 = arith.constant 0 : index
    %16 = vector.load %arg9[%c8, %c0_16] : memref<64x128xf32, #tpu.memory_space<vmem>>, vector<1x128xf32>
    tpu.vector_store %arg9[%c8, %c0_16], %15 {strides = array<i32>} : memref<64x128xf32, #tpu.memory_space<vmem>>, vector<1x128xf32>,
    %c1_17 = arith.constant 1 : index
    %c1_18 = arith.constant 1 : index
    %17 = memref.load %arg0[%c1_17, %c1_18] : memref<2x8xi32, #tpu.memory_space<smem>>
    %18 = arith.index_cast %17 : i32 to index
    %c0_19 = arith.constant 0 : index
    %c0_20 = arith.constant 0 : index
    %19 = vector.load %arg1[%18, %c0_19, %c0_20] : memref<20x1x128xf32, #tpu.memory_space<vmem>>, vector<1x1x128xf32>
    %20 = vector.shape_cast %19 : vector<1x1x128xf32> to vector<1x128xf32>
    %c9 = arith.constant 9 : index
    %c0_21 = arith.constant 0 : index
    %21 = vector.load %arg9[%c9, %c0_21] : memref<64x128xf32, #tpu.memory_space<vmem>>, vector<1x128xf32>
    tpu.vector_store %arg9[%c9, %c0_21], %20 {strides = array<i32>} : memref<64x128xf32, #tpu.memory_space<vmem>>, vector<1x128xf32>,
    %c0_22 = arith.constant 0 : index
    %c2 = arith.constant 2 : index
    %22 = memref.load %arg0[%c0_22, %c2] : memref<2x8xi32, #tpu.memory_space<smem>>
    %23 = arith.index_cast %22 : i32 to index
    %c0_23 = arith.constant 0 : index
    %c0_24 = arith.constant 0 : index
    %24 = vector.load %arg1[%23, %c0_23, %c0_24] : memref<20x1x128xf32, #tpu.memory_space<vmem>>, vector<1x1x128xf32>
    %25 = vector.shape_cast %24 : vector<1x1x128xf32> to vector<1x128xf32>
    %c16 = arith.constant 16 : index
    %c0_25 = arith.constant 0 : index
    %26 = vector.load %arg9[%c16, %c0_25] : memref<64x128xf32, #tpu.memory_space<vmem>>, vector<1x128xf32>
    tpu.vector_store %arg9[%c16, %c0_25], %25 {strides = array<i32>} : memref<64x128xf32, #tpu.memory_space<vmem>>, vector<1x128xf32>,
    %c1_26 = arith.constant 1 : index
    %c2_27 = arith.constant 2 : index
    %27 = memref.load %arg0[%c1_26, %c2_27] : memref<2x8xi32, #tpu.memory_space<smem>>
    %28 = arith.index_cast %27 : i32 to index
    %c0_28 = arith.constant 0 : index
    %c0_29 = arith.constant 0 : index
    %29 = vector.load %arg1[%28, %c0_28, %c0_29] : memref<20x1x128xf32, #tpu.memory_space<vmem>>, vector<1x1x128xf32>
    %30 = vector.shape_cast %29 : vector<1x1x128xf32> to vector<1x128xf32>
    %c17 = arith.constant 17 : index
    %c0_30 = arith.constant 0 : index
    %31 = vector.load %arg9[%c17, %c0_30] : memref<64x128xf32, #tpu.memory_space<vmem>>, vector<1x128xf32>
    tpu.vector_store %arg9[%c17, %c0_30], %30 {strides = array<i32>} : memref<64x128xf32, #tpu.memory_space<vmem>>, vector<1x128xf32>,
    %c0_31 = arith.constant 0 : index
    %c3 = arith.constant 3 : index
    %32 = memref.load %arg0[%c0_31, %c3] : memref<2x8xi32, #tpu.memory_space<smem>>
    %33 = arith.index_cast %32 : i32 to index
    %c0_32 = arith.constant 0 : index
    %c0_33 = arith.constant 0 : index
    %34 = vector.load %arg1[%33, %c0_32, %c0_33] : memref<20x1x128xf32, #tpu.memory_space<vmem>>, vector<1x1x128xf32>
    %35 = vector.shape_cast %34 : vector<1x1x128xf32> to vector<1x128xf32>
    %c24 = arith.constant 24 : index
    %c0_34 = arith.constant 0 : index
    %36 = vector.load %arg9[%c24, %c0_34] : memref<64x128xf32, #tpu.memory_space<vmem>>, vector<1x128xf32>
    tpu.vector_store %arg9[%c24, %c0_34], %35 {strides = array<i32>} : memref<64x128xf32, #tpu.memory_space<vmem>>, vector<1x128xf32>,
    %c1_35 = arith.constant 1 : index
    %c3_36 = arith.constant 3 : index
    %37 = memref.load %arg0[%c1_35, %c3_36] : memref<2x8xi32, #tpu.memory_space<smem>>
    %38 = arith.index_cast %37 : i32 to index
    %c0_37 = arith.constant 0 : index
    %c0_38 = arith.constant 0 : index
    %39 = vector.load %arg1[%38, %c0_37, %c0_38] : memref<20x1x128xf32, #tpu.memory_space<vmem>>, vector<1x1x128xf32>
    %40 = vector.shape_cast %39 : vector<1x1x128xf32> to vector<1x128xf32>
    %c25 = arith.constant 25 : index
    %c0_39 = arith.constant 0 : index
    %41 = vector.load %arg9[%c25, %c0_39] : memref<64x128xf32, #tpu.memory_space<vmem>>, vector<1x128xf32>
    tpu.vector_store %arg9[%c25, %c0_39], %40 {strides = array<i32>} : memref<64x128xf32, #tpu.memory_space<vmem>>, vector<1x128xf32>,
    %c0_40 = arith.constant 0 : index
    %c4 = arith.constant 4 : index
    %42 = memref.load %arg0[%c0_40, %c4] : memref<2x8xi32, #tpu.memory_space<smem>>
    %43 = arith.index_cast %42 : i32 to index
    %c0_41 = arith.constant 0 : index
    %c0_42 = arith.constant 0 : index
    %44 = vector.load %arg1[%43, %c0_41, %c0_42] : memref<20x1x128xf32, #tpu.memory_space<vmem>>, vector<1x1x128xf32>
    %45 = vector.shape_cast %44 : vector<1x1x128xf32> to vector<1x128xf32>
    %c32 = arith.constant 32 : index
    %c0_43 = arith.constant 0 : index
    %46 = vector.load %arg9[%c32, %c0_43] : memref<64x128xf32, #tpu.memory_space<vmem>>, vector<1x128xf32>
    tpu.vector_store %arg9[%c32, %c0_43], %45 {strides = array<i32>} : memref<64x128xf32, #tpu.memory_space<vmem>>, vector<1x128xf32>,
    %c1_44 = arith.constant 1 : index
    %c4_45 = arith.constant 4 : index
    %47 = memref.load %arg0[%c1_44, %c4_45] : memref<2x8xi32, #tpu.memory_space<smem>>
    %48 = arith.index_cast %47 : i32 to index
    %c0_46 = arith.constant 0 : index
    %c0_47 = arith.constant 0 : index
    %49 = vector.load %arg1[%48, %c0_46, %c0_47] : memref<20x1x128xf32, #tpu.memory_space<vmem>>, vector<1x1x128xf32>
    %50 = vector.shape_cast %49 : vector<1x1x128xf32> to vector<1x128xf32>
    %c33 = arith.constant 33 : index
    %c0_48 = arith.constant 0 : index
    %51 = vector.load %arg9[%c33, %c0_48] : memref<64x128xf32, #tpu.memory_space<vmem>>, vector<1x128xf32>
    tpu.vector_store %arg9[%c33, %c0_48], %50 {strides = array<i32>} : memref<64x128xf32, #tpu.memory_space<vmem>>, vector<1x128xf32>,
    %c0_49 = arith.constant 0 : index
    %c5 = arith.constant 5 : index
    %52 = memref.load %arg0[%c0_49, %c5] : memref<2x8xi32, #tpu.memory_space<smem>>
    %53 = arith.index_cast %52 : i32 to index
    %c0_50 = arith.constant 0 : index
    %c0_51 = arith.constant 0 : index
    %54 = vector.load %arg1[%53, %c0_50, %c0_51] : memref<20x1x128xf32, #tpu.memory_space<vmem>>, vector<1x1x128xf32>
    %55 = vector.shape_cast %54 : vector<1x1x128xf32> to vector<1x128xf32>
    %c40 = arith.constant 40 : index
    %c0_52 = arith.constant 0 : index
    %56 = vector.load %arg9[%c40, %c0_52] : memref<64x128xf32, #tpu.memory_space<vmem>>, vector<1x128xf32>
    tpu.vector_store %arg9[%c40, %c0_52], %55 {strides = array<i32>} : memref<64x128xf32, #tpu.memory_space<vmem>>, vector<1x128xf32>,
    %c1_53 = arith.constant 1 : index
    %c5_54 = arith.constant 5 : index
    %57 = memref.load %arg0[%c1_53, %c5_54] : memref<2x8xi32, #tpu.memory_space<smem>>
    %58 = arith.index_cast %57 : i32 to index
    %c0_55 = arith.constant 0 : index
    %c0_56 = arith.constant 0 : index
    %59 = vector.load %arg1[%58, %c0_55, %c0_56] : memref<20x1x128xf32, #tpu.memory_space<vmem>>, vector<1x1x128xf32>
    %60 = vector.shape_cast %59 : vector<1x1x128xf32> to vector<1x128xf32>
    %c41 = arith.constant 41 : index
    %c0_57 = arith.constant 0 : index
    %61 = vector.load %arg9[%c41, %c0_57] : memref<64x128xf32, #tpu.memory_space<vmem>>, vector<1x128xf32>
    tpu.vector_store %arg9[%c41, %c0_57], %60 {strides = array<i32>} : memref<64x128xf32, #tpu.memory_space<vmem>>, vector<1x128xf32>,
    %c0_58 = arith.constant 0 : index
    %c6 = arith.constant 6 : index
    %62 = memref.load %arg0[%c0_58, %c6] : memref<2x8xi32, #tpu.memory_space<smem>>
    %63 = arith.index_cast %62 : i32 to index
    %c0_59 = arith.constant 0 : index
    %c0_60 = arith.constant 0 : index
    %64 = vector.load %arg1[%63, %c0_59, %c0_60] : memref<20x1x128xf32, #tpu.memory_space<vmem>>, vector<1x1x128xf32>
    %65 = vector.shape_cast %64 : vector<1x1x128xf32> to vector<1x128xf32>
    %c48 = arith.constant 48 : index
    %c0_61 = arith.constant 0 : index
    %66 = vector.load %arg9[%c48, %c0_61] : memref<64x128xf32, #tpu.memory_space<vmem>>, vector<1x128xf32>
    tpu.vector_store %arg9[%c48, %c0_61], %65 {strides = array<i32>} : memref<64x128xf32, #tpu.memory_space<vmem>>, vector<1x128xf32>,
    %c1_62 = arith.constant 1 : index
    %c6_63 = arith.constant 6 : index
    %67 = memref.load %arg0[%c1_62, %c6_63] : memref<2x8xi32, #tpu.memory_space<smem>>
    %68 = arith.index_cast %67 : i32 to index
    %c0_64 = arith.constant 0 : index
    %c0_65 = arith.constant 0 : index
    %69 = vector.load %arg1[%68, %c0_64, %c0_65] : memref<20x1x128xf32, #tpu.memory_space<vmem>>, vector<1x1x128xf32>
    %70 = vector.shape_cast %69 : vector<1x1x128xf32> to vector<1x128xf32>
    %c49 = arith.constant 49 : index
    %c0_66 = arith.constant 0 : index
    %71 = vector.load %arg9[%c49, %c0_66] : memref<64x128xf32, #tpu.memory_space<vmem>>, vector<1x128xf32>
    tpu.vector_store %arg9[%c49, %c0_66], %70 {strides = array<i32>} : memref<64x128xf32, #tpu.memory_space<vmem>>, vector<1x128xf32>,
    %c0_67 = arith.constant 0 : index
    %c7 = arith.constant 7 : index
    %72 = memref.load %arg0[%c0_67, %c7] : memref<2x8xi32, #tpu.memory_space<smem>>
    %73 = arith.index_cast %72 : i32 to index
    %c0_68 = arith.constant 0 : index
    %c0_69 = arith.constant 0 : index
    %74 = vector.load %arg1[%73, %c0_68, %c0_69] : memref<20x1x128xf32, #tpu.memory_space<vmem>>, vector<1x1x128xf32>
    %75 = vector.shape_cast %74 : vector<1x1x128xf32> to vector<1x128xf32>
    %c56 = arith.constant 56 : index
    %c0_70 = arith.constant 0 : index
    %76 = vector.load %arg9[%c56, %c0_70] : memref<64x128xf32, #tpu.memory_space<vmem>>, vector<1x128xf32>
    tpu.vector_store %arg9[%c56, %c0_70], %75 {strides = array<i32>} : memref<64x128xf32, #tpu.memory_space<vmem>>, vector<1x128xf32>,
    %c1_71 = arith.constant 1 : index
    %c7_72 = arith.constant 7 : index
    %77 = memref.load %arg0[%c1_71, %c7_72] : memref<2x8xi32, #tpu.memory_space<smem>>
    %78 = arith.index_cast %77 : i32 to index
    %c0_73 = arith.constant 0 : index
    %c0_74 = arith.constant 0 : index
    %79 = vector.load %arg1[%78, %c0_73, %c0_74] : memref<20x1x128xf32, #tpu.memory_space<vmem>>, vector<1x1x128xf32>
    %80 = vector.shape_cast %79 : vector<1x1x128xf32> to vector<1x128xf32>
    %c57 = arith.constant 57 : index
    %c0_75 = arith.constant 0 : index
    %81 = vector.load %arg9[%c57, %c0_75] : memref<64x128xf32, #tpu.memory_space<vmem>>, vector<1x128xf32>
    tpu.vector_store %arg9[%c57, %c0_75], %80 {strides = array<i32>} : memref<64x128xf32, #tpu.memory_space<vmem>>, vector<1x128xf32>,
    %c0_76 = arith.constant 0 : index
    %c0_77 = arith.constant 0 : index
    %82 = vector.load %arg9[%c0_76, %c0_77] : memref<64x128xf32, #tpu.memory_space<vmem>>, vector<64x128xf32>
    %c0_78 = arith.constant 0 : index
    %c0_79 = arith.constant 0 : index
    %c0_80 = arith.constant 0 : index
    %83 = vector.load %arg3[%c0_78, %c0_79, %c0_80] : memref<3x128x384xf32, #tpu.memory_space<vmem>>, vector<1x128x384xf32>
    %84 = vector.shape_cast %83 : vector<1x128x384xf32> to vector<128x384xf32>
    %cst_81 = arith.constant dense<0.000000e+00> : vector<64x384xf32>
    %85 = tpu.matmul %82, %84, %cst_81 {dimension_numbers = #tpu.dot_dimension_numbers<[1], [0], [0], [1], [0, 0, 1, 1], [], []>} : vector<64x128xf32>, vector<128x384xf32>, vector<64x384xf32> -> vector<64x384xf32>
    %c0_82 = arith.constant 0 : index
    %c0_83 = arith.constant 0 : index
    %c0_84 = arith.constant 0 : index
    %86 = vector.load %arg5[%c0_82, %c0_83, %c0_84] : memref<3x1x384xf32, #tpu.memory_space<vmem>>, vector<1x1x384xf32>
    %87 = vector.shape_cast %86 : vector<1x1x384xf32> to vector<1x384xf32>
    %88 = vector.broadcast %87 : vector<1x384xf32> to vector<64x384xf32>
    %89 = arith.addf %85, %88 : vector<64x384xf32>
    %c0_85 = arith.constant 0 : index
    %c0_86 = arith.constant 0 : index
    %90 = vector.load %arg10[%c0_85, %c0_86] : memref<64x384xf32, #tpu.memory_space<vmem>>, vector<64x384xf32>
    tpu.vector_store %arg10[%c0_85, %c0_86], %89 {strides = array<i32>} : memref<64x384xf32, #tpu.memory_space<vmem>>, vector<64x384xf32>,
    %c0_87 = arith.constant 0 : index
    %c0_88 = arith.constant 0 : index
    %c0_89 = arith.constant 0 : index
    %91 = vector.load %arg2[%c0_87, %c0_88, %c0_89] : memref<3x8x128xf32, #tpu.memory_space<vmem>>, vector<1x8x128xf32>
    %92 = vector.shape_cast %91 : vector<1x8x128xf32> to vector<8x128xf32>
    %c0_i32 = arith.constant 0 : i32
    %c8_i32 = arith.constant 8 : i32
    %93 = arith.muli %c0_i32, %c8_i32 : i32
    %94 = tpu.assume_multiple %93, 8 : i32
    %95 = arith.index_cast %94 : i32 to index
    %c0_90 = arith.constant 0 : index
    %96 = vector.load %arg10[%95, %c0_90] : memref<64x384xf32, #tpu.memory_space<vmem>>, vector<8x384xf32>
    %c0_91 = arith.constant 0 : index
    %c0_92 = arith.constant 0 : index
    %c0_93 = arith.constant 0 : index
    %97 = vector.load %arg4[%c0_91, %c0_92, %c0_93] : memref<3x128x384xf32, #tpu.memory_space<vmem>>, vector<1x128x384xf32>
    %98 = vector.shape_cast %97 : vector<1x128x384xf32> to vector<128x384xf32>
    %cst_94 = arith.constant dense<0.000000e+00> : vector<8x384xf32>
    %99 = tpu.matmul %92, %98, %cst_94 {dimension_numbers = #tpu.dot_dimension_numbers<[1], [0], [0], [1], [0, 0, 1, 1], [], []>} : vector<8x128xf32>, vector<128x384xf32>, vector<8x384xf32> -> vector<8x384xf32>
    %c0_95 = arith.constant 0 : index
    %c0_96 = arith.constant 0 : index
    %c0_97 = arith.constant 0 : index
    %100 = vector.load %arg6[%c0_95, %c0_96, %c0_97] : memref<3x1x384xf32, #tpu.memory_space<vmem>>, vector<1x1x384xf32>
    %101 = vector.shape_cast %100 : vector<1x1x384xf32> to vector<1x384xf32>
    %102 = vector.broadcast %101 : vector<1x384xf32> to vector<8x384xf32>
    %103 = arith.addf %99, %102 : vector<8x384xf32>
    %104 = vector.extract_strided_slice %96 {offsets = [0, 0], sizes = [8, 128], strides = [1, 1]} : vector<8x384xf32> to vector<8x128xf32>
    %105 = vector.extract_strided_slice %103 {offsets = [0, 0], sizes = [8, 128], strides = [1, 1]} : vector<8x384xf32> to vector<8x128xf32>
    %106 = arith.addf %104, %105 : vector<8x128xf32>
    %107 = arith.negf %106 : vector<8x128xf32>
    %108 = math.exp %107 : vector<8x128xf32>
    %cst_98 = arith.constant 1.000000e+00 : f32
    %109 = vector.broadcast %cst_98 : f32 to vector<8x128xf32>
    %110 = arith.addf %109, %108 : vector<8x128xf32>
    %111 = arith.divf %109, %110 : vector<8x128xf32>
    %112 = vector.extract_strided_slice %96 {offsets = [0, 128], sizes = [8, 128], strides = [1, 1]} : vector<8x384xf32> to vector<8x128xf32>
    %113 = vector.extract_strided_slice %103 {offsets = [0, 128], sizes = [8, 128], strides = [1, 1]} : vector<8x384xf32> to vector<8x128xf32>
    %114 = arith.addf %112, %113 : vector<8x128xf32>
    %115 = arith.negf %114 : vector<8x128xf32>
    %116 = math.exp %115 : vector<8x128xf32>
    %cst_99 = arith.constant 1.000000e+00 : f32
    %117 = vector.broadcast %cst_99 : f32 to vector<8x128xf32>
    %118 = arith.addf %117, %116 : vector<8x128xf32>
    %119 = arith.divf %117, %118 : vector<8x128xf32>
    %120 = vector.extract_strided_slice %96 {offsets = [0, 256], sizes = [8, 128], strides = [1, 1]} : vector<8x384xf32> to vector<8x128xf32>
    %121 = vector.extract_strided_slice %103 {offsets = [0, 256], sizes = [8, 128], strides = [1, 1]} : vector<8x384xf32> to vector<8x128xf32>
    %122 = arith.mulf %111, %121 : vector<8x128xf32>
    %123 = arith.addf %120, %122 : vector<8x128xf32>
    %124 = math.tanh %123 : vector<8x128xf32>
    %cst_100 = arith.constant 1.000000e+00 : f32
    %125 = vector.broadcast %cst_100 : f32 to vector<8x128xf32>
    %126 = arith.subf %125, %119 : vector<8x128xf32>
    %127 = arith.mulf %126, %124 : vector<8x128xf32>
    %128 = arith.mulf %119, %92 : vector<8x128xf32>
    %129 = arith.addf %127, %128 : vector<8x128xf32>
    %130 = arith.index_cast %94 : i32 to index
    %c0_101 = arith.constant 0 : index
    %131 = vector.load %arg9[%130, %c0_101] : memref<64x128xf32, #tpu.memory_space<vmem>>, vector<8x128xf32>
    tpu.vector_store %arg9[%130, %c0_101], %129 {strides = array<i32>} : memref<64x128xf32, #tpu.memory_space<vmem>>, vector<8x128xf32>,
    %c1_i32 = arith.constant 1 : i32
    %c8_i32_102 = arith.constant 8 : i32
    %132 = arith.muli %c1_i32, %c8_i32_102 : i32
    %133 = tpu.assume_multiple %132, 8 : i32
    %134 = arith.index_cast %133 : i32 to index
    %c0_103 = arith.constant 0 : index
    %135 = vector.load %arg10[%134, %c0_103] : memref<64x384xf32, #tpu.memory_space<vmem>>, vector<8x384xf32>
    %c0_104 = arith.constant 0 : index
    %c0_105 = arith.constant 0 : index
    %c0_106 = arith.constant 0 : index
    %136 = vector.load %arg4[%c0_104, %c0_105, %c0_106] : memref<3x128x384xf32, #tpu.memory_space<vmem>>, vector<1x128x384xf32>
    %137 = vector.shape_cast %136 : vector<1x128x384xf32> to vector<128x384xf32>
    %cst_107 = arith.constant dense<0.000000e+00> : vector<8x384xf32>
    %138 = tpu.matmul %129, %137, %cst_107 {dimension_numbers = #tpu.dot_dimension_numbers<[1], [0], [0], [1], [0, 0, 1, 1], [], []>} : vector<8x128xf32>, vector<128x384xf32>, vector<8x384xf32> -> vector<8x384xf32>
    %c0_108 = arith.constant 0 : index
    %c0_109 = arith.constant 0 : index
    %c0_110 = arith.constant 0 : index
    %139 = vector.load %arg6[%c0_108, %c0_109, %c0_110] : memref<3x1x384xf32, #tpu.memory_space<vmem>>, vector<1x1x384xf32>
    %140 = vector.shape_cast %139 : vector<1x1x384xf32> to vector<1x384xf32>
    %141 = vector.broadcast %140 : vector<1x384xf32> to vector<8x384xf32>
    %142 = arith.addf %138, %141 : vector<8x384xf32>
    %143 = vector.extract_strided_slice %135 {offsets = [0, 0], sizes = [8, 128], strides = [1, 1]} : vector<8x384xf32> to vector<8x128xf32>
    %144 = vector.extract_strided_slice %142 {offsets = [0, 0], sizes = [8, 128], strides = [1, 1]} : vector<8x384xf32> to vector<8x128xf32>
    %145 = arith.addf %143, %144 : vector<8x128xf32>
    %146 = arith.negf %145 : vector<8x128xf32>
    %147 = math.exp %146 : vector<8x128xf32>
    %cst_111 = arith.constant 1.000000e+00 : f32
    %148 = vector.broadcast %cst_111 : f32 to vector<8x128xf32>
    %149 = arith.addf %148, %147 : vector<8x128xf32>
    %150 = arith.divf %148, %149 : vector<8x128xf32>
    %151 = vector.extract_strided_slice %135 {offsets = [0, 128], sizes = [8, 128], strides = [1, 1]} : vector<8x384xf32> to vector<8x128xf32>
    %152 = vector.extract_strided_slice %142 {offsets = [0, 128], sizes = [8, 128], strides = [1, 1]} : vector<8x384xf32> to vector<8x128xf32>
    %153 = arith.addf %151, %152 : vector<8x128xf32>
    %154 = arith.negf %153 : vector<8x128xf32>
    %155 = math.exp %154 : vector<8x128xf32>
    %cst_112 = arith.constant 1.000000e+00 : f32
    %156 = vector.broadcast %cst_112 : f32 to vector<8x128xf32>
    %157 = arith.addf %156, %155 : vector<8x128xf32>
    %158 = arith.divf %156, %157 : vector<8x128xf32>
    %159 = vector.extract_strided_slice %135 {offsets = [0, 256], sizes = [8, 128], strides = [1, 1]} : vector<8x384xf32> to vector<8x128xf32>
    %160 = vector.extract_strided_slice %142 {offsets = [0, 256], sizes = [8, 128], strides = [1, 1]} : vector<8x384xf32> to vector<8x128xf32>
    %161 = arith.mulf %150, %160 : vector<8x128xf32>
    %162 = arith.addf %159, %161 : vector<8x128xf32>
    %163 = math.tanh %162 : vector<8x128xf32>
    %cst_113 = arith.constant 1.000000e+00 : f32
    %164 = vector.broadcast %cst_113 : f32 to vector<8x128xf32>
    %165 = arith.subf %164, %158 : vector<8x128xf32>
    %166 = arith.mulf %165, %163 : vector<8x128xf32>
    %167 = arith.mulf %158, %129 : vector<8x128xf32>
    %168 = arith.addf %166, %167 : vector<8x128xf32>
    %169 = arith.index_cast %133 : i32 to index
    %c0_114 = arith.constant 0 : index
    %170 = vector.load %arg9[%169, %c0_114] : memref<64x128xf32, #tpu.memory_space<vmem>>, vector<8x128xf32>
    tpu.vector_store %arg9[%169, %c0_114], %168 {strides = array<i32>} : memref<64x128xf32, #tpu.memory_space<vmem>>, vector<8x128xf32>,
    %c2_i32 = arith.constant 2 : i32
    %c8_i32_115 = arith.constant 8 : i32
    %171 = arith.muli %c2_i32, %c8_i32_115 : i32
    %172 = tpu.assume_multiple %171, 8 : i32
    %173 = arith.index_cast %172 : i32 to index
    %c0_116 = arith.constant 0 : index
    %174 = vector.load %arg10[%173, %c0_116] : memref<64x384xf32, #tpu.memory_space<vmem>>, vector<8x384xf32>
    %c0_117 = arith.constant 0 : index
    %c0_118 = arith.constant 0 : index
    %c0_119 = arith.constant 0 : index
    %175 = vector.load %arg4[%c0_117, %c0_118, %c0_119] : memref<3x128x384xf32, #tpu.memory_space<vmem>>, vector<1x128x384xf32>
    %176 = vector.shape_cast %175 : vector<1x128x384xf32> to vector<128x384xf32>
    %cst_120 = arith.constant dense<0.000000e+00> : vector<8x384xf32>
    %177 = tpu.matmul %168, %176, %cst_120 {dimension_numbers = #tpu.dot_dimension_numbers<[1], [0], [0], [1], [0, 0, 1, 1], [], []>} : vector<8x128xf32>, vector<128x384xf32>, vector<8x384xf32> -> vector<8x384xf32>
    %c0_121 = arith.constant 0 : index
    %c0_122 = arith.constant 0 : index
    %c0_123 = arith.constant 0 : index
    %178 = vector.load %arg6[%c0_121, %c0_122, %c0_123] : memref<3x1x384xf32, #tpu.memory_space<vmem>>, vector<1x1x384xf32>
    %179 = vector.shape_cast %178 : vector<1x1x384xf32> to vector<1x384xf32>
    %180 = vector.broadcast %179 : vector<1x384xf32> to vector<8x384xf32>
    %181 = arith.addf %177, %180 : vector<8x384xf32>
    %182 = vector.extract_strided_slice %174 {offsets = [0, 0], sizes = [8, 128], strides = [1, 1]} : vector<8x384xf32> to vector<8x128xf32>
    %183 = vector.extract_strided_slice %181 {offsets = [0, 0], sizes = [8, 128], strides = [1, 1]} : vector<8x384xf32> to vector<8x128xf32>
    %184 = arith.addf %182, %183 : vector<8x128xf32>
    %185 = arith.negf %184 : vector<8x128xf32>
    %186 = math.exp %185 : vector<8x128xf32>
    %cst_124 = arith.constant 1.000000e+00 : f32
    %187 = vector.broadcast %cst_124 : f32 to vector<8x128xf32>
    %188 = arith.addf %187, %186 : vector<8x128xf32>
    %189 = arith.divf %187, %188 : vector<8x128xf32>
    %190 = vector.extract_strided_slice %174 {offsets = [0, 128], sizes = [8, 128], strides = [1, 1]} : vector<8x384xf32> to vector<8x128xf32>
    %191 = vector.extract_strided_slice %181 {offsets = [0, 128], sizes = [8, 128], strides = [1, 1]} : vector<8x384xf32> to vector<8x128xf32>
    %192 = arith.addf %190, %191 : vector<8x128xf32>
    %193 = arith.negf %192 : vector<8x128xf32>
    %194 = math.exp %193 : vector<8x128xf32>
    %cst_125 = arith.constant 1.000000e+00 : f32
    %195 = vector.broadcast %cst_125 : f32 to vector<8x128xf32>
    %196 = arith.addf %195, %194 : vector<8x128xf32>
    %197 = arith.divf %195, %196 : vector<8x128xf32>
    %198 = vector.extract_strided_slice %174 {offsets = [0, 256], sizes = [8, 128], strides = [1, 1]} : vector<8x384xf32> to vector<8x128xf32>
    %199 = vector.extract_strided_slice %181 {offsets = [0, 256], sizes = [8, 128], strides = [1, 1]} : vector<8x384xf32> to vector<8x128xf32>
    %200 = arith.mulf %189, %199 : vector<8x128xf32>
    %201 = arith.addf %198, %200 : vector<8x128xf32>
    %202 = math.tanh %201 : vector<8x128xf32>
    %cst_126 = arith.constant 1.000000e+00 : f32
    %203 = vector.broadcast %cst_126 : f32 to vector<8x128xf32>
    %204 = arith.subf %203, %197 : vector<8x128xf32>
    %205 = arith.mulf %204, %202 : vector<8x128xf32>
    %206 = arith.mulf %197, %168 : vector<8x128xf32>
    %207 = arith.addf %205, %206 : vector<8x128xf32>
    %208 = arith.index_cast %172 : i32 to index
    %c0_127 = arith.constant 0 : index
    %209 = vector.load %arg9[%208, %c0_127] : memref<64x128xf32, #tpu.memory_space<vmem>>, vector<8x128xf32>
    tpu.vector_store %arg9[%208, %c0_127], %207 {strides = array<i32>} : memref<64x128xf32, #tpu.memory_space<vmem>>, vector<8x128xf32>,
    %c3_i32 = arith.constant 3 : i32
    %c8_i32_128 = arith.constant 8 : i32
    %210 = arith.muli %c3_i32, %c8_i32_128 : i32
    %211 = tpu.assume_multiple %210, 8 : i32
    %212 = arith.index_cast %211 : i32 to index
    %c0_129 = arith.constant 0 : index
    %213 = vector.load %arg10[%212, %c0_129] : memref<64x384xf32, #tpu.memory_space<vmem>>, vector<8x384xf32>
    %c0_130 = arith.constant 0 : index
    %c0_131 = arith.constant 0 : index
    %c0_132 = arith.constant 0 : index
    %214 = vector.load %arg4[%c0_130, %c0_131, %c0_132] : memref<3x128x384xf32, #tpu.memory_space<vmem>>, vector<1x128x384xf32>
    %215 = vector.shape_cast %214 : vector<1x128x384xf32> to vector<128x384xf32>
    %cst_133 = arith.constant dense<0.000000e+00> : vector<8x384xf32>
    %216 = tpu.matmul %207, %215, %cst_133 {dimension_numbers = #tpu.dot_dimension_numbers<[1], [0], [0], [1], [0, 0, 1, 1], [], []>} : vector<8x128xf32>, vector<128x384xf32>, vector<8x384xf32> -> vector<8x384xf32>
    %c0_134 = arith.constant 0 : index
    %c0_135 = arith.constant 0 : index
    %c0_136 = arith.constant 0 : index
    %217 = vector.load %arg6[%c0_134, %c0_135, %c0_136] : memref<3x1x384xf32, #tpu.memory_space<vmem>>, vector<1x1x384xf32>
    %218 = vector.shape_cast %217 : vector<1x1x384xf32> to vector<1x384xf32>
    %219 = vector.broadcast %218 : vector<1x384xf32> to vector<8x384xf32>
    %220 = arith.addf %216, %219 : vector<8x384xf32>
    %221 = vector.extract_strided_slice %213 {offsets = [0, 0], sizes = [8, 128], strides = [1, 1]} : vector<8x384xf32> to vector<8x128xf32>
    %222 = vector.extract_strided_slice %220 {offsets = [0, 0], sizes = [8, 128], strides = [1, 1]} : vector<8x384xf32> to vector<8x128xf32>
    %223 = arith.addf %221, %222 : vector<8x128xf32>
    %224 = arith.negf %223 : vector<8x128xf32>
    %225 = math.exp %224 : vector<8x128xf32>
    %cst_137 = arith.constant 1.000000e+00 : f32
    %226 = vector.broadcast %cst_137 : f32 to vector<8x128xf32>
    %227 = arith.addf %226, %225 : vector<8x128xf32>
    %228 = arith.divf %226, %227 : vector<8x128xf32>
    %229 = vector.extract_strided_slice %213 {offsets = [0, 128], sizes = [8, 128], strides = [1, 1]} : vector<8x384xf32> to vector<8x128xf32>
    %230 = vector.extract_strided_slice %220 {offsets = [0, 128], sizes = [8, 128], strides = [1, 1]} : vector<8x384xf32> to vector<8x128xf32>
    %231 = arith.addf %229, %230 : vector<8x128xf32>
    %232 = arith.negf %231 : vector<8x128xf32>
    %233 = math.exp %232 : vector<8x128xf32>
    %cst_138 = arith.constant 1.000000e+00 : f32
    %234 = vector.broadcast %cst_138 : f32 to vector<8x128xf32>
    %235 = arith.addf %234, %233 : vector<8x128xf32>
    %236 = arith.divf %234, %235 : vector<8x128xf32>
    %237 = vector.extract_strided_slice %213 {offsets = [0, 256], sizes = [8, 128], strides = [1, 1]} : vector<8x384xf32> to vector<8x128xf32>
    %238 = vector.extract_strided_slice %220 {offsets = [0, 256], sizes = [8, 128], strides = [1, 1]} : vector<8x384xf32> to vector<8x128xf32>
    %239 = arith.mulf %228, %238 : vector<8x128xf32>
    %240 = arith.addf %237, %239 : vector<8x128xf32>
    %241 = math.tanh %240 : vector<8x128xf32>
    %cst_139 = arith.constant 1.000000e+00 : f32
    %242 = vector.broadcast %cst_139 : f32 to vector<8x128xf32>
    %243 = arith.subf %242, %236 : vector<8x128xf32>
    %244 = arith.mulf %243, %241 : vector<8x128xf32>
    %245 = arith.mulf %236, %207 : vector<8x128xf32>
    %246 = arith.addf %244, %245 : vector<8x128xf32>
    %247 = arith.index_cast %211 : i32 to index
    %c0_140 = arith.constant 0 : index
    %248 = vector.load %arg9[%247, %c0_140] : memref<64x128xf32, #tpu.memory_space<vmem>>, vector<8x128xf32>
    tpu.vector_store %arg9[%247, %c0_140], %246 {strides = array<i32>} : memref<64x128xf32, #tpu.memory_space<vmem>>, vector<8x128xf32>,
    %c4_i32 = arith.constant 4 : i32
    %c8_i32_141 = arith.constant 8 : i32
    %249 = arith.muli %c4_i32, %c8_i32_141 : i32
    %250 = tpu.assume_multiple %249, 8 : i32
    %251 = arith.index_cast %250 : i32 to index
    %c0_142 = arith.constant 0 : index
    %252 = vector.load %arg10[%251, %c0_142] : memref<64x384xf32, #tpu.memory_space<vmem>>, vector<8x384xf32>
    %c0_143 = arith.constant 0 : index
    %c0_144 = arith.constant 0 : index
    %c0_145 = arith.constant 0 : index
    %253 = vector.load %arg4[%c0_143, %c0_144, %c0_145] : memref<3x128x384xf32, #tpu.memory_space<vmem>>, vector<1x128x384xf32>
    %254 = vector.shape_cast %253 : vector<1x128x384xf32> to vector<128x384xf32>
    %cst_146 = arith.constant dense<0.000000e+00> : vector<8x384xf32>
    %255 = tpu.matmul %246, %254, %cst_146 {dimension_numbers = #tpu.dot_dimension_numbers<[1], [0], [0], [1], [0, 0, 1, 1], [], []>} : vector<8x128xf32>, vector<128x384xf32>, vector<8x384xf32> -> vector<8x384xf32>
    %c0_147 = arith.constant 0 : index
    %c0_148 = arith.constant 0 : index
    %c0_149 = arith.constant 0 : index
    %256 = vector.load %arg6[%c0_147, %c0_148, %c0_149] : memref<3x1x384xf32, #tpu.memory_space<vmem>>, vector<1x1x384xf32>
    %257 = vector.shape_cast %256 : vector<1x1x384xf32> to vector<1x384xf32>
    %258 = vector.broadcast %257 : vector<1x384xf32> to vector<8x384xf32>
    %259 = arith.addf %255, %258 : vector<8x384xf32>
    %260 = vector.extract_strided_slice %252 {offsets = [0, 0], sizes = [8, 128], strides = [1, 1]} : vector<8x384xf32> to vector<8x128xf32>
    %261 = vector.extract_strided_slice %259 {offsets = [0, 0], sizes = [8, 128], strides = [1, 1]} : vector<8x384xf32> to vector<8x128xf32>
    %262 = arith.addf %260, %261 : vector<8x128xf32>
    %263 = arith.negf %262 : vector<8x128xf32>
    %264 = math.exp %263 : vector<8x128xf32>
    %cst_150 = arith.constant 1.000000e+00 : f32
    %265 = vector.broadcast %cst_150 : f32 to vector<8x128xf32>
    %266 = arith.addf %265, %264 : vector<8x128xf32>
    %267 = arith.divf %265, %266 : vector<8x128xf32>
    %268 = vector.extract_strided_slice %252 {offsets = [0, 128], sizes = [8, 128], strides = [1, 1]} : vector<8x384xf32> to vector<8x128xf32>
    %269 = vector.extract_strided_slice %259 {offsets = [0, 128], sizes = [8, 128], strides = [1, 1]} : vector<8x384xf32> to vector<8x128xf32>
    %270 = arith.addf %268, %269 : vector<8x128xf32>
    %271 = arith.negf %270 : vector<8x128xf32>
    %272 = math.exp %271 : vector<8x128xf32>
    %cst_151 = arith.constant 1.000000e+00 : f32
    %273 = vector.broadcast %cst_151 : f32 to vector<8x128xf32>
    %274 = arith.addf %273, %272 : vector<8x128xf32>
    %275 = arith.divf %273, %274 : vector<8x128xf32>
    %276 = vector.extract_strided_slice %252 {offsets = [0, 256], sizes = [8, 128], strides = [1, 1]} : vector<8x384xf32> to vector<8x128xf32>
    %277 = vector.extract_strided_slice %259 {offsets = [0, 256], sizes = [8, 128], strides = [1, 1]} : vector<8x384xf32> to vector<8x128xf32>
    %278 = arith.mulf %267, %277 : vector<8x128xf32>
    %279 = arith.addf %276, %278 : vector<8x128xf32>
    %280 = math.tanh %279 : vector<8x128xf32>
    %cst_152 = arith.constant 1.000000e+00 : f32
    %281 = vector.broadcast %cst_152 : f32 to vector<8x128xf32>
    %282 = arith.subf %281, %275 : vector<8x128xf32>
    %283 = arith.mulf %282, %280 : vector<8x128xf32>
    %284 = arith.mulf %275, %246 : vector<8x128xf32>
    %285 = arith.addf %283, %284 : vector<8x128xf32>
    %286 = arith.index_cast %250 : i32 to index
    %c0_153 = arith.constant 0 : index
    %287 = vector.load %arg9[%286, %c0_153] : memref<64x128xf32, #tpu.memory_space<vmem>>, vector<8x128xf32>
    tpu.vector_store %arg9[%286, %c0_153], %285 {strides = array<i32>} : memref<64x128xf32, #tpu.memory_space<vmem>>, vector<8x128xf32>,
    %c5_i32 = arith.constant 5 : i32
    %c8_i32_154 = arith.constant 8 : i32
    %288 = arith.muli %c5_i32, %c8_i32_154 : i32
    %289 = tpu.assume_multiple %288, 8 : i32
    %290 = arith.index_cast %289 : i32 to index
    %c0_155 = arith.constant 0 : index
    %291 = vector.load %arg10[%290, %c0_155] : memref<64x384xf32, #tpu.memory_space<vmem>>, vector<8x384xf32>
    %c0_156 = arith.constant 0 : index
    %c0_157 = arith.constant 0 : index
    %c0_158 = arith.constant 0 : index
    %292 = vector.load %arg4[%c0_156, %c0_157, %c0_158] : memref<3x128x384xf32, #tpu.memory_space<vmem>>, vector<1x128x384xf32>
    %293 = vector.shape_cast %292 : vector<1x128x384xf32> to vector<128x384xf32>
    %cst_159 = arith.constant dense<0.000000e+00> : vector<8x384xf32>
    %294 = tpu.matmul %285, %293, %cst_159 {dimension_numbers = #tpu.dot_dimension_numbers<[1], [0], [0], [1], [0, 0, 1, 1], [], []>} : vector<8x128xf32>, vector<128x384xf32>, vector<8x384xf32> -> vector<8x384xf32>
    %c0_160 = arith.constant 0 : index
    %c0_161 = arith.constant 0 : index
    %c0_162 = arith.constant 0 : index
    %295 = vector.load %arg6[%c0_160, %c0_161, %c0_162] : memref<3x1x384xf32, #tpu.memory_space<vmem>>, vector<1x1x384xf32>
    %296 = vector.shape_cast %295 : vector<1x1x384xf32> to vector<1x384xf32>
    %297 = vector.broadcast %296 : vector<1x384xf32> to vector<8x384xf32>
    %298 = arith.addf %294, %297 : vector<8x384xf32>
    %299 = vector.extract_strided_slice %291 {offsets = [0, 0], sizes = [8, 128], strides = [1, 1]} : vector<8x384xf32> to vector<8x128xf32>
    %300 = vector.extract_strided_slice %298 {offsets = [0, 0], sizes = [8, 128], strides = [1, 1]} : vector<8x384xf32> to vector<8x128xf32>
    %301 = arith.addf %299, %300 : vector<8x128xf32>
    %302 = arith.negf %301 : vector<8x128xf32>
    %303 = math.exp %302 : vector<8x128xf32>
    %cst_163 = arith.constant 1.000000e+00 : f32
    %304 = vector.broadcast %cst_163 : f32 to vector<8x128xf32>
    %305 = arith.addf %304, %303 : vector<8x128xf32>
    %306 = arith.divf %304, %305 : vector<8x128xf32>
    %307 = vector.extract_strided_slice %291 {offsets = [0, 128], sizes = [8, 128], strides = [1, 1]} : vector<8x384xf32> to vector<8x128xf32>
    %308 = vector.extract_strided_slice %298 {offsets = [0, 128], sizes = [8, 128], strides = [1, 1]} : vector<8x384xf32> to vector<8x128xf32>
    %309 = arith.addf %307, %308 : vector<8x128xf32>
    %310 = arith.negf %309 : vector<8x128xf32>
    %311 = math.exp %310 : vector<8x128xf32>
    %cst_164 = arith.constant 1.000000e+00 : f32
    %312 = vector.broadcast %cst_164 : f32 to vector<8x128xf32>
    %313 = arith.addf %312, %311 : vector<8x128xf32>
    %314 = arith.divf %312, %313 : vector<8x128xf32>
    %315 = vector.extract_strided_slice %291 {offsets = [0, 256], sizes = [8, 128], strides = [1, 1]} : vector<8x384xf32> to vector<8x128xf32>
    %316 = vector.extract_strided_slice %298 {offsets = [0, 256], sizes = [8, 128], strides = [1, 1]} : vector<8x384xf32> to vector<8x128xf32>
    %317 = arith.mulf %306, %316 : vector<8x128xf32>
    %318 = arith.addf %315, %317 : vector<8x128xf32>
    %319 = math.tanh %318 : vector<8x128xf32>
    %cst_165 = arith.constant 1.000000e+00 : f32
    %320 = vector.broadcast %cst_165 : f32 to vector<8x128xf32>
    %321 = arith.subf %320, %314 : vector<8x128xf32>
    %322 = arith.mulf %321, %319 : vector<8x128xf32>
    %323 = arith.mulf %314, %285 : vector<8x128xf32>
    %324 = arith.addf %322, %323 : vector<8x128xf32>
    %325 = arith.index_cast %289 : i32 to index
    %c0_166 = arith.constant 0 : index
    %326 = vector.load %arg9[%325, %c0_166] : memref<64x128xf32, #tpu.memory_space<vmem>>, vector<8x128xf32>
    tpu.vector_store %arg9[%325, %c0_166], %324 {strides = array<i32>} : memref<64x128xf32, #tpu.memory_space<vmem>>, vector<8x128xf32>,
    %c6_i32 = arith.constant 6 : i32
    %c8_i32_167 = arith.constant 8 : i32
    %327 = arith.muli %c6_i32, %c8_i32_167 : i32
    %328 = tpu.assume_multiple %327, 8 : i32
    %329 = arith.index_cast %328 : i32 to index
    %c0_168 = arith.constant 0 : index
    %330 = vector.load %arg10[%329, %c0_168] : memref<64x384xf32, #tpu.memory_space<vmem>>, vector<8x384xf32>
    %c0_169 = arith.constant 0 : index
    %c0_170 = arith.constant 0 : index
    %c0_171 = arith.constant 0 : index
    %331 = vector.load %arg4[%c0_169, %c0_170, %c0_171] : memref<3x128x384xf32, #tpu.memory_space<vmem>>, vector<1x128x384xf32>
    %332 = vector.shape_cast %331 : vector<1x128x384xf32> to vector<128x384xf32>
    %cst_172 = arith.constant dense<0.000000e+00> : vector<8x384xf32>
    %333 = tpu.matmul %324, %332, %cst_172 {dimension_numbers = #tpu.dot_dimension_numbers<[1], [0], [0], [1], [0, 0, 1, 1], [], []>} : vector<8x128xf32>, vector<128x384xf32>, vector<8x384xf32> -> vector<8x384xf32>
    %c0_173 = arith.constant 0 : index
    %c0_174 = arith.constant 0 : index
    %c0_175 = arith.constant 0 : index
    %334 = vector.load %arg6[%c0_173, %c0_174, %c0_175] : memref<3x1x384xf32, #tpu.memory_space<vmem>>, vector<1x1x384xf32>
    %335 = vector.shape_cast %334 : vector<1x1x384xf32> to vector<1x384xf32>
    %336 = vector.broadcast %335 : vector<1x384xf32> to vector<8x384xf32>
    %337 = arith.addf %333, %336 : vector<8x384xf32>
    %338 = vector.extract_strided_slice %330 {offsets = [0, 0], sizes = [8, 128], strides = [1, 1]} : vector<8x384xf32> to vector<8x128xf32>
    %339 = vector.extract_strided_slice %337 {offsets = [0, 0], sizes = [8, 128], strides = [1, 1]} : vector<8x384xf32> to vector<8x128xf32>
    %340 = arith.addf %338, %339 : vector<8x128xf32>
    %341 = arith.negf %340 : vector<8x128xf32>
    %342 = math.exp %341 : vector<8x128xf32>
    %cst_176 = arith.constant 1.000000e+00 : f32
    %343 = vector.broadcast %cst_176 : f32 to vector<8x128xf32>
    %344 = arith.addf %343, %342 : vector<8x128xf32>
    %345 = arith.divf %343, %344 : vector<8x128xf32>
    %346 = vector.extract_strided_slice %330 {offsets = [0, 128], sizes = [8, 128], strides = [1, 1]} : vector<8x384xf32> to vector<8x128xf32>
    %347 = vector.extract_strided_slice %337 {offsets = [0, 128], sizes = [8, 128], strides = [1, 1]} : vector<8x384xf32> to vector<8x128xf32>
    %348 = arith.addf %346, %347 : vector<8x128xf32>
    %349 = arith.negf %348 : vector<8x128xf32>
    %350 = math.exp %349 : vector<8x128xf32>
    %cst_177 = arith.constant 1.000000e+00 : f32
    %351 = vector.broadcast %cst_177 : f32 to vector<8x128xf32>
    %352 = arith.addf %351, %350 : vector<8x128xf32>
    %353 = arith.divf %351, %352 : vector<8x128xf32>
    %354 = vector.extract_strided_slice %330 {offsets = [0, 256], sizes = [8, 128], strides = [1, 1]} : vector<8x384xf32> to vector<8x128xf32>
    %355 = vector.extract_strided_slice %337 {offsets = [0, 256], sizes = [8, 128], strides = [1, 1]} : vector<8x384xf32> to vector<8x128xf32>
    %356 = arith.mulf %345, %355 : vector<8x128xf32>
    %357 = arith.addf %354, %356 : vector<8x128xf32>
    %358 = math.tanh %357 : vector<8x128xf32>
    %cst_178 = arith.constant 1.000000e+00 : f32
    %359 = vector.broadcast %cst_178 : f32 to vector<8x128xf32>
    %360 = arith.subf %359, %353 : vector<8x128xf32>
    %361 = arith.mulf %360, %358 : vector<8x128xf32>
    %362 = arith.mulf %353, %324 : vector<8x128xf32>
    %363 = arith.addf %361, %362 : vector<8x128xf32>
    %364 = arith.index_cast %328 : i32 to index
    %c0_179 = arith.constant 0 : index
    %365 = vector.load %arg9[%364, %c0_179] : memref<64x128xf32, #tpu.memory_space<vmem>>, vector<8x128xf32>
    tpu.vector_store %arg9[%364, %c0_179], %363 {strides = array<i32>} : memref<64x128xf32, #tpu.memory_space<vmem>>, vector<8x128xf32>,
    %c7_i32 = arith.constant 7 : i32
    %c8_i32_180 = arith.constant 8 : i32
    %366 = arith.muli %c7_i32, %c8_i32_180 : i32
    %367 = tpu.assume_multiple %366, 8 : i32
    %368 = arith.index_cast %367 : i32 to index
    %c0_181 = arith.constant 0 : index
    %369 = vector.load %arg10[%368, %c0_181] : memref<64x384xf32, #tpu.memory_space<vmem>>, vector<8x384xf32>
    %c0_182 = arith.constant 0 : index
    %c0_183 = arith.constant 0 : index
    %c0_184 = arith.constant 0 : index
    %370 = vector.load %arg4[%c0_182, %c0_183, %c0_184] : memref<3x128x384xf32, #tpu.memory_space<vmem>>, vector<1x128x384xf32>
    %371 = vector.shape_cast %370 : vector<1x128x384xf32> to vector<128x384xf32>
    %cst_185 = arith.constant dense<0.000000e+00> : vector<8x384xf32>
    %372 = tpu.matmul %363, %371, %cst_185 {dimension_numbers = #tpu.dot_dimension_numbers<[1], [0], [0], [1], [0, 0, 1, 1], [], []>} : vector<8x128xf32>, vector<128x384xf32>, vector<8x384xf32> -> vector<8x384xf32>
    %c0_186 = arith.constant 0 : index
    %c0_187 = arith.constant 0 : index
    %c0_188 = arith.constant 0 : index
    %373 = vector.load %arg6[%c0_186, %c0_187, %c0_188] : memref<3x1x384xf32, #tpu.memory_space<vmem>>, vector<1x1x384xf32>
    %374 = vector.shape_cast %373 : vector<1x1x384xf32> to vector<1x384xf32>
    %375 = vector.broadcast %374 : vector<1x384xf32> to vector<8x384xf32>
    %376 = arith.addf %372, %375 : vector<8x384xf32>
    %377 = vector.extract_strided_slice %369 {offsets = [0, 0], sizes = [8, 128], strides = [1, 1]} : vector<8x384xf32> to vector<8x128xf32>
    %378 = vector.extract_strided_slice %376 {offsets = [0, 0], sizes = [8, 128], strides = [1, 1]} : vector<8x384xf32> to vector<8x128xf32>
    %379 = arith.addf %377, %378 : vector<8x128xf32>
    %380 = arith.negf %379 : vector<8x128xf32>
    %381 = math.exp %380 : vector<8x128xf32>
    %cst_189 = arith.constant 1.000000e+00 : f32
    %382 = vector.broadcast %cst_189 : f32 to vector<8x128xf32>
    %383 = arith.addf %382, %381 : vector<8x128xf32>
    %384 = arith.divf %382, %383 : vector<8x128xf32>
    %385 = vector.extract_strided_slice %369 {offsets = [0, 128], sizes = [8, 128], strides = [1, 1]} : vector<8x384xf32> to vector<8x128xf32>
    %386 = vector.extract_strided_slice %376 {offsets = [0, 128], sizes = [8, 128], strides = [1, 1]} : vector<8x384xf32> to vector<8x128xf32>
    %387 = arith.addf %385, %386 : vector<8x128xf32>
    %388 = arith.negf %387 : vector<8x128xf32>
    %389 = math.exp %388 : vector<8x128xf32>
    %cst_190 = arith.constant 1.000000e+00 : f32
    %390 = vector.broadcast %cst_190 : f32 to vector<8x128xf32>
    %391 = arith.addf %390, %389 : vector<8x128xf32>
    %392 = arith.divf %390, %391 : vector<8x128xf32>
    %393 = vector.extract_strided_slice %369 {offsets = [0, 256], sizes = [8, 128], strides = [1, 1]} : vector<8x384xf32> to vector<8x128xf32>
    %394 = vector.extract_strided_slice %376 {offsets = [0, 256], sizes = [8, 128], strides = [1, 1]} : vector<8x384xf32> to vector<8x128xf32>
    %395 = arith.mulf %384, %394 : vector<8x128xf32>
    %396 = arith.addf %393, %395 : vector<8x128xf32>
    %397 = math.tanh %396 : vector<8x128xf32>
    %cst_191 = arith.constant 1.000000e+00 : f32
    %398 = vector.broadcast %cst_191 : f32 to vector<8x128xf32>
    %399 = arith.subf %398, %392 : vector<8x128xf32>
    %400 = arith.mulf %399, %397 : vector<8x128xf32>
    %401 = arith.mulf %392, %363 : vector<8x128xf32>
    %402 = arith.addf %400, %401 : vector<8x128xf32>
    %403 = arith.index_cast %367 : i32 to index
    %c0_192 = arith.constant 0 : index
    %404 = vector.load %arg9[%403, %c0_192] : memref<64x128xf32, #tpu.memory_space<vmem>>, vector<8x128xf32>
    tpu.vector_store %arg9[%403, %c0_192], %402 {strides = array<i32>} : memref<64x128xf32, #tpu.memory_space<vmem>>, vector<8x128xf32>,
    %c8_i32_193 = arith.constant 8 : i32
    %c0_194 = arith.constant 0 : index
    %c0_195 = arith.constant 0 : index
    %c0_196 = arith.constant 0 : index
    %405 = vector.load %arg8[%c0_194, %c0_195, %c0_196] : memref<3x8x128xf32, #tpu.memory_space<vmem>>, vector<1x8x128xf32>
    %406 = vector.shape_cast %405 : vector<1x8x128xf32> to vector<8x128xf32>
    %407 = vector.shape_cast %402 : vector<8x128xf32> to vector<1x8x128xf32>
    tpu.vector_store %arg8[%c0_194, %c0_195, %c0_196], %407 {strides = array<i32>} : memref<3x8x128xf32, #tpu.memory_space<vmem>>, vector<1x8x128xf32>,
    %c0_197 = arith.constant 0 : index
    %c0_198 = arith.constant 0 : index
    %408 = vector.load %arg9[%c0_197, %c0_198] : memref<64x128xf32, #tpu.memory_space<vmem>>, vector<64x128xf32>
    %c1_199 = arith.constant 1 : index
    %c0_200 = arith.constant 0 : index
    %c0_201 = arith.constant 0 : index
    %409 = vector.load %arg3[%c1_199, %c0_200, %c0_201] : memref<3x128x384xf32, #tpu.memory_space<vmem>>, vector<1x128x384xf32>
    %410 = vector.shape_cast %409 : vector<1x128x384xf32> to vector<128x384xf32>
    %cst_202 = arith.constant dense<0.000000e+00> : vector<64x384xf32>
    %411 = tpu.matmul %408, %410, %cst_202 {dimension_numbers = #tpu.dot_dimension_numbers<[1], [0], [0], [1], [0, 0, 1, 1], [], []>} : vector<64x128xf32>, vector<128x384xf32>, vector<64x384xf32> -> vector<64x384xf32>
    %c1_203 = arith.constant 1 : index
    %c0_204 = arith.constant 0 : index
    %c0_205 = arith.constant 0 : index
    %412 = vector.load %arg5[%c1_203, %c0_204, %c0_205] : memref<3x1x384xf32, #tpu.memory_space<vmem>>, vector<1x1x384xf32>
    %413 = vector.shape_cast %412 : vector<1x1x384xf32> to vector<1x384xf32>
    %414 = vector.broadcast %413 : vector<1x384xf32> to vector<64x384xf32>
    %415 = arith.addf %411, %414 : vector<64x384xf32>
    %c0_206 = arith.constant 0 : index
    %c0_207 = arith.constant 0 : index
    %416 = vector.load %arg10[%c0_206, %c0_207] : memref<64x384xf32, #tpu.memory_space<vmem>>, vector<64x384xf32>
    tpu.vector_store %arg10[%c0_206, %c0_207], %415 {strides = array<i32>} : memref<64x384xf32, #tpu.memory_space<vmem>>, vector<64x384xf32>,
    %c1_208 = arith.constant 1 : index
    %c0_209 = arith.constant 0 : index
    %c0_210 = arith.constant 0 : index
    %417 = vector.load %arg2[%c1_208, %c0_209, %c0_210] : memref<3x8x128xf32, #tpu.memory_space<vmem>>, vector<1x8x128xf32>
    %418 = vector.shape_cast %417 : vector<1x8x128xf32> to vector<8x128xf32>
    %c0_i32_211 = arith.constant 0 : i32
    %c8_i32_212 = arith.constant 8 : i32
    %419 = arith.muli %c0_i32_211, %c8_i32_212 : i32
    %420 = tpu.assume_multiple %419, 8 : i32
    %421 = arith.index_cast %420 : i32 to index
    %c0_213 = arith.constant 0 : index
    %422 = vector.load %arg10[%421, %c0_213] : memref<64x384xf32, #tpu.memory_space<vmem>>, vector<8x384xf32>
    %c1_214 = arith.constant 1 : index
    %c0_215 = arith.constant 0 : index
    %c0_216 = arith.constant 0 : index
    %423 = vector.load %arg4[%c1_214, %c0_215, %c0_216] : memref<3x128x384xf32, #tpu.memory_space<vmem>>, vector<1x128x384xf32>
    %424 = vector.shape_cast %423 : vector<1x128x384xf32> to vector<128x384xf32>
    %cst_217 = arith.constant dense<0.000000e+00> : vector<8x384xf32>
    %425 = tpu.matmul %418, %424, %cst_217 {dimension_numbers = #tpu.dot_dimension_numbers<[1], [0], [0], [1], [0, 0, 1, 1], [], []>} : vector<8x128xf32>, vector<128x384xf32>, vector<8x384xf32> -> vector<8x384xf32>
    %c1_218 = arith.constant 1 : index
    %c0_219 = arith.constant 0 : index
    %c0_220 = arith.constant 0 : index
    %426 = vector.load %arg6[%c1_218, %c0_219, %c0_220] : memref<3x1x384xf32, #tpu.memory_space<vmem>>, vector<1x1x384xf32>
    %427 = vector.shape_cast %426 : vector<1x1x384xf32> to vector<1x384xf32>
    %428 = vector.broadcast %427 : vector<1x384xf32> to vector<8x384xf32>
    %429 = arith.addf %425, %428 : vector<8x384xf32>
    %430 = vector.extract_strided_slice %422 {offsets = [0, 0], sizes = [8, 128], strides = [1, 1]} : vector<8x384xf32> to vector<8x128xf32>
    %431 = vector.extract_strided_slice %429 {offsets = [0, 0], sizes = [8, 128], strides = [1, 1]} : vector<8x384xf32> to vector<8x128xf32>
    %432 = arith.addf %430, %431 : vector<8x128xf32>
    %433 = arith.negf %432 : vector<8x128xf32>
    %434 = math.exp %433 : vector<8x128xf32>
    %cst_221 = arith.constant 1.000000e+00 : f32
    %435 = vector.broadcast %cst_221 : f32 to vector<8x128xf32>
    %436 = arith.addf %435, %434 : vector<8x128xf32>
    %437 = arith.divf %435, %436 : vector<8x128xf32>
    %438 = vector.extract_strided_slice %422 {offsets = [0, 128], sizes = [8, 128], strides = [1, 1]} : vector<8x384xf32> to vector<8x128xf32>
    %439 = vector.extract_strided_slice %429 {offsets = [0, 128], sizes = [8, 128], strides = [1, 1]} : vector<8x384xf32> to vector<8x128xf32>
    %440 = arith.addf %438, %439 : vector<8x128xf32>
    %441 = arith.negf %440 : vector<8x128xf32>
    %442 = math.exp %441 : vector<8x128xf32>
    %cst_222 = arith.constant 1.000000e+00 : f32
    %443 = vector.broadcast %cst_222 : f32 to vector<8x128xf32>
    %444 = arith.addf %443, %442 : vector<8x128xf32>
    %445 = arith.divf %443, %444 : vector<8x128xf32>
    %446 = vector.extract_strided_slice %422 {offsets = [0, 256], sizes = [8, 128], strides = [1, 1]} : vector<8x384xf32> to vector<8x128xf32>
    %447 = vector.extract_strided_slice %429 {offsets = [0, 256], sizes = [8, 128], strides = [1, 1]} : vector<8x384xf32> to vector<8x128xf32>
    %448 = arith.mulf %437, %447 : vector<8x128xf32>
    %449 = arith.addf %446, %448 : vector<8x128xf32>
    %450 = math.tanh %449 : vector<8x128xf32>
    %cst_223 = arith.constant 1.000000e+00 : f32
    %451 = vector.broadcast %cst_223 : f32 to vector<8x128xf32>
    %452 = arith.subf %451, %445 : vector<8x128xf32>
    %453 = arith.mulf %452, %450 : vector<8x128xf32>
    %454 = arith.mulf %445, %418 : vector<8x128xf32>
    %455 = arith.addf %453, %454 : vector<8x128xf32>
    %456 = arith.index_cast %420 : i32 to index
    %c0_224 = arith.constant 0 : index
    %457 = vector.load %arg9[%456, %c0_224] : memref<64x128xf32, #tpu.memory_space<vmem>>, vector<8x128xf32>
    tpu.vector_store %arg9[%456, %c0_224], %455 {strides = array<i32>} : memref<64x128xf32, #tpu.memory_space<vmem>>, vector<8x128xf32>,
    %c1_i32_225 = arith.constant 1 : i32
    %c8_i32_226 = arith.constant 8 : i32
    %458 = arith.muli %c1_i32_225, %c8_i32_226 : i32
    %459 = tpu.assume_multiple %458, 8 : i32
    %460 = arith.index_cast %459 : i32 to index
    %c0_227 = arith.constant 0 : index
    %461 = vector.load %arg10[%460, %c0_227] : memref<64x384xf32, #tpu.memory_space<vmem>>, vector<8x384xf32>
    %c1_228 = arith.constant 1 : index
    %c0_229 = arith.constant 0 : index
    %c0_230 = arith.constant 0 : index
    %462 = vector.load %arg4[%c1_228, %c0_229, %c0_230] : memref<3x128x384xf32, #tpu.memory_space<vmem>>, vector<1x128x384xf32>
    %463 = vector.shape_cast %462 : vector<1x128x384xf32> to vector<128x384xf32>
    %cst_231 = arith.constant dense<0.000000e+00> : vector<8x384xf32>
    %464 = tpu.matmul %455, %463, %cst_231 {dimension_numbers = #tpu.dot_dimension_numbers<[1], [0], [0], [1], [0, 0, 1, 1], [], []>} : vector<8x128xf32>, vector<128x384xf32>, vector<8x384xf32> -> vector<8x384xf32>
    %c1_232 = arith.constant 1 : index
    %c0_233 = arith.constant 0 : index
    %c0_234 = arith.constant 0 : index
    %465 = vector.load %arg6[%c1_232, %c0_233, %c0_234] : memref<3x1x384xf32, #tpu.memory_space<vmem>>, vector<1x1x384xf32>
    %466 = vector.shape_cast %465 : vector<1x1x384xf32> to vector<1x384xf32>
    %467 = vector.broadcast %466 : vector<1x384xf32> to vector<8x384xf32>
    %468 = arith.addf %464, %467 : vector<8x384xf32>
    %469 = vector.extract_strided_slice %461 {offsets = [0, 0], sizes = [8, 128], strides = [1, 1]} : vector<8x384xf32> to vector<8x128xf32>
    %470 = vector.extract_strided_slice %468 {offsets = [0, 0], sizes = [8, 128], strides = [1, 1]} : vector<8x384xf32> to vector<8x128xf32>
    %471 = arith.addf %469, %470 : vector<8x128xf32>
    %472 = arith.negf %471 : vector<8x128xf32>
    %473 = math.exp %472 : vector<8x128xf32>
    %cst_235 = arith.constant 1.000000e+00 : f32
    %474 = vector.broadcast %cst_235 : f32 to vector<8x128xf32>
    %475 = arith.addf %474, %473 : vector<8x128xf32>
    %476 = arith.divf %474, %475 : vector<8x128xf32>
    %477 = vector.extract_strided_slice %461 {offsets = [0, 128], sizes = [8, 128], strides = [1, 1]} : vector<8x384xf32> to vector<8x128xf32>
    %478 = vector.extract_strided_slice %468 {offsets = [0, 128], sizes = [8, 128], strides = [1, 1]} : vector<8x384xf32> to vector<8x128xf32>
    %479 = arith.addf %477, %478 : vector<8x128xf32>
    %480 = arith.negf %479 : vector<8x128xf32>
    %481 = math.exp %480 : vector<8x128xf32>
    %cst_236 = arith.constant 1.000000e+00 : f32
    %482 = vector.broadcast %cst_236 : f32 to vector<8x128xf32>
    %483 = arith.addf %482, %481 : vector<8x128xf32>
    %484 = arith.divf %482, %483 : vector<8x128xf32>
    %485 = vector.extract_strided_slice %461 {offsets = [0, 256], sizes = [8, 128], strides = [1, 1]} : vector<8x384xf32> to vector<8x128xf32>
    %486 = vector.extract_strided_slice %468 {offsets = [0, 256], sizes = [8, 128], strides = [1, 1]} : vector<8x384xf32> to vector<8x128xf32>
    %487 = arith.mulf %476, %486 : vector<8x128xf32>
    %488 = arith.addf %485, %487 : vector<8x128xf32>
    %489 = math.tanh %488 : vector<8x128xf32>
    %cst_237 = arith.constant 1.000000e+00 : f32
    %490 = vector.broadcast %cst_237 : f32 to vector<8x128xf32>
    %491 = arith.subf %490, %484 : vector<8x128xf32>
    %492 = arith.mulf %491, %489 : vector<8x128xf32>
    %493 = arith.mulf %484, %455 : vector<8x128xf32>
    %494 = arith.addf %492, %493 : vector<8x128xf32>
    %495 = arith.index_cast %459 : i32 to index
    %c0_238 = arith.constant 0 : index
    %496 = vector.load %arg9[%495, %c0_238] : memref<64x128xf32, #tpu.memory_space<vmem>>, vector<8x128xf32>
    tpu.vector_store %arg9[%495, %c0_238], %494 {strides = array<i32>} : memref<64x128xf32, #tpu.memory_space<vmem>>, vector<8x128xf32>,
    %c2_i32_239 = arith.constant 2 : i32
    %c8_i32_240 = arith.constant 8 : i32
    %497 = arith.muli %c2_i32_239, %c8_i32_240 : i32
    %498 = tpu.assume_multiple %497, 8 : i32
    %499 = arith.index_cast %498 : i32 to index
    %c0_241 = arith.constant 0 : index
    %500 = vector.load %arg10[%499, %c0_241] : memref<64x384xf32, #tpu.memory_space<vmem>>, vector<8x384xf32>
    %c1_242 = arith.constant 1 : index
    %c0_243 = arith.constant 0 : index
    %c0_244 = arith.constant 0 : index
    %501 = vector.load %arg4[%c1_242, %c0_243, %c0_244] : memref<3x128x384xf32, #tpu.memory_space<vmem>>, vector<1x128x384xf32>
    %502 = vector.shape_cast %501 : vector<1x128x384xf32> to vector<128x384xf32>
    %cst_245 = arith.constant dense<0.000000e+00> : vector<8x384xf32>
    %503 = tpu.matmul %494, %502, %cst_245 {dimension_numbers = #tpu.dot_dimension_numbers<[1], [0], [0], [1], [0, 0, 1, 1], [], []>} : vector<8x128xf32>, vector<128x384xf32>, vector<8x384xf32> -> vector<8x384xf32>
    %c1_246 = arith.constant 1 : index
    %c0_247 = arith.constant 0 : index
    %c0_248 = arith.constant 0 : index
    %504 = vector.load %arg6[%c1_246, %c0_247, %c0_248] : memref<3x1x384xf32, #tpu.memory_space<vmem>>, vector<1x1x384xf32>
    %505 = vector.shape_cast %504 : vector<1x1x384xf32> to vector<1x384xf32>
    %506 = vector.broadcast %505 : vector<1x384xf32> to vector<8x384xf32>
    %507 = arith.addf %503, %506 : vector<8x384xf32>
    %508 = vector.extract_strided_slice %500 {offsets = [0, 0], sizes = [8, 128], strides = [1, 1]} : vector<8x384xf32> to vector<8x128xf32>
    %509 = vector.extract_strided_slice %507 {offsets = [0, 0], sizes = [8, 128], strides = [1, 1]} : vector<8x384xf32> to vector<8x128xf32>
    %510 = arith.addf %508, %509 : vector<8x128xf32>
    %511 = arith.negf %510 : vector<8x128xf32>
    %512 = math.exp %511 : vector<8x128xf32>
    %cst_249 = arith.constant 1.000000e+00 : f32
    %513 = vector.broadcast %cst_249 : f32 to vector<8x128xf32>
    %514 = arith.addf %513, %512 : vector<8x128xf32>
    %515 = arith.divf %513, %514 : vector<8x128xf32>
    %516 = vector.extract_strided_slice %500 {offsets = [0, 128], sizes = [8, 128], strides = [1, 1]} : vector<8x384xf32> to vector<8x128xf32>
    %517 = vector.extract_strided_slice %507 {offsets = [0, 128], sizes = [8, 128], strides = [1, 1]} : vector<8x384xf32> to vector<8x128xf32>
    %518 = arith.addf %516, %517 : vector<8x128xf32>
    %519 = arith.negf %518 : vector<8x128xf32>
    %520 = math.exp %519 : vector<8x128xf32>
    %cst_250 = arith.constant 1.000000e+00 : f32
    %521 = vector.broadcast %cst_250 : f32 to vector<8x128xf32>
    %522 = arith.addf %521, %520 : vector<8x128xf32>
    %523 = arith.divf %521, %522 : vector<8x128xf32>
    %524 = vector.extract_strided_slice %500 {offsets = [0, 256], sizes = [8, 128], strides = [1, 1]} : vector<8x384xf32> to vector<8x128xf32>
    %525 = vector.extract_strided_slice %507 {offsets = [0, 256], sizes = [8, 128], strides = [1, 1]} : vector<8x384xf32> to vector<8x128xf32>
    %526 = arith.mulf %515, %525 : vector<8x128xf32>
    %527 = arith.addf %524, %526 : vector<8x128xf32>
    %528 = math.tanh %527 : vector<8x128xf32>
    %cst_251 = arith.constant 1.000000e+00 : f32
    %529 = vector.broadcast %cst_251 : f32 to vector<8x128xf32>
    %530 = arith.subf %529, %523 : vector<8x128xf32>
    %531 = arith.mulf %530, %528 : vector<8x128xf32>
    %532 = arith.mulf %523, %494 : vector<8x128xf32>
    %533 = arith.addf %531, %532 : vector<8x128xf32>
    %534 = arith.index_cast %498 : i32 to index
    %c0_252 = arith.constant 0 : index
    %535 = vector.load %arg9[%534, %c0_252] : memref<64x128xf32, #tpu.memory_space<vmem>>, vector<8x128xf32>
    tpu.vector_store %arg9[%534, %c0_252], %533 {strides = array<i32>} : memref<64x128xf32, #tpu.memory_space<vmem>>, vector<8x128xf32>,
    %c3_i32_253 = arith.constant 3 : i32
    %c8_i32_254 = arith.constant 8 : i32
    %536 = arith.muli %c3_i32_253, %c8_i32_254 : i32
    %537 = tpu.assume_multiple %536, 8 : i32
    %538 = arith.index_cast %537 : i32 to index
    %c0_255 = arith.constant 0 : index
    %539 = vector.load %arg10[%538, %c0_255] : memref<64x384xf32, #tpu.memory_space<vmem>>, vector<8x384xf32>
    %c1_256 = arith.constant 1 : index
    %c0_257 = arith.constant 0 : index
    %c0_258 = arith.constant 0 : index
    %540 = vector.load %arg4[%c1_256, %c0_257, %c0_258] : memref<3x128x384xf32, #tpu.memory_space<vmem>>, vector<1x128x384xf32>
    %541 = vector.shape_cast %540 : vector<1x128x384xf32> to vector<128x384xf32>
    %cst_259 = arith.constant dense<0.000000e+00> : vector<8x384xf32>
    %542 = tpu.matmul %533, %541, %cst_259 {dimension_numbers = #tpu.dot_dimension_numbers<[1], [0], [0], [1], [0, 0, 1, 1], [], []>} : vector<8x128xf32>, vector<128x384xf32>, vector<8x384xf32> -> vector<8x384xf32>
    %c1_260 = arith.constant 1 : index
    %c0_261 = arith.constant 0 : index
    %c0_262 = arith.constant 0 : index
    %543 = vector.load %arg6[%c1_260, %c0_261, %c0_262] : memref<3x1x384xf32, #tpu.memory_space<vmem>>, vector<1x1x384xf32>
    %544 = vector.shape_cast %543 : vector<1x1x384xf32> to vector<1x384xf32>
    %545 = vector.broadcast %544 : vector<1x384xf32> to vector<8x384xf32>
    %546 = arith.addf %542, %545 : vector<8x384xf32>
    %547 = vector.extract_strided_slice %539 {offsets = [0, 0], sizes = [8, 128], strides = [1, 1]} : vector<8x384xf32> to vector<8x128xf32>
    %548 = vector.extract_strided_slice %546 {offsets = [0, 0], sizes = [8, 128], strides = [1, 1]} : vector<8x384xf32> to vector<8x128xf32>
    %549 = arith.addf %547, %548 : vector<8x128xf32>
    %550 = arith.negf %549 : vector<8x128xf32>
    %551 = math.exp %550 : vector<8x128xf32>
    %cst_263 = arith.constant 1.000000e+00 : f32
    %552 = vector.broadcast %cst_263 : f32 to vector<8x128xf32>
    %553 = arith.addf %552, %551 : vector<8x128xf32>
    %554 = arith.divf %552, %553 : vector<8x128xf32>
    %555 = vector.extract_strided_slice %539 {offsets = [0, 128], sizes = [8, 128], strides = [1, 1]} : vector<8x384xf32> to vector<8x128xf32>
    %556 = vector.extract_strided_slice %546 {offsets = [0, 128], sizes = [8, 128], strides = [1, 1]} : vector<8x384xf32> to vector<8x128xf32>
    %557 = arith.addf %555, %556 : vector<8x128xf32>
    %558 = arith.negf %557 : vector<8x128xf32>
    %559 = math.exp %558 : vector<8x128xf32>
    %cst_264 = arith.constant 1.000000e+00 : f32
    %560 = vector.broadcast %cst_264 : f32 to vector<8x128xf32>
    %561 = arith.addf %560, %559 : vector<8x128xf32>
    %562 = arith.divf %560, %561 : vector<8x128xf32>
    %563 = vector.extract_strided_slice %539 {offsets = [0, 256], sizes = [8, 128], strides = [1, 1]} : vector<8x384xf32> to vector<8x128xf32>
    %564 = vector.extract_strided_slice %546 {offsets = [0, 256], sizes = [8, 128], strides = [1, 1]} : vector<8x384xf32> to vector<8x128xf32>
    %565 = arith.mulf %554, %564 : vector<8x128xf32>
    %566 = arith.addf %563, %565 : vector<8x128xf32>
    %567 = math.tanh %566 : vector<8x128xf32>
    %cst_265 = arith.constant 1.000000e+00 : f32
    %568 = vector.broadcast %cst_265 : f32 to vector<8x128xf32>
    %569 = arith.subf %568, %562 : vector<8x128xf32>
    %570 = arith.mulf %569, %567 : vector<8x128xf32>
    %571 = arith.mulf %562, %533 : vector<8x128xf32>
    %572 = arith.addf %570, %571 : vector<8x128xf32>
    %573 = arith.index_cast %537 : i32 to index
    %c0_266 = arith.constant 0 : index
    %574 = vector.load %arg9[%573, %c0_266] : memref<64x128xf32, #tpu.memory_space<vmem>>, vector<8x128xf32>
    tpu.vector_store %arg9[%573, %c0_266], %572 {strides = array<i32>} : memref<64x128xf32, #tpu.memory_space<vmem>>, vector<8x128xf32>,
    %c4_i32_267 = arith.constant 4 : i32
    %c8_i32_268 = arith.constant 8 : i32
    %575 = arith.muli %c4_i32_267, %c8_i32_268 : i32
    %576 = tpu.assume_multiple %575, 8 : i32
    %577 = arith.index_cast %576 : i32 to index
    %c0_269 = arith.constant 0 : index
    %578 = vector.load %arg10[%577, %c0_269] : memref<64x384xf32, #tpu.memory_space<vmem>>, vector<8x384xf32>
    %c1_270 = arith.constant 1 : index
    %c0_271 = arith.constant 0 : index
    %c0_272 = arith.constant 0 : index
    %579 = vector.load %arg4[%c1_270, %c0_271, %c0_272] : memref<3x128x384xf32, #tpu.memory_space<vmem>>, vector<1x128x384xf32>
    %580 = vector.shape_cast %579 : vector<1x128x384xf32> to vector<128x384xf32>
    %cst_273 = arith.constant dense<0.000000e+00> : vector<8x384xf32>
    %581 = tpu.matmul %572, %580, %cst_273 {dimension_numbers = #tpu.dot_dimension_numbers<[1], [0], [0], [1], [0, 0, 1, 1], [], []>} : vector<8x128xf32>, vector<128x384xf32>, vector<8x384xf32> -> vector<8x384xf32>
    %c1_274 = arith.constant 1 : index
    %c0_275 = arith.constant 0 : index
    %c0_276 = arith.constant 0 : index
    %582 = vector.load %arg6[%c1_274, %c0_275, %c0_276] : memref<3x1x384xf32, #tpu.memory_space<vmem>>, vector<1x1x384xf32>
    %583 = vector.shape_cast %582 : vector<1x1x384xf32> to vector<1x384xf32>
    %584 = vector.broadcast %583 : vector<1x384xf32> to vector<8x384xf32>
    %585 = arith.addf %581, %584 : vector<8x384xf32>
    %586 = vector.extract_strided_slice %578 {offsets = [0, 0], sizes = [8, 128], strides = [1, 1]} : vector<8x384xf32> to vector<8x128xf32>
    %587 = vector.extract_strided_slice %585 {offsets = [0, 0], sizes = [8, 128], strides = [1, 1]} : vector<8x384xf32> to vector<8x128xf32>
    %588 = arith.addf %586, %587 : vector<8x128xf32>
    %589 = arith.negf %588 : vector<8x128xf32>
    %590 = math.exp %589 : vector<8x128xf32>
    %cst_277 = arith.constant 1.000000e+00 : f32
    %591 = vector.broadcast %cst_277 : f32 to vector<8x128xf32>
    %592 = arith.addf %591, %590 : vector<8x128xf32>
    %593 = arith.divf %591, %592 : vector<8x128xf32>
    %594 = vector.extract_strided_slice %578 {offsets = [0, 128], sizes = [8, 128], strides = [1, 1]} : vector<8x384xf32> to vector<8x128xf32>
    %595 = vector.extract_strided_slice %585 {offsets = [0, 128], sizes = [8, 128], strides = [1, 1]} : vector<8x384xf32> to vector<8x128xf32>
    %596 = arith.addf %594, %595 : vector<8x128xf32>
    %597 = arith.negf %596 : vector<8x128xf32>
    %598 = math.exp %597 : vector<8x128xf32>
    %cst_278 = arith.constant 1.000000e+00 : f32
    %599 = vector.broadcast %cst_278 : f32 to vector<8x128xf32>
    %600 = arith.addf %599, %598 : vector<8x128xf32>
    %601 = arith.divf %599, %600 : vector<8x128xf32>
    %602 = vector.extract_strided_slice %578 {offsets = [0, 256], sizes = [8, 128], strides = [1, 1]} : vector<8x384xf32> to vector<8x128xf32>
    %603 = vector.extract_strided_slice %585 {offsets = [0, 256], sizes = [8, 128], strides = [1, 1]} : vector<8x384xf32> to vector<8x128xf32>
    %604 = arith.mulf %593, %603 : vector<8x128xf32>
    %605 = arith.addf %602, %604 : vector<8x128xf32>
    %606 = math.tanh %605 : vector<8x128xf32>
    %cst_279 = arith.constant 1.000000e+00 : f32
    %607 = vector.broadcast %cst_279 : f32 to vector<8x128xf32>
    %608 = arith.subf %607, %601 : vector<8x128xf32>
    %609 = arith.mulf %608, %606 : vector<8x128xf32>
    %610 = arith.mulf %601, %572 : vector<8x128xf32>
    %611 = arith.addf %609, %610 : vector<8x128xf32>
    %612 = arith.index_cast %576 : i32 to index
    %c0_280 = arith.constant 0 : index
    %613 = vector.load %arg9[%612, %c0_280] : memref<64x128xf32, #tpu.memory_space<vmem>>, vector<8x128xf32>
    tpu.vector_store %arg9[%612, %c0_280], %611 {strides = array<i32>} : memref<64x128xf32, #tpu.memory_space<vmem>>, vector<8x128xf32>,
    %c5_i32_281 = arith.constant 5 : i32
    %c8_i32_282 = arith.constant 8 : i32
    %614 = arith.muli %c5_i32_281, %c8_i32_282 : i32
    %615 = tpu.assume_multiple %614, 8 : i32
    %616 = arith.index_cast %615 : i32 to index
    %c0_283 = arith.constant 0 : index
    %617 = vector.load %arg10[%616, %c0_283] : memref<64x384xf32, #tpu.memory_space<vmem>>, vector<8x384xf32>
    %c1_284 = arith.constant 1 : index
    %c0_285 = arith.constant 0 : index
    %c0_286 = arith.constant 0 : index
    %618 = vector.load %arg4[%c1_284, %c0_285, %c0_286] : memref<3x128x384xf32, #tpu.memory_space<vmem>>, vector<1x128x384xf32>
    %619 = vector.shape_cast %618 : vector<1x128x384xf32> to vector<128x384xf32>
    %cst_287 = arith.constant dense<0.000000e+00> : vector<8x384xf32>
    %620 = tpu.matmul %611, %619, %cst_287 {dimension_numbers = #tpu.dot_dimension_numbers<[1], [0], [0], [1], [0, 0, 1, 1], [], []>} : vector<8x128xf32>, vector<128x384xf32>, vector<8x384xf32> -> vector<8x384xf32>
    %c1_288 = arith.constant 1 : index
    %c0_289 = arith.constant 0 : index
    %c0_290 = arith.constant 0 : index
    %621 = vector.load %arg6[%c1_288, %c0_289, %c0_290] : memref<3x1x384xf32, #tpu.memory_space<vmem>>, vector<1x1x384xf32>
    %622 = vector.shape_cast %621 : vector<1x1x384xf32> to vector<1x384xf32>
    %623 = vector.broadcast %622 : vector<1x384xf32> to vector<8x384xf32>
    %624 = arith.addf %620, %623 : vector<8x384xf32>
    %625 = vector.extract_strided_slice %617 {offsets = [0, 0], sizes = [8, 128], strides = [1, 1]} : vector<8x384xf32> to vector<8x128xf32>
    %626 = vector.extract_strided_slice %624 {offsets = [0, 0], sizes = [8, 128], strides = [1, 1]} : vector<8x384xf32> to vector<8x128xf32>
    %627 = arith.addf %625, %626 : vector<8x128xf32>
    %628 = arith.negf %627 : vector<8x128xf32>
    %629 = math.exp %628 : vector<8x128xf32>
    %cst_291 = arith.constant 1.000000e+00 : f32
    %630 = vector.broadcast %cst_291 : f32 to vector<8x128xf32>
    %631 = arith.addf %630, %629 : vector<8x128xf32>
    %632 = arith.divf %630, %631 : vector<8x128xf32>
    %633 = vector.extract_strided_slice %617 {offsets = [0, 128], sizes = [8, 128], strides = [1, 1]} : vector<8x384xf32> to vector<8x128xf32>
    %634 = vector.extract_strided_slice %624 {offsets = [0, 128], sizes = [8, 128], strides = [1, 1]} : vector<8x384xf32> to vector<8x128xf32>
    %635 = arith.addf %633, %634 : vector<8x128xf32>
    %636 = arith.negf %635 : vector<8x128xf32>
    %637 = math.exp %636 : vector<8x128xf32>
    %cst_292 = arith.constant 1.000000e+00 : f32
    %638 = vector.broadcast %cst_292 : f32 to vector<8x128xf32>
    %639 = arith.addf %638, %637 : vector<8x128xf32>
    %640 = arith.divf %638, %639 : vector<8x128xf32>
    %641 = vector.extract_strided_slice %617 {offsets = [0, 256], sizes = [8, 128], strides = [1, 1]} : vector<8x384xf32> to vector<8x128xf32>
    %642 = vector.extract_strided_slice %624 {offsets = [0, 256], sizes = [8, 128], strides = [1, 1]} : vector<8x384xf32> to vector<8x128xf32>
    %643 = arith.mulf %632, %642 : vector<8x128xf32>
    %644 = arith.addf %641, %643 : vector<8x128xf32>
    %645 = math.tanh %644 : vector<8x128xf32>
    %cst_293 = arith.constant 1.000000e+00 : f32
    %646 = vector.broadcast %cst_293 : f32 to vector<8x128xf32>
    %647 = arith.subf %646, %640 : vector<8x128xf32>
    %648 = arith.mulf %647, %645 : vector<8x128xf32>
    %649 = arith.mulf %640, %611 : vector<8x128xf32>
    %650 = arith.addf %648, %649 : vector<8x128xf32>
    %651 = arith.index_cast %615 : i32 to index
    %c0_294 = arith.constant 0 : index
    %652 = vector.load %arg9[%651, %c0_294] : memref<64x128xf32, #tpu.memory_space<vmem>>, vector<8x128xf32>
    tpu.vector_store %arg9[%651, %c0_294], %650 {strides = array<i32>} : memref<64x128xf32, #tpu.memory_space<vmem>>, vector<8x128xf32>,
    %c6_i32_295 = arith.constant 6 : i32
    %c8_i32_296 = arith.constant 8 : i32
    %653 = arith.muli %c6_i32_295, %c8_i32_296 : i32
    %654 = tpu.assume_multiple %653, 8 : i32
    %655 = arith.index_cast %654 : i32 to index
    %c0_297 = arith.constant 0 : index
    %656 = vector.load %arg10[%655, %c0_297] : memref<64x384xf32, #tpu.memory_space<vmem>>, vector<8x384xf32>
    %c1_298 = arith.constant 1 : index
    %c0_299 = arith.constant 0 : index
    %c0_300 = arith.constant 0 : index
    %657 = vector.load %arg4[%c1_298, %c0_299, %c0_300] : memref<3x128x384xf32, #tpu.memory_space<vmem>>, vector<1x128x384xf32>
    %658 = vector.shape_cast %657 : vector<1x128x384xf32> to vector<128x384xf32>
    %cst_301 = arith.constant dense<0.000000e+00> : vector<8x384xf32>
    %659 = tpu.matmul %650, %658, %cst_301 {dimension_numbers = #tpu.dot_dimension_numbers<[1], [0], [0], [1], [0, 0, 1, 1], [], []>} : vector<8x128xf32>, vector<128x384xf32>, vector<8x384xf32> -> vector<8x384xf32>
    %c1_302 = arith.constant 1 : index
    %c0_303 = arith.constant 0 : index
    %c0_304 = arith.constant 0 : index
    %660 = vector.load %arg6[%c1_302, %c0_303, %c0_304] : memref<3x1x384xf32, #tpu.memory_space<vmem>>, vector<1x1x384xf32>
    %661 = vector.shape_cast %660 : vector<1x1x384xf32> to vector<1x384xf32>
    %662 = vector.broadcast %661 : vector<1x384xf32> to vector<8x384xf32>
    %663 = arith.addf %659, %662 : vector<8x384xf32>
    %664 = vector.extract_strided_slice %656 {offsets = [0, 0], sizes = [8, 128], strides = [1, 1]} : vector<8x384xf32> to vector<8x128xf32>
    %665 = vector.extract_strided_slice %663 {offsets = [0, 0], sizes = [8, 128], strides = [1, 1]} : vector<8x384xf32> to vector<8x128xf32>
    %666 = arith.addf %664, %665 : vector<8x128xf32>
    %667 = arith.negf %666 : vector<8x128xf32>
    %668 = math.exp %667 : vector<8x128xf32>
    %cst_305 = arith.constant 1.000000e+00 : f32
    %669 = vector.broadcast %cst_305 : f32 to vector<8x128xf32>
    %670 = arith.addf %669, %668 : vector<8x128xf32>
    %671 = arith.divf %669, %670 : vector<8x128xf32>
    %672 = vector.extract_strided_slice %656 {offsets = [0, 128], sizes = [8, 128], strides = [1, 1]} : vector<8x384xf32> to vector<8x128xf32>
    %673 = vector.extract_strided_slice %663 {offsets = [0, 128], sizes = [8, 128], strides = [1, 1]} : vector<8x384xf32> to vector<8x128xf32>
    %674 = arith.addf %672, %673 : vector<8x128xf32>
    %675 = arith.negf %674 : vector<8x128xf32>
    %676 = math.exp %675 : vector<8x128xf32>
    %cst_306 = arith.constant 1.000000e+00 : f32
    %677 = vector.broadcast %cst_306 : f32 to vector<8x128xf32>
    %678 = arith.addf %677, %676 : vector<8x128xf32>
    %679 = arith.divf %677, %678 : vector<8x128xf32>
    %680 = vector.extract_strided_slice %656 {offsets = [0, 256], sizes = [8, 128], strides = [1, 1]} : vector<8x384xf32> to vector<8x128xf32>
    %681 = vector.extract_strided_slice %663 {offsets = [0, 256], sizes = [8, 128], strides = [1, 1]} : vector<8x384xf32> to vector<8x128xf32>
    %682 = arith.mulf %671, %681 : vector<8x128xf32>
    %683 = arith.addf %680, %682 : vector<8x128xf32>
    %684 = math.tanh %683 : vector<8x128xf32>
    %cst_307 = arith.constant 1.000000e+00 : f32
    %685 = vector.broadcast %cst_307 : f32 to vector<8x128xf32>
    %686 = arith.subf %685, %679 : vector<8x128xf32>
    %687 = arith.mulf %686, %684 : vector<8x128xf32>
    %688 = arith.mulf %679, %650 : vector<8x128xf32>
    %689 = arith.addf %687, %688 : vector<8x128xf32>
    %690 = arith.index_cast %654 : i32 to index
    %c0_308 = arith.constant 0 : index
    %691 = vector.load %arg9[%690, %c0_308] : memref<64x128xf32, #tpu.memory_space<vmem>>, vector<8x128xf32>
    tpu.vector_store %arg9[%690, %c0_308], %689 {strides = array<i32>} : memref<64x128xf32, #tpu.memory_space<vmem>>, vector<8x128xf32>,
    %c7_i32_309 = arith.constant 7 : i32
    %c8_i32_310 = arith.constant 8 : i32
    %692 = arith.muli %c7_i32_309, %c8_i32_310 : i32
    %693 = tpu.assume_multiple %692, 8 : i32
    %694 = arith.index_cast %693 : i32 to index
    %c0_311 = arith.constant 0 : index
    %695 = vector.load %arg10[%694, %c0_311] : memref<64x384xf32, #tpu.memory_space<vmem>>, vector<8x384xf32>
    %c1_312 = arith.constant 1 : index
    %c0_313 = arith.constant 0 : index
    %c0_314 = arith.constant 0 : index
    %696 = vector.load %arg4[%c1_312, %c0_313, %c0_314] : memref<3x128x384xf32, #tpu.memory_space<vmem>>, vector<1x128x384xf32>
    %697 = vector.shape_cast %696 : vector<1x128x384xf32> to vector<128x384xf32>
    %cst_315 = arith.constant dense<0.000000e+00> : vector<8x384xf32>
    %698 = tpu.matmul %689, %697, %cst_315 {dimension_numbers = #tpu.dot_dimension_numbers<[1], [0], [0], [1], [0, 0, 1, 1], [], []>} : vector<8x128xf32>, vector<128x384xf32>, vector<8x384xf32> -> vector<8x384xf32>
    %c1_316 = arith.constant 1 : index
    %c0_317 = arith.constant 0 : index
    %c0_318 = arith.constant 0 : index
    %699 = vector.load %arg6[%c1_316, %c0_317, %c0_318] : memref<3x1x384xf32, #tpu.memory_space<vmem>>, vector<1x1x384xf32>
    %700 = vector.shape_cast %699 : vector<1x1x384xf32> to vector<1x384xf32>
    %701 = vector.broadcast %700 : vector<1x384xf32> to vector<8x384xf32>
    %702 = arith.addf %698, %701 : vector<8x384xf32>
    %703 = vector.extract_strided_slice %695 {offsets = [0, 0], sizes = [8, 128], strides = [1, 1]} : vector<8x384xf32> to vector<8x128xf32>
    %704 = vector.extract_strided_slice %702 {offsets = [0, 0], sizes = [8, 128], strides = [1, 1]} : vector<8x384xf32> to vector<8x128xf32>
    %705 = arith.addf %703, %704 : vector<8x128xf32>
    %706 = arith.negf %705 : vector<8x128xf32>
    %707 = math.exp %706 : vector<8x128xf32>
    %cst_319 = arith.constant 1.000000e+00 : f32
    %708 = vector.broadcast %cst_319 : f32 to vector<8x128xf32>
    %709 = arith.addf %708, %707 : vector<8x128xf32>
    %710 = arith.divf %708, %709 : vector<8x128xf32>
    %711 = vector.extract_strided_slice %695 {offsets = [0, 128], sizes = [8, 128], strides = [1, 1]} : vector<8x384xf32> to vector<8x128xf32>
    %712 = vector.extract_strided_slice %702 {offsets = [0, 128], sizes = [8, 128], strides = [1, 1]} : vector<8x384xf32> to vector<8x128xf32>
    %713 = arith.addf %711, %712 : vector<8x128xf32>
    %714 = arith.negf %713 : vector<8x128xf32>
    %715 = math.exp %714 : vector<8x128xf32>
    %cst_320 = arith.constant 1.000000e+00 : f32
    %716 = vector.broadcast %cst_320 : f32 to vector<8x128xf32>
    %717 = arith.addf %716, %715 : vector<8x128xf32>
    %718 = arith.divf %716, %717 : vector<8x128xf32>
    %719 = vector.extract_strided_slice %695 {offsets = [0, 256], sizes = [8, 128], strides = [1, 1]} : vector<8x384xf32> to vector<8x128xf32>
    %720 = vector.extract_strided_slice %702 {offsets = [0, 256], sizes = [8, 128], strides = [1, 1]} : vector<8x384xf32> to vector<8x128xf32>
    %721 = arith.mulf %710, %720 : vector<8x128xf32>
    %722 = arith.addf %719, %721 : vector<8x128xf32>
    %723 = math.tanh %722 : vector<8x128xf32>
    %cst_321 = arith.constant 1.000000e+00 : f32
    %724 = vector.broadcast %cst_321 : f32 to vector<8x128xf32>
    %725 = arith.subf %724, %718 : vector<8x128xf32>
    %726 = arith.mulf %725, %723 : vector<8x128xf32>
    %727 = arith.mulf %718, %689 : vector<8x128xf32>
    %728 = arith.addf %726, %727 : vector<8x128xf32>
    %729 = arith.index_cast %693 : i32 to index
    %c0_322 = arith.constant 0 : index
    %730 = vector.load %arg9[%729, %c0_322] : memref<64x128xf32, #tpu.memory_space<vmem>>, vector<8x128xf32>
    tpu.vector_store %arg9[%729, %c0_322], %728 {strides = array<i32>} : memref<64x128xf32, #tpu.memory_space<vmem>>, vector<8x128xf32>,
    %c8_i32_323 = arith.constant 8 : i32
    %c1_324 = arith.constant 1 : index
    %c0_325 = arith.constant 0 : index
    %c0_326 = arith.constant 0 : index
    %731 = vector.load %arg8[%c1_324, %c0_325, %c0_326] : memref<3x8x128xf32, #tpu.memory_space<vmem>>, vector<1x8x128xf32>
    %732 = vector.shape_cast %731 : vector<1x8x128xf32> to vector<8x128xf32>
    %733 = vector.shape_cast %728 : vector<8x128xf32> to vector<1x8x128xf32>
    tpu.vector_store %arg8[%c1_324, %c0_325, %c0_326], %733 {strides = array<i32>} : memref<3x8x128xf32, #tpu.memory_space<vmem>>, vector<1x8x128xf32>,
    %c0_327 = arith.constant 0 : index
    %c0_328 = arith.constant 0 : index
    %734 = vector.load %arg9[%c0_327, %c0_328] : memref<64x128xf32, #tpu.memory_space<vmem>>, vector<64x128xf32>
    %c2_329 = arith.constant 2 : index
    %c0_330 = arith.constant 0 : index
    %c0_331 = arith.constant 0 : index
    %735 = vector.load %arg3[%c2_329, %c0_330, %c0_331] : memref<3x128x384xf32, #tpu.memory_space<vmem>>, vector<1x128x384xf32>
    %736 = vector.shape_cast %735 : vector<1x128x384xf32> to vector<128x384xf32>
    %cst_332 = arith.constant dense<0.000000e+00> : vector<64x384xf32>
    %737 = tpu.matmul %734, %736, %cst_332 {dimension_numbers = #tpu.dot_dimension_numbers<[1], [0], [0], [1], [0, 0, 1, 1], [], []>} : vector<64x128xf32>, vector<128x384xf32>, vector<64x384xf32> -> vector<64x384xf32>
    %c2_333 = arith.constant 2 : index
    %c0_334 = arith.constant 0 : index
    %c0_335 = arith.constant 0 : index
    %738 = vector.load %arg5[%c2_333, %c0_334, %c0_335] : memref<3x1x384xf32, #tpu.memory_space<vmem>>, vector<1x1x384xf32>
    %739 = vector.shape_cast %738 : vector<1x1x384xf32> to vector<1x384xf32>
    %740 = vector.broadcast %739 : vector<1x384xf32> to vector<64x384xf32>
    %741 = arith.addf %737, %740 : vector<64x384xf32>
    %c0_336 = arith.constant 0 : index
    %c0_337 = arith.constant 0 : index
    %742 = vector.load %arg10[%c0_336, %c0_337] : memref<64x384xf32, #tpu.memory_space<vmem>>, vector<64x384xf32>
    tpu.vector_store %arg10[%c0_336, %c0_337], %741 {strides = array<i32>} : memref<64x384xf32, #tpu.memory_space<vmem>>, vector<64x384xf32>,
    %c2_338 = arith.constant 2 : index
    %c0_339 = arith.constant 0 : index
    %c0_340 = arith.constant 0 : index
    %743 = vector.load %arg2[%c2_338, %c0_339, %c0_340] : memref<3x8x128xf32, #tpu.memory_space<vmem>>, vector<1x8x128xf32>
    %744 = vector.shape_cast %743 : vector<1x8x128xf32> to vector<8x128xf32>
    %c0_i32_341 = arith.constant 0 : i32
    %c8_i32_342 = arith.constant 8 : i32
    %745 = arith.muli %c0_i32_341, %c8_i32_342 : i32
    %746 = tpu.assume_multiple %745, 8 : i32
    %747 = arith.index_cast %746 : i32 to index
    %c0_343 = arith.constant 0 : index
    %748 = vector.load %arg10[%747, %c0_343] : memref<64x384xf32, #tpu.memory_space<vmem>>, vector<8x384xf32>
    %c2_344 = arith.constant 2 : index
    %c0_345 = arith.constant 0 : index
    %c0_346 = arith.constant 0 : index
    %749 = vector.load %arg4[%c2_344, %c0_345, %c0_346] : memref<3x128x384xf32, #tpu.memory_space<vmem>>, vector<1x128x384xf32>
    %750 = vector.shape_cast %749 : vector<1x128x384xf32> to vector<128x384xf32>
    %cst_347 = arith.constant dense<0.000000e+00> : vector<8x384xf32>
    %751 = tpu.matmul %744, %750, %cst_347 {dimension_numbers = #tpu.dot_dimension_numbers<[1], [0], [0], [1], [0, 0, 1, 1], [], []>} : vector<8x128xf32>, vector<128x384xf32>, vector<8x384xf32> -> vector<8x384xf32>
    %c2_348 = arith.constant 2 : index
    %c0_349 = arith.constant 0 : index
    %c0_350 = arith.constant 0 : index
    %752 = vector.load %arg6[%c2_348, %c0_349, %c0_350] : memref<3x1x384xf32, #tpu.memory_space<vmem>>, vector<1x1x384xf32>
    %753 = vector.shape_cast %752 : vector<1x1x384xf32> to vector<1x384xf32>
    %754 = vector.broadcast %753 : vector<1x384xf32> to vector<8x384xf32>
    %755 = arith.addf %751, %754 : vector<8x384xf32>
    %756 = vector.extract_strided_slice %748 {offsets = [0, 0], sizes = [8, 128], strides = [1, 1]} : vector<8x384xf32> to vector<8x128xf32>
    %757 = vector.extract_strided_slice %755 {offsets = [0, 0], sizes = [8, 128], strides = [1, 1]} : vector<8x384xf32> to vector<8x128xf32>
    %758 = arith.addf %756, %757 : vector<8x128xf32>
    %759 = arith.negf %758 : vector<8x128xf32>
    %760 = math.exp %759 : vector<8x128xf32>
    %cst_351 = arith.constant 1.000000e+00 : f32
    %761 = vector.broadcast %cst_351 : f32 to vector<8x128xf32>
    %762 = arith.addf %761, %760 : vector<8x128xf32>
    %763 = arith.divf %761, %762 : vector<8x128xf32>
    %764 = vector.extract_strided_slice %748 {offsets = [0, 128], sizes = [8, 128], strides = [1, 1]} : vector<8x384xf32> to vector<8x128xf32>
    %765 = vector.extract_strided_slice %755 {offsets = [0, 128], sizes = [8, 128], strides = [1, 1]} : vector<8x384xf32> to vector<8x128xf32>
    %766 = arith.addf %764, %765 : vector<8x128xf32>
    %767 = arith.negf %766 : vector<8x128xf32>
    %768 = math.exp %767 : vector<8x128xf32>
    %cst_352 = arith.constant 1.000000e+00 : f32
    %769 = vector.broadcast %cst_352 : f32 to vector<8x128xf32>
    %770 = arith.addf %769, %768 : vector<8x128xf32>
    %771 = arith.divf %769, %770 : vector<8x128xf32>
    %772 = vector.extract_strided_slice %748 {offsets = [0, 256], sizes = [8, 128], strides = [1, 1]} : vector<8x384xf32> to vector<8x128xf32>
    %773 = vector.extract_strided_slice %755 {offsets = [0, 256], sizes = [8, 128], strides = [1, 1]} : vector<8x384xf32> to vector<8x128xf32>
    %774 = arith.mulf %763, %773 : vector<8x128xf32>
    %775 = arith.addf %772, %774 : vector<8x128xf32>
    %776 = math.tanh %775 : vector<8x128xf32>
    %cst_353 = arith.constant 1.000000e+00 : f32
    %777 = vector.broadcast %cst_353 : f32 to vector<8x128xf32>
    %778 = arith.subf %777, %771 : vector<8x128xf32>
    %779 = arith.mulf %778, %776 : vector<8x128xf32>
    %780 = arith.mulf %771, %744 : vector<8x128xf32>
    %781 = arith.addf %779, %780 : vector<8x128xf32>
    %c128_i32 = arith.constant 128 : i32
    %782 = arith.muli %c0_i32_341, %c128_i32 : i32
    %783 = tpu.assume_multiple %782, 128 : i32
    %c0_354 = arith.constant 0 : index
    %784 = arith.index_cast %783 : i32 to index
    %785 = vector.load %arg7[%c0_354, %784] : memref<8x1024xf32, #tpu.memory_space<vmem>>, vector<8x128xf32>
    tpu.vector_store %arg7[%c0_354, %784], %781 {strides = array<i32>} : memref<8x1024xf32, #tpu.memory_space<vmem>>, vector<8x128xf32>,
    %c1_i32_355 = arith.constant 1 : i32
    %c8_i32_356 = arith.constant 8 : i32
    %786 = arith.muli %c1_i32_355, %c8_i32_356 : i32
    %787 = tpu.assume_multiple %786, 8 : i32
    %788 = arith.index_cast %787 : i32 to index
    %c0_357 = arith.constant 0 : index
    %789 = vector.load %arg10[%788, %c0_357] : memref<64x384xf32, #tpu.memory_space<vmem>>, vector<8x384xf32>
    %c2_358 = arith.constant 2 : index
    %c0_359 = arith.constant 0 : index
    %c0_360 = arith.constant 0 : index
    %790 = vector.load %arg4[%c2_358, %c0_359, %c0_360] : memref<3x128x384xf32, #tpu.memory_space<vmem>>, vector<1x128x384xf32>
    %791 = vector.shape_cast %790 : vector<1x128x384xf32> to vector<128x384xf32>
    %cst_361 = arith.constant dense<0.000000e+00> : vector<8x384xf32>
    %792 = tpu.matmul %781, %791, %cst_361 {dimension_numbers = #tpu.dot_dimension_numbers<[1], [0], [0], [1], [0, 0, 1, 1], [], []>} : vector<8x128xf32>, vector<128x384xf32>, vector<8x384xf32> -> vector<8x384xf32>
    %c2_362 = arith.constant 2 : index
    %c0_363 = arith.constant 0 : index
    %c0_364 = arith.constant 0 : index
    %793 = vector.load %arg6[%c2_362, %c0_363, %c0_364] : memref<3x1x384xf32, #tpu.memory_space<vmem>>, vector<1x1x384xf32>
    %794 = vector.shape_cast %793 : vector<1x1x384xf32> to vector<1x384xf32>
    %795 = vector.broadcast %794 : vector<1x384xf32> to vector<8x384xf32>
    %796 = arith.addf %792, %795 : vector<8x384xf32>
    %797 = vector.extract_strided_slice %789 {offsets = [0, 0], sizes = [8, 128], strides = [1, 1]} : vector<8x384xf32> to vector<8x128xf32>
    %798 = vector.extract_strided_slice %796 {offsets = [0, 0], sizes = [8, 128], strides = [1, 1]} : vector<8x384xf32> to vector<8x128xf32>
    %799 = arith.addf %797, %798 : vector<8x128xf32>
    %800 = arith.negf %799 : vector<8x128xf32>
    %801 = math.exp %800 : vector<8x128xf32>
    %cst_365 = arith.constant 1.000000e+00 : f32
    %802 = vector.broadcast %cst_365 : f32 to vector<8x128xf32>
    %803 = arith.addf %802, %801 : vector<8x128xf32>
    %804 = arith.divf %802, %803 : vector<8x128xf32>
    %805 = vector.extract_strided_slice %789 {offsets = [0, 128], sizes = [8, 128], strides = [1, 1]} : vector<8x384xf32> to vector<8x128xf32>
    %806 = vector.extract_strided_slice %796 {offsets = [0, 128], sizes = [8, 128], strides = [1, 1]} : vector<8x384xf32> to vector<8x128xf32>
    %807 = arith.addf %805, %806 : vector<8x128xf32>
    %808 = arith.negf %807 : vector<8x128xf32>
    %809 = math.exp %808 : vector<8x128xf32>
    %cst_366 = arith.constant 1.000000e+00 : f32
    %810 = vector.broadcast %cst_366 : f32 to vector<8x128xf32>
    %811 = arith.addf %810, %809 : vector<8x128xf32>
    %812 = arith.divf %810, %811 : vector<8x128xf32>
    %813 = vector.extract_strided_slice %789 {offsets = [0, 256], sizes = [8, 128], strides = [1, 1]} : vector<8x384xf32> to vector<8x128xf32>
    %814 = vector.extract_strided_slice %796 {offsets = [0, 256], sizes = [8, 128], strides = [1, 1]} : vector<8x384xf32> to vector<8x128xf32>
    %815 = arith.mulf %804, %814 : vector<8x128xf32>
    %816 = arith.addf %813, %815 : vector<8x128xf32>
    %817 = math.tanh %816 : vector<8x128xf32>
    %cst_367 = arith.constant 1.000000e+00 : f32
    %818 = vector.broadcast %cst_367 : f32 to vector<8x128xf32>
    %819 = arith.subf %818, %812 : vector<8x128xf32>
    %820 = arith.mulf %819, %817 : vector<8x128xf32>
    %821 = arith.mulf %812, %781 : vector<8x128xf32>
    %822 = arith.addf %820, %821 : vector<8x128xf32>
    %c128_i32_368 = arith.constant 128 : i32
    %823 = arith.muli %c1_i32_355, %c128_i32_368 : i32
    %824 = tpu.assume_multiple %823, 128 : i32
    %c0_369 = arith.constant 0 : index
    %825 = arith.index_cast %824 : i32 to index
    %826 = vector.load %arg7[%c0_369, %825] : memref<8x1024xf32, #tpu.memory_space<vmem>>, vector<8x128xf32>
    tpu.vector_store %arg7[%c0_369, %825], %822 {strides = array<i32>} : memref<8x1024xf32, #tpu.memory_space<vmem>>, vector<8x128xf32>,
    %c2_i32_370 = arith.constant 2 : i32
    %c8_i32_371 = arith.constant 8 : i32
    %827 = arith.muli %c2_i32_370, %c8_i32_371 : i32
    %828 = tpu.assume_multiple %827, 8 : i32
    %829 = arith.index_cast %828 : i32 to index
    %c0_372 = arith.constant 0 : index
    %830 = vector.load %arg10[%829, %c0_372] : memref<64x384xf32, #tpu.memory_space<vmem>>, vector<8x384xf32>
    %c2_373 = arith.constant 2 : index
    %c0_374 = arith.constant 0 : index
    %c0_375 = arith.constant 0 : index
    %831 = vector.load %arg4[%c2_373, %c0_374, %c0_375] : memref<3x128x384xf32, #tpu.memory_space<vmem>>, vector<1x128x384xf32>
    %832 = vector.shape_cast %831 : vector<1x128x384xf32> to vector<128x384xf32>
    %cst_376 = arith.constant dense<0.000000e+00> : vector<8x384xf32>
    %833 = tpu.matmul %822, %832, %cst_376 {dimension_numbers = #tpu.dot_dimension_numbers<[1], [0], [0], [1], [0, 0, 1, 1], [], []>} : vector<8x128xf32>, vector<128x384xf32>, vector<8x384xf32> -> vector<8x384xf32>
    %c2_377 = arith.constant 2 : index
    %c0_378 = arith.constant 0 : index
    %c0_379 = arith.constant 0 : index
    %834 = vector.load %arg6[%c2_377, %c0_378, %c0_379] : memref<3x1x384xf32, #tpu.memory_space<vmem>>, vector<1x1x384xf32>
    %835 = vector.shape_cast %834 : vector<1x1x384xf32> to vector<1x384xf32>
    %836 = vector.broadcast %835 : vector<1x384xf32> to vector<8x384xf32>
    %837 = arith.addf %833, %836 : vector<8x384xf32>
    %838 = vector.extract_strided_slice %830 {offsets = [0, 0], sizes = [8, 128], strides = [1, 1]} : vector<8x384xf32> to vector<8x128xf32>
    %839 = vector.extract_strided_slice %837 {offsets = [0, 0], sizes = [8, 128], strides = [1, 1]} : vector<8x384xf32> to vector<8x128xf32>
    %840 = arith.addf %838, %839 : vector<8x128xf32>
    %841 = arith.negf %840 : vector<8x128xf32>
    %842 = math.exp %841 : vector<8x128xf32>
    %cst_380 = arith.constant 1.000000e+00 : f32
    %843 = vector.broadcast %cst_380 : f32 to vector<8x128xf32>
    %844 = arith.addf %843, %842 : vector<8x128xf32>
    %845 = arith.divf %843, %844 : vector<8x128xf32>
    %846 = vector.extract_strided_slice %830 {offsets = [0, 128], sizes = [8, 128], strides = [1, 1]} : vector<8x384xf32> to vector<8x128xf32>
    %847 = vector.extract_strided_slice %837 {offsets = [0, 128], sizes = [8, 128], strides = [1, 1]} : vector<8x384xf32> to vector<8x128xf32>
    %848 = arith.addf %846, %847 : vector<8x128xf32>
    %849 = arith.negf %848 : vector<8x128xf32>
    %850 = math.exp %849 : vector<8x128xf32>
    %cst_381 = arith.constant 1.000000e+00 : f32
    %851 = vector.broadcast %cst_381 : f32 to vector<8x128xf32>
    %852 = arith.addf %851, %850 : vector<8x128xf32>
    %853 = arith.divf %851, %852 : vector<8x128xf32>
    %854 = vector.extract_strided_slice %830 {offsets = [0, 256], sizes = [8, 128], strides = [1, 1]} : vector<8x384xf32> to vector<8x128xf32>
    %855 = vector.extract_strided_slice %837 {offsets = [0, 256], sizes = [8, 128], strides = [1, 1]} : vector<8x384xf32> to vector<8x128xf32>
    %856 = arith.mulf %845, %855 : vector<8x128xf32>
    %857 = arith.addf %854, %856 : vector<8x128xf32>
    %858 = math.tanh %857 : vector<8x128xf32>
    %cst_382 = arith.constant 1.000000e+00 : f32
    %859 = vector.broadcast %cst_382 : f32 to vector<8x128xf32>
    %860 = arith.subf %859, %853 : vector<8x128xf32>
    %861 = arith.mulf %860, %858 : vector<8x128xf32>
    %862 = arith.mulf %853, %822 : vector<8x128xf32>
    %863 = arith.addf %861, %862 : vector<8x128xf32>
    %c128_i32_383 = arith.constant 128 : i32
    %864 = arith.muli %c2_i32_370, %c128_i32_383 : i32
    %865 = tpu.assume_multiple %864, 128 : i32
    %c0_384 = arith.constant 0 : index
    %866 = arith.index_cast %865 : i32 to index
    %867 = vector.load %arg7[%c0_384, %866] : memref<8x1024xf32, #tpu.memory_space<vmem>>, vector<8x128xf32>
    tpu.vector_store %arg7[%c0_384, %866], %863 {strides = array<i32>} : memref<8x1024xf32, #tpu.memory_space<vmem>>, vector<8x128xf32>,
    %c3_i32_385 = arith.constant 3 : i32
    %c8_i32_386 = arith.constant 8 : i32
    %868 = arith.muli %c3_i32_385, %c8_i32_386 : i32
    %869 = tpu.assume_multiple %868, 8 : i32
    %870 = arith.index_cast %869 : i32 to index
    %c0_387 = arith.constant 0 : index
    %871 = vector.load %arg10[%870, %c0_387] : memref<64x384xf32, #tpu.memory_space<vmem>>, vector<8x384xf32>
    %c2_388 = arith.constant 2 : index
    %c0_389 = arith.constant 0 : index
    %c0_390 = arith.constant 0 : index
    %872 = vector.load %arg4[%c2_388, %c0_389, %c0_390] : memref<3x128x384xf32, #tpu.memory_space<vmem>>, vector<1x128x384xf32>
    %873 = vector.shape_cast %872 : vector<1x128x384xf32> to vector<128x384xf32>
    %cst_391 = arith.constant dense<0.000000e+00> : vector<8x384xf32>
    %874 = tpu.matmul %863, %873, %cst_391 {dimension_numbers = #tpu.dot_dimension_numbers<[1], [0], [0], [1], [0, 0, 1, 1], [], []>} : vector<8x128xf32>, vector<128x384xf32>, vector<8x384xf32> -> vector<8x384xf32>
    %c2_392 = arith.constant 2 : index
    %c0_393 = arith.constant 0 : index
    %c0_394 = arith.constant 0 : index
    %875 = vector.load %arg6[%c2_392, %c0_393, %c0_394] : memref<3x1x384xf32, #tpu.memory_space<vmem>>, vector<1x1x384xf32>
    %876 = vector.shape_cast %875 : vector<1x1x384xf32> to vector<1x384xf32>
    %877 = vector.broadcast %876 : vector<1x384xf32> to vector<8x384xf32>
    %878 = arith.addf %874, %877 : vector<8x384xf32>
    %879 = vector.extract_strided_slice %871 {offsets = [0, 0], sizes = [8, 128], strides = [1, 1]} : vector<8x384xf32> to vector<8x128xf32>
    %880 = vector.extract_strided_slice %878 {offsets = [0, 0], sizes = [8, 128], strides = [1, 1]} : vector<8x384xf32> to vector<8x128xf32>
    %881 = arith.addf %879, %880 : vector<8x128xf32>
    %882 = arith.negf %881 : vector<8x128xf32>
    %883 = math.exp %882 : vector<8x128xf32>
    %cst_395 = arith.constant 1.000000e+00 : f32
    %884 = vector.broadcast %cst_395 : f32 to vector<8x128xf32>
    %885 = arith.addf %884, %883 : vector<8x128xf32>
    %886 = arith.divf %884, %885 : vector<8x128xf32>
    %887 = vector.extract_strided_slice %871 {offsets = [0, 128], sizes = [8, 128], strides = [1, 1]} : vector<8x384xf32> to vector<8x128xf32>
    %888 = vector.extract_strided_slice %878 {offsets = [0, 128], sizes = [8, 128], strides = [1, 1]} : vector<8x384xf32> to vector<8x128xf32>
    %889 = arith.addf %887, %888 : vector<8x128xf32>
    %890 = arith.negf %889 : vector<8x128xf32>
    %891 = math.exp %890 : vector<8x128xf32>
    %cst_396 = arith.constant 1.000000e+00 : f32
    %892 = vector.broadcast %cst_396 : f32 to vector<8x128xf32>
    %893 = arith.addf %892, %891 : vector<8x128xf32>
    %894 = arith.divf %892, %893 : vector<8x128xf32>
    %895 = vector.extract_strided_slice %871 {offsets = [0, 256], sizes = [8, 128], strides = [1, 1]} : vector<8x384xf32> to vector<8x128xf32>
    %896 = vector.extract_strided_slice %878 {offsets = [0, 256], sizes = [8, 128], strides = [1, 1]} : vector<8x384xf32> to vector<8x128xf32>
    %897 = arith.mulf %886, %896 : vector<8x128xf32>
    %898 = arith.addf %895, %897 : vector<8x128xf32>
    %899 = math.tanh %898 : vector<8x128xf32>
    %cst_397 = arith.constant 1.000000e+00 : f32
    %900 = vector.broadcast %cst_397 : f32 to vector<8x128xf32>
    %901 = arith.subf %900, %894 : vector<8x128xf32>
    %902 = arith.mulf %901, %899 : vector<8x128xf32>
    %903 = arith.mulf %894, %863 : vector<8x128xf32>
    %904 = arith.addf %902, %903 : vector<8x128xf32>
    %c128_i32_398 = arith.constant 128 : i32
    %905 = arith.muli %c3_i32_385, %c128_i32_398 : i32
    %906 = tpu.assume_multiple %905, 128 : i32
    %c0_399 = arith.constant 0 : index
    %907 = arith.index_cast %906 : i32 to index
    %908 = vector.load %arg7[%c0_399, %907] : memref<8x1024xf32, #tpu.memory_space<vmem>>, vector<8x128xf32>
    tpu.vector_store %arg7[%c0_399, %907], %904 {strides = array<i32>} : memref<8x1024xf32, #tpu.memory_space<vmem>>, vector<8x128xf32>,
    %c4_i32_400 = arith.constant 4 : i32
    %c8_i32_401 = arith.constant 8 : i32
    %909 = arith.muli %c4_i32_400, %c8_i32_401 : i32
    %910 = tpu.assume_multiple %909, 8 : i32
    %911 = arith.index_cast %910 : i32 to index
    %c0_402 = arith.constant 0 : index
    %912 = vector.load %arg10[%911, %c0_402] : memref<64x384xf32, #tpu.memory_space<vmem>>, vector<8x384xf32>
    %c2_403 = arith.constant 2 : index
    %c0_404 = arith.constant 0 : index
    %c0_405 = arith.constant 0 : index
    %913 = vector.load %arg4[%c2_403, %c0_404, %c0_405] : memref<3x128x384xf32, #tpu.memory_space<vmem>>, vector<1x128x384xf32>
    %914 = vector.shape_cast %913 : vector<1x128x384xf32> to vector<128x384xf32>
    %cst_406 = arith.constant dense<0.000000e+00> : vector<8x384xf32>
    %915 = tpu.matmul %904, %914, %cst_406 {dimension_numbers = #tpu.dot_dimension_numbers<[1], [0], [0], [1], [0, 0, 1, 1], [], []>} : vector<8x128xf32>, vector<128x384xf32>, vector<8x384xf32> -> vector<8x384xf32>
    %c2_407 = arith.constant 2 : index
    %c0_408 = arith.constant 0 : index
    %c0_409 = arith.constant 0 : index
    %916 = vector.load %arg6[%c2_407, %c0_408, %c0_409] : memref<3x1x384xf32, #tpu.memory_space<vmem>>, vector<1x1x384xf32>
    %917 = vector.shape_cast %916 : vector<1x1x384xf32> to vector<1x384xf32>
    %918 = vector.broadcast %917 : vector<1x384xf32> to vector<8x384xf32>
    %919 = arith.addf %915, %918 : vector<8x384xf32>
    %920 = vector.extract_strided_slice %912 {offsets = [0, 0], sizes = [8, 128], strides = [1, 1]} : vector<8x384xf32> to vector<8x128xf32>
    %921 = vector.extract_strided_slice %919 {offsets = [0, 0], sizes = [8, 128], strides = [1, 1]} : vector<8x384xf32> to vector<8x128xf32>
    %922 = arith.addf %920, %921 : vector<8x128xf32>
    %923 = arith.negf %922 : vector<8x128xf32>
    %924 = math.exp %923 : vector<8x128xf32>
    %cst_410 = arith.constant 1.000000e+00 : f32
    %925 = vector.broadcast %cst_410 : f32 to vector<8x128xf32>
    %926 = arith.addf %925, %924 : vector<8x128xf32>
    %927 = arith.divf %925, %926 : vector<8x128xf32>
    %928 = vector.extract_strided_slice %912 {offsets = [0, 128], sizes = [8, 128], strides = [1, 1]} : vector<8x384xf32> to vector<8x128xf32>
    %929 = vector.extract_strided_slice %919 {offsets = [0, 128], sizes = [8, 128], strides = [1, 1]} : vector<8x384xf32> to vector<8x128xf32>
    %930 = arith.addf %928, %929 : vector<8x128xf32>
    %931 = arith.negf %930 : vector<8x128xf32>
    %932 = math.exp %931 : vector<8x128xf32>
    %cst_411 = arith.constant 1.000000e+00 : f32
    %933 = vector.broadcast %cst_411 : f32 to vector<8x128xf32>
    %934 = arith.addf %933, %932 : vector<8x128xf32>
    %935 = arith.divf %933, %934 : vector<8x128xf32>
    %936 = vector.extract_strided_slice %912 {offsets = [0, 256], sizes = [8, 128], strides = [1, 1]} : vector<8x384xf32> to vector<8x128xf32>
    %937 = vector.extract_strided_slice %919 {offsets = [0, 256], sizes = [8, 128], strides = [1, 1]} : vector<8x384xf32> to vector<8x128xf32>
    %938 = arith.mulf %927, %937 : vector<8x128xf32>
    %939 = arith.addf %936, %938 : vector<8x128xf32>
    %940 = math.tanh %939 : vector<8x128xf32>
    %cst_412 = arith.constant 1.000000e+00 : f32
    %941 = vector.broadcast %cst_412 : f32 to vector<8x128xf32>
    %942 = arith.subf %941, %935 : vector<8x128xf32>
    %943 = arith.mulf %942, %940 : vector<8x128xf32>
    %944 = arith.mulf %935, %904 : vector<8x128xf32>
    %945 = arith.addf %943, %944 : vector<8x128xf32>
    %c128_i32_413 = arith.constant 128 : i32
    %946 = arith.muli %c4_i32_400, %c128_i32_413 : i32
    %947 = tpu.assume_multiple %946, 128 : i32
    %c0_414 = arith.constant 0 : index
    %948 = arith.index_cast %947 : i32 to index
    %949 = vector.load %arg7[%c0_414, %948] : memref<8x1024xf32, #tpu.memory_space<vmem>>, vector<8x128xf32>
    tpu.vector_store %arg7[%c0_414, %948], %945 {strides = array<i32>} : memref<8x1024xf32, #tpu.memory_space<vmem>>, vector<8x128xf32>,
    %c5_i32_415 = arith.constant 5 : i32
    %c8_i32_416 = arith.constant 8 : i32
    %950 = arith.muli %c5_i32_415, %c8_i32_416 : i32
    %951 = tpu.assume_multiple %950, 8 : i32
    %952 = arith.index_cast %951 : i32 to index
    %c0_417 = arith.constant 0 : index
    %953 = vector.load %arg10[%952, %c0_417] : memref<64x384xf32, #tpu.memory_space<vmem>>, vector<8x384xf32>
    %c2_418 = arith.constant 2 : index
    %c0_419 = arith.constant 0 : index
    %c0_420 = arith.constant 0 : index
    %954 = vector.load %arg4[%c2_418, %c0_419, %c0_420] : memref<3x128x384xf32, #tpu.memory_space<vmem>>, vector<1x128x384xf32>
    %955 = vector.shape_cast %954 : vector<1x128x384xf32> to vector<128x384xf32>
    %cst_421 = arith.constant dense<0.000000e+00> : vector<8x384xf32>
    %956 = tpu.matmul %945, %955, %cst_421 {dimension_numbers = #tpu.dot_dimension_numbers<[1], [0], [0], [1], [0, 0, 1, 1], [], []>} : vector<8x128xf32>, vector<128x384xf32>, vector<8x384xf32> -> vector<8x384xf32>
    %c2_422 = arith.constant 2 : index
    %c0_423 = arith.constant 0 : index
    %c0_424 = arith.constant 0 : index
    %957 = vector.load %arg6[%c2_422, %c0_423, %c0_424] : memref<3x1x384xf32, #tpu.memory_space<vmem>>, vector<1x1x384xf32>
    %958 = vector.shape_cast %957 : vector<1x1x384xf32> to vector<1x384xf32>
    %959 = vector.broadcast %958 : vector<1x384xf32> to vector<8x384xf32>
    %960 = arith.addf %956, %959 : vector<8x384xf32>
    %961 = vector.extract_strided_slice %953 {offsets = [0, 0], sizes = [8, 128], strides = [1, 1]} : vector<8x384xf32> to vector<8x128xf32>
    %962 = vector.extract_strided_slice %960 {offsets = [0, 0], sizes = [8, 128], strides = [1, 1]} : vector<8x384xf32> to vector<8x128xf32>
    %963 = arith.addf %961, %962 : vector<8x128xf32>
    %964 = arith.negf %963 : vector<8x128xf32>
    %965 = math.exp %964 : vector<8x128xf32>
    %cst_425 = arith.constant 1.000000e+00 : f32
    %966 = vector.broadcast %cst_425 : f32 to vector<8x128xf32>
    %967 = arith.addf %966, %965 : vector<8x128xf32>
    %968 = arith.divf %966, %967 : vector<8x128xf32>
    %969 = vector.extract_strided_slice %953 {offsets = [0, 128], sizes = [8, 128], strides = [1, 1]} : vector<8x384xf32> to vector<8x128xf32>
    %970 = vector.extract_strided_slice %960 {offsets = [0, 128], sizes = [8, 128], strides = [1, 1]} : vector<8x384xf32> to vector<8x128xf32>
    %971 = arith.addf %969, %970 : vector<8x128xf32>
    %972 = arith.negf %971 : vector<8x128xf32>
    %973 = math.exp %972 : vector<8x128xf32>
    %cst_426 = arith.constant 1.000000e+00 : f32
    %974 = vector.broadcast %cst_426 : f32 to vector<8x128xf32>
    %975 = arith.addf %974, %973 : vector<8x128xf32>
    %976 = arith.divf %974, %975 : vector<8x128xf32>
    %977 = vector.extract_strided_slice %953 {offsets = [0, 256], sizes = [8, 128], strides = [1, 1]} : vector<8x384xf32> to vector<8x128xf32>
    %978 = vector.extract_strided_slice %960 {offsets = [0, 256], sizes = [8, 128], strides = [1, 1]} : vector<8x384xf32> to vector<8x128xf32>
    %979 = arith.mulf %968, %978 : vector<8x128xf32>
    %980 = arith.addf %977, %979 : vector<8x128xf32>
    %981 = math.tanh %980 : vector<8x128xf32>
    %cst_427 = arith.constant 1.000000e+00 : f32
    %982 = vector.broadcast %cst_427 : f32 to vector<8x128xf32>
    %983 = arith.subf %982, %976 : vector<8x128xf32>
    %984 = arith.mulf %983, %981 : vector<8x128xf32>
    %985 = arith.mulf %976, %945 : vector<8x128xf32>
    %986 = arith.addf %984, %985 : vector<8x128xf32>
    %c128_i32_428 = arith.constant 128 : i32
    %987 = arith.muli %c5_i32_415, %c128_i32_428 : i32
    %988 = tpu.assume_multiple %987, 128 : i32
    %c0_429 = arith.constant 0 : index
    %989 = arith.index_cast %988 : i32 to index
    %990 = vector.load %arg7[%c0_429, %989] : memref<8x1024xf32, #tpu.memory_space<vmem>>, vector<8x128xf32>
    tpu.vector_store %arg7[%c0_429, %989], %986 {strides = array<i32>} : memref<8x1024xf32, #tpu.memory_space<vmem>>, vector<8x128xf32>,
    %c6_i32_430 = arith.constant 6 : i32
    %c8_i32_431 = arith.constant 8 : i32
    %991 = arith.muli %c6_i32_430, %c8_i32_431 : i32
    %992 = tpu.assume_multiple %991, 8 : i32
    %993 = arith.index_cast %992 : i32 to index
    %c0_432 = arith.constant 0 : index
    %994 = vector.load %arg10[%993, %c0_432] : memref<64x384xf32, #tpu.memory_space<vmem>>, vector<8x384xf32>
    %c2_433 = arith.constant 2 : index
    %c0_434 = arith.constant 0 : index
    %c0_435 = arith.constant 0 : index
    %995 = vector.load %arg4[%c2_433, %c0_434, %c0_435] : memref<3x128x384xf32, #tpu.memory_space<vmem>>, vector<1x128x384xf32>
    %996 = vector.shape_cast %995 : vector<1x128x384xf32> to vector<128x384xf32>
    %cst_436 = arith.constant dense<0.000000e+00> : vector<8x384xf32>
    %997 = tpu.matmul %986, %996, %cst_436 {dimension_numbers = #tpu.dot_dimension_numbers<[1], [0], [0], [1], [0, 0, 1, 1], [], []>} : vector<8x128xf32>, vector<128x384xf32>, vector<8x384xf32> -> vector<8x384xf32>
    %c2_437 = arith.constant 2 : index
    %c0_438 = arith.constant 0 : index
    %c0_439 = arith.constant 0 : index
    %998 = vector.load %arg6[%c2_437, %c0_438, %c0_439] : memref<3x1x384xf32, #tpu.memory_space<vmem>>, vector<1x1x384xf32>
    %999 = vector.shape_cast %998 : vector<1x1x384xf32> to vector<1x384xf32>
    %1000 = vector.broadcast %999 : vector<1x384xf32> to vector<8x384xf32>
    %1001 = arith.addf %997, %1000 : vector<8x384xf32>
    %1002 = vector.extract_strided_slice %994 {offsets = [0, 0], sizes = [8, 128], strides = [1, 1]} : vector<8x384xf32> to vector<8x128xf32>
    %1003 = vector.extract_strided_slice %1001 {offsets = [0, 0], sizes = [8, 128], strides = [1, 1]} : vector<8x384xf32> to vector<8x128xf32>
    %1004 = arith.addf %1002, %1003 : vector<8x128xf32>
    %1005 = arith.negf %1004 : vector<8x128xf32>
    %1006 = math.exp %1005 : vector<8x128xf32>
    %cst_440 = arith.constant 1.000000e+00 : f32
    %1007 = vector.broadcast %cst_440 : f32 to vector<8x128xf32>
    %1008 = arith.addf %1007, %1006 : vector<8x128xf32>
    %1009 = arith.divf %1007, %1008 : vector<8x128xf32>
    %1010 = vector.extract_strided_slice %994 {offsets = [0, 128], sizes = [8, 128], strides = [1, 1]} : vector<8x384xf32> to vector<8x128xf32>
    %1011 = vector.extract_strided_slice %1001 {offsets = [0, 128], sizes = [8, 128], strides = [1, 1]} : vector<8x384xf32> to vector<8x128xf32>
    %1012 = arith.addf %1010, %1011 : vector<8x128xf32>
    %1013 = arith.negf %1012 : vector<8x128xf32>
    %1014 = math.exp %1013 : vector<8x128xf32>
    %cst_441 = arith.constant 1.000000e+00 : f32
    %1015 = vector.broadcast %cst_441 : f32 to vector<8x128xf32>
    %1016 = arith.addf %1015, %1014 : vector<8x128xf32>
    %1017 = arith.divf %1015, %1016 : vector<8x128xf32>
    %1018 = vector.extract_strided_slice %994 {offsets = [0, 256], sizes = [8, 128], strides = [1, 1]} : vector<8x384xf32> to vector<8x128xf32>
    %1019 = vector.extract_strided_slice %1001 {offsets = [0, 256], sizes = [8, 128], strides = [1, 1]} : vector<8x384xf32> to vector<8x128xf32>
    %1020 = arith.mulf %1009, %1019 : vector<8x128xf32>
    %1021 = arith.addf %1018, %1020 : vector<8x128xf32>
    %1022 = math.tanh %1021 : vector<8x128xf32>
    %cst_442 = arith.constant 1.000000e+00 : f32
    %1023 = vector.broadcast %cst_442 : f32 to vector<8x128xf32>
    %1024 = arith.subf %1023, %1017 : vector<8x128xf32>
    %1025 = arith.mulf %1024, %1022 : vector<8x128xf32>
    %1026 = arith.mulf %1017, %986 : vector<8x128xf32>
    %1027 = arith.addf %1025, %1026 : vector<8x128xf32>
    %c128_i32_443 = arith.constant 128 : i32
    %1028 = arith.muli %c6_i32_430, %c128_i32_443 : i32
    %1029 = tpu.assume_multiple %1028, 128 : i32
    %c0_444 = arith.constant 0 : index
    %1030 = arith.index_cast %1029 : i32 to index
    %1031 = vector.load %arg7[%c0_444, %1030] : memref<8x1024xf32, #tpu.memory_space<vmem>>, vector<8x128xf32>
    tpu.vector_store %arg7[%c0_444, %1030], %1027 {strides = array<i32>} : memref<8x1024xf32, #tpu.memory_space<vmem>>, vector<8x128xf32>,
    %c7_i32_445 = arith.constant 7 : i32
    %c8_i32_446 = arith.constant 8 : i32
    %1032 = arith.muli %c7_i32_445, %c8_i32_446 : i32
    %1033 = tpu.assume_multiple %1032, 8 : i32
    %1034 = arith.index_cast %1033 : i32 to index
    %c0_447 = arith.constant 0 : index
    %1035 = vector.load %arg10[%1034, %c0_447] : memref<64x384xf32, #tpu.memory_space<vmem>>, vector<8x384xf32>
    %c2_448 = arith.constant 2 : index
    %c0_449 = arith.constant 0 : index
    %c0_450 = arith.constant 0 : index
    %1036 = vector.load %arg4[%c2_448, %c0_449, %c0_450] : memref<3x128x384xf32, #tpu.memory_space<vmem>>, vector<1x128x384xf32>
    %1037 = vector.shape_cast %1036 : vector<1x128x384xf32> to vector<128x384xf32>
    %cst_451 = arith.constant dense<0.000000e+00> : vector<8x384xf32>
    %1038 = tpu.matmul %1027, %1037, %cst_451 {dimension_numbers = #tpu.dot_dimension_numbers<[1], [0], [0], [1], [0, 0, 1, 1], [], []>} : vector<8x128xf32>, vector<128x384xf32>, vector<8x384xf32> -> vector<8x384xf32>
    %c2_452 = arith.constant 2 : index
    %c0_453 = arith.constant 0 : index
    %c0_454 = arith.constant 0 : index
    %1039 = vector.load %arg6[%c2_452, %c0_453, %c0_454] : memref<3x1x384xf32, #tpu.memory_space<vmem>>, vector<1x1x384xf32>
    %1040 = vector.shape_cast %1039 : vector<1x1x384xf32> to vector<1x384xf32>
    %1041 = vector.broadcast %1040 : vector<1x384xf32> to vector<8x384xf32>
    %1042 = arith.addf %1038, %1041 : vector<8x384xf32>
    %1043 = vector.extract_strided_slice %1035 {offsets = [0, 0], sizes = [8, 128], strides = [1, 1]} : vector<8x384xf32> to vector<8x128xf32>
    %1044 = vector.extract_strided_slice %1042 {offsets = [0, 0], sizes = [8, 128], strides = [1, 1]} : vector<8x384xf32> to vector<8x128xf32>
    %1045 = arith.addf %1043, %1044 : vector<8x128xf32>
    %1046 = arith.negf %1045 : vector<8x128xf32>
    %1047 = math.exp %1046 : vector<8x128xf32>
    %cst_455 = arith.constant 1.000000e+00 : f32
    %1048 = vector.broadcast %cst_455 : f32 to vector<8x128xf32>
    %1049 = arith.addf %1048, %1047 : vector<8x128xf32>
    %1050 = arith.divf %1048, %1049 : vector<8x128xf32>
    %1051 = vector.extract_strided_slice %1035 {offsets = [0, 128], sizes = [8, 128], strides = [1, 1]} : vector<8x384xf32> to vector<8x128xf32>
    %1052 = vector.extract_strided_slice %1042 {offsets = [0, 128], sizes = [8, 128], strides = [1, 1]} : vector<8x384xf32> to vector<8x128xf32>
    %1053 = arith.addf %1051, %1052 : vector<8x128xf32>
    %1054 = arith.negf %1053 : vector<8x128xf32>
    %1055 = math.exp %1054 : vector<8x128xf32>
    %cst_456 = arith.constant 1.000000e+00 : f32
    %1056 = vector.broadcast %cst_456 : f32 to vector<8x128xf32>
    %1057 = arith.addf %1056, %1055 : vector<8x128xf32>
    %1058 = arith.divf %1056, %1057 : vector<8x128xf32>
    %1059 = vector.extract_strided_slice %1035 {offsets = [0, 256], sizes = [8, 128], strides = [1, 1]} : vector<8x384xf32> to vector<8x128xf32>
    %1060 = vector.extract_strided_slice %1042 {offsets = [0, 256], sizes = [8, 128], strides = [1, 1]} : vector<8x384xf32> to vector<8x128xf32>
    %1061 = arith.mulf %1050, %1060 : vector<8x128xf32>
    %1062 = arith.addf %1059, %1061 : vector<8x128xf32>
    %1063 = math.tanh %1062 : vector<8x128xf32>
    %cst_457 = arith.constant 1.000000e+00 : f32
    %1064 = vector.broadcast %cst_457 : f32 to vector<8x128xf32>
    %1065 = arith.subf %1064, %1058 : vector<8x128xf32>
    %1066 = arith.mulf %1065, %1063 : vector<8x128xf32>
    %1067 = arith.mulf %1058, %1027 : vector<8x128xf32>
    %1068 = arith.addf %1066, %1067 : vector<8x128xf32>
    %c128_i32_458 = arith.constant 128 : i32
    %1069 = arith.muli %c7_i32_445, %c128_i32_458 : i32
    %1070 = tpu.assume_multiple %1069, 128 : i32
    %c0_459 = arith.constant 0 : index
    %1071 = arith.index_cast %1070 : i32 to index
    %1072 = vector.load %arg7[%c0_459, %1071] : memref<8x1024xf32, #tpu.memory_space<vmem>>, vector<8x128xf32>
    tpu.vector_store %arg7[%c0_459, %1071], %1068 {strides = array<i32>} : memref<8x1024xf32, #tpu.memory_space<vmem>>, vector<8x128xf32>,
    %c8_i32_460 = arith.constant 8 : i32
    %c2_461 = arith.constant 2 : index
    %c0_462 = arith.constant 0 : index
    %c0_463 = arith.constant 0 : index
    %1073 = vector.load %arg8[%c2_461, %c0_462, %c0_463] : memref<3x8x128xf32, #tpu.memory_space<vmem>>, vector<1x8x128xf32>
    %1074 = vector.shape_cast %1073 : vector<1x8x128xf32> to vector<8x128xf32>
    %1075 = vector.shape_cast %1068 : vector<8x128xf32> to vector<1x8x128xf32>
    tpu.vector_store %arg8[%c2_461, %c0_462, %c0_463], %1075 {strides = array<i32>} : memref<3x8x128xf32, #tpu.memory_space<vmem>>, vector<1x8x128xf32>,
    return
  }
}

</mosaic_0001>

<bundles_post_ra>
// kernel: tpu_custom_call.1
= control target key start
LH: loop header
LB: loop body
LE: loop exit
PB: predicated region body
PF: predicated region fallthrough
CT: control target
= control target key end

     0   :  { %14 = vsyncpa [#allocation7], 0  ;;  %s7755_s0 = inlined_call_operand.hbm [shape: s32[2,8], index: 0, kind: input, shape index: {}]   ;;  %s7756_s1 = inlined_call_operand.hbm [shape: f32[20,1,128], index: 1, kind: input, shape index: {}]   ;;  %s7757_s2 = inlined_call_operand.hbm [shape: f32[3,8,128], index: 2, kind: input, shape index: {}]   ;;  %s7758_s3 = inlined_call_operand.hbm [shape: f32[3,128,384], index: 3, kind: input, shape index: {}]   ;;  %s7759_s4 = inlined_call_operand.hbm [shape: f32[3,128,384], index: 4, kind: input, shape index: {}]   ;;  %s7760_s5 = inlined_call_operand.hbm [shape: f32[3,1,384], index: 5, kind: input, shape index: {}]   ;;  %s7761_s6 = inlined_call_operand.hbm [shape: f32[3,1,384], index: 6, kind: input, shape index: {}]   ;;  %s7762_s7 = inlined_call_operand.hbm [shape: f32[8,1024], index: 7, kind: output, shape index: {0}]   ;;  %s7763_s8 = inlined_call_operand.hbm [shape: f32[3,8,128], index: 8, kind: output, shape index: {1}]  }
   0x1   :  { %15 = vsyncpa [#allocation5], 0 }
   0x2   :  { %16 = vsyncpa [#allocation10], 0 }
   0x3   :  { %17 = vsyncpa [#allocation13], 0 }
   0x4   :  { %18 = vsyncpa [#allocation16], 0 }
   0x5   :  { %19 = vsyncpa [#allocation6], 0  ;;  %s47_s29 = sshll.u32 %s7757_s2, 4  ;;  %s48_s29 = int_to_ptr.hbm [resolvable:$true] %s47_s29 }
   0x6   :  { %20 = vsyncpa [#allocation19], 0  ;;  %s5508_s30 = smov [#allocation9]   ;;  %s5509_s10 = smov 128  }
   0x7   :  { %s49_s9 = sshll.u32 %s5508_s30, 4  ;;  %s5510_s11 = smov 8   ;;  %s50_s9 = int_to_ptr.vmem [resolvable:$true] %s49_s9 }
   0x8   :  { %55 = dma.hbm_to_vmem [thread:$0]  %s48_s29, 384, %s50_s9, [#allocation10], %s5509_s10, %s5509_s10, %s5510_s11  }
   0x9   :  { %s73_s14 = sshll.u32 %s7759_s4, 4  ;;  %s5511_s15 = smov [#allocation12]   ;;  %s74_s14 = int_to_ptr.hbm [resolvable:$true] %s73_s14 }
   0xa   :  { %s75_s16 = sshll.u32 %s5511_s15, 4  ;;  %s26_s18 = sshll.u32 %s7755_s0, 4  ;;  %s76_s16 = int_to_ptr.vmem [resolvable:$true] %s75_s16  ;;  %s27_s18 = int_to_ptr.hbm [resolvable:$true] %s26_s18 }
   0xb   :  { %s5512_s19 = smov 384   ;;  %s5513_s20 = smov 24  }
   0xc   :  { %81 = dma.hbm_to_vmem [thread:$0]  %s74_s14, 18432, %s76_s16, [#allocation13], %s5512_s19, %s5512_s19, %s5513_s20  }
   0xd   :  { %s34_s23 = sshll.u32 %s7756_s1, 4  ;;  %s5514_s24 = smov [#allocation4]   ;;  %s35_s23 = int_to_ptr.hbm [resolvable:$true] %s34_s23 }
   0xe   :  { %29 = dma.hbm_to_smem %s27_s18, 32, %s5514_s24, [#allocation7]  }
   0xf   :  { %s5515_s4 = smov [#allocation8]   ;;  %s5516_s26 = smov 16  }
  0x10   :  { %s36_s25 = sshll.u32 %s5515_s4, 4  ;;  %s5517_s27 = smov 1   ;;  %s37_s25 = int_to_ptr.vmem [resolvable:$true] %s36_s25 }
  0x11   :  { %42 = dma.hbm_to_vmem [thread:$0]  %s35_s23, 320, %s37_s25, [#allocation5], %s5516_s26, %s5516_s26, %s5517_s27  }
  0x12   :  { %s60_s29 = sshll.u32 %s7758_s3, 4  ;;  %s5518_s30 = smov [#allocation11]   ;;  %s61_s29 = int_to_ptr.hbm [resolvable:$true] %s60_s29 }
  0x13   :  { %s62_s9 = sshll.u32 %s5518_s30, 4  ;;  %s86_s1 = sshll.u32 %s7760_s5, 4  ;;  %s63_s9 = int_to_ptr.vmem [resolvable:$true] %s62_s9  ;;  %s87_s1 = int_to_ptr.hbm [resolvable:$true] %s86_s1 }
  0x14   :  { %68 = dma.hbm_to_vmem [thread:$0]  %s61_s29, 18432, %s63_s9, [#allocation10], %s5512_s19, %s5512_s19, %s5513_s20  }
  0x15   :  { %s5519_s14 = smov [#allocation14]   ;;  %s5520_s16 = smov 48  }
  0x16   :  { %s88_s15 = sshll.u32 %s5519_s14, 4  ;;  %s5521_s17 = smov 3   ;;  %s89_s15 = int_to_ptr.vmem [resolvable:$true] %s88_s15 }
  0x17   :  { %94 = dma.hbm_to_vmem [thread:$0]  %s87_s1, 144, %s89_s15, [#allocation13], %s5520_s16, %s5520_s16, %s5521_s17  }
  0x18   :  { %s99_s3 = sshll.u32 %s7761_s6, 4  ;;  %s5522_s21 = smov [#allocation15]   ;;  %s100_s3 = int_to_ptr.hbm [resolvable:$true] %s99_s3 }
  0x19   :  { %s101_s22 = sshll.u32 %s5522_s21, 4  ;;  %s102_s22 = int_to_ptr.vmem [resolvable:$true] %s101_s22 }
  0x1a   :  { %107 = dma.hbm_to_vmem [thread:$0]  %s100_s3, 144, %s102_s22, [#allocation16], %s5520_s16, %s5520_s16, %s5521_s17  }
  0x1b   :  { %5494 = dma.done.wait [#allocation7], 32  }
  0x1c   :  { %5495 = vsyncadd [#allocation7], 4294967264 }
  0x1d   :  { %5496 = dma.done.wait [#allocation5], 320  }
  0x1e   :  { %5497 = vsyncadd [#allocation5], 4294966976 }
  0x1f   :  { %5498 = dma.done.wait [#allocation10], 18816  }
  0x20   :  { %5499 = vsyncadd [#allocation10], 4294948480 }
  0x21   :  { %5500 = dma.done.wait [#allocation13], 18576  }
  0x22   :  { %5501 = vsyncadd [#allocation13], 4294948720 }
  0x23   :  { %5502 = dma.done.wait [#allocation16], 144  }
  0x24   :  { %5503 = vsyncadd [#allocation16], 4294967152 }
  0x25   :  { %136 = sfence }
  0x26   :  { %v262_v0 = vld [vmem:[#allocation11 + $0x168] sm:$0xff]  ;;  %v259_v2 = vld [vmem:[#allocation11 + $0x150] sm:$0xff]  ;;  %s5597_s5 = sld [smem:[#allocation4]]  ;;  %v5523_v4 = vmov 0.0   ;;  %v256_v5 = vld [vmem:[#allocation11 + $0x138] sm:$0xff] }
  0x27   :  { %v5595_v1 = vld [vmem:[#allocation12 + $0x168] sm:$0xff]  ;;  %273 = vmatpush.msra.mxu0 %v262_v0  ;;  %v5600_v3 = vld [vmem:[#allocation12 + $0x150] sm:$0xff]  ;;  %137 = vst [vmem:[#allocation2] sm:$0xff] %v5523_v4  ;;  %s5602_s6 = sld [smem:[#allocation4 + $0x80]]  ;;  %v5604_v6 = vld [vmem:[#allocation12 + $0x138] sm:$0xff] }
  0x28   :  { %483 = vmatpush.msra.mxu3 %v5595_v1  ;;  %138 = vst [vmem:[#allocation2 + $0x8] sm:$0xff] %v5523_v4  ;;  %s5606_s19 = sld [smem:[#allocation4 + $0x1]]  ;;  %v253_v7 = vld [vmem:[#allocation11 + $0x120] sm:$0xff]  ;;  %v250_v9 = vld [vmem:[#allocation11 + $0x108] sm:$0xff]  ;;  %v247_v11 = vld [vmem:[#allocation11 + $0xf0] sm:$0xff] }
  0x29   :  { %274 = vmatpush.msra.mxu0 %v259_v2  ;;  %139 = vst [vmem:[#allocation2 + $0x10] sm:$0xff] %v5523_v4  ;;  %s5609_s20 = sld [smem:[#allocation4 + $0x81]]  ;;  %v5611_v8 = vld [vmem:[#allocation12 + $0x120] sm:$0xff]  ;;  %v5614_v10 = vld [vmem:[#allocation12 + $0x108] sm:$0xff]  ;;  %v5621_v12 = vld [vmem:[#allocation12 + $0xf0] sm:$0xff] }
  0x2a   :  { %484 = vmatpush.msra.mxu3 %v5600_v3  ;;  %140 = vst [vmem:[#allocation2 + $0x18] sm:$0xff] %v5523_v4  ;;  %s5616_s23 = sld [smem:[#allocation4 + $0x2]]  ;;  %v244_v13 = vld [vmem:[#allocation11 + $0xd8] sm:$0xff]  ;;  %v241_v17 = vld [vmem:[#allocation11 + $0xc0] sm:$0xff]  ;;  %v238_v19 = vld [vmem:[#allocation11 + $0xa8] sm:$0xff] }
  0x2b   :  { %275 = vmatpush.msra.mxu0 %v256_v5  ;;  %141 = vst [vmem:[#allocation2 + $0x20] sm:$0xff] %v5523_v4  ;;  %s5619_s24 = sld [smem:[#allocation4 + $0x82]]  ;;  %v5624_v14 = vld [vmem:[#allocation12 + $0xd8] sm:$0xff]  ;;  %v5631_v18 = vld [vmem:[#allocation12 + $0xc0] sm:$0xff]  ;;  %v5634_v20 = vld [vmem:[#allocation12 + $0xa8] sm:$0xff] }
  0x2c   :  { %485 = vmatpush.msra.mxu3 %v5604_v6  ;;  %142 = vst [vmem:[#allocation2 + $0x28] sm:$0xff] %v5523_v4  ;;  %s146_s4 = scalar_lea.vmem [#allocation8], %s5597_s5  ;;  %s5629_s26 = sld [smem:[#allocation4 + $0x3]]  ;;  %v263_v21 = vld [vmem:[#allocation11 + $0x170] sm:$0xff]  ;;  %v260_v24 = vld [vmem:[#allocation11 + $0x158] sm:$0xff]  ;;  %v257_v25 = vld [vmem:[#allocation11 + $0x140] sm:$0xff] }
  0x2d   :  { %276 = vmatpush.msra.mxu0 %v253_v7  ;;  %143 = vst [vmem:[#allocation2 + $0x30] sm:$0xff] %v5523_v4  ;;  %v147_v15 = vld [vmem:[%s146_s4] sm:$0x1]  ;;  %s150_s25 = scalar_lea.vmem [#allocation8], %s5602_s6  ;;  %s5636_s27 = sld [smem:[#allocation4 + $0x83]]  ;;  %314 = vmatpush.msra.mxu1 %v263_v21  ;;  %v232_v28 = vld [vmem:[#allocation11 + $0x78] sm:$0xff] }
  0x2e   :  { %486 = vmatpush.msra.mxu3 %v5611_v8  ;;  %144 = vst [vmem:[#allocation2 + $0x38] sm:$0xff] %v5523_v4  ;;  %v151_v16 = vld [vmem:[%s150_s25] sm:$0x1]  ;;  %s154_s28 = scalar_lea.vmem [#allocation8], %s5606_s19  ;;  %v254_v29 = vld [vmem:[#allocation11 + $0x128] sm:$0xff]  ;;  %s5644_s29 = sld [smem:[#allocation4 + $0x4]] }
  0x2f   :  { %277 = vmatpush.msra.mxu0 %v250_v9  ;;  %148 = vst [vmem:[#allocation2] sm:$0x1] %v147_v15  ;;  %v155_v22 = vld [vmem:[%s154_s28] sm:$0x1]  ;;  %s158_s0 = scalar_lea.vmem [#allocation8], %s5609_s20  ;;  %315 = vmatpush.msra.mxu1 %v260_v24  ;;  %v5646_v30 = vld [vmem:[#allocation12 + $0x78] sm:$0xff] }
  0x30   :  { %487 = vmatpush.msra.mxu3 %v5614_v10  ;;  %152 = vst [vmem:[#allocation2 + $0x1] sm:$0x1] %v151_v16  ;;  %v159_v23 = vld [vmem:[%s158_s0] sm:$0x1]  ;;  %s162_s30 = scalar_lea.vmem [#allocation8], %s5616_s23  ;;  %v229_v34 = vld [vmem:[#allocation11 + $0x60] sm:$0xff] }
  0x31   :  { %278 = vmatpush.msra.mxu0 %v247_v11  ;;  %156 = vst [vmem:[#allocation2 + $0x8] sm:$0x1] %v155_v22  ;;  %v235_v26 = vld [vmem:[#allocation11 + $0x90] sm:$0xff]  ;;  %316 = vmatpush.msra.mxu1 %v257_v25  ;;  %s166_s9 = scalar_lea.vmem [#allocation8], %s5619_s24  ;;  %v5651_v35 = vld [vmem:[#allocation12 + $0x60] sm:$0xff]  ;;  %v226_v36 = vld [vmem:[#allocation11 + $0x48] sm:$0xff] }
  0x32   :  { %488 = vmatpush.msra.mxu3 %v5621_v12  ;;  %v5641_v27 = vld [vmem:[#allocation12 + $0x90] sm:$0xff]  ;;  %160 = vst [vmem:[#allocation2 + $0x9] sm:$0x1] %v159_v23  ;;  %v248_v37 = vld [vmem:[#allocation11 + $0xf8] sm:$0xff]  ;;  %s5654_s12 = sld [smem:[#allocation4 + $0x84]]  ;;  %v5656_v38 = vld [vmem:[#allocation12 + $0x48] sm:$0xff] }
  0x33   :  { %279 = vmatpush.msra.mxu0 %v244_v13  ;;  %v163_v31 = vld [vmem:[%s162_s30] sm:$0x1]  ;;  %317 = vmatpush.msra.mxu1 %v254_v29  ;;  %s170_s13 = scalar_lea.vmem [#allocation8], %s5629_s26  ;;  %s174_s1 = scalar_lea.vmem [#allocation8], %s5636_s27  ;;  %v245_v43 = vld [vmem:[#allocation11 + $0xe0] sm:$0xff]  ;;  %v242_v45 = vld [vmem:[#allocation11 + $0xc8] sm:$0xff] }
  0x34   :  { %489 = vmatpush.msra.mxu3 %v5624_v14  ;;  %v167_v32 = vld [vmem:[%s166_s9] sm:$0x1]  ;;  %164 = vst [vmem:[#allocation2 + $0x10] sm:$0x1] %v163_v31  ;;  %s178_s14 = scalar_lea.vmem [#allocation8], %s5644_s29  ;;  %s5664_s15 = sld [smem:[#allocation4 + $0x5]] }
  0x35   :  { %280 = vmatpush.msra.mxu0 %v241_v17  ;;  %v251_v33 = vld [vmem:[#allocation11 + $0x110] sm:$0xff]  ;;  %168 = vst [vmem:[#allocation2 + $0x11] sm:$0x1] %v167_v32  ;;  %v220_v46 = vld [vmem:[#allocation11 + $0x18] sm:$0xff]  ;;  %s5669_s16 = sld [smem:[#allocation4 + $0x85]]  ;;  %v217_v49 = vld [vmem:[#allocation11] sm:$0xff] }
  0x36   :  { %490 = vmatpush.msra.mxu3 %v5631_v18  ;;  %318 = vmatpush.msra.mxu1 %v251_v33  ;;  %v171_v39 = vld [vmem:[%s170_s13] sm:$0x1]  ;;  %v5667_v47 = vld [vmem:[#allocation12 + $0x18] sm:$0xff]  ;;  %v5672_v50 = vld [vmem:[#allocation12] sm:$0xff]  ;;  %s5684_s2 = sld [smem:[#allocation4 + $0x6]]  ;;  %s5524_s24 = smov [#allocation17]  }
  0x37   :  { %281 = vmatpush.msra.mxu0 %v238_v19  ;;  %v175_v40 = vld [vmem:[%s174_s1] sm:$0x1]  ;;  %172 = vst [vmem:[#allocation2 + $0x18] sm:$0x1] %v171_v39  ;;  %v5678_v53 = vld [vmem:[#allocation9] sm:$0xff]  ;;  %v264_v54 = vld [vmem:[#allocation11 + $0x178] sm:$0xff] }
  0x38   :  { %491 = vmatpush.msra.mxu3 %v5634_v20  ;;  %v223_v41 = vld [vmem:[#allocation11 + $0x30] sm:$0xff]  ;;  %319 = vmatpush.msra.mxu1 %v248_v37  ;;  %176 = vst [vmem:[#allocation2 + $0x19] sm:$0x1] %v175_v40  ;;  %s182_s17 = scalar_lea.vmem [#allocation8], %s5654_s12  ;;  %v5682_v56 = vld [vmem:[#allocation12 + $0x178] sm:$0xff]  ;;  %v261_v58 = vld [vmem:[#allocation11 + $0x160] sm:$0xff] }
  0x39   :  { %282 = vmatpush.msra.mxu0 %v235_v26  ;;  %v5661_v42 = vld [vmem:[#allocation12 + $0x30] sm:$0xff]  ;;  %355 = vmatpush.msra.mxu2 %v264_v54  ;;  %v236_v57 = vld [vmem:[#allocation11 + $0x98] sm:$0xff]  ;;  %s5687_s18 = sld [smem:[#allocation4 + $0x86]]  ;;  %v5693_v60 = vld [vmem:[#allocation12 + $0x160] sm:$0xff]  ;;  %s4911_s4 = sshll.u32 %s5524_s24, 4  ;;  %s4912_s4 = int_to_ptr.vmem [resolvable:$true] %s4911_s4 }
  0x3a   :  { %492 = vmatpush.msra.mxu3 %v5641_v27  ;;  %v179_v44 = vld [vmem:[%s178_s14] sm:$0x1]  ;;  %320 = vmatpush.msra.mxu1 %v245_v43  ;;  %v5691_v59 = vld [vmem:[#allocation12 + $0x158] sm:$0xff]  ;;  %v233_v61 = vld [vmem:[#allocation11 + $0x80] sm:$0xff]  ;;  %s186_s3 = scalar_lea.vmem [#allocation8], %s5664_s15  ;;  %s5713_s22 = sld [smem:[#allocation4 + $0x7]] }
  0x3b   :  { %283 = vmatpush.msra.mxu0 %v232_v28  ;;  %180 = vst [vmem:[#allocation2 + $0x20] sm:$0x1] %v179_v44  ;;  %v239_v48 = vld [vmem:[#allocation11 + $0xb0] sm:$0xff]  ;;  %v258_v62 = vld [vmem:[#allocation11 + $0x148] sm:$0xff]  ;;  %v5697_v63 = vld [vmem:[#allocation12 + $0x140] sm:$0xff]  ;;  %356 = vmatpush.msra.mxu2 %v261_v58  ;;  %s190_s21 = scalar_lea.vmem [#allocation8], %s5669_s16 }
  0x3c   :  { %493 = vmatpush.msra.mxu3 %v5646_v30  ;;  %321 = vmatpush.msra.mxu1 %v242_v45  ;;  %v183_v51 = vld [vmem:[%s182_s17] sm:$0x1]  ;;  %v5699_v0 = vld [vmem:[#allocation12 + $0x148] sm:$0xff]  ;;  %v5710_v13 = vld [vmem:[#allocation2 + $0x8] sm:$0xff]  ;;  %s5719_s5 = sld [smem:[#allocation4 + $0x87]]  ;;  %s194_s6 = scalar_lea.vmem [#allocation8], %s5684_s2 }
  0x3d   :  { %284 = vmatpush.msra.mxu0 %v229_v34  ;;  %v5676_v52 = vld [vmem:[#allocation2] sm:$0xff]  ;;  %184 = vst [vmem:[#allocation2 + $0x21] sm:$0x1] %v183_v51  ;;  %v230_v2 = vld [vmem:[#allocation11 + $0x68] sm:$0xff]  ;;  %357 = vmatpush.msra.mxu2 %v258_v62  ;;  %v5726_v23 = vld [vmem:[#allocation12 + $0x100] sm:$0xff]  ;;  %s4913_s27 = sshll.u32 %s7762_s7, 4  ;;  %s4914_s27 = int_to_ptr.hbm [resolvable:$true] %s4913_s27 }
  0x3e   :  { %494 = vmatpush.msra.mxu3 %v5651_v35  ;;  %v5680_v55 = vld [vmem:[#allocation12 + $0x170] sm:$0xff]  ;;  %322 = vmatpush.msra.mxu1 %v239_v48  ;;  %v5705_v9 = vld [vmem:[#allocation12 + $0x128] sm:$0xff]  ;;  %v5717_v17 = vld [vmem:[#allocation12 + $0x118] sm:$0xff]  ;;  %s5525_s28 = smov [#allocation18]   ;;  %s4923_s9 = sshll.u32 %s7763_s8, 4  ;;  %s4924_s9 = int_to_ptr.hbm [resolvable:$true] %s4923_s9 }
  0x3f   :  { %285 = vmatpush.msra.mxu0 %v226_v36  ;;  %v255_v4 = vld [vmem:[#allocation11 + $0x130] sm:$0xff]  ;;  %v224_v19 = vld [vmem:[#allocation11 + $0x38] sm:$0xff]  ;;  %v5729_v24 = vld [vmem:[#allocation12 + $0xe0] sm:$0xff]  ;;  %s198_s19 = scalar_lea.vmem [#allocation8], %s5687_s18  ;;  %s4921_s0 = sshll.u32 %s5525_s28, 4  ;;  %s4922_s0 = int_to_ptr.vmem [resolvable:$true] %s4921_s0 }
  0x40   :  { %495 = vmatpush.msra.mxu3 %v5656_v38  ;;  %323 = vmatpush.msra.mxu1 %v236_v57  ;;  %v187_v5 = vld [vmem:[%s186_s3] sm:$0x1]  ;;  %v252_v21 = vld [vmem:[#allocation11 + $0x118] sm:$0xff]  ;;  %v221_v25 = vld [vmem:[#allocation11 + $0x20] sm:$0xff]  ;;  %s202_s20 = scalar_lea.vmem [#allocation8], %s5713_s22 }
  0x41   :  { %286 = vmatpush.msra.mxu0 %v223_v41  ;;  %v191_v7 = vld [vmem:[%s190_s21] sm:$0x1]  ;;  %188 = vst [vmem:[#allocation2 + $0x28] sm:$0x1] %v187_v5  ;;  %358 = vmatpush.msra.mxu2 %v255_v4  ;;  %v5724_v22 = vld [vmem:[#allocation12 + $0xf8] sm:$0xff]  ;;  %v249_v26 = vld [vmem:[#allocation11 + $0x100] sm:$0xff] }
  0x42   :  { %496 = vmatpush.msra.mxu3 %v5661_v42  ;;  %v5707_v11 = vld [vmem:[#allocation12 + $0x130] sm:$0xff]  ;;  %324 = vmatpush.msra.mxu1 %v233_v61  ;;  %192 = vst [vmem:[#allocation2 + $0x29] sm:$0x1] %v191_v7  ;;  %v5732_v28 = vld [vmem:[#allocation12 + $0xe8] sm:$0xff]  ;;  %v5748_v40 = vld [vmem:[#allocation12 + $0xb8] sm:$0xff]  ;;  %s206_s23 = scalar_lea.vmem [#allocation8], %s5719_s5 }
  0x43   :  { %287 = vmatpush.msra.mxu0 %v220_v46  ;;  %v227_v15 = vld [vmem:[#allocation11 + $0x50] sm:$0xff]  ;;  %359 = vmatpush.msra.mxu2 %v252_v21  ;;  %v218_v32 = vld [vmem:[#allocation11 + $0x8] sm:$0xff]  ;;  %v5753_v43 = vld [vmem:[#allocation12 + $0x98] sm:$0xff] }
  0x44   :  { %497 = vmatpush.msra.mxu3 %v5667_v47  ;;  %v5715_v16 = vld [vmem:[#allocation12 + $0x110] sm:$0xff]  ;;  %325 = vmatpush.msra.mxu1 %v230_v2  ;;  %v246_v33 = vld [vmem:[#allocation11 + $0xe8] sm:$0xff]  ;;  %v5755_v44 = vld [vmem:[#allocation12 + $0xa0] sm:$0xff] }
  0x45   :  { %288 = vmatpush.msra.mxu0 %v217_v49  ;;  %v195_v29 = vld [vmem:[%s194_s6] sm:$0x1]  ;;  %v5738_v34 = vld [vmem:[#allocation12 + $0xc8] sm:$0xff]  ;;  %360 = vmatpush.msra.mxu2 %v249_v26  ;;  %v5759_v45 = vld [vmem:[#allocation12 + $0x80] sm:$0xff] }
  0x46   :  { %498 = vmatpush.msra.mxu3 %v5672_v50  ;;  %289 = vmatmul.f32.vlgmr.msra.gmra.mxu0 %v5676_v52  ;;  %v199_v31 = vld [vmem:[%s198_s19] sm:$0x1]  ;;  %196 = vst [vmem:[#allocation2 + $0x30] sm:$0x1] %v195_v29  ;;  %v5743_v37 = vld [vmem:[#allocation2 + $0x10] sm:$0xff]  ;;  %v240_v46 = vld [vmem:[#allocation11 + $0xb8] sm:$0xff] }
  0x47   :  { %499 = vmatmul.f32.vlgmr.msra.gmra.mxu3 %v5678_v53  ;;  %523 = vmatpush.msrb.mxu0 %v5682_v56  ;;  %v5740_v36 = vld [vmem:[#allocation12 + $0xd0] sm:$0xff]  ;;  %200 = vst [vmem:[#allocation2 + $0x31] sm:$0x1] %v199_v31  ;;  %v5762_v48 = vld [vmem:[#allocation12 + $0x88] sm:$0xff]  ;;  %v237_v54 = vld [vmem:[#allocation11 + $0xa0] sm:$0xff] }
  0x48   :  { %503 = vmatpush.msrb.mxu3 %v5680_v55  ;;  %326 = vmatpush.msra.mxu1 %v227_v15  ;;  %v5746_v39 = vld [vmem:[#allocation12 + $0xb0] sm:$0xff]  ;;  %v5769_v57 = vld [vmem:[#allocation12 + $0x68] sm:$0xff]  ;;  %v5780_v2 = vld [vmem:[#allocation12 + $0x58] sm:$0xff] }
  0x49   :  { %524 = vmatpush.msrb.mxu0 %v5693_v60  ;;  %361 = vmatpush.msra.mxu2 %v246_v33  ;;  %v243_v41 = vld [vmem:[#allocation11 + $0xd0] sm:$0xff]  ;;  %v5788_v5 = vld [vmem:[#allocation12 + $0x40] sm:$0xff]  ;;  %v228_v7 = vld [vmem:[#allocation11 + $0x58] sm:$0xff] }
  0x4a   :  { %504 = vmatpush.msrb.mxu3 %v5691_v59  ;;  %327 = vmatpush.msra.mxu1 %v224_v19  ;;  %v203_v49 = vld [vmem:[%s202_s20] sm:$0x1]  ;;  %v5775_v61 = vld [vmem:[#allocation2 + $0x18] sm:$0xff]  ;;  %v5792_v15 = vld [vmem:[#allocation12 + $0x20] sm:$0xff] }
  0x4b   :  { %525 = vmatpush.msrb.mxu0 %v5699_v0  ;;  %362 = vmatpush.msra.mxu2 %v243_v41  ;;  %v207_v51 = vld [vmem:[%s206_s23] sm:$0x1]  ;;  %204 = vst [vmem:[#allocation2 + $0x38] sm:$0x1] %v203_v49  ;;  %v225_v19 = vld [vmem:[#allocation11 + $0x40] sm:$0xff]  ;;  %v5799_v21 = vld [vmem:[#allocation12 + $0x8] sm:$0xff] }
  0x4c   :  { %505 = vmatpush.msrb.mxu3 %v5697_v63  ;;  %328 = vmatpush.msra.mxu1 %v221_v25  ;;  %v5771_v58 = vld [vmem:[#allocation12 + $0x70] sm:$0xff]  ;;  %208 = vst [vmem:[#allocation2 + $0x39] sm:$0x1] %v207_v51  ;;  %v222_v29 = vld [vmem:[#allocation11 + $0x28] sm:$0xff] }
  0x4d   :  { %526 = vmatpush.msrb.mxu0 %v5707_v11  ;;  %363 = vmatpush.msra.mxu2 %v240_v46  ;;  %v5778_v62 = vld [vmem:[#allocation12 + $0x50] sm:$0xff] }
  0x4e   :  { %506 = vmatpush.msrb.mxu3 %v5705_v9  ;;  %292 = vmatmul.f32.gmra.mxu0 %v5710_v13  ;;  %v231_v4 = vld [vmem:[#allocation11 + $0x70] sm:$0xff] }
  0x4f   :  { %527 = vmatpush.msrb.mxu0 %v5717_v17  ;;  %329 = vmatpush.msra.mxu1 %v218_v32  ;;  %v5801_v25 = vld [vmem:[#allocation12 + $0x10] sm:$0xff] }
  0x50   :  { %507 = vmatpush.msrb.mxu3 %v5715_v16  ;;  %330 = vmatmul.f32.vlgmr.msra.gmra.mxu1 %v5676_v52  ;;  %v5805_v26 = vld [vmem:[#allocation2 + $0x20] sm:$0xff] }
  0x51   :  { %528 = vmatpush.msrb.mxu0 %v5726_v23  ;;  %653 = vmatpush.msrb.mxu1 %v5595_v1  ;;  %v234_v1 = vld [vmem:[#allocation11 + $0x88] sm:$0xff]  ;;  %v219_v31 = vld [vmem:[#allocation11 + $0x10] sm:$0xff] }
  0x52   :  { %508 = vmatpush.msrb.mxu3 %v5724_v22  ;;  %364 = vmatpush.msra.mxu2 %v237_v54 }
  0x53   :  { %529 = vmatpush.msrb.mxu0 %v5732_v28  ;;  %654 = vmatpush.msrb.mxu1 %v5600_v3  ;;  %v5786_v3 = vld [vmem:[#allocation12 + $0x38] sm:$0xff] }
  0x54   :  { %509 = vmatpush.msrb.mxu3 %v5729_v24  ;;  %365 = vmatpush.msra.mxu2 %v234_v1 }
  0x55   :  { %530 = vmatpush.msrb.mxu0 %v5740_v36  ;;  %655 = vmatpush.msrb.mxu1 %v5604_v6  ;;  %v5794_v6 = vld [vmem:[#allocation12 + $0x28] sm:$0xff] }
  0x56   :  { %510 = vmatpush.msrb.mxu3 %v5738_v34  ;;  %295 = vmatmul.f32.gmra.mxu0 %v5743_v37 }
  0x57   :  { %531 = vmatpush.msrb.mxu0 %v5748_v40  ;;  %366 = vmatpush.msra.mxu2 %v231_v4 }
  0x58   :  { %511 = vmatpush.msrb.mxu3 %v5746_v39  ;;  %333 = vmatmul.f32.gmra.mxu1 %v5710_v13 }
  0x59   :  { %532 = vmatpush.msrb.mxu0 %v5755_v44  ;;  %367 = vmatpush.msra.mxu2 %v228_v7 }
  0x5a   :  { %512 = vmatpush.msrb.mxu3 %v5753_v43  ;;  %656 = vmatpush.msrb.mxu1 %v5611_v8  ;;  %v5819_v8 = vld [vmem:[#allocation2 + $0x28] sm:$0xff] }
  0x5b   :  { %533 = vmatpush.msrb.mxu0 %v5762_v48  ;;  %368 = vmatpush.msra.mxu2 %v225_v19 }
  0x5c   :  { %513 = vmatpush.msrb.mxu3 %v5759_v45  ;;  %657 = vmatpush.msrb.mxu1 %v5614_v10  ;;  %v215_v10 = vld [vmem:[#allocation2 + $0x30] sm:$0xff] }
  0x5d   :  { %534 = vmatpush.msrb.mxu0 %v5771_v58  ;;  %369 = vmatpush.msra.mxu2 %v222_v29 }
  0x5e   :  { %514 = vmatpush.msrb.mxu3 %v5769_v57  ;;  %298 = vmatmul.f32.gmra.mxu0 %v5775_v61 }
  0x5f   :  { %535 = vmatpush.msrb.mxu0 %v5780_v2  ;;  %658 = vmatpush.msrb.mxu1 %v5621_v12  ;;  %v216_v12 = vld [vmem:[#allocation2 + $0x38] sm:$0xff] }
  0x60   :  { %515 = vmatpush.msrb.mxu3 %v5778_v62  ;;  %336 = vmatmul.f32.gmra.mxu1 %v5743_v37 }
  0x61   :  { %536 = vmatpush.msrb.mxu0 %v5788_v5  ;;  %370 = vmatpush.msra.mxu2 %v219_v31 }
  0x62   :  { %516 = vmatpush.msrb.mxu3 %v5786_v3  ;;  %659 = vmatpush.msrb.mxu1 %v5624_v14 }
  0x63   :  { %537 = vmatpush.msrb.mxu0 %v5794_v6  ;;  %371 = vmatmul.f32.vlgmr.msra.gmra.mxu2 %v5676_v52 }
  0x64   :  { %517 = vmatpush.msrb.mxu3 %v5792_v15  ;;  %673 = vmatpush.msrb.mxu2 %v5680_v55 }
  0x65   :  { %538 = vmatpush.msrb.mxu0 %v5801_v25  ;;  %660 = vmatpush.msrb.mxu1 %v5631_v18  ;;  %v475_v18 = vld [vmem:[#allocation15] sm:$0x7] }
  0x66   :  { %518 = vmatpush.msrb.mxu3 %v5799_v21  ;;  %301 = vmatmul.f32.gmra.mxu0 %v5805_v26  ;;  %v479_v46 = vperm.slane %v475_v18, 2 }
  0x67   :  { %519 = vmatmul.f32.vlgmr.msrb.gmra.mxu3 %v5678_v53  ;;  %674 = vmatpush.msrb.mxu2 %v5691_v59 }
  0x68   :  { %693 = vmatpush.msra.mxu3 %v5682_v56  ;;  %661 = vmatpush.msrb.mxu1 %v5634_v20  ;;  %v265_v20 = vld [vmem:[#allocation14] sm:$0x7] }
  0x69   :  { %675 = vmatpush.msrb.mxu2 %v5697_v63  ;;  %339 = vmatmul.f32.gmra.mxu1 %v5775_v61  ;;  %v5922_v49 = vperm.slane %v265_v20, 2 }
  0x6a   :  { %694 = vmatpush.msra.mxu3 %v5693_v60  ;;  %662 = vmatpush.msrb.mxu1 %v5641_v27 }
  0x6b   :  { %676 = vmatpush.msrb.mxu2 %v5705_v9 }
  0x6c   :  { %695 = vmatpush.msra.mxu3 %v5699_v0  ;;  %663 = vmatpush.msrb.mxu1 %v5646_v30  ;;  %v477_v30 = vperm.slane %v475_v18, 0 }
  0x6d   :  { %374 = vmatmul.f32.gmra.mxu2 %v5710_v13 }
  0x6e   :  { %304 = vmatmul.f32.gmra.mxu0 %v5819_v8  ;;  %696 = vmatpush.msra.mxu3 %v5707_v11 }
  0x6f   :  { %677 = vmatpush.msrb.mxu2 %v5715_v16  ;;  %664 = vmatpush.msrb.mxu1 %v5651_v35 }
  0x70   :  { %697 = vmatpush.msra.mxu3 %v5717_v17 }
  0x71   :  { %678 = vmatpush.msrb.mxu2 %v5724_v22  ;;  %665 = vmatpush.msrb.mxu1 %v5656_v38  ;;  %v5904_v38 = vperm.slane %v265_v20, 0 }
  0x72   :  { %698 = vmatpush.msra.mxu3 %v5726_v23  ;;  %342 = vmatmul.f32.gmra.mxu1 %v5805_v26 }
  0x73   :  { %679 = vmatpush.msrb.mxu2 %v5729_v24  ;;  %666 = vmatpush.msrb.mxu1 %v5661_v42  ;;  %7768 = vst [vmem:[#allocation27_spill] sm:$0xff] %v5904_v38 }
  0x74   :  { %699 = vmatpush.msra.mxu3 %v5732_v28 }
  0x75   :  { %680 = vmatpush.msrb.mxu2 %v5738_v34  ;;  %667 = vmatpush.msrb.mxu1 %v5667_v47 }
  0x76   :  { %307 = vmatmul.f32.gmra.mxu0 %v215_v10  ;;  %700 = vmatpush.msra.mxu3 %v5740_v36 }
  0x77   :  { %377 = vmatmul.f32.gmra.mxu2 %v5743_v37  ;;  %668 = vmatpush.msrb.mxu1 %v5672_v50 }
  0x78   :  { %701 = vmatpush.msra.mxu3 %v5748_v40  ;;  %681 = vmatpush.msrb.mxu2 %v5746_v39 }
  0x79   :  { %844 = vmatpush.msra.mxu1 %v5680_v55 }
  0x7a   :  { %702 = vmatpush.msra.mxu3 %v5755_v44  ;;  %682 = vmatpush.msrb.mxu2 %v5753_v43 }
  0x7b   :  { %845 = vmatpush.msra.mxu1 %v5691_v59 }
  0x7c   :  { %703 = vmatpush.msra.mxu3 %v5762_v48  ;;  %683 = vmatpush.msrb.mxu2 %v5759_v45 }
  0x7d   :  { %345 = vmatmul.f32.gmra.mxu1 %v5819_v8 }
  0x7e   :  { %310 = vmatmul.f32.gmra.mxu0 %v216_v12  ;;  %704 = vmatpush.msra.mxu3 %v5771_v58 }
  0x7f   :  { %684 = vmatpush.msrb.mxu2 %v5769_v57  ;;  %846 = vmatpush.msra.mxu1 %v5697_v63  ;;  %v5913_v63 = vperm.slane %v265_v20, 1 }
  0x80   :  { %705 = vmatpush.msra.mxu3 %v5780_v2  ;;  %380 = vmatmul.f32.gmra.mxu2 %v5775_v61 }
  0x81   :  { %685 = vmatpush.msrb.mxu2 %v5778_v62  ;;  %847 = vmatpush.msra.mxu1 %v5705_v9  ;;  %7771 = vst [vmem:[#allocation30_spill] sm:$0xff] %v5913_v63 }
  0x82   :  { %706 = vmatpush.msra.mxu3 %v5788_v5 }
  0x83   :  { %686 = vmatpush.msrb.mxu2 %v5786_v3  ;;  %848 = vmatpush.msra.mxu1 %v5715_v16 }
  0x84   :  { %707 = vmatpush.msra.mxu3 %v5794_v6 }
  0x85   :  { %687 = vmatpush.msrb.mxu2 %v5792_v15  ;;  %849 = vmatpush.msra.mxu1 %v5724_v22 }
  0x86   :  { %539 = vmatmul.f32.vlgmr.msrb.gmra.mxu0 %v5678_v53  ;;  %708 = vmatpush.msra.mxu3 %v5801_v25 }
  0x87   :  { %348 = vmatmul.f32.gmra.mxu1 %v215_v10  ;;  %688 = vmatpush.msrb.mxu2 %v5799_v21 }
  0x88   :  { %850 = vmatpush.msra.mxu1 %v5729_v24  ;;  %383 = vmatmul.f32.gmra.mxu2 %v5805_v26 }
  0x89   :  { %864 = vmatpush.msra.mxu2 %v5682_v56 }
  0x8a   :  { %851 = vmatpush.msra.mxu1 %v5738_v34 }
  0x8b   :  { %865 = vmatpush.msra.mxu2 %v5693_v60 }
  0x8c   :  { %852 = vmatpush.msra.mxu1 %v5746_v39 }
  0x8d   :  { %866 = vmatpush.msra.mxu2 %v5699_v0 }
  0x8e   :  { %853 = vmatpush.msra.mxu1 %v5753_v43 }
  0x8f   :  { %351 = vmatmul.f32.gmra.mxu1 %v216_v12  ;;  %867 = vmatpush.msra.mxu2 %v5707_v11  ;;  %v478_v11 = vperm.slane %v475_v18, 1 }
  0x90   :  { %854 = vmatpush.msra.mxu1 %v5759_v45  ;;  %386 = vmatmul.f32.gmra.mxu2 %v5819_v8 }
  0x91   :  { %868 = vmatpush.msra.mxu2 %v5717_v17 }
  0x92   :  { %855 = vmatpush.msra.mxu1 %v5769_v57 }
  0x93   :  { %869 = vmatpush.msra.mxu2 %v5726_v23 }
  0x94   :  { %856 = vmatpush.msra.mxu1 %v5778_v62 }
  0x95   :  { %870 = vmatpush.msra.mxu2 %v5732_v28 }
  0x96   :  { %857 = vmatpush.msra.mxu1 %v5786_v3 }
  0x97   :  { %871 = vmatpush.msra.mxu2 %v5740_v36 }
  0x98   :  { %858 = vmatpush.msra.mxu1 %v5792_v15  ;;  %389 = vmatmul.f32.gmra.mxu2 %v215_v10 }
  0x99   :  { %872 = vmatpush.msra.mxu2 %v5748_v40 }
  0x9a   :  { %859 = vmatpush.msra.mxu1 %v5799_v21 }
  0x9b   :  { %873 = vmatpush.msra.mxu2 %v5755_v44 }
  0x9d   :  { %874 = vmatpush.msra.mxu2 %v5762_v48 }
  0x9f   :  { %875 = vmatpush.msra.mxu2 %v5771_v58 }
  0xa0   :  { %392 = vmatmul.f32.gmra.mxu2 %v216_v12 }
  0xa1   :  { %876 = vmatpush.msra.mxu2 %v5780_v2 }
  0xa3   :  { %877 = vmatpush.msra.mxu2 %v5788_v5 }
  0xa5   :  { %878 = vmatpush.msra.mxu2 %v5794_v6 }
  0xa7   :  { %879 = vmatpush.msra.mxu2 %v5801_v25 }
  0xc3   :  { %v290_v14 = vpop.f32.mrf.mxu0 }
  0xc4   :  { %v291_v47 = vadd.f32 %v290_v14, %v5904_v38 }
  0xca   :  { %v500_v35 = vpop.f32.mrf.mxu3 }
  0xcb   :  { %v5902_v27 = vpop.f32.mrf.mxu0  ;;  %v501_v42 = vadd.f32 %v500_v35, %v477_v30 }
  0xcd   :  { %v543_v52 = vadd.f32 %v501_v42, %v291_v47  ;;  %v331_v9 = vpop.f32.mrf.mxu1 }
  0xce   :  { %v332_v13 = vadd.f32 %v331_v9, %v5913_v63  ;;  %v5960_v9 = vld [vmem:[#allocation12 + $0x150] sm:$0xff] }
  0xcf   :  { %v4983_v55 = vmul.f32 -1.442695, %v543_v52 }
  0xd1   :  { %5049 = vpow2.f32 %v4983_v55 }
  0xd3   :  { %v5907_v50 = vpop.f32.mrf.mxu0 }
  0xd5   :  { %v5932_v12 = vpop.f32.mrf.mxu1 }
  0xd7   :  { %v5050_v59 = vpop.eup %5049 }
  0xd8   :  { %v547_v0 = vadd.f32 1.0, %v5050_v59  ;;  %v5954_v59 = vld [vmem:[#allocation12 + $0x168] sm:$0xff] }
  0xd9   :  { %824 = vmatpush.msra.mxu0 %v5954_v59  ;;  %995 = vmatpush.msrb.mxu3 %v5954_v59 }
  0xda   :  { %5051 = vrcp.f32 %v547_v0  ;;  %vm553_vm1 = vweird.f32 %v547_v0  ;;  %v559_v44 = vand.u32 2147483648, %v547_v0  ;;  %v557_v48 = vand.u32 2147483647, %v547_v0 }
  0xdb   :  { %v5909_v56 = vpop.f32.mrf.mxu0  ;;  %825 = vmatpush.msra.mxu0 %v5960_v9  ;;  %996 = vmatpush.msrb.mxu3 %v5960_v9 }
  0xdc   :  { %7769 = vst [vmem:[#allocation28_spill] sm:$0xff] %v5909_v56  ;;  %v560_v61 = vor.u32 1.1754944e-38, %v559_v44  ;;  %vm558_vm3 = vcmp.eq.f32.partialorder %v557_v48, 8.507059e+37  ;;  %v6015_v48 = vld [vmem:[#allocation12 + $0x78] sm:$0xff] }
  0xdd   :  { %v5936_v18 = vpop.f32.mrf.mxu1 }
  0xe0   :  { %v5052_v28 = vpop.eup %5051 }
  0xe1   :  { %v549_v32 = vmul.f32 %v5052_v28, %v547_v0  ;;  %vm554_vm0 = vweird.f32 %v5052_v28 }
  0xe2   :  { %vm555_vm2 = vmor %vm553_vm1, %vm554_vm0 }
  0xe3   :  { %v5911_v60 = vpop.f32.mrf.mxu0  ;;  %v550_v36 = vsub.f32 1.0, %v549_v32 }
  0xe4   :  { %7770 = vst [vmem:[#allocation29_spill] sm:$0xff] %v5911_v60 }
  0xe5   :  { %v551_v39 = vmul.f32 %v5052_v28, %v550_v36  ;;  %v5997_v36 = vld [vmem:[#allocation12 + $0xc0] sm:$0xff] }
  0xe6   :  { %v372_v51 = vpop.f32.mrf.mxu2  ;;  %v5940_v30 = vpop.f32.mrf.mxu1 }
  0xe7   :  { %v552_v41 = vadd.f32 %v5052_v28, %v551_v39  ;;  %v373_v2 = vadd.f32 %v372_v51, %v5922_v49  ;;  %7775 = vst [vmem:[#allocation34_spill] sm:$0xff] %v5940_v30  ;;  %v294_v39 = vadd.f32 %v5902_v27, %v5904_v38 }
  0xe9   :  { %v556_v57 = vsel %vm555_vm2, %v5052_v28, %v552_v41 }
  0xea   :  { %v520_v16 = vpop.f32.mrf.mxu3  ;;  %v561_v4 = vsel %vm558_vm3, %v560_v61, %v556_v57 }
  0xeb   :  { %v521_v17 = vadd.f32 %v520_v16, %v478_v11  ;;  %v5916_v22 = vpop.f32.mrf.mxu0  ;;  %v5965_v11 = vld [vmem:[#allocation12 + $0x138] sm:$0xff]  ;;  %v5972_v16 = vld [vmem:[#allocation12 + $0x120] sm:$0xff] }
  0xec   :  { %7772 = vst [vmem:[#allocation31_spill] sm:$0xff] %v5916_v22  ;;  %826 = vmatpush.msra.mxu0 %v5965_v11  ;;  %997 = vmatpush.msrb.mxu3 %v5965_v11 }
  0xed   :  { %v563_v23 = vadd.f32 %v521_v17, %v332_v13  ;;  %v5977_v17 = vld [vmem:[#allocation12 + $0x108] sm:$0xff] }
  0xee   :  { %827 = vmatpush.msra.mxu0 %v5972_v16  ;;  %998 = vmatpush.msrb.mxu3 %v5972_v16 }
  0xef   :  { %v4984_v24 = vmul.f32 -1.442695, %v563_v23  ;;  %v5944_v35 = vpop.f32.mrf.mxu1  ;;  %v5980_v23 = vld [vmem:[#allocation15] sm:$0x7] }
  0xf0   :  { %v5934_v14 = vpop.f32.mrf.mxu2  ;;  %7777 = vst [vmem:[#allocation36_spill] sm:$0xff] %v5944_v35  ;;  %828 = vmatpush.msra.mxu0 %v5977_v17  ;;  %999 = vmatpush.msrb.mxu3 %v5977_v17  ;;  %v647_v32 = vperm.slane %v5980_v23, 0 }
  0xf1   :  { %5053 = vpow2.f32 %v4984_v24  ;;  %v5984_v24 = vld [vmem:[#allocation12 + $0xf0] sm:$0xff] }
  0xf2   :  { %829 = vmatpush.msra.mxu0 %v5984_v24  ;;  %1000 = vmatpush.msrb.mxu3 %v5984_v24 }
  0xf3   :  { %v5918_v33 = vpop.f32.mrf.mxu0 }
  0xf4   :  { %7773 = vst [vmem:[#allocation32_spill] sm:$0xff] %v5918_v33  ;;  %v6182_v33 = vld [vmem:[#allocation12 + $0x10] sm:$0xff] }
  0xf7   :  { %v5054_v34 = vpop.eup %5053 }
  0xf8   :  { %v567_v37 = vadd.f32 1.0, %v5054_v34  ;;  %v5992_v34 = vld [vmem:[#allocation12 + $0xd8] sm:$0xff] }
  0xf9   :  { %830 = vmatpush.msra.mxu0 %v5992_v34  ;;  %1001 = vmatpush.msrb.mxu3 %v5992_v34 }
  0xfa   :  { %5055 = vrcp.f32 %v567_v37  ;;  %vm573_vm4 = vweird.f32 %v567_v37  ;;  %v579_v3 = vand.u32 2147483648, %v567_v37  ;;  %v577_v15 = vand.u32 2147483647, %v567_v37  ;;  %v5938_v20 = vpop.f32.mrf.mxu2  ;;  %v5948_v47 = vpop.f32.mrf.mxu1 }
  0xfb   :  { %v5920_v40 = vpop.f32.mrf.mxu0  ;;  %7779 = vst [vmem:[#allocation38_spill] sm:$0xff] %v5948_v47  ;;  %831 = vmatpush.msra.mxu0 %v5997_v36  ;;  %1002 = vmatpush.msrb.mxu3 %v5997_v36 }
  0xfc   :  { %7774 = vst [vmem:[#allocation33_spill] sm:$0xff] %v5920_v40  ;;  %v580_v21 = vor.u32 1.1754944e-38, %v579_v3  ;;  %vm578_vm7 = vcmp.eq.f32.partialorder %v577_v15, 8.507059e+37 }
 0x100   :  { %v5056_v43 = vpop.eup %5055 }
 0x101   :  { %v569_v45 = vmul.f32 %v5056_v43, %v567_v37  ;;  %vm574_vm5 = vweird.f32 %v5056_v43 }
 0x102   :  { %vm575_vm6 = vmor %vm573_vm4, %vm574_vm5 }
 0x103   :  { %v570_v54 = vsub.f32 1.0, %v569_v45  ;;  %v540_v58 = vpop.f32.mrf.mxu0  ;;  %v648_v45 = vperm.slane %v5980_v23, 1 }
 0x104   :  { %v541_v62 = vadd.f32 %v540_v58, %v479_v46  ;;  %v5952_v55 = vpop.f32.mrf.mxu1  ;;  %v6010_v46 = vld [vmem:[#allocation12 + $0x90] sm:$0xff]  ;;  %v6022_v58 = vld [vmem:[#allocation12 + $0x60] sm:$0xff] }
 0x105   :  { %v571_v1 = vmul.f32 %v5056_v43, %v570_v54  ;;  %7781 = vst [vmem:[#allocation40_spill] sm:$0xff] %v5952_v55  ;;  %v335_v54 = vadd.f32 %v5932_v12, %v5913_v63  ;;  %v6180_v55 = vld [vmem:[#allocation12 + $0x8] sm:$0xff] }
 0x106   :  { %v583_v5 = vmul.f32 %v561_v4, %v541_v62  ;;  %v6036_v4 = vld [vmem:[#allocation12 + $0x18] sm:$0xff] }
 0x107   :  { %v572_v7 = vadd.f32 %v5056_v43, %v571_v1  ;;  %v6027_v1 = vld [vmem:[#allocation12 + $0x48] sm:$0xff] }
 0x108   :  { %v584_v6 = vadd.f32 %v583_v5, %v373_v2  ;;  %v6032_v2 = vld [vmem:[#allocation12 + $0x30] sm:$0xff]  ;;  %v6039_v5 = vld [vmem:[#allocation12] sm:$0xff] }
 0x109   :  { %v576_v19 = vsel %vm575_vm6, %v5056_v43, %v572_v7  ;;  %v6004_v43 = vld [vmem:[#allocation12 + $0xa8] sm:$0xff] }
 0x10a   :  { %5057 = vtanh.f32 %v584_v6  ;;  %v581_v25 = vsel %vm578_vm7, %v580_v21, %v576_v19  ;;  %832 = vmatpush.msra.mxu0 %v6004_v43  ;;  %1003 = vmatpush.msrb.mxu3 %v6004_v43 }
 0x10b   :  { %v586_v26 = vsub.f32 1.0, %v581_v25  ;;  %v588_v8 = vmul.f32 %v581_v25, %v5678_v53  ;;  %v5942_v53 = vpop.f32.mrf.mxu2 }
 0x10c   :  { %7776 = vst [vmem:[#allocation35_spill] sm:$0xff] %v5942_v53  ;;  %v5968_v13 = vpop.f32.mrf.mxu1  ;;  %833 = vmatpush.msra.mxu0 %v6010_v46  ;;  %1004 = vmatpush.msrb.mxu3 %v6010_v46 }
 0x10d   :  { %7783 = vst [vmem:[#allocation42_spill] sm:$0xff] %v5968_v13  ;;  %v6136_v13 = vld [vmem:[#allocation12 + $0x98] sm:$0xff] }
 0x10e   :  { %834 = vmatpush.msra.mxu0 %v6015_v48  ;;  %1005 = vmatpush.msrb.mxu3 %v6015_v48 }
 0x110   :  { %v5058_v29 = vpop.eup %5057  ;;  %835 = vmatpush.msra.mxu0 %v6022_v58  ;;  %1006 = vmatpush.msrb.mxu3 %v6022_v58 }
 0x111   :  { %v587_v31 = vmul.f32 %v5058_v29, %v586_v26  ;;  %v649_v29 = vperm.slane %v5980_v23, 2 }
 0x112   :  { %836 = vmatpush.msra.mxu0 %v6027_v1  ;;  %1007 = vmatpush.msrb.mxu3 %v6027_v1 }
 0x113   :  { %v5926_v10 = vadd.f32 %v588_v8, %v587_v31  ;;  %v5946_v42 = vpop.f32.mrf.mxu2 }
 0x114   :  { %7778 = vst [vmem:[#allocation37_spill] sm:$0xff] %v5946_v42  ;;  %837 = vmatpush.msra.mxu0 %v6032_v2  ;;  %1008 = vmatpush.msrb.mxu3 %v6032_v2 }
 0x115   :  { %590 = vst [vmem:[#allocation2] sm:$0xff] %v5926_v10  ;;  %669 = vmatmul.f32.vlgmr.msrb.gmra.mxu1 %v5926_v10  ;;  %689 = vmatmul.f32.vlgmr.msrb.gmra.mxu2 %v5926_v10 }
 0x116   :  { %709 = vmatmul.f32.vlgmr.msra.gmra.mxu3 %v5926_v10  ;;  %1166 = vmatpush.msrb.mxu2 %v5954_v59 }
 0x117   :  { %838 = vmatpush.msra.mxu0 %v6036_v4  ;;  %1009 = vmatpush.msrb.mxu3 %v6036_v4 }
 0x118   :  { %1167 = vmatpush.msrb.mxu2 %v5960_v9 }
 0x119   :  { %839 = vmatpush.msra.mxu0 %v6039_v5  ;;  %1010 = vmatpush.msrb.mxu3 %v6039_v5 }
 0x11a   :  { %1168 = vmatpush.msrb.mxu2 %v5965_v11 }
 0x11b   :  { %v5950_v52 = vpop.f32.mrf.mxu2 }
 0x11c   :  { %7780 = vst [vmem:[#allocation39_spill] sm:$0xff] %v5950_v52  ;;  %1169 = vmatpush.msrb.mxu2 %v5972_v16 }
 0x11e   :  { %1170 = vmatpush.msrb.mxu2 %v5977_v17 }
 0x120   :  { %1171 = vmatpush.msrb.mxu2 %v5984_v24 }
 0x122   :  { %1172 = vmatpush.msrb.mxu2 %v5992_v34 }
 0x123   :  { %v5956_v0 = vpop.f32.mrf.mxu2 }
 0x124   :  { %7782 = vst [vmem:[#allocation41_spill] sm:$0xff] %v5956_v0  ;;  %1173 = vmatpush.msrb.mxu2 %v5997_v36  ;;  %v6138_v0 = vld [vmem:[#allocation12 + $0xa0] sm:$0xff] }
 0x126   :  { %1174 = vmatpush.msrb.mxu2 %v6004_v43 }
 0x128   :  { %1175 = vmatpush.msrb.mxu2 %v6010_v46 }
 0x12a   :  { %1176 = vmatpush.msrb.mxu2 %v6015_v48 }
 0x12b   :  { %v5987_v28 = vpop.f32.mrf.mxu2 }
 0x12c   :  { %7784 = vst [vmem:[#allocation43_spill] sm:$0xff] %v5987_v28  ;;  %1177 = vmatpush.msrb.mxu2 %v6022_v58  ;;  %v6130_v28 = vld [vmem:[#allocation12 + $0xb8] sm:$0xff] }
 0x12e   :  { %1178 = vmatpush.msrb.mxu2 %v6027_v1 }
 0x130   :  { %1179 = vmatpush.msrb.mxu2 %v6032_v2 }
 0x132   :  { %1180 = vmatpush.msrb.mxu2 %v6036_v4 }
 0x134   :  { %1181 = vmatpush.msrb.mxu2 %v6039_v5 }
 0x192   :  { %v670_v37 = vpop.f32.mrf.mxu1 }
 0x193   :  { %v671_v41 = vadd.f32 %v670_v37, %v647_v32 }
 0x195   :  { %v713_v44 = vadd.f32 %v671_v41, %v294_v39 }
 0x197   :  { %v4985_v27 = vmul.f32 -1.442695, %v713_v44 }
 0x198   :  { %v690_v51 = vpop.f32.mrf.mxu2 }
 0x199   :  { %5059 = vpow2.f32 %v4985_v27  ;;  %v691_v57 = vadd.f32 %v690_v51, %v648_v45  ;;  %v710_v32 = vpop.f32.mrf.mxu3  ;;  %v376_v51 = vadd.f32 %v5934_v14, %v5922_v49 }
 0x19a   :  { %v711_v45 = vadd.f32 %v710_v32, %v649_v29  ;;  %v6072_v32 = vld [vmem:[#allocation12 + $0x140] sm:$0xff] }
 0x19b   :  { %v733_v61 = vadd.f32 %v691_v57, %v335_v54 }
 0x19d   :  { %v4986_v62 = vmul.f32 -1.442695, %v733_v61 }
 0x19f   :  { %v5060_v3 = vpop.eup %5059  ;;  %5061 = vpow2.f32 %v4986_v62 }
 0x1a0   :  { %v717_v7 = vadd.f32 1.0, %v5060_v3 }
 0x1a2   :  { %5063 = vrcp.f32 %v717_v7  ;;  %v729_v26 = vand.u32 2147483648, %v717_v7  ;;  %v727_v8 = vand.u32 2147483647, %v717_v7  ;;  %vm723_vm9 = vweird.f32 %v717_v7 }
 0x1a4   :  { %v730_v41 = vor.u32 1.1754944e-38, %v729_v26  ;;  %vm728_vm11 = vcmp.eq.f32.partialorder %v727_v8, 8.507059e+37  ;;  %v6060_v8 = vld [vmem:[#allocation12 + $0x178] sm:$0xff] }
 0x1a5   :  { %v5062_v15 = vpop.eup %5061  ;;  %1035 = vmatpush.msrb.mxu1 %v6060_v8 }
 0x1a6   :  { %v737_v6 = vadd.f32 1.0, %v5062_v15 }
 0x1a8   :  { %v5064_v19 = vpop.eup %5063  ;;  %5065 = vrcp.f32 %v737_v6  ;;  %v749_v23 = vand.u32 2147483648, %v737_v6  ;;  %v747_v62 = vand.u32 2147483647, %v737_v6  ;;  %vm743_vm13 = vweird.f32 %v737_v6 }
 0x1a9   :  { %v719_v21 = vmul.f32 %v5064_v19, %v717_v7  ;;  %vm724_vm8 = vweird.f32 %v5064_v19 }
 0x1aa   :  { %vm725_vm10 = vmor %vm723_vm9, %vm724_vm8  ;;  %v750_v7 = vor.u32 1.1754944e-38, %v749_v23  ;;  %vm748_vm15 = vcmp.eq.f32.partialorder %v747_v62, 8.507059e+37  ;;  %v6110_v62 = vld [vmem:[#allocation12 + $0xe8] sm:$0xff] }
 0x1ab   :  { %v720_v25 = vsub.f32 1.0, %v719_v21 }
 0x1ad   :  { %v721_v31 = vmul.f32 %v5064_v19, %v720_v25 }
 0x1ae   :  { %v5066_v12 = vpop.eup %5065 }
 0x1af   :  { %v739_v37 = vmul.f32 %v5066_v12, %v737_v6  ;;  %v722_v39 = vadd.f32 %v5064_v19, %v721_v31  ;;  %vm744_vm12 = vweird.f32 %v5066_v12  ;;  %v6058_v6 = vld [vmem:[#allocation12 + $0x170] sm:$0xff] }
 0x1b0   :  { %vm745_vm14 = vmor %vm743_vm13, %vm744_vm12  ;;  %1015 = vmatpush.msrb.mxu0 %v6058_v6  ;;  %1186 = vmatpush.msra.mxu3 %v6058_v6 }
 0x1b1   :  { %v740_v44 = vsub.f32 1.0, %v739_v37  ;;  %v726_v27 = vsel %vm725_vm10, %v5064_v19, %v722_v39  ;;  %v6074_v37 = vld [vmem:[#allocation12 + $0x148] sm:$0xff] }
 0x1b2   :  { %v731_v54 = vsel %vm728_vm11, %v730_v41, %v726_v27  ;;  %v6080_v39 = vld [vmem:[#allocation12 + $0x128] sm:$0xff]  ;;  %v6082_v41 = vld [vmem:[#allocation12 + $0x130] sm:$0xff] }
 0x1b3   :  { %v741_v57 = vmul.f32 %v5066_v12, %v740_v44  ;;  %v753_v61 = vmul.f32 %v731_v54, %v711_v45  ;;  %v6088_v44 = vld [vmem:[#allocation12 + $0x110] sm:$0xff]  ;;  %v6090_v45 = vld [vmem:[#allocation12 + $0x118] sm:$0xff]  ;;  %v6094_v27 = vld [vmem:[#allocation15] sm:$0x7] }
 0x1b4   :  { %v6100_v54 = vld [vmem:[#allocation12 + $0x100] sm:$0xff]  ;;  %v819_v23 = vperm.slane %v6094_v27, 1 }
 0x1b5   :  { %v742_v3 = vadd.f32 %v5066_v12, %v741_v57  ;;  %v754_v15 = vadd.f32 %v753_v61, %v376_v51  ;;  %v6098_v51 = vld [vmem:[#allocation12 + $0xf8] sm:$0xff]  ;;  %v818_v57 = vperm.slane %v6094_v27, 0  ;;  %v6108_v61 = vld [vmem:[#allocation12 + $0xe0] sm:$0xff] }
 0x1b7   :  { %v746_v21 = vsel %vm745_vm14, %v5066_v12, %v742_v3  ;;  %5067 = vtanh.f32 %v754_v15  ;;  %v6064_v12 = vld [vmem:[#allocation12 + $0x158] sm:$0xff]  ;;  %v6116_v3 = vld [vmem:[#allocation12 + $0xc8] sm:$0xff]  ;;  %v6118_v15 = vld [vmem:[#allocation12 + $0xd0] sm:$0xff] }
 0x1b8   :  { %v751_v25 = vsel %vm748_vm15, %v750_v7, %v746_v21  ;;  %1016 = vmatpush.msrb.mxu0 %v6064_v12  ;;  %1187 = vmatpush.msra.mxu3 %v6064_v12  ;;  %v297_v7 = vadd.f32 %v5907_v50, %v5904_v38 }
 0x1b9   :  { %v756_v19 = vsub.f32 1.0, %v751_v25  ;;  %v758_v14 = vmul.f32 %v751_v25, %v5926_v10  ;;  %v6066_v10 = vld [vmem:[#allocation12 + $0x160] sm:$0xff] }
 0x1ba   :  { %1036 = vmatpush.msrb.mxu1 %v6066_v10  ;;  %1017 = vmatpush.msrb.mxu0 %v6072_v32 }
 0x1bb   :  { %1188 = vmatpush.msra.mxu3 %v6072_v32 }
 0x1bc   :  { %1037 = vmatpush.msrb.mxu1 %v6074_v37  ;;  %1018 = vmatpush.msrb.mxu0 %v6080_v39 }
 0x1bd   :  { %v5068_v26 = vpop.eup %5067  ;;  %1189 = vmatpush.msra.mxu3 %v6080_v39 }
 0x1be   :  { %v757_v29 = vmul.f32 %v5068_v26, %v756_v19  ;;  %1038 = vmatpush.msrb.mxu1 %v6082_v41  ;;  %1019 = vmatpush.msrb.mxu0 %v6088_v44  ;;  %v338_v19 = vadd.f32 %v5936_v18, %v5913_v63 }
 0x1bf   :  { %1190 = vmatpush.msra.mxu3 %v6088_v44 }
 0x1c0   :  { %v6052_v31 = vadd.f32 %v758_v14, %v757_v29  ;;  %1039 = vmatpush.msrb.mxu1 %v6090_v45  ;;  %1020 = vmatpush.msrb.mxu0 %v6098_v51  ;;  %v6128_v14 = vld [vmem:[#allocation12 + $0xb0] sm:$0xff] }
 0x1c1   :  { %1191 = vmatpush.msra.mxu3 %v6098_v51 }
 0x1c2   :  { %761 = vst [vmem:[#allocation2 + $0x8] sm:$0xff] %v6052_v31  ;;  %840 = vmatmul.f32.vlgmr.msra.gmra.mxu0 %v6052_v31  ;;  %860 = vmatmul.f32.vlgmr.msra.gmra.mxu1 %v6052_v31 }
 0x1c3   :  { %880 = vmatmul.f32.vlgmr.msra.gmra.mxu2 %v6052_v31  ;;  %1040 = vmatpush.msrb.mxu1 %v6100_v54 }
 0x1c4   :  { %1357 = vmatpush.msra.mxu2 %v6058_v6  ;;  %1021 = vmatpush.msrb.mxu0 %v6108_v61 }
 0x1c5   :  { %1041 = vmatpush.msrb.mxu1 %v6110_v62  ;;  %1192 = vmatpush.msra.mxu3 %v6108_v61 }
 0x1c6   :  { %1358 = vmatpush.msra.mxu2 %v6064_v12  ;;  %1022 = vmatpush.msrb.mxu0 %v6116_v3 }
 0x1c7   :  { %1042 = vmatpush.msrb.mxu1 %v6118_v15  ;;  %1193 = vmatpush.msra.mxu3 %v6116_v3 }
 0x1c8   :  { %1359 = vmatpush.msra.mxu2 %v6072_v32  ;;  %1023 = vmatpush.msrb.mxu0 %v6128_v14 }
 0x1c9   :  { %1043 = vmatpush.msrb.mxu1 %v6130_v28  ;;  %1194 = vmatpush.msra.mxu3 %v6128_v14 }
 0x1ca   :  { %1360 = vmatpush.msra.mxu2 %v6080_v39  ;;  %1024 = vmatpush.msrb.mxu0 %v6136_v13 }
 0x1cb   :  { %1044 = vmatpush.msrb.mxu1 %v6138_v0  ;;  %1195 = vmatpush.msra.mxu3 %v6136_v13 }
 0x1cc   :  { %1361 = vmatpush.msra.mxu2 %v6088_v44 }
 0x1ce   :  { %1362 = vmatpush.msra.mxu2 %v6098_v51 }
 0x1d0   :  { %1363 = vmatpush.msra.mxu2 %v6108_v61 }
 0x1d2   :  { %1364 = vmatpush.msra.mxu2 %v6116_v3 }
 0x1d4   :  { %1365 = vmatpush.msra.mxu2 %v6128_v14 }
 0x1d6   :  { %1366 = vmatpush.msra.mxu2 %v6136_v13 }
 0x23f   :  { %v841_v21 = vpop.f32.mrf.mxu0  ;;  %v861_v25 = vpop.f32.mrf.mxu1 }
 0x240   :  { %v842_v26 = vadd.f32 %v841_v21, %v818_v57  ;;  %v862_v29 = vadd.f32 %v861_v25, %v819_v23  ;;  %v6144_v23 = vld [vmem:[#allocation12 + $0x80] sm:$0xff]  ;;  %v6146_v21 = vld [vmem:[#allocation12 + $0x88] sm:$0xff]  ;;  %v6154_v25 = vld [vmem:[#allocation12 + $0x70] sm:$0xff] }
 0x241   :  { %1025 = vmatpush.msrb.mxu0 %v6144_v23  ;;  %1045 = vmatpush.msrb.mxu1 %v6146_v21 }
 0x242   :  { %v884_v50 = vadd.f32 %v842_v26, %v297_v7  ;;  %v904_v40 = vadd.f32 %v862_v29, %v338_v19  ;;  %v6152_v7 = vld [vmem:[#allocation12 + $0x68] sm:$0xff]  ;;  %1196 = vmatpush.msra.mxu3 %v6144_v23  ;;  %1367 = vmatpush.msra.mxu2 %v6144_v23  ;;  %v6162_v19 = vld [vmem:[#allocation12 + $0x58] sm:$0xff]  ;;  %v6170_v29 = vld [vmem:[#allocation12 + $0x40] sm:$0xff] }
 0x243   :  { %1026 = vmatpush.msrb.mxu0 %v6152_v7  ;;  %1046 = vmatpush.msrb.mxu1 %v6154_v25  ;;  %v6168_v26 = vld [vmem:[#allocation12 + $0x38] sm:$0xff] }
 0x244   :  { %v4987_v18 = vmul.f32 -1.442695, %v884_v50  ;;  %v4988_v57 = vmul.f32 -1.442695, %v904_v40  ;;  %v6160_v40 = vld [vmem:[#allocation12 + $0x50] sm:$0xff]  ;;  %1197 = vmatpush.msra.mxu3 %v6152_v7  ;;  %1368 = vmatpush.msra.mxu2 %v6152_v7  ;;  %v6176_v50 = vld [vmem:[#allocation12 + $0x20] sm:$0xff] }
 0x245   :  { %1027 = vmatpush.msrb.mxu0 %v6160_v40  ;;  %1047 = vmatpush.msrb.mxu1 %v6162_v19 }
 0x246   :  { %5069 = vpow2.f32 %v4987_v18  ;;  %1198 = vmatpush.msra.mxu3 %v6160_v40  ;;  %1369 = vmatpush.msra.mxu2 %v6160_v40  ;;  %v6178_v18 = vld [vmem:[#allocation12 + $0x28] sm:$0xff]  ;;  %v881_v30 = vpop.f32.mrf.mxu2 }
 0x247   :  { %5071 = vpow2.f32 %v4988_v57  ;;  %1028 = vmatpush.msrb.mxu0 %v6168_v26  ;;  %1048 = vmatpush.msrb.mxu1 %v6170_v29 }
 0x248   :  { %1199 = vmatpush.msra.mxu3 %v6168_v26  ;;  %1370 = vmatpush.msra.mxu2 %v6168_v26 }
 0x249   :  { %1029 = vmatpush.msrb.mxu0 %v6176_v50  ;;  %1049 = vmatpush.msrb.mxu1 %v6178_v18 }
 0x24a   :  { %1200 = vmatpush.msra.mxu3 %v6176_v50  ;;  %1371 = vmatpush.msra.mxu2 %v6176_v50 }
 0x24b   :  { %1030 = vmatpush.msrb.mxu0 %v6180_v55  ;;  %1050 = vmatpush.msrb.mxu1 %v6182_v33 }
 0x24c   :  { %v5070_v57 = vpop.eup %5069  ;;  %1201 = vmatpush.msra.mxu3 %v6180_v55  ;;  %1372 = vmatpush.msra.mxu2 %v6180_v55 }
 0x24d   :  { %v5072_v52 = vpop.eup %5071  ;;  %v888_v47 = vadd.f32 1.0, %v5070_v57  ;;  %1206 = vmatpush.msra.mxu0 %v6060_v8  ;;  %1337 = vmatpush.msra.mxu1 %v5954_v59 }
 0x24e   :  { %v6188_v22 = vadd.f32 1.0, %v5072_v52 }
 0x24f   :  { %5073 = vrcp.f32 %v888_v47  ;;  %1207 = vmatpush.msra.mxu0 %v6066_v10  ;;  %1338 = vmatpush.msra.mxu1 %v5960_v9  ;;  %v900_v53 = vand.u32 2147483648, %v888_v47  ;;  %v820_v9 = vperm.slane %v6094_v27, 2  ;;  %vm894_vm1 = vweird.f32 %v888_v47 }
 0x250   :  { %5075 = vrcp.f32 %v6188_v22  ;;  %vm914_vm5 = vweird.f32 %v6188_v22 }
 0x251   :  { %1208 = vmatpush.msra.mxu0 %v6074_v37  ;;  %1339 = vmatpush.msra.mxu1 %v5965_v11  ;;  %v898_v11 = vand.u32 2147483647, %v888_v47 }
 0x253   :  { %1209 = vmatpush.msra.mxu0 %v6082_v41  ;;  %1340 = vmatpush.msra.mxu1 %v5972_v16  ;;  %vm899_vm3 = vcmp.eq.f32.partialorder %v898_v11, 8.507059e+37 }
 0x255   :  { %v5074_v52 = vpop.eup %5073  ;;  %1210 = vmatpush.msra.mxu0 %v6090_v45  ;;  %1341 = vmatpush.msra.mxu1 %v5977_v17 }
 0x256   :  { %v5076_v57 = vpop.eup %5075  ;;  %v890_v42 = vmul.f32 %v5074_v52, %v888_v47  ;;  %vm895_vm0 = vweird.f32 %v5074_v52 }
 0x257   :  { %v910_v35 = vmul.f32 %v5076_v57, %v6188_v22  ;;  %1211 = vmatpush.msra.mxu0 %v6100_v54  ;;  %1342 = vmatpush.msra.mxu1 %v5984_v24  ;;  %vm896_vm2 = vmor %vm894_vm1, %vm895_vm0  ;;  %vm915_vm4 = vweird.f32 %v5076_v57 }
 0x258   :  { %v891_v59 = vsub.f32 1.0, %v890_v42  ;;  %v882_v42 = vadd.f32 %v881_v30, %v820_v9  ;;  %vm916_vm6 = vmor %vm914_vm5, %vm915_vm4 }
 0x259   :  { %v911_v60 = vsub.f32 1.0, %v910_v35  ;;  %1212 = vmatpush.msra.mxu0 %v6110_v62  ;;  %v901_v35 = vor.u32 1.1754944e-38, %v900_v53  ;;  %1343 = vmatpush.msra.mxu1 %v5992_v34 }
 0x25a   :  { %v892_v56 = vmul.f32 %v5074_v52, %v891_v59 }
 0x25b   :  { %v912_v38 = vmul.f32 %v5076_v57, %v911_v60  ;;  %1213 = vmatpush.msra.mxu0 %v6118_v15  ;;  %1344 = vmatpush.msra.mxu1 %v5997_v36  ;;  %v920_v60 = vand.u32 2147483648, %v6188_v22 }
 0x25c   :  { %v893_v63 = vadd.f32 %v5074_v52, %v892_v56  ;;  %v379_v56 = vadd.f32 %v5938_v20, %v5922_v49 }
 0x25d   :  { %v913_v27 = vadd.f32 %v5076_v57, %v912_v38  ;;  %1214 = vmatpush.msra.mxu0 %v6130_v28  ;;  %1345 = vmatpush.msra.mxu1 %v6004_v43  ;;  %v921_v53 = vor.u32 1.1754944e-38, %v920_v60 }
 0x25e   :  { %v897_v16 = vsel %vm896_vm2, %v5074_v52, %v893_v63  ;;  %v918_v63 = vand.u32 2147483647, %v6188_v22 }
 0x25f   :  { %v902_v17 = vsel %vm899_vm3, %v901_v35, %v897_v16  ;;  %1215 = vmatpush.msra.mxu0 %v6138_v0  ;;  %v917_v38 = vsel %vm916_vm6, %v5076_v57, %v913_v27  ;;  %1346 = vmatpush.msra.mxu1 %v6010_v46 }
 0x260   :  { %v924_v47 = vmul.f32 %v902_v17, %v882_v42  ;;  %vm919_vm7 = vcmp.eq.f32.partialorder %v918_v63, 8.507059e+37 }
 0x261   :  { %1216 = vmatpush.msra.mxu0 %v6146_v21  ;;  %1347 = vmatpush.msra.mxu1 %v6015_v48  ;;  %v922_v20 = vsel %vm919_vm7, %v921_v53, %v917_v38  ;;  %v7789_v38 = vld [vmem:[#allocation35_spill] sm:$0xff] }
 0x262   :  { %v925_v30 = vadd.f32 %v924_v47, %v379_v56  ;;  %v927_v22 = vsub.f32 1.0, %v922_v20  ;;  %v929_v36 = vmul.f32 %v922_v20, %v6052_v31  ;;  %v382_v53 = vadd.f32 %v7789_v38, %v5922_v49 }
 0x263   :  { %1217 = vmatpush.msra.mxu0 %v6154_v25  ;;  %1348 = vmatpush.msra.mxu1 %v6022_v58  ;;  %v7785_v58 = vld [vmem:[#allocation30_spill] sm:$0xff] }
 0x264   :  { %5077 = vtanh.f32 %v925_v30 }
 0x265   :  { %1218 = vmatpush.msra.mxu0 %v6162_v19  ;;  %1349 = vmatpush.msra.mxu1 %v6027_v1  ;;  %v7786_v1 = vld [vmem:[#allocation34_spill] sm:$0xff] }
 0x267   :  { %1219 = vmatpush.msra.mxu0 %v6170_v29  ;;  %1350 = vmatpush.msra.mxu1 %v6032_v2  ;;  %v341_v2 = vadd.f32 %v7786_v1, %v7785_v58 }
 0x269   :  { %1220 = vmatpush.msra.mxu0 %v6178_v18  ;;  %1351 = vmatpush.msra.mxu1 %v6036_v4 }
 0x26a   :  { %v5078_v24 = vpop.eup %5077 }
 0x26b   :  { %v928_v34 = vmul.f32 %v5078_v24, %v927_v22  ;;  %1221 = vmatpush.msra.mxu0 %v6182_v33  ;;  %1352 = vmatpush.msra.mxu1 %v6039_v5 }
 0x26d   :  { %v6234_v43 = vadd.f32 %v929_v36, %v928_v34 }
 0x26f   :  { %1011 = vmatmul.f32.vlgmr.msrb.gmra.mxu3 %v6234_v43  ;;  %1031 = vmatmul.f32.vlgmr.msrb.gmra.mxu0 %v6234_v43 }
 0x270   :  { %1051 = vmatmul.f32.vlgmr.msrb.gmra.mxu1 %v6234_v43  ;;  %1377 = vmatpush.msrb.mxu3 %v6060_v8 }
 0x271   :  { %1528 = vmatpush.msrb.mxu1 %v6058_v6 }
 0x272   :  { %1378 = vmatpush.msrb.mxu3 %v6066_v10 }
 0x273   :  { %1529 = vmatpush.msrb.mxu1 %v6064_v12 }
 0x274   :  { %1379 = vmatpush.msrb.mxu3 %v6074_v37 }
 0x275   :  { %1530 = vmatpush.msrb.mxu1 %v6072_v32  ;;  %v7787_v32 = vld [vmem:[#allocation27_spill] sm:$0xff] }
 0x276   :  { %1380 = vmatpush.msrb.mxu3 %v6082_v41 }
 0x277   :  { %1531 = vmatpush.msrb.mxu1 %v6080_v39  ;;  %v7788_v39 = vld [vmem:[#allocation28_spill] sm:$0xff] }
 0x278   :  { %1381 = vmatpush.msrb.mxu3 %v6090_v45 }
 0x279   :  { %1532 = vmatpush.msrb.mxu1 %v6088_v44  ;;  %v300_v44 = vadd.f32 %v7788_v39, %v7787_v32 }
 0x27a   :  { %1382 = vmatpush.msrb.mxu3 %v6100_v54 }
 0x27b   :  { %1533 = vmatpush.msrb.mxu1 %v6098_v51 }
 0x27c   :  { %1383 = vmatpush.msrb.mxu3 %v6110_v62 }
 0x27d   :  { %1534 = vmatpush.msrb.mxu1 %v6108_v61 }
 0x27e   :  { %1384 = vmatpush.msrb.mxu3 %v6118_v15 }
 0x27f   :  { %1535 = vmatpush.msrb.mxu1 %v6116_v3 }
 0x280   :  { %1385 = vmatpush.msrb.mxu3 %v6130_v28 }
 0x281   :  { %1536 = vmatpush.msrb.mxu1 %v6128_v14 }
 0x282   :  { %1386 = vmatpush.msrb.mxu3 %v6138_v0 }
 0x283   :  { %1537 = vmatpush.msrb.mxu1 %v6136_v13  ;;  %v987_v13 = vld [vmem:[#allocation15] sm:$0x7] }
 0x284   :  { %1387 = vmatpush.msrb.mxu3 %v6146_v21  ;;  %v990_v46 = vperm.slane %v987_v13, 1  ;;  %v989_v31 = vperm.slane %v987_v13, 0  ;;  %v991_v11 = vperm.slane %v987_v13, 2 }
 0x285   :  { %1538 = vmatpush.msrb.mxu1 %v6144_v23 }
 0x286   :  { %1388 = vmatpush.msrb.mxu3 %v6154_v25 }
 0x287   :  { %1539 = vmatpush.msrb.mxu1 %v6152_v7 }
 0x288   :  { %1389 = vmatpush.msrb.mxu3 %v6162_v19 }
 0x289   :  { %1540 = vmatpush.msrb.mxu1 %v6160_v40 }
 0x28a   :  { %1390 = vmatpush.msrb.mxu3 %v6170_v29 }
 0x28b   :  { %1541 = vmatpush.msrb.mxu1 %v6168_v26 }
 0x28c   :  { %1391 = vmatpush.msrb.mxu3 %v6178_v18 }
 0x28d   :  { %1542 = vmatpush.msrb.mxu1 %v6176_v50 }
 0x28e   :  { %1392 = vmatpush.msrb.mxu3 %v6182_v33 }
 0x28f   :  { %1543 = vmatpush.msrb.mxu1 %v6180_v55 }
 0x2ec   :  { %v1032_v48 = vpop.f32.mrf.mxu0 }
 0x2ed   :  { %v1033_v4 = vadd.f32 %v1032_v48, %v990_v46  ;;  %v1052_v17 = vpop.f32.mrf.mxu1 }
 0x2ee   :  { %v1053_v60 = vadd.f32 %v1052_v17, %v991_v11 }
 0x2ef   :  { %v1075_v5 = vadd.f32 %v1033_v4, %v341_v2 }
 0x2f1   :  { %v4990_v6 = vmul.f32 -1.442695, %v1075_v5 }
 0x2f2   :  { %v1012_v12 = vpop.f32.mrf.mxu3 }
 0x2f3   :  { %5079 = vpow2.f32 %v4990_v6  ;;  %v1013_v51 = vadd.f32 %v1012_v12, %v989_v31 }
 0x2f5   :  { %v1055_v61 = vadd.f32 %v1013_v51, %v300_v44 }
 0x2f7   :  { %v4989_v3 = vmul.f32 -1.442695, %v1055_v61 }
 0x2f9   :  { %v5080_v14 = vpop.eup %5079  ;;  %5081 = vpow2.f32 %v4989_v3 }
 0x2fa   :  { %v1079_v55 = vadd.f32 1.0, %v5080_v14 }
 0x2fc   :  { %5083 = vrcp.f32 %v1079_v55  ;;  %v1091_v20 = vand.u32 2147483648, %v1079_v55  ;;  %vm1085_vm13 = vweird.f32 %v1079_v55  ;;  %v1089_v24 = vand.u32 2147483647, %v1079_v55 }
 0x2fe   :  { %v1092_v13 = vor.u32 1.1754944e-38, %v1091_v20  ;;  %vm1090_vm15 = vcmp.eq.f32.partialorder %v1089_v24, 8.507059e+37 }
 0x2ff   :  { %v5082_v23 = vpop.eup %5081 }
 0x300   :  { %v1059_v7 = vadd.f32 1.0, %v5082_v23 }
 0x302   :  { %5085 = vrcp.f32 %v1059_v7  ;;  %v5084_v40 = vpop.eup %5083  ;;  %v1071_v9 = vand.u32 2147483648, %v1059_v7  ;;  %v1069_v42 = vand.u32 2147483647, %v1059_v7  ;;  %vm1065_vm9 = vweird.f32 %v1059_v7 }
 0x303   :  { %v1081_v26 = vmul.f32 %v5084_v40, %v1079_v55  ;;  %vm1086_vm12 = vweird.f32 %v5084_v40 }
 0x304   :  { %v1072_v56 = vor.u32 1.1754944e-38, %v1071_v9  ;;  %vm1070_vm11 = vcmp.eq.f32.partialorder %v1069_v42, 8.507059e+37  ;;  %vm1087_vm14 = vmor %vm1085_vm13, %vm1086_vm12  ;;  %v7792_v42 = vld [vmem:[#allocation37_spill] sm:$0xff] }
 0x305   :  { %v1082_v57 = vsub.f32 1.0, %v1081_v26 }
 0x307   :  { %v1083_v16 = vmul.f32 %v5084_v40, %v1082_v57 }
 0x308   :  { %v5086_v50 = vpop.eup %5085 }
 0x309   :  { %v1061_v52 = vmul.f32 %v5086_v50, %v1059_v7  ;;  %vm1066_vm8 = vweird.f32 %v5086_v50  ;;  %v1084_v30 = vadd.f32 %v5084_v40, %v1083_v16  ;;  %v385_v16 = vadd.f32 %v7792_v42, %v5922_v49  ;;  %v1807_v42 = vld [vmem:[#allocation11 + $0x1c8] sm:$0xff] }
 0x30a   :  { %vm1067_vm10 = vmor %vm1065_vm9, %vm1066_vm8 }
 0x30b   :  { %v1062_v59 = vsub.f32 1.0, %v1061_v52  ;;  %v1088_v36 = vsel %vm1087_vm14, %v5084_v40, %v1084_v30 }
 0x30c   :  { %v1093_v46 = vsel %vm1090_vm15, %v1092_v13, %v1088_v36  ;;  %v1494_v36 = vld [vmem:[#allocation12 + $0x150] sm:$0xff]  ;;  %v1491_v13 = vld [vmem:[#allocation12 + $0x138] sm:$0xff] }
 0x30d   :  { %v1063_v35 = vmul.f32 %v5086_v50, %v1062_v59  ;;  %v1098_v48 = vsub.f32 1.0, %v1093_v46  ;;  %v1100_v4 = vmul.f32 %v1093_v46, %v6234_v43  ;;  %v1488_v46 = vld [vmem:[#allocation12 + $0x120] sm:$0xff] }
 0x30f   :  { %v1064_v27 = vadd.f32 %v5086_v50, %v1063_v35 }
 0x311   :  { %v1068_v47 = vsel %vm1067_vm10, %v5086_v50, %v1064_v27 }
 0x312   :  { %v1073_v63 = vsel %vm1070_vm11, %v1072_v56, %v1068_v47 }
 0x313   :  { %v1095_v22 = vmul.f32 %v1073_v63, %v1053_v60 }
 0x315   :  { %v1096_v34 = vadd.f32 %v1095_v22, %v382_v53 }
 0x317   :  { %5087 = vtanh.f32 %v1096_v34  ;;  %v1497_v34 = vld [vmem:[#allocation12 + $0x168] sm:$0xff] }
 0x318   :  { %1508 = vmatpush.msrb.mxu0 %v1497_v34 }
 0x31a   :  { %1509 = vmatpush.msrb.mxu0 %v1494_v36 }
 0x31c   :  { %1510 = vmatpush.msrb.mxu0 %v1491_v13 }
 0x31d   :  { %v5088_v1 = vpop.eup %5087 }
 0x31e   :  { %v1099_v2 = vmul.f32 %v5088_v1, %v1098_v48  ;;  %1511 = vmatpush.msrb.mxu0 %v1488_v46  ;;  %v1485_v48 = vld [vmem:[#allocation12 + $0x108] sm:$0xff] }
 0x31f   :  { %v1843_v1 = vld [vmem:[#allocation11 + $0x2e8] sm:$0xff] }
 0x320   :  { %v6281_v5 = vadd.f32 %v1100_v4, %v1099_v2  ;;  %v6314_v2 = vld [vmem:[#allocation15] sm:$0x7]  ;;  %1512 = vmatpush.msrb.mxu0 %v1485_v48  ;;  %v1482_v4 = vld [vmem:[#allocation12 + $0xf0] sm:$0xff] }
 0x322   :  { %1182 = vmatmul.f32.vlgmr.msrb.gmra.mxu2 %v6281_v5  ;;  %1202 = vmatmul.f32.vlgmr.msra.gmra.mxu3 %v6281_v5 }
 0x323   :  { %1222 = vmatmul.f32.vlgmr.msra.gmra.mxu0 %v6281_v5  ;;  %1548 = vmatpush.msrb.mxu2 %v6060_v8  ;;  %v1158_v8 = vld [vmem:[#allocation15] sm:$0x7] }
 0x324   :  { %v1162_v23 = vperm.slane %v1158_v8, 2  ;;  %1679 = vmatpush.msra.mxu3 %v1497_v34  ;;  %1513 = vmatpush.msrb.mxu0 %v1482_v4 }
 0x325   :  { %1549 = vmatpush.msrb.mxu2 %v6066_v10  ;;  %v1160_v10 = vperm.slane %v1158_v8, 0 }
 0x326   :  { %1680 = vmatpush.msra.mxu3 %v1494_v36 }
 0x327   :  { %1550 = vmatpush.msrb.mxu2 %v6074_v37  ;;  %v1161_v37 = vperm.slane %v1158_v8, 1  ;;  %v1840_v8 = vld [vmem:[#allocation11 + $0x2d0] sm:$0xff] }
 0x328   :  { %1681 = vmatpush.msra.mxu3 %v1491_v13 }
 0x329   :  { %1551 = vmatpush.msrb.mxu2 %v6082_v41 }
 0x32a   :  { %1682 = vmatpush.msra.mxu3 %v1488_v46 }
 0x32b   :  { %1552 = vmatpush.msrb.mxu2 %v6090_v45 }
 0x32c   :  { %1683 = vmatpush.msra.mxu3 %v1485_v48 }
 0x32d   :  { %1553 = vmatpush.msrb.mxu2 %v6100_v54  ;;  %v7791_v54 = vld [vmem:[#allocation36_spill] sm:$0xff] }
 0x32e   :  { %1684 = vmatpush.msra.mxu3 %v1482_v4 }
 0x32f   :  { %1554 = vmatpush.msrb.mxu2 %v6110_v62  ;;  %v344_v62 = vadd.f32 %v7791_v54, %v7785_v58  ;;  %v7793_v54 = vld [vmem:[#allocation31_spill] sm:$0xff] }
 0x331   :  { %1555 = vmatpush.msrb.mxu2 %v6118_v15 }
 0x333   :  { %1556 = vmatpush.msrb.mxu2 %v6130_v28  ;;  %v7790_v28 = vld [vmem:[#allocation29_spill] sm:$0xff] }
 0x335   :  { %1557 = vmatpush.msrb.mxu2 %v6138_v0  ;;  %v303_v0 = vadd.f32 %v7790_v28, %v7787_v32  ;;  %v1834_v28 = vld [vmem:[#allocation11 + $0x2a0] sm:$0xff] }
 0x337   :  { %1558 = vmatpush.msrb.mxu2 %v6146_v21 }
 0x339   :  { %1559 = vmatpush.msrb.mxu2 %v6154_v25 }
 0x33b   :  { %1560 = vmatpush.msrb.mxu2 %v6162_v19 }
 0x33d   :  { %1561 = vmatpush.msrb.mxu2 %v6170_v29 }
 0x33f   :  { %1562 = vmatpush.msrb.mxu2 %v6178_v18 }
 0x341   :  { %1563 = vmatpush.msrb.mxu2 %v6182_v33 }
 0x3a0   :  { %v1223_v26 = vpop.f32.mrf.mxu0 }
 0x3a1   :  { %v1224_v59 = vadd.f32 %v1223_v26, %v1162_v23  ;;  %v1461_v23 = vld [vmem:[#allocation12 + $0x48] sm:$0xff]  ;;  %v1458_v26 = vld [vmem:[#allocation12 + $0x30] sm:$0xff] }
 0x3a5   :  { %v1183_v41 = vpop.f32.mrf.mxu2  ;;  %v1203_v45 = vpop.f32.mrf.mxu3 }
 0x3a6   :  { %v1184_v15 = vadd.f32 %v1183_v41, %v1160_v10  ;;  %v1204_v21 = vadd.f32 %v1203_v45, %v1161_v37  ;;  %v1331_v10 = vperm.slane %v6314_v2, 0  ;;  %v1479_v37 = vld [vmem:[#allocation12 + $0xd8] sm:$0xff]  ;;  %v1476_v45 = vld [vmem:[#allocation12 + $0xc0] sm:$0xff] }
 0x3a7   :  { %v1837_v41 = vld [vmem:[#allocation11 + $0x2b8] sm:$0xff]  ;;  %1514 = vmatpush.msrb.mxu0 %v1479_v37  ;;  %1685 = vmatpush.msra.mxu3 %v1479_v37 }
 0x3a8   :  { %v1226_v25 = vadd.f32 %v1184_v15, %v303_v0  ;;  %v1246_v19 = vadd.f32 %v1204_v21, %v344_v62  ;;  %v306_v62 = vadd.f32 %v7793_v54, %v7787_v32  ;;  %v1473_v21 = vld [vmem:[#allocation12 + $0xa8] sm:$0xff] }
 0x3a9   :  { %1515 = vmatpush.msrb.mxu0 %v1476_v45  ;;  %1686 = vmatpush.msra.mxu3 %v1476_v45 }
 0x3aa   :  { %v4991_v29 = vmul.f32 -1.442695, %v1226_v25  ;;  %v4992_v31 = vmul.f32 -1.442695, %v1246_v19  ;;  %v1831_v25 = vld [vmem:[#allocation11 + $0x288] sm:$0xff] }
 0x3ab   :  { %1516 = vmatpush.msrb.mxu0 %v1473_v21  ;;  %1687 = vmatpush.msra.mxu3 %v1473_v21 }
 0x3ac   :  { %5089 = vpow2.f32 %v4991_v29  ;;  %v1332_v29 = vperm.slane %v6314_v2, 1 }
 0x3ad   :  { %5091 = vpow2.f32 %v4992_v31  ;;  %v1470_v31 = vld [vmem:[#allocation12 + $0x90] sm:$0xff] }
 0x3ae   :  { %1517 = vmatpush.msrb.mxu0 %v1470_v31  ;;  %1688 = vmatpush.msra.mxu3 %v1470_v31 }
 0x3b2   :  { %v5090_v33 = vpop.eup %5089 }
 0x3b3   :  { %v5092_v18 = vpop.eup %5091  ;;  %v1230_v6 = vadd.f32 1.0, %v5090_v33  ;;  %v1828_v33 = vld [vmem:[#allocation11 + $0x270] sm:$0xff] }
 0x3b4   :  { %v1250_v12 = vadd.f32 1.0, %v5092_v18 }
 0x3b5   :  { %5093 = vrcp.f32 %v1230_v6  ;;  %v1242_v14 = vand.u32 2147483648, %v1230_v6  ;;  %v1240_v40 = vand.u32 2147483647, %v1230_v6  ;;  %vm1236_vm1 = vweird.f32 %v1230_v6 }
 0x3b6   :  { %5095 = vrcp.f32 %v1250_v12  ;;  %v1262_v27 = vand.u32 2147483648, %v1250_v12  ;;  %vm1256_vm5 = vweird.f32 %v1250_v12  ;;  %v1260_v56 = vand.u32 2147483647, %v1250_v12 }
 0x3b7   :  { %v1243_v57 = vor.u32 1.1754944e-38, %v1242_v14  ;;  %vm1241_vm3 = vcmp.eq.f32.partialorder %v1240_v40, 8.507059e+37  ;;  %v1822_v14 = vld [vmem:[#allocation11 + $0x240] sm:$0xff] }
 0x3b8   :  { %v1263_v63 = vor.u32 1.1754944e-38, %v1262_v27  ;;  %vm1261_vm7 = vcmp.eq.f32.partialorder %v1260_v56, 8.507059e+37  ;;  %v1801_v27 = vld [vmem:[#allocation11 + $0x198] sm:$0xff] }
 0x3bb   :  { %v5094_v39 = vpop.eup %5093 }
 0x3bc   :  { %v5096_v44 = vpop.eup %5095  ;;  %v1232_v51 = vmul.f32 %v5094_v39, %v1230_v6  ;;  %vm1237_vm0 = vweird.f32 %v5094_v39  ;;  %v1467_v6 = vld [vmem:[#allocation12 + $0x78] sm:$0xff] }
 0x3bd   :  { %v1252_v61 = vmul.f32 %v5096_v44, %v1250_v12  ;;  %vm1238_vm2 = vmor %vm1236_vm1, %vm1237_vm0  ;;  %vm1257_vm4 = vweird.f32 %v5096_v44  ;;  %v1825_v12 = vld [vmem:[#allocation11 + $0x258] sm:$0xff]  ;;  %1518 = vmatpush.msrb.mxu0 %v1467_v6  ;;  %1689 = vmatpush.msra.mxu3 %v1467_v6 }
 0x3be   :  { %v1233_v3 = vsub.f32 1.0, %v1232_v51  ;;  %vm1258_vm6 = vmor %vm1256_vm5, %vm1257_vm4  ;;  %v6331_v6 = vld [vmem:[#allocation2] sm:$0xff] }
 0x3bf   :  { %v1253_v55 = vsub.f32 1.0, %v1252_v61 }
 0x3c0   :  { %v1234_v7 = vmul.f32 %v5094_v39, %v1233_v3  ;;  %v1464_v3 = vld [vmem:[#allocation12 + $0x60] sm:$0xff] }
 0x3c1   :  { %v1254_v50 = vmul.f32 %v5096_v44, %v1253_v55  ;;  %1519 = vmatpush.msrb.mxu0 %v1464_v3  ;;  %1690 = vmatpush.msra.mxu3 %v1464_v3  ;;  %v1666_v3 = vld [vmem:[#allocation12 + $0x158] sm:$0xff] }
 0x3c2   :  { %v1235_v52 = vadd.f32 %v5094_v39, %v1234_v7  ;;  %v1819_v7 = vld [vmem:[#allocation11 + $0x228] sm:$0xff] }
 0x3c3   :  { %v1255_v35 = vadd.f32 %v5096_v44, %v1254_v50  ;;  %1520 = vmatpush.msrb.mxu0 %v1461_v23  ;;  %v1816_v50 = vld [vmem:[#allocation11 + $0x210] sm:$0xff]  ;;  %1691 = vmatpush.msra.mxu3 %v1461_v23  ;;  %v1658_v23 = vld [vmem:[#allocation12 + $0x118] sm:$0xff] }
 0x3c4   :  { %v1239_v9 = vsel %vm1238_vm2, %v5094_v39, %v1235_v52  ;;  %v1455_v52 = vld [vmem:[#allocation12 + $0x18] sm:$0xff] }
 0x3c5   :  { %v1244_v11 = vsel %vm1241_vm3, %v1243_v57, %v1239_v9  ;;  %v1259_v47 = vsel %vm1258_vm6, %v5096_v44, %v1255_v35  ;;  %v7794_v44 = vld [vmem:[#allocation38_spill] sm:$0xff]  ;;  %1521 = vmatpush.msrb.mxu0 %v1458_v26  ;;  %v1813_v57 = vld [vmem:[#allocation11 + $0x1f8] sm:$0xff]  ;;  %1692 = vmatpush.msra.mxu3 %v1458_v26 }
 0x3c6   :  { %v1266_v17 = vmul.f32 %v1244_v11, %v1224_v59  ;;  %v1264_v30 = vsel %vm1261_vm7, %v1263_v63, %v1259_v47  ;;  %v347_v51 = vadd.f32 %v7794_v44, %v7785_v58  ;;  %v1452_v9 = vld [vmem:[#allocation12] sm:$0xff]  ;;  %v1660_v26 = vld [vmem:[#allocation12 + $0x128] sm:$0xff] }
 0x3c7   :  { %v1269_v38 = vsub.f32 1.0, %v1264_v30  ;;  %v1271_v22 = vmul.f32 %v1264_v30, %v6281_v5  ;;  %v1810_v11 = vld [vmem:[#allocation11 + $0x1e0] sm:$0xff]  ;;  %1522 = vmatpush.msrb.mxu0 %v1455_v52  ;;  %1693 = vmatpush.msra.mxu3 %v1455_v52  ;;  %v1657_v52 = vld [vmem:[#allocation12 + $0x110] sm:$0xff] }
 0x3c8   :  { %v1267_v60 = vadd.f32 %v1266_v17, %v385_v16  ;;  %v1804_v16 = vld [vmem:[#allocation11 + $0x1b0] sm:$0xff]  ;;  %v1667_v44 = vld [vmem:[#allocation12 + $0x160] sm:$0xff] }
 0x3c9   :  { %1523 = vmatpush.msrb.mxu0 %v1452_v9  ;;  %1694 = vmatpush.msra.mxu3 %v1452_v9  ;;  %v1643_v9 = vld [vmem:[#allocation12 + $0xa0] sm:$0xff] }
 0x3ca   :  { %5097 = vtanh.f32 %v1267_v60  ;;  %v1798_v60 = vld [vmem:[#allocation11 + $0x180] sm:$0xff] }
 0x3d0   :  { %v5098_v53 = vpop.eup %5097 }
 0x3d1   :  { %v1270_v20 = vmul.f32 %v5098_v53, %v1269_v38  ;;  %v1333_v53 = vperm.slane %v6314_v2, 2 }
 0x3d3   :  { %v6309_v24 = vadd.f32 %v1271_v22, %v1270_v20 }
 0x3d5   :  { %1353 = vmatmul.f32.vlgmr.msra.gmra.mxu1 %v6309_v24  ;;  %1373 = vmatmul.f32.vlgmr.msra.gmra.mxu2 %v6309_v24 }
 0x3d6   :  { %1393 = vmatmul.f32.vlgmr.msrb.gmra.mxu3 %v6309_v24  ;;  %1855 = vmatpush.msra.mxu2 %v1843_v1 }
 0x3d8   :  { %1856 = vmatpush.msra.mxu2 %v1840_v8 }
 0x3da   :  { %1857 = vmatpush.msra.mxu2 %v1837_v41 }
 0x3dc   :  { %1858 = vmatpush.msra.mxu2 %v1834_v28 }
 0x3de   :  { %1859 = vmatpush.msra.mxu2 %v1831_v25 }
 0x3e0   :  { %1860 = vmatpush.msra.mxu2 %v1828_v33 }
 0x3e2   :  { %1861 = vmatpush.msra.mxu2 %v1825_v12  ;;  %v6334_v12 = vld [vmem:[#allocation2 + $0x8] sm:$0xff] }
 0x3e4   :  { %1862 = vmatpush.msra.mxu2 %v1822_v14  ;;  %v1663_v14 = vld [vmem:[#allocation12 + $0x140] sm:$0xff] }
 0x3e6   :  { %1863 = vmatpush.msra.mxu2 %v1819_v7  ;;  %v1655_v7 = vld [vmem:[#allocation12 + $0x100] sm:$0xff] }
 0x3e8   :  { %1864 = vmatpush.msra.mxu2 %v1816_v50  ;;  %v1649_v50 = vld [vmem:[#allocation12 + $0xd0] sm:$0xff] }
 0x3ea   :  { %1865 = vmatpush.msra.mxu2 %v1813_v57  ;;  %v1646_v57 = vld [vmem:[#allocation12 + $0xb8] sm:$0xff] }
 0x3ec   :  { %1866 = vmatpush.msra.mxu2 %v1810_v11  ;;  %v1651_v11 = vld [vmem:[#allocation12 + $0xe0] sm:$0xff] }
 0x3ee   :  { %1867 = vmatpush.msra.mxu2 %v1807_v42  ;;  %v1648_v42 = vld [vmem:[#allocation12 + $0xc8] sm:$0xff] }
 0x3f0   :  { %1868 = vmatpush.msra.mxu2 %v1804_v16  ;;  %v1637_v16 = vld [vmem:[#allocation12 + $0x70] sm:$0xff] }
 0x3f2   :  { %1869 = vmatpush.msra.mxu2 %v1801_v27  ;;  %v1634_v27 = vld [vmem:[#allocation12 + $0x58] sm:$0xff] }
 0x3f4   :  { %1870 = vmatpush.msra.mxu2 %v1798_v60  ;;  %v1631_v60 = vld [vmem:[#allocation12 + $0x40] sm:$0xff] }
 0x452   :  { %v1354_v0 = vpop.f32.mrf.mxu1 }
 0x453   :  { %v1355_v15 = vadd.f32 %v1354_v0, %v1331_v10  ;;  %v7795_v10 = vld [vmem:[#allocation39_spill] sm:$0xff] }
 0x454   :  { %v388_v37 = vadd.f32 %v7795_v10, %v5922_v49  ;;  %v6355_v10 = vld [vmem:[#allocation12 + $0x288] sm:$0xff] }
 0x455   :  { %v1397_v19 = vadd.f32 %v1355_v15, %v306_v62 }
 0x457   :  { %v4993_v18 = vmul.f32 -1.442695, %v1397_v19 }
 0x458   :  { %v1374_v39 = vpop.f32.mrf.mxu2 }
 0x459   :  { %5099 = vpow2.f32 %v4993_v18  ;;  %v1375_v61 = vadd.f32 %v1374_v39, %v1332_v29  ;;  %v1394_v36 = vpop.f32.mrf.mxu3  ;;  %v1670_v39 = vld [vmem:[#allocation12 + $0x178] sm:$0xff] }
 0x45a   :  { %v1395_v4 = vadd.f32 %v1394_v36, %v1333_v53  ;;  %1719 = vmatpush.msra.mxu1 %v1670_v39  ;;  %v6341_v53 = vld [vmem:[#allocation12 + $0x2e8] sm:$0xff]  ;;  %v6347_v36 = vld [vmem:[#allocation12 + $0x2b8] sm:$0xff] }
 0x45b   :  { %v1417_v55 = vadd.f32 %v1375_v61, %v347_v51  ;;  %v1669_v51 = vld [vmem:[#allocation12 + $0x170] sm:$0xff]  ;;  %v1664_v61 = vld [vmem:[#allocation12 + $0x148] sm:$0xff] }
 0x45c   :  { %1699 = vmatpush.msra.mxu0 %v1669_v51  ;;  %1720 = vmatpush.msra.mxu1 %v1667_v44  ;;  %v1835_v44 = vld [vmem:[#allocation11 + $0x2a8] sm:$0xff]  ;;  %v1836_v51 = vld [vmem:[#allocation11 + $0x2b0] sm:$0xff] }
 0x45d   :  { %v4994_v40 = vmul.f32 -1.442695, %v1417_v55  ;;  %v1661_v55 = vld [vmem:[#allocation12 + $0x130] sm:$0xff] }
 0x45e   :  { %1700 = vmatpush.msra.mxu0 %v1666_v3  ;;  %1721 = vmatpush.msra.mxu1 %v1664_v61  ;;  %v6370_v61 = vld [vmem:[#allocation12 + $0x240] sm:$0xff] }
 0x45f   :  { %v5100_v59 = vpop.eup %5099  ;;  %5101 = vpow2.f32 %v4994_v40  ;;  %v1652_v40 = vld [vmem:[#allocation12 + $0xe8] sm:$0xff] }
 0x460   :  { %v1401_v35 = vadd.f32 1.0, %v5100_v59  ;;  %1701 = vmatpush.msra.mxu0 %v1663_v14  ;;  %1722 = vmatpush.msra.mxu1 %v1661_v55  ;;  %v1654_v59 = vld [vmem:[#allocation12 + $0xf8] sm:$0xff]  ;;  %v1832_v55 = vld [vmem:[#allocation11 + $0x290] sm:$0xff] }
 0x462   :  { %5103 = vrcp.f32 %v1401_v35  ;;  %v1413_v38 = vand.u32 2147483648, %v1401_v35  ;;  %v1411_v22 = vand.u32 2147483647, %v1401_v35  ;;  %vm1407_vm9 = vweird.f32 %v1401_v35  ;;  %1723 = vmatpush.msra.mxu1 %v1658_v23  ;;  %1702 = vmatpush.msra.mxu0 %v1660_v26  ;;  %v1833_v23 = vld [vmem:[#allocation11 + $0x298] sm:$0xff] }
 0x464   :  { %v1414_v48 = vor.u32 1.1754944e-38, %v1413_v38  ;;  %vm1412_vm11 = vcmp.eq.f32.partialorder %v1411_v22, 8.507059e+37  ;;  %1724 = vmatpush.msra.mxu1 %v1655_v7  ;;  %1703 = vmatpush.msra.mxu0 %v1657_v52  ;;  %v1625_v38 = vld [vmem:[#allocation12 + $0x10] sm:$0xff]  ;;  %v6373_v7 = vld [vmem:[#allocation12 + $0x228] sm:$0xff]  ;;  %v1830_v52 = vld [vmem:[#allocation11 + $0x280] sm:$0xff] }
 0x465   :  { %v5102_v17 = vpop.eup %5101  ;;  %v6344_v22 = vld [vmem:[#allocation12 + $0x2d0] sm:$0xff] }
 0x466   :  { %v1421_v56 = vadd.f32 1.0, %v5102_v17  ;;  %1725 = vmatpush.msra.mxu1 %v1652_v40  ;;  %1704 = vmatpush.msra.mxu0 %v1654_v59  ;;  %v1645_v17 = vld [vmem:[#allocation12 + $0xb0] sm:$0xff]  ;;  %v1826_v59 = vld [vmem:[#allocation11 + $0x260] sm:$0xff] }
 0x468   :  { %v5104_v47 = vpop.eup %5103  ;;  %5105 = vrcp.f32 %v1421_v56  ;;  %v1433_v2 = vand.u32 2147483648, %v1421_v56  ;;  %v1431_v0 = vand.u32 2147483647, %v1421_v56  ;;  %vm1427_vm13 = vweird.f32 %v1421_v56  ;;  %1726 = vmatpush.msra.mxu1 %v1649_v50  ;;  %1705 = vmatpush.msra.mxu0 %v1651_v11  ;;  %v1829_v50 = vld [vmem:[#allocation11 + $0x278] sm:$0xff] }
 0x469   :  { %v1403_v63 = vmul.f32 %v5104_v47, %v1401_v35  ;;  %vm1408_vm8 = vweird.f32 %v5104_v47  ;;  %v1640_v35 = vld [vmem:[#allocation12 + $0x88] sm:$0xff]  ;;  %v6379_v11 = vld [vmem:[#allocation12 + $0x1f8] sm:$0xff] }
 0x46a   :  { %vm1409_vm10 = vmor %vm1407_vm9, %vm1408_vm8  ;;  %v1434_v21 = vor.u32 1.1754944e-38, %v1433_v2  ;;  %vm1432_vm15 = vcmp.eq.f32.partialorder %v1431_v0, 8.507059e+37  ;;  %1727 = vmatpush.msra.mxu1 %v1646_v57  ;;  %1706 = vmatpush.msra.mxu0 %v1648_v42  ;;  %v1842_v2 = vld [vmem:[#allocation11 + $0x2e0] sm:$0xff]  ;;  %v6376_v57 = vld [vmem:[#allocation12 + $0x210] sm:$0xff] }
 0x46b   :  { %v1404_v30 = vsub.f32 1.0, %v1403_v63  ;;  %v1628_v63 = vld [vmem:[#allocation12 + $0x28] sm:$0xff]  ;;  %v1838_v0 = vld [vmem:[#allocation11 + $0x2c0] sm:$0xff]  ;;  %v1824_v42 = vld [vmem:[#allocation11 + $0x250] sm:$0xff] }
 0x46c   :  { %1728 = vmatpush.msra.mxu1 %v1643_v9  ;;  %1707 = vmatpush.msra.mxu0 %v1645_v17  ;;  %v1827_v9 = vld [vmem:[#allocation11 + $0x268] sm:$0xff]  ;;  %v1820_v17 = vld [vmem:[#allocation11 + $0x230] sm:$0xff] }
 0x46d   :  { %v1405_v20 = vmul.f32 %v5104_v47, %v1404_v30  ;;  %v1636_v30 = vld [vmem:[#allocation12 + $0x68] sm:$0xff] }
 0x46e   :  { %v5106_v34 = vpop.eup %5105  ;;  %1729 = vmatpush.msra.mxu1 %v1640_v35  ;;  %v1823_v35 = vld [vmem:[#allocation11 + $0x248] sm:$0xff] }
 0x46f   :  { %v1423_v13 = vmul.f32 %v5106_v34, %v1421_v56  ;;  %v1406_v46 = vadd.f32 %v5104_v47, %v1405_v20  ;;  %vm1428_vm12 = vweird.f32 %v5106_v34  ;;  %v1642_v56 = vld [vmem:[#allocation12 + $0x98] sm:$0xff]  ;;  %v1633_v20 = vld [vmem:[#allocation12 + $0x50] sm:$0xff] }
 0x470   :  { %vm1429_vm14 = vmor %vm1427_vm13, %vm1428_vm12  ;;  %1730 = vmatpush.msra.mxu1 %v1637_v16  ;;  %1708 = vmatpush.msra.mxu0 %v1642_v56  ;;  %v6382_v16 = vld [vmem:[#allocation12 + $0x1e0] sm:$0xff]  ;;  %v6385_v56 = vld [vmem:[#allocation12 + $0x1c8] sm:$0xff] }
 0x471   :  { %v1424_v1 = vsub.f32 1.0, %v1423_v13  ;;  %v1410_v8 = vsel %vm1409_vm10, %v5104_v47, %v1406_v46  ;;  %v1639_v47 = vld [vmem:[#allocation12 + $0x80] sm:$0xff] }
 0x472   :  { %v1415_v41 = vsel %vm1412_vm11, %v1414_v48, %v1410_v8  ;;  %1731 = vmatpush.msra.mxu1 %v1634_v27  ;;  %1709 = vmatpush.msra.mxu0 %v1639_v47  ;;  %v1627_v13 = vld [vmem:[#allocation12 + $0x20] sm:$0xff]  ;;  %v6352_v48 = vld [vmem:[#allocation15] sm:$0x7]  ;;  %v1845_v8 = vld [vmem:[#allocation11 + $0x2f8] sm:$0xff] }
 0x473   :  { %v1425_v45 = vmul.f32 %v5106_v34, %v1424_v1  ;;  %v1437_v28 = vmul.f32 %v1415_v41, %v1395_v4  ;;  %v6350_v46 = vld [vmem:[#allocation12 + $0x2a0] sm:$0xff]  ;;  %v1624_v1 = vld [vmem:[#allocation12 + $0x8] sm:$0xff]  ;;  %v1844_v4 = vld [vmem:[#allocation11 + $0x2f0] sm:$0xff]  ;;  %v1503_v41 = vperm.slane %v6352_v48, 1 }
 0x474   :  { %1732 = vmatpush.msra.mxu1 %v1631_v60  ;;  %1710 = vmatpush.msra.mxu0 %v1636_v30  ;;  %v1821_v27 = vld [vmem:[#allocation11 + $0x238] sm:$0xff]  ;;  %v1818_v47 = vld [vmem:[#allocation11 + $0x220] sm:$0xff] }
 0x475   :  { %v1426_v54 = vadd.f32 %v5106_v34, %v1425_v45  ;;  %v1438_v62 = vadd.f32 %v1437_v28, %v388_v37  ;;  %1896 = vmatpush.msrb.mxu3 %v1844_v4  ;;  %v1502_v37 = vperm.slane %v6352_v48, 0  ;;  %v1841_v45 = vld [vmem:[#allocation11 + $0x2d8] sm:$0xff]  ;;  %v6360_v28 = vld [vmem:[#allocation12 + $0x270] sm:$0xff] }
 0x476   :  { %1733 = vmatpush.msra.mxu1 %v1628_v63  ;;  %1711 = vmatpush.msra.mxu0 %v1633_v20  ;;  %v1817_v60 = vld [vmem:[#allocation11 + $0x218] sm:$0xff]  ;;  %v6387_v63 = vld [vmem:[#allocation12 + $0x1b0] sm:$0xff]  ;;  %v1815_v20 = vld [vmem:[#allocation11 + $0x208] sm:$0xff] }
 0x477   :  { %v1430_v15 = vsel %vm1429_vm14, %v5106_v34, %v1426_v54  ;;  %5107 = vtanh.f32 %v1438_v62  ;;  %v1630_v34 = vld [vmem:[#allocation12 + $0x38] sm:$0xff]  ;;  %1897 = vmatpush.msrb.mxu3 %v1841_v45  ;;  %v1839_v54 = vld [vmem:[#allocation11 + $0x2c8] sm:$0xff]  ;;  %v1808_v45 = vld [vmem:[#allocation11 + $0x1d0] sm:$0xff] }
 0x478   :  { %v1435_v25 = vsel %vm1432_vm15, %v1434_v21, %v1430_v15  ;;  %1734 = vmatpush.msra.mxu1 %v1625_v38  ;;  %1712 = vmatpush.msra.mxu0 %v1630_v34  ;;  %v6363_v62 = vld [vmem:[#allocation12 + $0x258] sm:$0xff]  ;;  %v1814_v38 = vld [vmem:[#allocation11 + $0x200] sm:$0xff] }
 0x479   :  { %v1440_v19 = vsub.f32 1.0, %v1435_v25  ;;  %v1442_v33 = vmul.f32 %v1435_v25, %v6309_v24  ;;  %1898 = vmatpush.msrb.mxu3 %v1838_v0  ;;  %v7796_v25 = vld [vmem:[#allocation32_spill] sm:$0xff] }
 0x47a   :  { %1713 = vmatpush.msra.mxu0 %v1627_v13  ;;  %v1805_v0 = vld [vmem:[#allocation11 + $0x1b8] sm:$0xff] }
 0x47b   :  { %1899 = vmatpush.msrb.mxu3 %v1835_v44  ;;  %v1800_v44 = vld [vmem:[#allocation11 + $0x190] sm:$0xff] }
 0x47c   :  { %1714 = vmatpush.msra.mxu0 %v1624_v1  ;;  %v6390_v1 = vld [vmem:[#allocation12 + $0x198] sm:$0xff] }
 0x47d   :  { %v5108_v29 = vpop.eup %5107  ;;  %1900 = vmatpush.msrb.mxu3 %v1832_v55 }
 0x47e   :  { %v1441_v31 = vmul.f32 %v5108_v29, %v1440_v19  ;;  %v309_v19 = vadd.f32 %v7796_v25, %v7787_v32  ;;  %v7797_v29 = vld [vmem:[#allocation40_spill] sm:$0xff]  ;;  %v1803_v25 = vld [vmem:[#allocation11 + $0x1a8] sm:$0xff] }
 0x47f   :  { %1901 = vmatpush.msrb.mxu3 %v1829_v50 }
 0x480   :  { %v6326_v18 = vadd.f32 %v1442_v33, %v1441_v31  ;;  %v350_v31 = vadd.f32 %v7797_v29, %v7785_v58 }
 0x481   :  { %1902 = vmatpush.msrb.mxu3 %v1826_v59 }
 0x482   :  { %1524 = vmatmul.f32.vlgmr.msrb.gmra.mxu0 %v6326_v18  ;;  %1544 = vmatmul.f32.vlgmr.msrb.gmra.mxu1 %v6326_v18 }
 0x483   :  { %1564 = vmatmul.f32.vlgmr.msrb.gmra.mxu2 %v6326_v18  ;;  %2065 = vmatpush.msrb.mxu1 %v6341_v53 }
 0x484   :  { %1937 = vmatpush.msrb.mxu0 %v1845_v8  ;;  %1903 = vmatpush.msrb.mxu3 %v1823_v35  ;;  %v1811_v8 = vld [vmem:[#allocation11 + $0x1e8] sm:$0xff] }
 0x485   :  { %2066 = vmatpush.msrb.mxu1 %v6344_v22 }
 0x486   :  { %1938 = vmatpush.msrb.mxu0 %v1842_v2  ;;  %1904 = vmatpush.msrb.mxu3 %v1820_v17  ;;  %v1809_v2 = vld [vmem:[#allocation11 + $0x1d8] sm:$0xff] }
 0x487   :  { %2067 = vmatpush.msrb.mxu1 %v6347_v36  ;;  %v7798_v17 = vld [vmem:[#allocation41_spill] sm:$0xff] }
 0x488   :  { %1939 = vmatpush.msrb.mxu0 %v1839_v54  ;;  %1905 = vmatpush.msrb.mxu3 %v1817_v60  ;;  %v1806_v54 = vld [vmem:[#allocation11 + $0x1c0] sm:$0xff] }
 0x489   :  { %2068 = vmatpush.msrb.mxu1 %v6350_v46 }
 0x48a   :  { %1940 = vmatpush.msrb.mxu0 %v1836_v51  ;;  %1906 = vmatpush.msrb.mxu3 %v1814_v38 }
 0x48b   :  { %1871 = vmatmul.f32.vlgmr.msra.gmra.mxu2 %v6331_v6  ;;  %2069 = vmatpush.msrb.mxu1 %v6355_v10 }
 0x48c   :  { %1941 = vmatpush.msrb.mxu0 %v1833_v23  ;;  %1907 = vmatpush.msrb.mxu3 %v1811_v8 }
 0x48d   :  { %2070 = vmatpush.msrb.mxu1 %v6360_v28 }
 0x48e   :  { %1942 = vmatpush.msrb.mxu0 %v1830_v52  ;;  %1908 = vmatpush.msrb.mxu3 %v1808_v45 }
 0x48f   :  { %2071 = vmatpush.msrb.mxu1 %v6363_v62 }
 0x490   :  { %1943 = vmatpush.msrb.mxu0 %v1827_v9  ;;  %1909 = vmatpush.msrb.mxu3 %v1805_v0  ;;  %v6403_v0 = vld [vmem:[#allocation12 + $0x2f0] sm:$0xff] }
 0x491   :  { %2072 = vmatpush.msrb.mxu1 %v6370_v61 }
 0x492   :  { %1944 = vmatpush.msrb.mxu0 %v1824_v42 }
 0x493   :  { %1874 = vmatmul.f32.gmra.mxu2 %v6334_v12  ;;  %2073 = vmatpush.msrb.mxu1 %v6373_v7 }
 0x494   :  { %1945 = vmatpush.msrb.mxu0 %v1821_v27  ;;  %v391_v27 = vadd.f32 %v7798_v17, %v5922_v49 }
 0x495   :  { %2074 = vmatpush.msrb.mxu1 %v6376_v57 }
 0x496   :  { %1946 = vmatpush.msrb.mxu0 %v1818_v47 }
 0x497   :  { %2075 = vmatpush.msrb.mxu1 %v6379_v11 }
 0x498   :  { %1947 = vmatpush.msrb.mxu0 %v1815_v20 }
 0x499   :  { %2076 = vmatpush.msrb.mxu1 %v6382_v16 }
 0x49b   :  { %1877 = vmatmul.f32.gmra.mxu2 %v6234_v43  ;;  %2077 = vmatpush.msrb.mxu1 %v6385_v56 }
 0x49d   :  { %2078 = vmatpush.msrb.mxu1 %v6387_v63 }
 0x49f   :  { %2079 = vmatpush.msrb.mxu1 %v6390_v1 }
 0x4a3   :  { %1880 = vmatmul.f32.gmra.mxu2 %v6281_v5 }
 0x4ab   :  { %1883 = vmatmul.f32.gmra.mxu2 %v6309_v24 }
 0x4b3   :  { %1886 = vmatmul.f32.gmra.mxu2 %v6326_v18 }
 0x4ff   :  { %v1525_v15 = vpop.f32.mrf.mxu0  ;;  %v1545_v21 = vpop.f32.mrf.mxu1 }
 0x500   :  { %v1526_v33 = vadd.f32 %v1525_v15, %v1502_v37  ;;  %v1546_v39 = vadd.f32 %v1545_v21, %v1503_v41  ;;  %v1812_v37 = vld [vmem:[#allocation11 + $0x1f0] sm:$0xff]  ;;  %v6393_v41 = vld [vmem:[#allocation12 + $0x180] sm:$0xff] }
 0x501   :  { %1948 = vmatpush.msrb.mxu0 %v1812_v37  ;;  %2080 = vmatpush.msrb.mxu1 %v6393_v41  ;;  %v1802_v21 = vld [vmem:[#allocation11 + $0x1a0] sm:$0xff] }
 0x502   :  { %v1568_v3 = vadd.f32 %v1526_v33, %v309_v19  ;;  %v1588_v14 = vadd.f32 %v1546_v39, %v350_v31  ;;  %1910 = vmatpush.msrb.mxu3 %v1802_v21  ;;  %v1799_v33 = vld [vmem:[#allocation11 + $0x188] sm:$0xff]  ;;  %v6422_v21 = vld [vmem:[#allocation9 + $0x8] sm:$0xff] }
 0x503   :  { %1949 = vmatpush.msrb.mxu0 %v1809_v2 }
 0x504   :  { %v4995_v40 = vmul.f32 -1.442695, %v1568_v3  ;;  %v4996_v26 = vmul.f32 -1.442695, %v1588_v14  ;;  %1911 = vmatpush.msrb.mxu3 %v1799_v33  ;;  %v1504_v14 = vperm.slane %v6352_v48, 2  ;;  %v2027_v33 = vld [vmem:[#allocation12 + $0x218] sm:$0xff] }
 0x505   :  { %1950 = vmatpush.msrb.mxu0 %v1806_v54  ;;  %v6413_v54 = vld [vmem:[#allocation12 + $0x2c0] sm:$0xff] }
 0x506   :  { %5109 = vpow2.f32 %v4995_v40 }
 0x507   :  { %5111 = vpow2.f32 %v4996_v26  ;;  %1951 = vmatpush.msrb.mxu0 %v1803_v25  ;;  %v1565_v26 = vpop.f32.mrf.mxu2  ;;  %v6425_v25 = vld [vmem:[#allocation12 + $0x290] sm:$0xff] }
 0x508   :  { %v1566_v59 = vadd.f32 %v1565_v26, %v1504_v14  ;;  %v2009_v14 = vld [vmem:[#allocation12 + $0x188] sm:$0xff] }
 0x509   :  { %1952 = vmatpush.msrb.mxu0 %v1800_v44  ;;  %v2021_v44 = vld [vmem:[#allocation12 + $0x1e8] sm:$0xff] }
 0x50c   :  { %v5110_v30 = vpop.eup %5109 }
 0x50d   :  { %v5112_v34 = vpop.eup %5111  ;;  %v1572_v13 = vadd.f32 1.0, %v5110_v30 }
 0x50e   :  { %v1592_v4 = vadd.f32 1.0, %v5112_v34 }
 0x50f   :  { %5113 = vrcp.f32 %v1572_v13  ;;  %v1584_v3 = vand.u32 2147483648, %v1572_v13  ;;  %v1582_v23 = vand.u32 2147483647, %v1572_v13  ;;  %vm1578_vm1 = vweird.f32 %v1572_v13 }
 0x510   :  { %5115 = vrcp.f32 %v1592_v4  ;;  %v1604_v60 = vand.u32 2147483648, %v1592_v4  ;;  %vm1598_vm5 = vweird.f32 %v1592_v4  ;;  %v1602_v47 = vand.u32 2147483647, %v1592_v4 }
 0x511   :  { %v1585_v52 = vor.u32 1.1754944e-38, %v1584_v3  ;;  %vm1583_vm3 = vcmp.eq.f32.partialorder %v1582_v23, 8.507059e+37  ;;  %v2012_v3 = vld [vmem:[#allocation12 + $0x1a0] sm:$0xff] }
 0x512   :  { %v1605_v20 = vor.u32 1.1754944e-38, %v1604_v60  ;;  %vm1603_vm7 = vcmp.eq.f32.partialorder %v1602_v47, 8.507059e+37  ;;  %v6498_v47 = vld [vmem:[#allocation12 + $0x280] sm:$0xff] }
 0x515   :  { %v5114_v15 = vpop.eup %5113 }
 0x516   :  { %v5116_v19 = vpop.eup %5115  ;;  %v1574_v29 = vmul.f32 %v5114_v15, %v1572_v13  ;;  %vm1579_vm0 = vweird.f32 %v5114_v15 }
 0x517   :  { %v1594_v31 = vmul.f32 %v5116_v19, %v1592_v4  ;;  %vm1580_vm2 = vmor %vm1578_vm1, %vm1579_vm0  ;;  %vm1599_vm4 = vweird.f32 %v5116_v19  ;;  %v6408_v4 = vld [vmem:[#allocation12 + $0x2d8] sm:$0xff] }
 0x518   :  { %v1575_v39 = vsub.f32 1.0, %v1574_v29  ;;  %vm1600_vm6 = vmor %vm1598_vm5, %vm1599_vm4  ;;  %v2036_v29 = vld [vmem:[#allocation12 + $0x260] sm:$0xff] }
 0x519   :  { %v1595_v51 = vsub.f32 1.0, %v1594_v31  ;;  %v2033_v31 = vld [vmem:[#allocation12 + $0x248] sm:$0xff] }
 0x51a   :  { %v1576_v55 = vmul.f32 %v5114_v15, %v1575_v39  ;;  %v2024_v39 = vld [vmem:[#allocation12 + $0x200] sm:$0xff] }
 0x51b   :  { %v1596_v40 = vmul.f32 %v5116_v19, %v1595_v51  ;;  %v2018_v51 = vld [vmem:[#allocation12 + $0x1d0] sm:$0xff] }
 0x51c   :  { %v1577_v50 = vadd.f32 %v5114_v15, %v1576_v55 }
 0x51d   :  { %v1597_v35 = vadd.f32 %v5116_v19, %v1596_v40  ;;  %v6471_v40 = vld [vmem:[#allocation12 + $0x2f8] sm:$0xff] }
 0x51e   :  { %v1581_v9 = vsel %vm1580_vm2, %v5114_v15, %v1577_v50  ;;  %v6418_v15 = vld [vmem:[#allocation12 + $0x2a8] sm:$0xff]  ;;  %2105 = vmatpush.msrb.mxu2 %v6471_v40 }
 0x51f   :  { %v1586_v42 = vsel %vm1583_vm3, %v1585_v52, %v1581_v9  ;;  %v1601_v38 = vsel %vm1600_vm6, %v5116_v19, %v1597_v35  ;;  %v2039_v19 = vld [vmem:[#allocation12 + $0x278] sm:$0xff]  ;;  %v6476_v52 = vld [vmem:[#allocation12 + $0x2e0] sm:$0xff] }
 0x520   :  { %v1608_v48 = vmul.f32 %v1586_v42, %v1566_v59  ;;  %v1606_v34 = vsel %vm1603_vm7, %v1605_v20, %v1601_v38  ;;  %2106 = vmatpush.msrb.mxu2 %v6476_v52  ;;  %v7800_v35 = vld [vmem:[#allocation33_spill] sm:$0xff]  ;;  %v6503_v38 = vld [vmem:[#allocation12 + $0x268] sm:$0xff] }
 0x521   :  { %v1611_v13 = vsub.f32 1.0, %v1606_v34  ;;  %v1613_v45 = vmul.f32 %v1606_v34, %v6326_v18  ;;  %v312_v42 = vadd.f32 %v7800_v35, %v7787_v32  ;;  %v6510_v34 = vld [vmem:[#allocation12 + $0x250] sm:$0xff] }
 0x522   :  { %v1609_v30 = vadd.f32 %v1608_v48, %v391_v27  ;;  %v6488_v27 = vld [vmem:[#allocation12 + $0x2b0] sm:$0xff]  ;;  %v6493_v48 = vld [vmem:[#allocation12 + $0x298] sm:$0xff] }
 0x524   :  { %5117 = vtanh.f32 %v1609_v30 }
 0x52a   :  { %v5118_v8 = vpop.eup %5117 }
 0x52b   :  { %v1612_v37 = vmul.f32 %v5118_v8, %v1611_v13  ;;  %v6516_v13 = vld [vmem:[#allocation12 + $0x238] sm:$0xff] }
 0x52d   :  { %v6401_v2 = vadd.f32 %v1613_v45, %v1612_v37  ;;  %v6521_v37 = vld [vmem:[#allocation12 + $0x220] sm:$0xff] }
 0x52f   :  { %1695 = vmatmul.f32.vlgmr.msra.gmra.mxu3 %v6401_v2  ;;  %1715 = vmatmul.f32.vlgmr.msra.gmra.mxu0 %v6401_v2 }
 0x530   :  { %1735 = vmatmul.f32.vlgmr.msra.gmra.mxu1 %v6401_v2  ;;  %1889 = vmatmul.f32.gmra.mxu2 %v6401_v2 }
 0x531   :  { %2085 = vmatpush.msra.mxu1 %v6403_v0  ;;  %2232 = vmatpush.msra.mxu3 %v6341_v53 }
 0x532   :  { %2252 = vmatpush.msra.mxu0 %v6403_v0 }
 0x533   :  { %2086 = vmatpush.msra.mxu1 %v6408_v4  ;;  %2233 = vmatpush.msra.mxu3 %v6344_v22 }
 0x534   :  { %2253 = vmatpush.msra.mxu0 %v6408_v4 }
 0x535   :  { %2087 = vmatpush.msra.mxu1 %v6413_v54  ;;  %2234 = vmatpush.msra.mxu3 %v6347_v36 }
 0x536   :  { %2254 = vmatpush.msra.mxu0 %v6413_v54 }
 0x537   :  { %2088 = vmatpush.msra.mxu1 %v6418_v15  ;;  %1912 = vmatmul.f32.vlgmr.msrb.gmra.mxu3 %v6331_v6 }
 0x538   :  { %1953 = vmatmul.f32.vlgmr.msrb.gmra.mxu0 %v6331_v6  ;;  %2081 = vmatmul.f32.vlgmr.msrb.gmra.mxu1 %v6422_v21  ;;  %v2030_v6 = vld [vmem:[#allocation12 + $0x230] sm:$0xff] }
 0x539   :  { %2089 = vmatpush.msra.mxu1 %v6425_v25  ;;  %2235 = vmatpush.msra.mxu3 %v6350_v46 }
 0x53a   :  { %2255 = vmatpush.msra.mxu0 %v6418_v15 }
 0x53b   :  { %2090 = vmatpush.msra.mxu1 %v2039_v19  ;;  %2236 = vmatpush.msra.mxu3 %v6355_v10 }
 0x53c   :  { %2256 = vmatpush.msra.mxu0 %v6425_v25 }
 0x53d   :  { %2091 = vmatpush.msra.mxu1 %v2036_v29  ;;  %2237 = vmatpush.msra.mxu3 %v6360_v28 }
 0x53e   :  { %2257 = vmatpush.msra.mxu0 %v2039_v19 }
 0x53f   :  { %2092 = vmatpush.msra.mxu1 %v2033_v31  ;;  %1915 = vmatmul.f32.gmra.mxu3 %v6334_v12 }
 0x540   :  { %1956 = vmatmul.f32.gmra.mxu0 %v6334_v12  ;;  %2238 = vmatpush.msra.mxu3 %v6363_v62  ;;  %v2015_v12 = vld [vmem:[#allocation12 + $0x1b8] sm:$0xff] }
 0x541   :  { %2093 = vmatpush.msra.mxu1 %v2030_v6  ;;  %2258 = vmatpush.msra.mxu0 %v2036_v29 }
 0x542   :  { %2239 = vmatpush.msra.mxu3 %v6370_v61 }
 0x543   :  { %2094 = vmatpush.msra.mxu1 %v2027_v33  ;;  %2259 = vmatpush.msra.mxu0 %v2033_v31 }
 0x544   :  { %2240 = vmatpush.msra.mxu3 %v6373_v7 }
 0x545   :  { %2095 = vmatpush.msra.mxu1 %v2024_v39  ;;  %2260 = vmatpush.msra.mxu0 %v2030_v6 }
 0x546   :  { %2241 = vmatpush.msra.mxu3 %v6376_v57 }
 0x547   :  { %2096 = vmatpush.msra.mxu1 %v2021_v44  ;;  %1918 = vmatmul.f32.gmra.mxu3 %v6234_v43 }
 0x548   :  { %1959 = vmatmul.f32.gmra.mxu0 %v6234_v43  ;;  %2242 = vmatpush.msra.mxu3 %v6379_v11  ;;  %v6466_v43 = vld [vmem:[#allocation15] sm:$0x7] }
 0x549   :  { %2097 = vmatpush.msra.mxu1 %v2018_v51  ;;  %2261 = vmatpush.msra.mxu0 %v2027_v33  ;;  %v1673_v50 = vperm.slane %v6466_v43, 0 }
 0x54a   :  { %2243 = vmatpush.msra.mxu3 %v6382_v16 }
 0x54b   :  { %2098 = vmatpush.msra.mxu1 %v2015_v12  ;;  %2262 = vmatpush.msra.mxu0 %v2024_v39 }
 0x54c   :  { %2244 = vmatpush.msra.mxu3 %v6385_v56 }
 0x54d   :  { %2099 = vmatpush.msra.mxu1 %v2012_v3  ;;  %2263 = vmatpush.msra.mxu0 %v2021_v44 }
 0x54e   :  { %2245 = vmatpush.msra.mxu3 %v6387_v63 }
 0x54f   :  { %2100 = vmatpush.msra.mxu1 %v2009_v14  ;;  %1921 = vmatmul.f32.gmra.mxu3 %v6281_v5 }
 0x550   :  { %2101 = vmatmul.f32.vlgmr.msra.gmra.mxu1 %v6422_v21  ;;  %1962 = vmatmul.f32.gmra.mxu0 %v6281_v5  ;;  %v1674_v5 = vperm.slane %v6466_v43, 1 }
 0x551   :  { %2246 = vmatpush.msra.mxu3 %v6390_v1  ;;  %2264 = vmatpush.msra.mxu0 %v2018_v51 }
 0x552   :  { %2272 = vmatpush.msrb.mxu1 %v6471_v40 }
 0x553   :  { %2265 = vmatpush.msra.mxu0 %v2015_v12  ;;  %2247 = vmatpush.msra.mxu3 %v6393_v41 }
 0x554   :  { %2273 = vmatpush.msrb.mxu1 %v6476_v52 }
 0x555   :  { %2419 = vmatpush.msrb.mxu3 %v6403_v0  ;;  %2266 = vmatpush.msra.mxu0 %v2012_v3  ;;  %v6526_v0 = vld [vmem:[#allocation12 + $0x208] sm:$0xff] }
 0x557   :  { %2420 = vmatpush.msrb.mxu3 %v6408_v4  ;;  %2267 = vmatpush.msra.mxu0 %v2009_v14 }
 0x558   :  { %1924 = vmatmul.f32.gmra.mxu3 %v6309_v24  ;;  %1965 = vmatmul.f32.gmra.mxu0 %v6309_v24 }
 0x559   :  { %2421 = vmatpush.msrb.mxu3 %v6413_v54  ;;  %2439 = vmatpush.msrb.mxu0 %v6471_v40  ;;  %v6533_v54 = vld [vmem:[#allocation12 + $0x1f0] sm:$0xff] }
 0x55b   :  { %2422 = vmatpush.msrb.mxu3 %v6418_v15  ;;  %2440 = vmatpush.msrb.mxu0 %v6476_v52  ;;  %v6538_v15 = vld [vmem:[#allocation12 + $0x1d8] sm:$0xff] }
 0x55d   :  { %2423 = vmatpush.msrb.mxu3 %v6425_v25 }
 0x55f   :  { %2424 = vmatpush.msrb.mxu3 %v2039_v19  ;;  %v6545_v19 = vld [vmem:[#allocation12 + $0x1c0] sm:$0xff] }
 0x560   :  { %1927 = vmatmul.f32.gmra.mxu3 %v6326_v18  ;;  %1968 = vmatmul.f32.gmra.mxu0 %v6326_v18  ;;  %v7799_v18 = vld [vmem:[#allocation42_spill] sm:$0xff] }
 0x561   :  { %2425 = vmatpush.msrb.mxu3 %v2036_v29  ;;  %v353_v55 = vadd.f32 %v7799_v18, %v7785_v58  ;;  %v6481_v58 = vld [vmem:[#allocation12 + $0x2c8] sm:$0xff] }
 0x562   :  { %2107 = vmatpush.msrb.mxu2 %v6481_v58  ;;  %2274 = vmatpush.msrb.mxu1 %v6481_v58 }
 0x563   :  { %2426 = vmatpush.msrb.mxu3 %v2033_v31  ;;  %2441 = vmatpush.msrb.mxu0 %v6481_v58 }
 0x564   :  { %2108 = vmatpush.msrb.mxu2 %v6488_v27  ;;  %2275 = vmatpush.msrb.mxu1 %v6488_v27 }
 0x565   :  { %2427 = vmatpush.msrb.mxu3 %v2030_v6  ;;  %2442 = vmatpush.msrb.mxu0 %v6488_v27  ;;  %v6550_v6 = vld [vmem:[#allocation12 + $0x1a8] sm:$0xff] }
 0x566   :  { %2109 = vmatpush.msrb.mxu2 %v6493_v48  ;;  %2276 = vmatpush.msrb.mxu1 %v6493_v48 }
 0x567   :  { %2428 = vmatpush.msrb.mxu3 %v2027_v33  ;;  %2443 = vmatpush.msrb.mxu0 %v6493_v48 }
 0x568   :  { %1930 = vmatmul.f32.gmra.mxu3 %v6401_v2  ;;  %1971 = vmatmul.f32.gmra.mxu0 %v6401_v2 }
 0x569   :  { %2429 = vmatpush.msrb.mxu3 %v2024_v39  ;;  %2110 = vmatpush.msrb.mxu2 %v6498_v47 }
 0x56a   :  { %2277 = vmatpush.msrb.mxu1 %v6498_v47  ;;  %2444 = vmatpush.msrb.mxu0 %v6498_v47 }
 0x56b   :  { %2430 = vmatpush.msrb.mxu3 %v2021_v44  ;;  %2111 = vmatpush.msrb.mxu2 %v6503_v38  ;;  %v6555_v44 = vld [vmem:[#allocation12 + $0x190] sm:$0xff] }
 0x56c   :  { %2278 = vmatpush.msrb.mxu1 %v6503_v38  ;;  %2445 = vmatpush.msrb.mxu0 %v6503_v38 }
 0x56d   :  { %2431 = vmatpush.msrb.mxu3 %v2018_v51  ;;  %2112 = vmatpush.msrb.mxu2 %v6510_v34 }
 0x56e   :  { %2279 = vmatpush.msrb.mxu1 %v6510_v34  ;;  %2446 = vmatpush.msrb.mxu0 %v6510_v34 }
 0x56f   :  { %2432 = vmatpush.msrb.mxu3 %v2015_v12  ;;  %2113 = vmatpush.msrb.mxu2 %v6516_v13  ;;  %v1675_v12 = vperm.slane %v6466_v43, 2 }
 0x570   :  { %2280 = vmatpush.msrb.mxu1 %v6516_v13  ;;  %2447 = vmatpush.msrb.mxu0 %v6516_v13 }
 0x571   :  { %2433 = vmatpush.msrb.mxu3 %v2012_v3  ;;  %2114 = vmatpush.msrb.mxu2 %v6521_v37 }
 0x572   :  { %2281 = vmatpush.msrb.mxu1 %v6521_v37  ;;  %2448 = vmatpush.msrb.mxu0 %v6521_v37 }
 0x573   :  { %2434 = vmatpush.msrb.mxu3 %v2009_v14  ;;  %2115 = vmatpush.msrb.mxu2 %v6526_v0 }
 0x574   :  { %2282 = vmatpush.msrb.mxu1 %v6526_v0  ;;  %2449 = vmatpush.msrb.mxu0 %v6526_v0 }
 0x575   :  { %2116 = vmatpush.msrb.mxu2 %v6533_v54 }
 0x576   :  { %2283 = vmatpush.msrb.mxu1 %v6533_v54  ;;  %2450 = vmatpush.msrb.mxu0 %v6533_v54 }
 0x577   :  { %2117 = vmatpush.msrb.mxu2 %v6538_v15 }
 0x578   :  { %2284 = vmatpush.msrb.mxu1 %v6538_v15  ;;  %2451 = vmatpush.msrb.mxu0 %v6538_v15 }
 0x579   :  { %2118 = vmatpush.msrb.mxu2 %v6545_v19 }
 0x57a   :  { %2285 = vmatpush.msrb.mxu1 %v6545_v19  ;;  %2452 = vmatpush.msrb.mxu0 %v6545_v19 }
 0x57b   :  { %2119 = vmatpush.msrb.mxu2 %v6550_v6 }
 0x57c   :  { %2286 = vmatpush.msrb.mxu1 %v6550_v6  ;;  %2453 = vmatpush.msrb.mxu0 %v6550_v6 }
 0x57d   :  { %2120 = vmatpush.msrb.mxu2 %v6555_v44 }
 0x57e   :  { %2287 = vmatpush.msrb.mxu1 %v6555_v44  ;;  %2454 = vmatpush.msrb.mxu0 %v6555_v44 }
 0x57f   :  { %2399 = vmatpush.msra.mxu2 %v6341_v53 }
 0x581   :  { %2400 = vmatpush.msra.mxu2 %v6344_v22 }
 0x583   :  { %2401 = vmatpush.msra.mxu2 %v6347_v36 }
 0x585   :  { %2402 = vmatpush.msra.mxu2 %v6350_v46 }
 0x587   :  { %2403 = vmatpush.msra.mxu2 %v6355_v10 }
 0x589   :  { %2404 = vmatpush.msra.mxu2 %v6360_v28  ;;  %v1872_v28 = vpop.f32.mrf.mxu2 }
 0x58b   :  { %2405 = vmatpush.msra.mxu2 %v6363_v62 }
 0x58d   :  { %2406 = vmatpush.msra.mxu2 %v6370_v61  ;;  %v2057_v61 = vld [vmem:[#allocation15 + $0x3] sm:$0x7] }
 0x58f   :  { %2407 = vmatpush.msra.mxu2 %v6373_v7  ;;  %v1847_v7 = vld [vmem:[#allocation14 + $0x3] sm:$0x7] }
 0x591   :  { %2408 = vmatpush.msra.mxu2 %v6376_v57  ;;  %v6589_v62 = vpop.f32.mrf.mxu2  ;;  %v2059_v57 = vperm.slane %v2057_v61, 0 }
 0x593   :  { %2409 = vmatpush.msra.mxu2 %v6379_v11 }
 0x595   :  { %2410 = vmatpush.msra.mxu2 %v6382_v16  ;;  %v6593_v16 = vperm.slane %v1847_v7, 0 }
 0x597   :  { %2411 = vmatpush.msra.mxu2 %v6385_v56 }
 0x599   :  { %2412 = vmatpush.msra.mxu2 %v6387_v63  ;;  %v1873_v63 = vadd.f32 %v1872_v28, %v6593_v16 }
 0x59b   :  { %2413 = vmatpush.msra.mxu2 %v6390_v1 }
 0x59d   :  { %2414 = vmatpush.msra.mxu2 %v6393_v41 }
 0x5ac   :  { %v1716_v24 = vpop.f32.mrf.mxu0 }
 0x5ad   :  { %v1717_v23 = vadd.f32 %v1716_v24, %v1674_v5  ;;  %v1736_v24 = vpop.f32.mrf.mxu1 }
 0x5af   :  { %v1759_v26 = vadd.f32 %v1717_v23, %v353_v55  ;;  %v1737_v23 = vadd.f32 %v1736_v24, %v1675_v12 }
 0x5b1   :  { %v4998_v59 = vmul.f32 -1.442695, %v1759_v26 }
 0x5b2   :  { %v1696_v9 = vpop.f32.mrf.mxu3 }
 0x5b3   :  { %5119 = vpow2.f32 %v4998_v59  ;;  %v1697_v17 = vadd.f32 %v1696_v9, %v1673_v50  ;;  %v7801_v50 = vld [vmem:[#allocation43_spill] sm:$0xff] }
 0x5b4   :  { %v394_v59 = vadd.f32 %v7801_v50, %v5922_v49 }
 0x5b5   :  { %v1739_v60 = vadd.f32 %v1697_v17, %v312_v42  ;;  %v2082_v11 = vpop.f32.mrf.mxu1 }
 0x5b6   :  { %v2083_v56 = vadd.f32 %v2082_v11, %v2059_v57 }
 0x5b7   :  { %v4997_v32 = vmul.f32 -1.442695, %v1739_v60 }
 0x5b8   :  { %v2125_v1 = vadd.f32 %v2083_v56, %v1873_v63 }
 0x5b9   :  { %v5120_v30 = vpop.eup %5119  ;;  %5121 = vpow2.f32 %v4997_v32 }
 0x5ba   :  { %v6506_v20 = vadd.f32 1.0, %v5120_v30  ;;  %v1913_v41 = vpop.f32.mrf.mxu3 }
 0x5bc   :  { %5123 = vrcp.f32 %v6506_v20  ;;  %v1775_v9 = vand.u32 2147483648, %v6506_v20  ;;  %vm1769_vm13 = vweird.f32 %v6506_v20  ;;  %v1773_v22 = vand.u32 2147483647, %v6506_v20 }
 0x5be   :  { %v1776_v17 = vor.u32 1.1754944e-38, %v1775_v9  ;;  %vm1774_vm15 = vcmp.eq.f32.partialorder %v1773_v22, 8.507059e+37 }
 0x5bf   :  { %v5122_v8 = vpop.eup %5121 }
 0x5c0   :  { %v1743_v45 = vadd.f32 1.0, %v5122_v8 }
 0x5c2   :  { %5125 = vrcp.f32 %v1743_v45  ;;  %v6531_v4 = vpop.eup %5123  ;;  %v1755_v51 = vand.u32 2147483648, %v1743_v45  ;;  %v1753_v14 = vand.u32 2147483647, %v1743_v45  ;;  %vm1749_vm9 = vweird.f32 %v1743_v45 }
 0x5c3   :  { %v1765_v25 = vmul.f32 %v6531_v4, %v6506_v20  ;;  %vm1770_vm12 = vweird.f32 %v6531_v4  ;;  %v2060_v20 = vperm.slane %v2057_v61, 1 }
 0x5c4   :  { %v1756_v55 = vor.u32 1.1754944e-38, %v1755_v51  ;;  %vm1754_vm11 = vcmp.eq.f32.partialorder %v1753_v14, 8.507059e+37  ;;  %vm1771_vm14 = vmor %vm1769_vm13, %vm1770_vm12 }
 0x5c5   :  { %v1766_v33 = vsub.f32 1.0, %v1765_v25 }
 0x5c7   :  { %v1767_v5 = vmul.f32 %v6531_v4, %v1766_v33 }
 0x5c8   :  { %v5126_v29 = vpop.eup %5125 }
 0x5c9   :  { %v1745_v31 = vmul.f32 %v5126_v29, %v1743_v45  ;;  %vm1750_vm8 = vweird.f32 %v5126_v29  ;;  %v1768_v43 = vadd.f32 %v6531_v4, %v1767_v5  ;;  %v6596_v45 = vperm.slane %v1847_v7, 1 }
 0x5ca   :  { %vm1751_vm10 = vmor %vm1749_vm9, %vm1750_vm8 }
 0x5cb   :  { %v1746_v39 = vsub.f32 1.0, %v1745_v31  ;;  %v1772_v36 = vsel %vm1771_vm14, %v6531_v4, %v1768_v43  ;;  %v1914_v31 = vadd.f32 %v1913_v41, %v6596_v45 }
 0x5cc   :  { %v1777_v49 = vsel %vm1774_vm15, %v1776_v17, %v1772_v36 }
 0x5cd   :  { %v1747_v3 = vmul.f32 %v5126_v29, %v1746_v39  ;;  %v1782_v46 = vsub.f32 1.0, %v1777_v49  ;;  %v1784_v32 = vmul.f32 %v1777_v49, %v6401_v2  ;;  %v6591_v2 = vpop.f32.mrf.mxu2  ;;  %v2102_v8 = vpop.f32.mrf.mxu1  ;;  %v6609_v49 = vperm.slane %v1847_v7, 2 }
 0x5ce   :  { %v2103_v25 = vadd.f32 %v2102_v8, %v2060_v20 }
 0x5cf   :  { %v1748_v18 = vadd.f32 %v5126_v29, %v1747_v3 }
 0x5d0   :  { %v2145_v33 = vadd.f32 %v2103_v25, %v1914_v31 }
 0x5d1   :  { %v1752_v26 = vsel %vm1751_vm10, %v5126_v29, %v1748_v18  ;;  %v4999_v29 = vmul.f32 -1.442695, %v2125_v1 }
 0x5d2   :  { %v1757_v53 = vsel %vm1754_vm11, %v1756_v55, %v1752_v26  ;;  %v5000_v39 = vmul.f32 -1.442695, %v2145_v33 }
 0x5d3   :  { %v1779_v35 = vmul.f32 %v1757_v53, %v1737_v23 }
 0x5d5   :  { %v1780_v42 = vadd.f32 %v1779_v35, %v394_v59  ;;  %v6598_v4 = vpop.f32.mrf.mxu2 }
 0x5d7   :  { %5127 = vtanh.f32 %v1780_v42  ;;  %v2061_v42 = vperm.slane %v2057_v61, 2 }
 0x5d8   :  { %5129 = vpow2.f32 %v4999_v29 }
 0x5d9   :  { %5131 = vpow2.f32 %v5000_v39 }
 0x5dd   :  { %v5128_v60 = vpop.eup %5127  ;;  %v6601_v51 = vpop.f32.mrf.mxu2 }
 0x5de   :  { %v1783_v30 = vmul.f32 %v5128_v60, %v1782_v46  ;;  %v5130_v12 = vpop.eup %5129  ;;  %v1954_v60 = vpop.f32.mrf.mxu0 }
 0x5df   :  { %v2129_v3 = vadd.f32 1.0, %v5130_v12  ;;  %v5132_v14 = vpop.eup %5131  ;;  %v1955_v11 = vadd.f32 %v1954_v60, %v6609_v49 }
 0x5e0   :  { %v1785_v10 = vadd.f32 %v1784_v32, %v1783_v30  ;;  %v2149_v24 = vadd.f32 1.0, %v5132_v14 }
 0x5e1   :  { %5133 = vrcp.f32 %v2129_v3  ;;  %v2141_v22 = vand.u32 2147483648, %v2129_v3  ;;  %vm2135_vm1 = vweird.f32 %v2129_v3  ;;  %v2139_v36 = vand.u32 2147483647, %v2129_v3 }
 0x5e2   :  { %1788 = vst [vmem:[#allocation18] sm:$0xff] %v1785_v10  ;;  %1892 = vmatmul.f32.gmra.mxu2 %v1785_v10  ;;  %1933 = vmatmul.f32.gmra.mxu3 %v1785_v10  ;;  %5135 = vrcp.f32 %v2149_v24  ;;  %v2161_v56 = vand.u32 2147483648, %v2149_v24  ;;  %vm2155_vm5 = vweird.f32 %v2149_v24  ;;  %v2159_v61 = vand.u32 2147483647, %v2149_v24 }
 0x5e3   :  { %1974 = vmatmul.f32.gmra.mxu0 %v1785_v10  ;;  %v2142_v30 = vor.u32 1.1754944e-38, %v2141_v22  ;;  %vm2140_vm3 = vcmp.eq.f32.partialorder %v2139_v36, 8.507059e+37 }
 0x5e4   :  { %v2162_v7 = vor.u32 1.1754944e-38, %v2161_v56  ;;  %vm2160_vm7 = vcmp.eq.f32.partialorder %v2159_v61, 8.507059e+37 }
 0x5e5   :  { %v6603_v5 = vpop.f32.mrf.mxu2 }
 0x5e7   :  { %v5134_v18 = vpop.eup %5133 }
 0x5e8   :  { %v2131_v55 = vmul.f32 %v5134_v18, %v2129_v3  ;;  %v5136_v26 = vpop.eup %5135  ;;  %vm2136_vm0 = vweird.f32 %v5134_v18 }
 0x5e9   :  { %v2151_v53 = vmul.f32 %v5136_v26, %v2149_v24  ;;  %vm2137_vm2 = vmor %vm2135_vm1, %vm2136_vm0  ;;  %vm2156_vm4 = vweird.f32 %v5136_v26 }
 0x5ea   :  { %2121 = vmatmul.f32.vlgmr.msrb.gmra.mxu2 %v6422_v21  ;;  %v2132_v43 = vsub.f32 1.0, %v2131_v55  ;;  %vm2157_vm6 = vmor %vm2155_vm5, %vm2156_vm4  ;;  %v1876_v55 = vadd.f32 %v6589_v62, %v6593_v16 }
 0x5eb   :  { %v2152_v9 = vsub.f32 1.0, %v2151_v53 }
 0x5ec   :  { %v2133_v50 = vmul.f32 %v5134_v18, %v2132_v43 }
 0x5ed   :  { %v6605_v23 = vpop.f32.mrf.mxu2  ;;  %v2153_v17 = vmul.f32 %v5136_v26, %v2152_v9 }
 0x5ee   :  { %v2134_v35 = vadd.f32 %v5134_v18, %v2133_v50 }
 0x5ef   :  { %v2154_v57 = vadd.f32 %v5136_v26, %v2153_v17 }
 0x5f0   :  { %v2138_v46 = vsel %vm2137_vm2, %v5134_v18, %v2134_v35 }
 0x5f1   :  { %v2143_v28 = vsel %vm2140_vm3, %v2142_v30, %v2138_v46  ;;  %v2158_v1 = vsel %vm2157_vm6, %v5136_v26, %v2154_v57 }
 0x5f2   :  { %v2163_v8 = vsel %vm2160_vm7, %v2162_v7, %v2158_v1 }
 0x5f3   :  { %v2168_v41 = vsub.f32 1.0, %v2163_v8  ;;  %v2170_v31 = vmul.f32 %v2163_v8, %v6422_v21  ;;  %v1957_v21 = vpop.f32.mrf.mxu0 }
 0x5f4   :  { %v1958_v8 = vadd.f32 %v1957_v21, %v6609_v49  ;;  %v6670_v21 = vld [vmem:[#allocation12 + $0x2e8] sm:$0xff] }
 0x5f5   :  { %2566 = vmatpush.msra.mxu1 %v6670_v21 }
 0x665   :  { %v6607_v59 = vpop.f32.mrf.mxu2 }
 0x666   :  { %7802 = vst [vmem:[#allocation30_spill] sm:$0xff] %v6607_v59 }
 0x66d   :  { %v2122_v32 = vpop.f32.mrf.mxu2 }
 0x66e   :  { %v2123_v10 = vadd.f32 %v2122_v32, %v2061_v42 }
 0x670   :  { %v2165_v63 = vmul.f32 %v2143_v28, %v2123_v10 }
 0x672   :  { %v2166_v20 = vadd.f32 %v2165_v63, %v1955_v11 }
 0x674   :  { %5137 = vtanh.f32 %v2166_v20 }
 0x67a   :  { %v5138_v25 = vpop.eup %5137 }
 0x67b   :  { %v2169_v29 = vmul.f32 %v5138_v25, %v2168_v41 }
 0x67d   :  { %v6613_v33 = vadd.f32 %v2170_v31, %v2169_v29 }
 0x67f   :  { %2172 = vst [vmem:[#allocation2] sm:$0xff] %v6613_v33  ;;  %2248 = vmatmul.f32.vlgmr.msra.gmra.mxu3 %v6613_v33  ;;  %2268 = vmatmul.f32.vlgmr.msra.gmra.mxu0 %v6613_v33 }
 0x680   :  { %2288 = vmatmul.f32.vlgmr.msrb.gmra.mxu1 %v6613_v33  ;;  %2606 = vmatpush.msra.mxu3 %v6471_v40  ;;  %v1916_v40 = vpop.f32.mrf.mxu3 }
 0x681   :  { %v1917_v39 = vadd.f32 %v1916_v40, %v6596_v45  ;;  %2733 = vmatpush.msra.mxu0 %v6670_v21 }
 0x682   :  { %2607 = vmatpush.msra.mxu3 %v6476_v52  ;;  %v6635_v52 = vpop.f32.mrf.mxu0 }
 0x684   :  { %2608 = vmatpush.msra.mxu3 %v6481_v58 }
 0x686   :  { %2609 = vmatpush.msra.mxu3 %v6488_v27 }
 0x688   :  { %2610 = vmatpush.msra.mxu3 %v6493_v48  ;;  %v6637_v58 = vpop.f32.mrf.mxu3 }
 0x68a   :  { %2611 = vmatpush.msra.mxu3 %v6498_v47  ;;  %v6639_v27 = vpop.f32.mrf.mxu0 }
 0x68c   :  { %2612 = vmatpush.msra.mxu3 %v6503_v38 }
 0x68e   :  { %2613 = vmatpush.msra.mxu3 %v6510_v34 }
 0x690   :  { %2614 = vmatpush.msra.mxu3 %v6516_v13  ;;  %v6641_v48 = vpop.f32.mrf.mxu3 }
 0x692   :  { %2615 = vmatpush.msra.mxu3 %v6521_v37  ;;  %v6643_v47 = vpop.f32.mrf.mxu0 }
 0x694   :  { %2616 = vmatpush.msra.mxu3 %v6526_v0 }
 0x696   :  { %2617 = vmatpush.msra.mxu3 %v6533_v54 }
 0x698   :  { %2618 = vmatpush.msra.mxu3 %v6538_v15  ;;  %v6645_v38 = vpop.f32.mrf.mxu3  ;;  %v2224_v15 = vld [vmem:[#allocation15 + $0x3] sm:$0x7] }
 0x699   :  { %v2226_v14 = vperm.slane %v2224_v15, 0  ;;  %v2228_v10 = vperm.slane %v2224_v15, 2 }
 0x69a   :  { %2619 = vmatpush.msra.mxu3 %v6545_v19  ;;  %v6647_v34 = vpop.f32.mrf.mxu0  ;;  %v2227_v19 = vperm.slane %v2224_v15, 1 }
 0x69c   :  { %2620 = vmatpush.msra.mxu3 %v6550_v6 }
 0x69e   :  { %2621 = vmatpush.msra.mxu3 %v6555_v44 }
 0x6a0   :  { %v6649_v13 = vpop.f32.mrf.mxu3 }
 0x6a2   :  { %v6651_v37 = vpop.f32.mrf.mxu0 }
 0x6a3   :  { %7803 = vst [vmem:[#allocation34_spill] sm:$0xff] %v6651_v37 }
 0x6a8   :  { %v6653_v0 = vpop.f32.mrf.mxu3 }
 0x6a9   :  { %7804 = vst [vmem:[#allocation27_spill] sm:$0xff] %v6653_v0 }
 0x6aa   :  { %v6655_v54 = vpop.f32.mrf.mxu0 }
 0x6ab   :  { %7805 = vst [vmem:[#allocation28_spill] sm:$0xff] %v6655_v54 }
 0x6b0   :  { %v6657_v6 = vpop.f32.mrf.mxu3 }
 0x6b1   :  { %7806 = vst [vmem:[#allocation35_spill] sm:$0xff] %v6657_v6 }
 0x6fc   :  { %v2269_v44 = vpop.f32.mrf.mxu0 }
 0x6fd   :  { %v2270_v12 = vadd.f32 %v2269_v44, %v2227_v19  ;;  %v2289_v11 = vpop.f32.mrf.mxu1 }
 0x6fe   :  { %v2290_v61 = vadd.f32 %v2289_v11, %v2228_v10  ;;  %v6732_v11 = vld [vmem:[#allocation12 + $0x240] sm:$0xff] }
 0x6ff   :  { %v2312_v3 = vadd.f32 %v2270_v12, %v1917_v39 }
 0x701   :  { %v5002_v24 = vmul.f32 -1.442695, %v2312_v3 }
 0x702   :  { %v2249_v18 = vpop.f32.mrf.mxu3 }
 0x703   :  { %5139 = vpow2.f32 %v5002_v24  ;;  %v2250_v26 = vadd.f32 %v2249_v18, %v2226_v14  ;;  %v6672_v24 = vld [vmem:[#allocation12 + $0x2f0] sm:$0xff] }
 0x704   :  { %2586 = vmatpush.msrb.mxu2 %v6672_v24  ;;  %v6676_v18 = vld [vmem:[#allocation12 + $0x2d0] sm:$0xff] }
 0x705   :  { %v2292_v43 = vadd.f32 %v2250_v26, %v1876_v55  ;;  %2567 = vmatpush.msra.mxu1 %v6676_v18  ;;  %v6684_v55 = vld [vmem:[#allocation12 + $0x2b8] sm:$0xff]  ;;  %v6686_v26 = vld [vmem:[#allocation12 + $0x2c0] sm:$0xff]  ;;  %2734 = vmatpush.msra.mxu0 %v6676_v18 }
 0x707   :  { %v5001_v53 = vmul.f32 -1.442695, %v2292_v43  ;;  %2568 = vmatpush.msra.mxu1 %v6684_v55  ;;  %v6692_v43 = vld [vmem:[#allocation12 + $0x2a0] sm:$0xff]  ;;  %2735 = vmatpush.msra.mxu0 %v6684_v55 }
 0x709   :  { %v5140_v50 = vpop.eup %5139  ;;  %5141 = vpow2.f32 %v5001_v53  ;;  %v6694_v53 = vld [vmem:[#allocation12 + $0x2a8] sm:$0xff]  ;;  %2569 = vmatpush.msra.mxu1 %v6692_v43  ;;  %2736 = vmatpush.msra.mxu0 %v6692_v43 }
 0x70a   :  { %v2316_v9 = vadd.f32 1.0, %v5140_v50  ;;  %v6700_v50 = vld [vmem:[#allocation12 + $0x288] sm:$0xff] }
 0x70b   :  { %2570 = vmatpush.msra.mxu1 %v6700_v50  ;;  %2737 = vmatpush.msra.mxu0 %v6700_v50 }
 0x70c   :  { %5143 = vrcp.f32 %v2316_v9  ;;  %v2328_v41 = vand.u32 2147483648, %v2316_v9  ;;  %vm2322_vm13 = vweird.f32 %v2316_v9  ;;  %v2326_v29 = vand.u32 2147483647, %v2316_v9 }
 0x70e   :  { %v2329_v15 = vor.u32 1.1754944e-38, %v2328_v41  ;;  %vm2327_vm15 = vcmp.eq.f32.partialorder %v2326_v29, 8.507059e+37  ;;  %v6752_v41 = vld [vmem:[#allocation12 + $0x1f8] sm:$0xff]  ;;  %v6760_v29 = vld [vmem:[#allocation12 + $0x1e0] sm:$0xff] }
 0x70f   :  { %v5142_v35 = vpop.eup %5141 }
 0x710   :  { %v2296_v22 = vadd.f32 1.0, %v5142_v35  ;;  %v6706_v35 = vld [vmem:[#allocation15 + $0x3] sm:$0x7] }
 0x712   :  { %5145 = vrcp.f32 %v2296_v22  ;;  %v5144_v42 = vpop.eup %5143  ;;  %v2308_v30 = vand.u32 2147483648, %v2296_v22  ;;  %v2306_v28 = vand.u32 2147483647, %v2296_v22  ;;  %vm2302_vm9 = vweird.f32 %v2296_v22 }
 0x713   :  { %v2318_v36 = vmul.f32 %v5144_v42, %v2316_v9  ;;  %vm2323_vm12 = vweird.f32 %v5144_v42  ;;  %v6702_v9 = vld [vmem:[#allocation12 + $0x290] sm:$0xff] }
 0x714   :  { %v2309_v63 = vor.u32 1.1754944e-38, %v2308_v30  ;;  %vm2307_vm11 = vcmp.eq.f32.partialorder %v2306_v28, 8.507059e+37  ;;  %vm2324_vm14 = vmor %vm2322_vm13, %vm2323_vm12 }
 0x715   :  { %v2319_v60 = vsub.f32 1.0, %v2318_v36  ;;  %v6712_v36 = vld [vmem:[#allocation12 + $0x270] sm:$0xff] }
 0x716   :  { %2571 = vmatpush.msra.mxu1 %v6712_v36  ;;  %2738 = vmatpush.msra.mxu0 %v6712_v36 }
 0x717   :  { %v2320_v57 = vmul.f32 %v5144_v42, %v2319_v60  ;;  %v6722_v60 = vld [vmem:[#allocation12 + $0x260] sm:$0xff] }
 0x718   :  { %v5146_v17 = vpop.eup %5145 }
 0x719   :  { %v2298_v46 = vmul.f32 %v5146_v17, %v2296_v22  ;;  %vm2303_vm8 = vweird.f32 %v5146_v17  ;;  %v2321_v7 = vadd.f32 %v5144_v42, %v2320_v57  ;;  %v2393_v22 = vperm.slane %v6706_v35, 0 }
 0x71a   :  { %vm2304_vm10 = vmor %vm2302_vm9, %vm2303_vm8 }
 0x71b   :  { %v2299_v32 = vsub.f32 1.0, %v2298_v46  ;;  %v2325_v40 = vsel %vm2324_vm14, %v5144_v42, %v2321_v7  ;;  %v2394_v42 = vperm.slane %v6706_v35, 1  ;;  %v6720_v46 = vld [vmem:[#allocation12 + $0x258] sm:$0xff] }
 0x71c   :  { %v2330_v19 = vsel %vm2327_vm15, %v2329_v15, %v2325_v40  ;;  %2572 = vmatpush.msra.mxu1 %v6720_v46  ;;  %2739 = vmatpush.msra.mxu0 %v6720_v46  ;;  %v6768_v40 = vld [vmem:[#allocation12 + $0x1c8] sm:$0xff]  ;;  %v6770_v15 = vld [vmem:[#allocation12 + $0x1d0] sm:$0xff] }
 0x71d   :  { %v2300_v62 = vmul.f32 %v5146_v17, %v2299_v32  ;;  %v2335_v44 = vsub.f32 1.0, %v2330_v19  ;;  %v2337_v3 = vmul.f32 %v2330_v19, %v6613_v33  ;;  %v6678_v33 = vld [vmem:[#allocation12 + $0x2d8] sm:$0xff]  ;;  %v1879_v32 = vadd.f32 %v6591_v2, %v6593_v16  ;;  %v6742_v2 = vld [vmem:[#allocation12 + $0x230] sm:$0xff] }
 0x71e   :  { %2587 = vmatpush.msrb.mxu2 %v6678_v33  ;;  %2573 = vmatpush.msra.mxu1 %v6732_v11  ;;  %v6776_v19 = vld [vmem:[#allocation12 + $0x1b0] sm:$0xff] }
 0x71f   :  { %v2301_v56 = vadd.f32 %v5146_v17, %v2300_v62  ;;  %v1920_v62 = vadd.f32 %v6637_v58, %v6596_v45  ;;  %2740 = vmatpush.msra.mxu0 %v6732_v11 }
 0x720   :  { %2588 = vmatpush.msrb.mxu2 %v6686_v26 }
 0x721   :  { %v2305_v20 = vsel %vm2304_vm10, %v5146_v17, %v2301_v56  ;;  %v6714_v17 = vld [vmem:[#allocation12 + $0x278] sm:$0xff]  ;;  %v6734_v56 = vld [vmem:[#allocation12 + $0x248] sm:$0xff] }
 0x722   :  { %v2310_v1 = vsel %vm2307_vm11, %v2309_v63, %v2305_v20  ;;  %2589 = vmatpush.msrb.mxu2 %v6694_v53  ;;  %v6736_v63 = vld [vmem:[#allocation12 + $0x228] sm:$0xff]  ;;  %v6744_v20 = vld [vmem:[#allocation12 + $0x210] sm:$0xff] }
 0x723   :  { %v2332_v25 = vmul.f32 %v2310_v1, %v2290_v61  ;;  %v6746_v1 = vld [vmem:[#allocation12 + $0x218] sm:$0xff]  ;;  %2574 = vmatpush.msra.mxu1 %v6736_v63  ;;  %2741 = vmatpush.msra.mxu0 %v6736_v63 }
 0x724   :  { %2590 = vmatpush.msrb.mxu2 %v6702_v9 }
 0x725   :  { %v2333_v31 = vadd.f32 %v2332_v25, %v1958_v8  ;;  %v6754_v25 = vld [vmem:[#allocation12 + $0x200] sm:$0xff]  ;;  %2575 = vmatpush.msra.mxu1 %v6744_v20  ;;  %2742 = vmatpush.msra.mxu0 %v6744_v20 }
 0x726   :  { %2591 = vmatpush.msrb.mxu2 %v6714_v17 }
 0x727   :  { %5147 = vtanh.f32 %v2333_v31  ;;  %v6762_v31 = vld [vmem:[#allocation12 + $0x1e8] sm:$0xff]  ;;  %2576 = vmatpush.msra.mxu1 %v6752_v41  ;;  %2743 = vmatpush.msra.mxu0 %v6752_v41 }
 0x728   :  { %2592 = vmatpush.msrb.mxu2 %v6722_v60 }
 0x729   :  { %2577 = vmatpush.msra.mxu1 %v6760_v29  ;;  %2744 = vmatpush.msra.mxu0 %v6760_v29 }
 0x72a   :  { %2593 = vmatpush.msrb.mxu2 %v6734_v56 }
 0x72b   :  { %2578 = vmatpush.msra.mxu1 %v6768_v40  ;;  %2745 = vmatpush.msra.mxu0 %v6768_v40 }
 0x72c   :  { %2594 = vmatpush.msrb.mxu2 %v6742_v2 }
 0x72d   :  { %v5148_v39 = vpop.eup %5147  ;;  %2579 = vmatpush.msra.mxu1 %v6776_v19  ;;  %2746 = vmatpush.msra.mxu0 %v6776_v19 }
 0x72e   :  { %v2336_v12 = vmul.f32 %v5148_v39, %v2335_v44  ;;  %2595 = vmatpush.msrb.mxu2 %v6746_v1  ;;  %v6778_v44 = vld [vmem:[#allocation12 + $0x1b8] sm:$0xff] }
 0x730   :  { %v6664_v14 = vadd.f32 %v2337_v3, %v2336_v12  ;;  %2596 = vmatpush.msrb.mxu2 %v6754_v25  ;;  %v6784_v12 = vld [vmem:[#allocation12 + $0x198] sm:$0xff]  ;;  %v6786_v3 = vld [vmem:[#allocation12 + $0x1a0] sm:$0xff] }
 0x731   :  { %2580 = vmatpush.msra.mxu1 %v6784_v12  ;;  %2747 = vmatpush.msra.mxu0 %v6784_v12 }
 0x732   :  { %2339 = vst [vmem:[#allocation2 + $0x8] sm:$0xff] %v6664_v14  ;;  %2415 = vmatmul.f32.vlgmr.msra.gmra.mxu2 %v6664_v14  ;;  %2435 = vmatmul.f32.vlgmr.msrb.gmra.mxu3 %v6664_v14 }
 0x733   :  { %2455 = vmatmul.f32.vlgmr.msrb.gmra.mxu0 %v6664_v14  ;;  %2900 = vmatpush.msrb.mxu3 %v6670_v21 }
 0x734   :  { %2597 = vmatpush.msrb.mxu2 %v6762_v31 }
 0x735   :  { %2901 = vmatpush.msrb.mxu3 %v6676_v18 }
 0x736   :  { %2598 = vmatpush.msrb.mxu2 %v6770_v15 }
 0x737   :  { %2902 = vmatpush.msrb.mxu3 %v6684_v55 }
 0x738   :  { %2599 = vmatpush.msrb.mxu2 %v6778_v44 }
 0x739   :  { %2903 = vmatpush.msrb.mxu3 %v6692_v43 }
 0x73a   :  { %2600 = vmatpush.msrb.mxu2 %v6786_v3 }
 0x73b   :  { %2904 = vmatpush.msrb.mxu3 %v6700_v50 }
 0x73d   :  { %2905 = vmatpush.msrb.mxu3 %v6712_v36 }
 0x73f   :  { %2906 = vmatpush.msrb.mxu3 %v6720_v46 }
 0x741   :  { %2907 = vmatpush.msrb.mxu3 %v6732_v11 }
 0x743   :  { %2908 = vmatpush.msrb.mxu3 %v6736_v63 }
 0x745   :  { %2909 = vmatpush.msrb.mxu3 %v6744_v20 }
 0x747   :  { %2910 = vmatpush.msrb.mxu3 %v6752_v41 }
 0x749   :  { %2911 = vmatpush.msrb.mxu3 %v6760_v29 }
 0x74b   :  { %2912 = vmatpush.msrb.mxu3 %v6768_v40 }
 0x74d   :  { %2913 = vmatpush.msrb.mxu3 %v6776_v19 }
 0x74f   :  { %2914 = vmatpush.msrb.mxu3 %v6784_v12 }
 0x7b0   :  { %v2456_v6 = vpop.f32.mrf.mxu0 }
 0x7b5   :  { %v2416_v30 = vpop.f32.mrf.mxu2  ;;  %v2436_v10 = vpop.f32.mrf.mxu3 }
 0x7b6   :  { %v2417_v28 = vadd.f32 %v2416_v30, %v2393_v22  ;;  %v2437_v57 = vadd.f32 %v2436_v10, %v2394_v42  ;;  %v6794_v30 = vld [vmem:[#allocation12 + $0x180] sm:$0xff]  ;;  %v6796_v10 = vld [vmem:[#allocation12 + $0x188] sm:$0xff] }
 0x7b7   :  { %2581 = vmatpush.msra.mxu1 %v6794_v30  ;;  %2601 = vmatpush.msrb.mxu2 %v6796_v10 }
 0x7b8   :  { %v2459_v61 = vadd.f32 %v2417_v28, %v1879_v32  ;;  %v2479_v58 = vadd.f32 %v2437_v57, %v1920_v62  ;;  %2748 = vmatpush.msra.mxu0 %v6794_v30  ;;  %2915 = vmatpush.msrb.mxu3 %v6794_v30 }
 0x7b9   :  { %2753 = vmatpush.msrb.mxu1 %v6672_v24 }
 0x7ba   :  { %v5003_v7 = vmul.f32 -1.442695, %v2459_v61  ;;  %v5004_v8 = vmul.f32 -1.442695, %v2479_v58  ;;  %2920 = vmatpush.msrb.mxu0 %v6672_v24 }
 0x7bb   :  { %2754 = vmatpush.msrb.mxu1 %v6678_v33 }
 0x7bc   :  { %5149 = vpow2.f32 %v5003_v7  ;;  %2921 = vmatpush.msrb.mxu0 %v6678_v33 }
 0x7bd   :  { %5151 = vpow2.f32 %v5004_v8  ;;  %2755 = vmatpush.msrb.mxu1 %v6686_v26 }
 0x7be   :  { %2922 = vmatpush.msrb.mxu0 %v6686_v26 }
 0x7bf   :  { %2756 = vmatpush.msrb.mxu1 %v6694_v53 }
 0x7c0   :  { %2923 = vmatpush.msrb.mxu0 %v6694_v53 }
 0x7c1   :  { %2757 = vmatpush.msrb.mxu1 %v6702_v9 }
 0x7c2   :  { %v5150_v39 = vpop.eup %5149  ;;  %2924 = vmatpush.msrb.mxu0 %v6702_v9 }
 0x7c3   :  { %v5152_v22 = vpop.eup %5151  ;;  %v2463_v42 = vadd.f32 1.0, %v5150_v39  ;;  %v2395_v39 = vperm.slane %v6706_v35, 2  ;;  %2758 = vmatpush.msrb.mxu1 %v6714_v17 }
 0x7c4   :  { %v6792_v32 = vadd.f32 1.0, %v5152_v22  ;;  %2925 = vmatpush.msrb.mxu0 %v6714_v17 }
 0x7c5   :  { %5153 = vrcp.f32 %v2463_v42  ;;  %v2475_v7 = vand.u32 2147483648, %v2463_v42  ;;  %v2473_v54 = vand.u32 2147483647, %v2463_v42  ;;  %vm2469_vm1 = vweird.f32 %v2463_v42  ;;  %2759 = vmatpush.msrb.mxu1 %v6722_v60 }
 0x7c6   :  { %5155 = vrcp.f32 %v6792_v32  ;;  %2926 = vmatpush.msrb.mxu0 %v6722_v60  ;;  %vm2489_vm5 = vweird.f32 %v6792_v32 }
 0x7c7   :  { %vm2474_vm3 = vcmp.eq.f32.partialorder %v2473_v54, 8.507059e+37  ;;  %2760 = vmatpush.msrb.mxu1 %v6734_v56 }
 0x7c8   :  { %2927 = vmatpush.msrb.mxu0 %v6734_v56 }
 0x7c9   :  { %2761 = vmatpush.msrb.mxu1 %v6742_v2 }
 0x7ca   :  { %2928 = vmatpush.msrb.mxu0 %v6742_v2 }
 0x7cb   :  { %v5154_v62 = vpop.eup %5153  ;;  %2762 = vmatpush.msrb.mxu1 %v6746_v1 }
 0x7cc   :  { %v5156_v28 = vpop.eup %5155  ;;  %v2465_v57 = vmul.f32 %v5154_v62, %v2463_v42  ;;  %vm2470_vm0 = vweird.f32 %v5154_v62  ;;  %2929 = vmatpush.msrb.mxu0 %v6746_v1 }
 0x7cd   :  { %v2485_v61 = vmul.f32 %v5156_v28, %v6792_v32  ;;  %vm2471_vm2 = vmor %vm2469_vm1, %vm2470_vm0  ;;  %vm2490_vm4 = vweird.f32 %v5156_v28  ;;  %2763 = vmatpush.msrb.mxu1 %v6754_v25 }
 0x7ce   :  { %v2466_v58 = vsub.f32 1.0, %v2465_v57  ;;  %v2476_v57 = vor.u32 1.1754944e-38, %v2475_v7  ;;  %vm2491_vm6 = vmor %vm2489_vm5, %vm2490_vm4  ;;  %2930 = vmatpush.msrb.mxu0 %v6754_v25 }
 0x7cf   :  { %v2486_v8 = vsub.f32 1.0, %v2485_v61  ;;  %v2457_v61 = vadd.f32 %v2456_v6, %v2395_v39  ;;  %2764 = vmatpush.msrb.mxu1 %v6762_v31  ;;  %v6913_v39 = vld [vmem:[#allocation12 + $0x220] sm:$0xff] }
 0x7d0   :  { %v2467_v22 = vmul.f32 %v5154_v62, %v2466_v58  ;;  %2931 = vmatpush.msrb.mxu0 %v6762_v31 }
 0x7d1   :  { %v2487_v59 = vmul.f32 %v5156_v28, %v2486_v8  ;;  %v1961_v8 = vadd.f32 %v6635_v52, %v6609_v49  ;;  %2765 = vmatpush.msrb.mxu1 %v6770_v15 }
 0x7d2   :  { %v2468_v37 = vadd.f32 %v5154_v62, %v2467_v22  ;;  %v2495_v22 = vand.u32 2147483648, %v6792_v32  ;;  %2932 = vmatpush.msrb.mxu0 %v6770_v15 }
 0x7d3   :  { %v2488_v58 = vadd.f32 %v5156_v28, %v2487_v59  ;;  %2766 = vmatpush.msrb.mxu1 %v6778_v44 }
 0x7d4   :  { %v2472_v0 = vsel %vm2471_vm2, %v5154_v62, %v2468_v37  ;;  %v2493_v37 = vand.u32 2147483647, %v6792_v32  ;;  %v2496_v54 = vor.u32 1.1754944e-38, %v2495_v22  ;;  %2933 = vmatpush.msrb.mxu0 %v6778_v44  ;;  %v6927_v22 = vld [vmem:[#allocation12 + $0x1d8] sm:$0xff] }
 0x7d5   :  { %v2477_v35 = vsel %vm2474_vm3, %v2476_v57, %v2472_v0  ;;  %v2492_v59 = vsel %vm2491_vm6, %v5156_v28, %v2488_v58  ;;  %2767 = vmatpush.msrb.mxu1 %v6786_v3  ;;  %v1923_v57 = vadd.f32 %v6641_v48, %v6596_v45  ;;  %v6930_v48 = vld [vmem:[#allocation12 + $0x1c0] sm:$0xff] }
 0x7d6   :  { %v2499_v42 = vmul.f32 %v2477_v35, %v2457_v61  ;;  %vm2494_vm7 = vcmp.eq.f32.partialorder %v2493_v37, 8.507059e+37  ;;  %2934 = vmatpush.msrb.mxu0 %v6786_v3  ;;  %v6919_v35 = vld [vmem:[#allocation12 + $0x208] sm:$0xff] }
 0x7d7   :  { %v2497_v52 = vsel %vm2494_vm7, %v2496_v54, %v2492_v59  ;;  %2768 = vmatpush.msrb.mxu1 %v6796_v10  ;;  %v6937_v54 = vld [vmem:[#allocation12 + $0x190] sm:$0xff] }
 0x7d8   :  { %v2500_v0 = vadd.f32 %v2499_v42, %v1961_v8  ;;  %v2502_v6 = vsub.f32 1.0, %v2497_v52  ;;  %v2504_v28 = vmul.f32 %v2497_v52, %v6664_v14  ;;  %2935 = vmatpush.msrb.mxu0 %v6796_v10  ;;  %v6871_v14 = vld [vmem:[#allocation12 + $0x2f8] sm:$0xff]  ;;  %v6923_v8 = vld [vmem:[#allocation12 + $0x1f0] sm:$0xff] }
 0x7d9   :  { %2773 = vmatpush.msra.mxu2 %v6871_v14 }
 0x7da   :  { %5157 = vtanh.f32 %v2500_v0  ;;  %v6933_v0 = vld [vmem:[#allocation12 + $0x1a8] sm:$0xff] }
 0x7e0   :  { %v5158_v32 = vpop.eup %5157 }
 0x7e1   :  { %v2503_v62 = vmul.f32 %v5158_v32, %v2502_v6 }
 0x7e3   :  { %v6844_v7 = vadd.f32 %v2504_v28, %v2503_v62 }
 0x7e5   :  { %2506 = vst [vmem:[#allocation2 + $0x10] sm:$0xff] %v6844_v7  ;;  %2582 = vmatmul.f32.vlgmr.msra.gmra.mxu1 %v6844_v7  ;;  %2602 = vmatmul.f32.vlgmr.msrb.gmra.mxu2 %v6844_v7 }
 0x7e6   :  { %2622 = vmatmul.f32.vlgmr.msra.gmra.mxu3 %v6844_v7  ;;  %2940 = vmatpush.msra.mxu1 %v6871_v14 }
 0x7e7   :  { %3087 = vmatpush.msra.mxu3 %v6672_v24  ;;  %v6875_v24 = vld [vmem:[#allocation12 + $0x2e0] sm:$0xff] }
 0x7e8   :  { %2774 = vmatpush.msra.mxu2 %v6875_v24  ;;  %2941 = vmatpush.msra.mxu1 %v6875_v24 }
 0x7e9   :  { %3088 = vmatpush.msra.mxu3 %v6678_v33  ;;  %v6879_v33 = vld [vmem:[#allocation12 + $0x2c8] sm:$0xff] }
 0x7ea   :  { %2775 = vmatpush.msra.mxu2 %v6879_v33  ;;  %2942 = vmatpush.msra.mxu1 %v6879_v33 }
 0x7eb   :  { %3089 = vmatpush.msra.mxu3 %v6686_v26  ;;  %v6883_v26 = vld [vmem:[#allocation12 + $0x2b0] sm:$0xff] }
 0x7ec   :  { %2776 = vmatpush.msra.mxu2 %v6883_v26  ;;  %2943 = vmatpush.msra.mxu1 %v6883_v26 }
 0x7ed   :  { %3090 = vmatpush.msra.mxu3 %v6694_v53  ;;  %v6885_v53 = vld [vmem:[#allocation15 + $0x3] sm:$0x7] }
 0x7ef   :  { %3091 = vmatpush.msra.mxu3 %v6702_v9  ;;  %v6889_v9 = vld [vmem:[#allocation12 + $0x298] sm:$0xff] }
 0x7f0   :  { %2777 = vmatpush.msra.mxu2 %v6889_v9  ;;  %2944 = vmatpush.msra.mxu1 %v6889_v9 }
 0x7f1   :  { %3092 = vmatpush.msra.mxu3 %v6714_v17  ;;  %v2560_v17 = vperm.slane %v6885_v53, 0 }
 0x7f3   :  { %3093 = vmatpush.msra.mxu3 %v6722_v60  ;;  %v6894_v60 = vld [vmem:[#allocation12 + $0x280] sm:$0xff] }
 0x7f4   :  { %2778 = vmatpush.msra.mxu2 %v6894_v60  ;;  %2945 = vmatpush.msra.mxu1 %v6894_v60 }
 0x7f5   :  { %3094 = vmatpush.msra.mxu3 %v6734_v56  ;;  %v6898_v56 = vld [vmem:[#allocation12 + $0x268] sm:$0xff] }
 0x7f6   :  { %2779 = vmatpush.msra.mxu2 %v6898_v56  ;;  %2946 = vmatpush.msra.mxu1 %v6898_v56 }
 0x7f7   :  { %3095 = vmatpush.msra.mxu3 %v6742_v2 }
 0x7f9   :  { %3096 = vmatpush.msra.mxu3 %v6746_v1  ;;  %v1882_v1 = vadd.f32 %v6598_v4, %v6593_v16 }
 0x7fb   :  { %3097 = vmatpush.msra.mxu3 %v6754_v25 }
 0x7fd   :  { %3098 = vmatpush.msra.mxu3 %v6762_v31  ;;  %v6904_v31 = vld [vmem:[#allocation12 + $0x250] sm:$0xff] }
 0x7fe   :  { %2780 = vmatpush.msra.mxu2 %v6904_v31  ;;  %2947 = vmatpush.msra.mxu1 %v6904_v31 }
 0x7ff   :  { %3099 = vmatpush.msra.mxu3 %v6770_v15 }
 0x801   :  { %3100 = vmatpush.msra.mxu3 %v6778_v44  ;;  %v2561_v44 = vperm.slane %v6885_v53, 1 }
 0x803   :  { %3101 = vmatpush.msra.mxu3 %v6786_v3  ;;  %v6909_v3 = vld [vmem:[#allocation12 + $0x238] sm:$0xff] }
 0x804   :  { %2781 = vmatpush.msra.mxu2 %v6909_v3  ;;  %2948 = vmatpush.msra.mxu1 %v6909_v3 }
 0x805   :  { %3102 = vmatpush.msra.mxu3 %v6796_v10 }
 0x806   :  { %2782 = vmatpush.msra.mxu2 %v6913_v39  ;;  %2949 = vmatpush.msra.mxu1 %v6913_v39 }
 0x808   :  { %2783 = vmatpush.msra.mxu2 %v6919_v35  ;;  %2950 = vmatpush.msra.mxu1 %v6919_v35 }
 0x80a   :  { %2784 = vmatpush.msra.mxu2 %v6923_v8  ;;  %2951 = vmatpush.msra.mxu1 %v6923_v8 }
 0x80c   :  { %2785 = vmatpush.msra.mxu2 %v6927_v22  ;;  %2952 = vmatpush.msra.mxu1 %v6927_v22 }
 0x80e   :  { %2786 = vmatpush.msra.mxu2 %v6930_v48  ;;  %2953 = vmatpush.msra.mxu1 %v6930_v48 }
 0x810   :  { %2787 = vmatpush.msra.mxu2 %v6933_v0  ;;  %2954 = vmatpush.msra.mxu1 %v6933_v0 }
 0x812   :  { %2788 = vmatpush.msra.mxu2 %v6937_v54  ;;  %2955 = vmatpush.msra.mxu1 %v6937_v54 }
 0x814   :  { %3067 = vmatpush.msrb.mxu2 %v6670_v21 }
 0x816   :  { %3068 = vmatpush.msrb.mxu2 %v6676_v18 }
 0x818   :  { %3069 = vmatpush.msrb.mxu2 %v6684_v55 }
 0x81a   :  { %3070 = vmatpush.msrb.mxu2 %v6692_v43 }
 0x81c   :  { %3071 = vmatpush.msrb.mxu2 %v6700_v50 }
 0x81e   :  { %3072 = vmatpush.msrb.mxu2 %v6712_v36 }
 0x820   :  { %3073 = vmatpush.msrb.mxu2 %v6720_v46 }
 0x822   :  { %3074 = vmatpush.msrb.mxu2 %v6732_v11 }
 0x824   :  { %3075 = vmatpush.msrb.mxu2 %v6736_v63 }
 0x826   :  { %3076 = vmatpush.msrb.mxu2 %v6744_v20  ;;  %v2725_v20 = vld [vmem:[#allocation15 + $0x3] sm:$0x7] }
 0x828   :  { %3077 = vmatpush.msrb.mxu2 %v6752_v41  ;;  %v2727_v41 = vperm.slane %v2725_v20, 0 }
 0x82a   :  { %3078 = vmatpush.msrb.mxu2 %v6760_v29  ;;  %v2728_v29 = vperm.slane %v2725_v20, 1 }
 0x82c   :  { %3079 = vmatpush.msrb.mxu2 %v6768_v40 }
 0x82e   :  { %3080 = vmatpush.msrb.mxu2 %v6776_v19 }
 0x830   :  { %3081 = vmatpush.msrb.mxu2 %v6784_v12  ;;  %v1885_v12 = vadd.f32 %v6601_v51, %v6593_v16 }
 0x832   :  { %3082 = vmatpush.msrb.mxu2 %v6794_v30  ;;  %v1926_v30 = vadd.f32 %v6645_v38, %v6596_v45 }
 0x862   :  { %v2583_v2 = vpop.f32.mrf.mxu1 }
 0x863   :  { %v2584_v25 = vadd.f32 %v2583_v2, %v2560_v17  ;;  %v2562_v2 = vperm.slane %v6885_v53, 2  ;;  %v1964_v53 = vadd.f32 %v6639_v27, %v6609_v49 }
 0x865   :  { %v2626_v15 = vadd.f32 %v2584_v25, %v1882_v1 }
 0x867   :  { %v5005_v10 = vmul.f32 -1.442695, %v2626_v15 }
 0x868   :  { %v2603_v4 = vpop.f32.mrf.mxu2 }
 0x869   :  { %5159 = vpow2.f32 %v5005_v10  ;;  %v2604_v61 = vadd.f32 %v2603_v4, %v2561_v44  ;;  %v2623_v15 = vpop.f32.mrf.mxu3 }
 0x86a   :  { %v2624_v4 = vadd.f32 %v2623_v15, %v2562_v2 }
 0x86b   :  { %v2646_v58 = vadd.f32 %v2604_v61, %v1923_v57 }
 0x86d   :  { %v5006_v42 = vmul.f32 -1.442695, %v2646_v58 }
 0x86f   :  { %v5160_v37 = vpop.eup %5159  ;;  %5161 = vpow2.f32 %v5006_v42 }
 0x870   :  { %v2630_v59 = vadd.f32 1.0, %v5160_v37 }
 0x872   :  { %5163 = vrcp.f32 %v2630_v59  ;;  %v2642_v17 = vand.u32 2147483648, %v2630_v59  ;;  %v2640_v25 = vand.u32 2147483647, %v2630_v59  ;;  %vm2636_vm9 = vweird.f32 %v2630_v59 }
 0x874   :  { %v2643_v55 = vor.u32 1.1754944e-38, %v2642_v17  ;;  %vm2641_vm11 = vcmp.eq.f32.partialorder %v2640_v25, 8.507059e+37 }
 0x875   :  { %v5162_v52 = vpop.eup %5161 }
 0x876   :  { %v2650_v6 = vadd.f32 1.0, %v5162_v52 }
 0x878   :  { %v5164_v32 = vpop.eup %5163  ;;  %5165 = vrcp.f32 %v2650_v6  ;;  %v2662_v61 = vand.u32 2147483648, %v2650_v6  ;;  %v2660_v42 = vand.u32 2147483647, %v2650_v6  ;;  %vm2656_vm13 = vweird.f32 %v2650_v6 }
 0x879   :  { %v2632_v62 = vmul.f32 %v5164_v32, %v2630_v59  ;;  %vm2637_vm8 = vweird.f32 %v5164_v32 }
 0x87a   :  { %vm2638_vm10 = vmor %vm2636_vm9, %vm2637_vm8  ;;  %v2663_v59 = vor.u32 1.1754944e-38, %v2662_v61  ;;  %vm2661_vm15 = vcmp.eq.f32.partialorder %v2660_v42, 8.507059e+37 }
 0x87b   :  { %v2633_v28 = vsub.f32 1.0, %v2632_v62 }
 0x87d   :  { %v2634_v1 = vmul.f32 %v5164_v32, %v2633_v28 }
 0x87e   :  { %v5166_v21 = vpop.eup %5165 }
 0x87f   :  { %v2652_v44 = vmul.f32 %v5166_v21, %v2650_v6  ;;  %v2635_v18 = vadd.f32 %v5164_v32, %v2634_v1  ;;  %vm2657_vm12 = vweird.f32 %v5166_v21 }
 0x880   :  { %vm2658_vm14 = vmor %vm2656_vm13, %vm2657_vm12 }
 0x881   :  { %v2653_v10 = vsub.f32 1.0, %v2652_v44  ;;  %v2639_v43 = vsel %vm2638_vm10, %v5164_v32, %v2635_v18 }
 0x882   :  { %v2644_v57 = vsel %vm2641_vm11, %v2643_v55, %v2639_v43 }
 0x883   :  { %v2654_v50 = vmul.f32 %v5166_v21, %v2653_v10  ;;  %v2666_v58 = vmul.f32 %v2644_v57, %v2624_v4  ;;  %v2729_v57 = vperm.slane %v2725_v20, 2 }
 0x885   :  { %v2655_v36 = vadd.f32 %v5166_v21, %v2654_v50  ;;  %v2667_v37 = vadd.f32 %v2666_v58, %v1964_v53 }
 0x887   :  { %v2659_v52 = vsel %vm2658_vm14, %v5166_v21, %v2655_v36  ;;  %5167 = vtanh.f32 %v2667_v37 }
 0x888   :  { %v2664_v27 = vsel %vm2661_vm15, %v2663_v59, %v2659_v52 }
 0x889   :  { %v2669_v46 = vsub.f32 1.0, %v2664_v27  ;;  %v2671_v32 = vmul.f32 %v2664_v27, %v6844_v7 }
 0x88d   :  { %v5168_v11 = vpop.eup %5167 }
 0x88e   :  { %v2670_v6 = vmul.f32 %v5168_v11, %v2669_v46  ;;  %v1967_v11 = vadd.f32 %v6643_v47, %v6609_v49  ;;  %v7014_v47 = vld [vmem:[#allocation15 + $0x3] sm:$0x7] }
 0x890   :  { %v6961_v63 = vadd.f32 %v2671_v32, %v2670_v6 }
 0x892   :  { %2673 = vst [vmem:[#allocation2 + $0x18] sm:$0xff] %v6961_v63  ;;  %2749 = vmatmul.f32.vlgmr.msra.gmra.mxu0 %v6961_v63  ;;  %2769 = vmatmul.f32.vlgmr.msrb.gmra.mxu1 %v6961_v63 }
 0x893   :  { %2789 = vmatmul.f32.vlgmr.msra.gmra.mxu2 %v6961_v63  ;;  %3107 = vmatpush.msra.mxu0 %v6871_v14 }
 0x895   :  { %3108 = vmatpush.msra.mxu0 %v6875_v24 }
 0x897   :  { %3109 = vmatpush.msra.mxu0 %v6879_v33 }
 0x899   :  { %3110 = vmatpush.msra.mxu0 %v6883_v26 }
 0x89b   :  { %3111 = vmatpush.msra.mxu0 %v6889_v9 }
 0x89d   :  { %3112 = vmatpush.msra.mxu0 %v6894_v60 }
 0x89f   :  { %3113 = vmatpush.msra.mxu0 %v6898_v56 }
 0x8a1   :  { %3114 = vmatpush.msra.mxu0 %v6904_v31 }
 0x8a3   :  { %3115 = vmatpush.msra.mxu0 %v6909_v3 }
 0x8a5   :  { %3116 = vmatpush.msra.mxu0 %v6913_v39 }
 0x8a7   :  { %3117 = vmatpush.msra.mxu0 %v6919_v35 }
 0x8a9   :  { %3118 = vmatpush.msra.mxu0 %v6923_v8 }
 0x8ab   :  { %3119 = vmatpush.msra.mxu0 %v6927_v22 }
 0x8ad   :  { %3120 = vmatpush.msra.mxu0 %v6930_v48 }
 0x8af   :  { %3121 = vmatpush.msra.mxu0 %v6933_v0 }
 0x8b1   :  { %3122 = vmatpush.msra.mxu0 %v6937_v54 }
 0x90f   :  { %v2750_v40 = vpop.f32.mrf.mxu0  ;;  %v2770_v19 = vpop.f32.mrf.mxu1 }
 0x910   :  { %v2751_v62 = vadd.f32 %v2750_v40, %v2727_v41  ;;  %v2771_v28 = vadd.f32 %v2770_v19, %v2728_v29 }
 0x912   :  { %v2793_v17 = vadd.f32 %v2751_v62, %v1885_v12  ;;  %v2813_v2 = vadd.f32 %v2771_v28, %v1926_v30 }
 0x914   :  { %v5007_v1 = vmul.f32 -1.442695, %v2793_v17  ;;  %v5008_v25 = vmul.f32 -1.442695, %v2813_v2 }
 0x916   :  { %5169 = vpow2.f32 %v5007_v1  ;;  %v2790_v42 = vpop.f32.mrf.mxu2  ;;  %v3380_v1 = vld [vmem:[#allocation11 + $0x3d8] sm:$0xff] }
 0x917   :  { %5171 = vpow2.f32 %v5008_v25  ;;  %v2791_v59 = vadd.f32 %v2790_v42, %v2729_v57  ;;  %v3356_v57 = vld [vmem:[#allocation11 + $0x318] sm:$0xff] }
 0x91c   :  { %v5170_v21 = vpop.eup %5169 }
 0x91d   :  { %v5172_v15 = vpop.eup %5171  ;;  %v2797_v44 = vadd.f32 1.0, %v5170_v21  ;;  %v3377_v21 = vld [vmem:[#allocation11 + $0x3c0] sm:$0xff] }
 0x91e   :  { %v2817_v18 = vadd.f32 1.0, %v5172_v15 }
 0x91f   :  { %5173 = vrcp.f32 %v2797_v44  ;;  %v2809_v53 = vand.u32 2147483648, %v2797_v44  ;;  %v2807_v61 = vand.u32 2147483647, %v2797_v44  ;;  %vm2803_vm1 = vweird.f32 %v2797_v44 }
 0x920   :  { %5175 = vrcp.f32 %v2817_v18  ;;  %v2829_v6 = vand.u32 2147483648, %v2817_v18  ;;  %vm2823_vm5 = vweird.f32 %v2817_v18  ;;  %v2827_v20 = vand.u32 2147483647, %v2817_v18 }
 0x921   :  { %v2810_v37 = vor.u32 1.1754944e-38, %v2809_v53  ;;  %vm2808_vm3 = vcmp.eq.f32.partialorder %v2807_v61, 8.507059e+37 }
 0x922   :  { %v2830_v40 = vor.u32 1.1754944e-38, %v2829_v6  ;;  %vm2828_vm7 = vcmp.eq.f32.partialorder %v2827_v20, 8.507059e+37 }
 0x925   :  { %v5174_v55 = vpop.eup %5173 }
 0x926   :  { %v5176_v10 = vpop.eup %5175  ;;  %v2799_v51 = vmul.f32 %v5174_v55, %v2797_v44  ;;  %vm2804_vm0 = vweird.f32 %v5174_v55  ;;  %v3374_v44 = vld [vmem:[#allocation11 + $0x3a8] sm:$0xff] }
 0x927   :  { %v2819_v4 = vmul.f32 %v5176_v10, %v2817_v18  ;;  %vm2805_vm2 = vmor %vm2803_vm1, %vm2804_vm0  ;;  %vm2824_vm4 = vweird.f32 %v5176_v10 }
 0x928   :  { %v2800_v43 = vsub.f32 1.0, %v2799_v51  ;;  %vm2825_vm6 = vmor %vm2823_vm5, %vm2824_vm4  ;;  %v3365_v51 = vld [vmem:[#allocation11 + $0x360] sm:$0xff] }
 0x929   :  { %v2820_v38 = vsub.f32 1.0, %v2819_v4 }
 0x92a   :  { %v2801_v50 = vmul.f32 %v5174_v55, %v2800_v43  ;;  %v3362_v43 = vld [vmem:[#allocation11 + $0x348] sm:$0xff] }
 0x92b   :  { %v2821_v58 = vmul.f32 %v5176_v10, %v2820_v38  ;;  %v3359_v38 = vld [vmem:[#allocation11 + $0x330] sm:$0xff] }
 0x92c   :  { %v2802_v36 = vadd.f32 %v5174_v55, %v2801_v50 }
 0x92d   :  { %v2822_v46 = vadd.f32 %v5176_v10, %v2821_v58  ;;  %v3353_v58 = vld [vmem:[#allocation11 + $0x300] sm:$0xff] }
 0x92e   :  { %v2806_v52 = vsel %vm2805_vm2, %v5174_v55, %v2802_v36  ;;  %v3368_v55 = vld [vmem:[#allocation11 + $0x378] sm:$0xff] }
 0x92f   :  { %v2811_v27 = vsel %vm2808_vm3, %v2810_v37, %v2806_v52  ;;  %v2826_v29 = vsel %vm2825_vm6, %v5176_v10, %v2822_v46 }
 0x930   :  { %v2833_v32 = vmul.f32 %v2811_v27, %v2791_v59  ;;  %v2831_v19 = vsel %vm2828_vm7, %v2830_v40, %v2826_v29  ;;  %v2896_v59 = vperm.slane %v7014_v47, 2 }
 0x931   :  { %v2836_v12 = vsub.f32 1.0, %v2831_v19  ;;  %v2838_v28 = vmul.f32 %v2831_v19, %v6961_v63  ;;  %v1970_v19 = vadd.f32 %v6647_v34, %v6609_v49  ;;  %v7032_v34 = vld [vmem:[#allocation2] sm:$0xff] }
 0x932   :  { %v2834_v41 = vadd.f32 %v2833_v32, %v1967_v11 }
 0x934   :  { %5177 = vtanh.f32 %v2834_v41 }
 0x93a   :  { %v5178_v30 = vpop.eup %5177 }
 0x93b   :  { %v2837_v62 = vmul.f32 %v5178_v30, %v2836_v12 }
 0x93d   :  { %v6992_v17 = vadd.f32 %v2838_v28, %v2837_v62 }
 0x93f   :  { %2840 = vst [vmem:[#allocation2 + $0x20] sm:$0xff] %v6992_v17  ;;  %2916 = vmatmul.f32.vlgmr.msrb.gmra.mxu3 %v6992_v17  ;;  %2936 = vmatmul.f32.vlgmr.msrb.gmra.mxu0 %v6992_v17 }
 0x940   :  { %2956 = vmatmul.f32.vlgmr.msra.gmra.mxu1 %v6992_v17  ;;  %3274 = vmatpush.msrb.mxu3 %v6871_v14  ;;  %v2895_v14 = vperm.slane %v7014_v47, 1 }
 0x942   :  { %3275 = vmatpush.msrb.mxu3 %v6875_v24 }
 0x944   :  { %3276 = vmatpush.msrb.mxu3 %v6879_v33  ;;  %v1929_v33 = vadd.f32 %v6649_v13, %v6596_v45 }
 0x946   :  { %3277 = vmatpush.msrb.mxu3 %v6883_v26 }
 0x948   :  { %3278 = vmatpush.msrb.mxu3 %v6889_v9  ;;  %v3398_v9 = vld [vmem:[#allocation11 + $0x468] sm:$0xff] }
 0x949   :  { %3410 = vmatpush.msrb.mxu0 %v3398_v9 }
 0x94a   :  { %3279 = vmatpush.msrb.mxu3 %v6894_v60 }
 0x94c   :  { %3280 = vmatpush.msrb.mxu3 %v6898_v56  ;;  %v2894_v56 = vperm.slane %v7014_v47, 0 }
 0x94e   :  { %3281 = vmatpush.msrb.mxu3 %v6904_v31  ;;  %v3395_v31 = vld [vmem:[#allocation11 + $0x450] sm:$0xff] }
 0x94f   :  { %3411 = vmatpush.msrb.mxu0 %v3395_v31  ;;  %v7035_v31 = vld [vmem:[#allocation2 + $0x8] sm:$0xff] }
 0x950   :  { %3282 = vmatpush.msrb.mxu3 %v6909_v3 }
 0x952   :  { %3283 = vmatpush.msrb.mxu3 %v6913_v39  ;;  %v3392_v39 = vld [vmem:[#allocation11 + $0x438] sm:$0xff] }
 0x953   :  { %3412 = vmatpush.msrb.mxu0 %v3392_v39  ;;  %v3224_v39 = vld [vmem:[#allocation12 + $0x2f0] sm:$0xff] }
 0x954   :  { %3284 = vmatpush.msrb.mxu3 %v6919_v35  ;;  %3254 = vmatpush.msra.mxu2 %v3224_v39  ;;  %v3391_v39 = vld [vmem:[#allocation11 + $0x430] sm:$0xff] }
 0x956   :  { %3285 = vmatpush.msrb.mxu3 %v6923_v8  ;;  %v1888_v8 = vadd.f32 %v6603_v5, %v6593_v16  ;;  %v3371_v5 = vld [vmem:[#allocation11 + $0x390] sm:$0xff] }
 0x958   :  { %3286 = vmatpush.msrb.mxu3 %v6927_v22 }
 0x95a   :  { %3287 = vmatpush.msrb.mxu3 %v6930_v48  ;;  %v3389_v48 = vld [vmem:[#allocation11 + $0x420] sm:$0xff] }
 0x95b   :  { %3413 = vmatpush.msrb.mxu0 %v3389_v48  ;;  %v3218_v48 = vld [vmem:[#allocation12 + $0x2c0] sm:$0xff] }
 0x95c   :  { %3288 = vmatpush.msrb.mxu3 %v6933_v0  ;;  %v3386_v0 = vld [vmem:[#allocation11 + $0x408] sm:$0xff] }
 0x95d   :  { %3414 = vmatpush.msrb.mxu0 %v3386_v0  ;;  %v3214_v0 = vld [vmem:[#allocation12 + $0x2a0] sm:$0xff] }
 0x95e   :  { %3289 = vmatpush.msrb.mxu3 %v6937_v54  ;;  %v3383_v54 = vld [vmem:[#allocation11 + $0x3f0] sm:$0xff] }
 0x95f   :  { %3415 = vmatpush.msrb.mxu0 %v3383_v54  ;;  %v3212_v54 = vld [vmem:[#allocation12 + $0x290] sm:$0xff] }
 0x961   :  { %3416 = vmatpush.msrb.mxu0 %v3380_v1  ;;  %v3209_v1 = vld [vmem:[#allocation12 + $0x278] sm:$0xff] }
 0x963   :  { %3417 = vmatpush.msrb.mxu0 %v3377_v21  ;;  %v3206_v21 = vld [vmem:[#allocation12 + $0x260] sm:$0xff] }
 0x965   :  { %3418 = vmatpush.msrb.mxu0 %v3374_v44  ;;  %v3203_v44 = vld [vmem:[#allocation12 + $0x248] sm:$0xff] }
 0x967   :  { %3419 = vmatpush.msrb.mxu0 %v3371_v5  ;;  %v3199_v5 = vld [vmem:[#allocation12 + $0x228] sm:$0xff] }
 0x969   :  { %3420 = vmatpush.msrb.mxu0 %v3368_v55  ;;  %v3196_v55 = vld [vmem:[#allocation12 + $0x210] sm:$0xff] }
 0x96b   :  { %3421 = vmatpush.msrb.mxu0 %v3365_v51  ;;  %v3193_v51 = vld [vmem:[#allocation12 + $0x1f8] sm:$0xff] }
 0x96d   :  { %3422 = vmatpush.msrb.mxu0 %v3362_v43  ;;  %v3190_v43 = vld [vmem:[#allocation12 + $0x1e0] sm:$0xff] }
 0x96f   :  { %3423 = vmatpush.msrb.mxu0 %v3359_v38  ;;  %v3191_v38 = vld [vmem:[#allocation12 + $0x1e8] sm:$0xff] }
 0x971   :  { %3424 = vmatpush.msrb.mxu0 %v3356_v57  ;;  %v3187_v57 = vld [vmem:[#allocation12 + $0x1c8] sm:$0xff] }
 0x973   :  { %3425 = vmatpush.msrb.mxu0 %v3353_v58  ;;  %v3184_v58 = vld [vmem:[#allocation12 + $0x1b0] sm:$0xff] }
 0x9bc   :  { %v2937_v24 = vpop.f32.mrf.mxu0 }
 0x9bd   :  { %v2938_v26 = vadd.f32 %v2937_v24, %v2895_v14  ;;  %v2957_v11 = vpop.f32.mrf.mxu1 }
 0x9be   :  { %v2958_v20 = vadd.f32 %v2957_v11, %v2896_v59  ;;  %v3182_v59 = vld [vmem:[#allocation12 + $0x1a0] sm:$0xff]  ;;  %v3399_v11 = vld [vmem:[#allocation11 + $0x470] sm:$0xff] }
 0x9bf   :  { %v2980_v60 = vadd.f32 %v2938_v26, %v1929_v33 }
 0x9c1   :  { %v5010_v3 = vmul.f32 -1.442695, %v2980_v60 }
 0x9c2   :  { %v2917_v35 = vpop.f32.mrf.mxu3 }
 0x9c3   :  { %5179 = vpow2.f32 %v5010_v3  ;;  %v2918_v22 = vadd.f32 %v2917_v35, %v2894_v56  ;;  %v3223_v3 = vld [vmem:[#allocation12 + $0x2e8] sm:$0xff]  ;;  %v3220_v35 = vld [vmem:[#allocation12 + $0x2d0] sm:$0xff] }
 0x9c4   :  { %3234 = vmatpush.msrb.mxu1 %v3223_v3  ;;  %v3390_v3 = vld [vmem:[#allocation11 + $0x428] sm:$0xff] }
 0x9c5   :  { %v2960_v13 = vadd.f32 %v2918_v22, %v1888_v8  ;;  %v3221_v8 = vld [vmem:[#allocation12 + $0x2d8] sm:$0xff] }
 0x9c6   :  { %v3217_v22 = vld [vmem:[#allocation12 + $0x2b8] sm:$0xff]  ;;  %3235 = vmatpush.msrb.mxu1 %v3220_v35  ;;  %3255 = vmatpush.msra.mxu2 %v3221_v8  ;;  %v7071_v35 = vld [vmem:[#allocation12 + $0x3c0] sm:$0xff]  ;;  %v3387_v8 = vld [vmem:[#allocation11 + $0x410] sm:$0xff] }
 0x9c7   :  { %v5009_v2 = vmul.f32 -1.442695, %v2960_v13  ;;  %v3211_v13 = vld [vmem:[#allocation12 + $0x288] sm:$0xff] }
 0x9c8   :  { %3236 = vmatpush.msrb.mxu1 %v3217_v22  ;;  %3256 = vmatpush.msra.mxu2 %v3218_v48  ;;  %v3388_v22 = vld [vmem:[#allocation11 + $0x418] sm:$0xff]  ;;  %v7073_v48 = vld [vmem:[#allocation12 + $0x3a8] sm:$0xff] }
 0x9c9   :  { %v5180_v25 = vpop.eup %5179  ;;  %5181 = vpow2.f32 %v5009_v2  ;;  %v3208_v2 = vld [vmem:[#allocation12 + $0x270] sm:$0xff] }
 0x9ca   :  { %v2984_v15 = vadd.f32 1.0, %v5180_v25  ;;  %3237 = vmatpush.msrb.mxu1 %v3214_v0  ;;  %v3205_v25 = vld [vmem:[#allocation12 + $0x258] sm:$0xff] }
 0x9cc   :  { %5183 = vrcp.f32 %v2984_v15  ;;  %v2996_v12 = vand.u32 2147483648, %v2984_v15  ;;  %vm2990_vm13 = vweird.f32 %v2984_v15  ;;  %v2994_v62 = vand.u32 2147483647, %v2984_v15  ;;  %3238 = vmatpush.msrb.mxu1 %v3211_v13  ;;  %v3385_v13 = vld [vmem:[#allocation11 + $0x400] sm:$0xff] }
 0x9ce   :  { %v2997_v14 = vor.u32 1.1754944e-38, %v2996_v12  ;;  %vm2995_vm15 = vcmp.eq.f32.partialorder %v2994_v62, 8.507059e+37  ;;  %3239 = vmatpush.msrb.mxu1 %v3208_v2  ;;  %v7061_v12 = vld [vmem:[#allocation12 + $0x3f0] sm:$0xff]  ;;  %v3394_v62 = vld [vmem:[#allocation11 + $0x448] sm:$0xff] }
 0x9cf   :  { %v5182_v18 = vpop.eup %5181 }
 0x9d0   :  { %v2964_v10 = vadd.f32 1.0, %v5182_v18  ;;  %3240 = vmatpush.msrb.mxu1 %v3205_v25  ;;  %v3200_v18 = vld [vmem:[#allocation12 + $0x230] sm:$0xff]  ;;  %v3381_v25 = vld [vmem:[#allocation11 + $0x3e0] sm:$0xff] }
 0x9d2   :  { %5185 = vrcp.f32 %v2964_v10  ;;  %v5184_v4 = vpop.eup %5183  ;;  %v2976_v37 = vand.u32 2147483648, %v2964_v10  ;;  %v2974_v27 = vand.u32 2147483647, %v2964_v10  ;;  %vm2970_vm9 = vweird.f32 %v2964_v10 }
 0x9d3   :  { %v2986_v53 = vmul.f32 %v5184_v4, %v2984_v15  ;;  %vm2991_vm12 = vweird.f32 %v5184_v4  ;;  %v3202_v15 = vld [vmem:[#allocation12 + $0x240] sm:$0xff] }
 0x9d4   :  { %v2977_v32 = vor.u32 1.1754944e-38, %v2976_v37  ;;  %vm2975_vm11 = vcmp.eq.f32.partialorder %v2974_v27, 8.507059e+37  ;;  %vm2992_vm14 = vmor %vm2990_vm13, %vm2991_vm12  ;;  %3241 = vmatpush.msrb.mxu1 %v3202_v15  ;;  %v3181_v37 = vld [vmem:[#allocation12 + $0x198] sm:$0xff]  ;;  %v3178_v27 = vld [vmem:[#allocation12 + $0x180] sm:$0xff] }
 0x9d5   :  { %v2987_v42 = vsub.f32 1.0, %v2986_v53  ;;  %v7042_v53 = vld [vmem:[#allocation12 + $0x468] sm:$0xff]  ;;  %v7079_v15 = vld [vmem:[#allocation12 + $0x378] sm:$0xff] }
 0x9d6   :  { %3242 = vmatpush.msrb.mxu1 %v3199_v5  ;;  %v3379_v5 = vld [vmem:[#allocation11 + $0x3d0] sm:$0xff] }
 0x9d7   :  { %v2988_v46 = vmul.f32 %v5184_v4, %v2987_v42  ;;  %v3185_v42 = vld [vmem:[#allocation12 + $0x1b8] sm:$0xff] }
 0x9d8   :  { %v5186_v50 = vpop.eup %5185  ;;  %3243 = vmatpush.msrb.mxu1 %v3196_v55  ;;  %v3375_v55 = vld [vmem:[#allocation11 + $0x3b0] sm:$0xff] }
 0x9d9   :  { %v2966_v61 = vmul.f32 %v5186_v50, %v2964_v10  ;;  %vm2971_vm8 = vweird.f32 %v5186_v50  ;;  %v2989_v40 = vadd.f32 %v5184_v4, %v2988_v46  ;;  %v3197_v10 = vld [vmem:[#allocation12 + $0x218] sm:$0xff]  ;;  %v3179_v46 = vld [vmem:[#allocation12 + $0x188] sm:$0xff] }
 0x9da   :  { %vm2972_vm10 = vmor %vm2970_vm9, %vm2971_vm8  ;;  %3244 = vmatpush.msrb.mxu1 %v3193_v51  ;;  %v7085_v51 = vld [vmem:[#allocation12 + $0x348] sm:$0xff] }
 0x9db   :  { %v2967_v36 = vsub.f32 1.0, %v2966_v61  ;;  %v2993_v47 = vsel %vm2992_vm14, %v5184_v4, %v2989_v40  ;;  %v3194_v4 = vld [vmem:[#allocation12 + $0x200] sm:$0xff]  ;;  %v7045_v61 = vld [vmem:[#allocation12 + $0x450] sm:$0xff]  ;;  %v3396_v40 = vld [vmem:[#allocation11 + $0x458] sm:$0xff] }
 0x9dc   :  { %v2998_v24 = vsel %vm2995_vm15, %v2997_v14, %v2993_v47  ;;  %3245 = vmatpush.msrb.mxu1 %v3190_v43  ;;  %v3373_v43 = vld [vmem:[#allocation11 + $0x3a0] sm:$0xff] }
 0x9dd   :  { %v2968_v52 = vmul.f32 %v5186_v50, %v2967_v36  ;;  %v3003_v33 = vsub.f32 1.0, %v2998_v24  ;;  %v3005_v60 = vmul.f32 %v2998_v24, %v6992_v17  ;;  %v7048_v36 = vld [vmem:[#allocation12 + $0x438] sm:$0xff]  ;;  %v1891_v24 = vadd.f32 %v6605_v23, %v6593_v16 }
 0x9de   :  { %3246 = vmatpush.msrb.mxu1 %v3187_v57  ;;  %v3384_v23 = vld [vmem:[#allocation11 + $0x3f8] sm:$0xff] }
 0x9df   :  { %v2969_v6 = vadd.f32 %v5186_v50, %v2968_v52  ;;  %v7051_v52 = vld [vmem:[#allocation12 + $0x420] sm:$0xff] }
 0x9e0   :  { %3247 = vmatpush.msrb.mxu1 %v3184_v58  ;;  %v3370_v58 = vld [vmem:[#allocation11 + $0x388] sm:$0xff] }
 0x9e1   :  { %v2973_v41 = vsel %vm2972_vm10, %v5186_v50, %v2969_v6  ;;  %v3188_v50 = vld [vmem:[#allocation12 + $0x1d0] sm:$0xff]  ;;  %v3400_v6 = vld [vmem:[#allocation11 + $0x478] sm:$0xff] }
 0x9e2   :  { %v2978_v29 = vsel %vm2975_vm11, %v2977_v32, %v2973_v41  ;;  %3248 = vmatpush.msrb.mxu1 %v3181_v37  ;;  %v7054_v32 = vld [vmem:[#allocation12 + $0x408] sm:$0xff] }
 0x9e3   :  { %v3000_v30 = vmul.f32 %v2978_v29, %v2958_v20  ;;  %v7056_v20 = vld [vmem:[#allocation15 + $0x3] sm:$0x7] }
 0x9e4   :  { %3249 = vmatpush.msrb.mxu1 %v3178_v27  ;;  %v3061_v41 = vperm.slane %v7056_v20, 0  ;;  %v3062_v29 = vperm.slane %v7056_v20, 1 }
 0x9e5   :  { %v3001_v28 = vadd.f32 %v3000_v30, %v1970_v19  ;;  %v3397_v19 = vld [vmem:[#allocation11 + $0x460] sm:$0xff] }
 0x9e6   :  { %3451 = vmatpush.msra.mxu1 %v3399_v11  ;;  %v3393_v30 = vld [vmem:[#allocation11 + $0x440] sm:$0xff]  ;;  %v3367_v11 = vld [vmem:[#allocation11 + $0x370] sm:$0xff] }
 0x9e7   :  { %5187 = vtanh.f32 %v3001_v28  ;;  %v7064_v28 = vld [vmem:[#allocation12 + $0x3d8] sm:$0xff] }
 0x9e8   :  { %3452 = vmatpush.msra.mxu1 %v3396_v40  ;;  %v3360_v40 = vld [vmem:[#allocation11 + $0x338] sm:$0xff] }
 0x9ea   :  { %3453 = vmatpush.msra.mxu1 %v3393_v30 }
 0x9ec   :  { %3454 = vmatpush.msra.mxu1 %v3390_v3 }
 0x9ed   :  { %v5188_v26 = vpop.eup %5187 }
 0x9ee   :  { %v3004_v9 = vmul.f32 %v5188_v26, %v3003_v33  ;;  %v7807_v33 = vld [vmem:[#allocation27_spill] sm:$0xff]  ;;  %3455 = vmatpush.msra.mxu1 %v3387_v8  ;;  %v3063_v8 = vperm.slane %v7056_v20, 2 }
 0x9ef   :  { %v1932_v26 = vadd.f32 %v7807_v33, %v6596_v45 }
 0x9f0   :  { %v7026_v56 = vadd.f32 %v3005_v60, %v3004_v9  ;;  %3456 = vmatpush.msra.mxu1 %v3384_v23 }
 0x9f2   :  { %3007 = vst [vmem:[#allocation2 + $0x28] sm:$0xff] %v7026_v56  ;;  %3083 = vmatmul.f32.vlgmr.msrb.gmra.mxu2 %v7026_v56  ;;  %3103 = vmatmul.f32.vlgmr.msra.gmra.mxu3 %v7026_v56 }
 0x9f3   :  { %3123 = vmatmul.f32.vlgmr.msra.gmra.mxu0 %v7026_v56  ;;  %3620 = vmatpush.msra.mxu3 %v7042_v53 }
 0x9f4   :  { %3457 = vmatpush.msra.mxu1 %v3381_v25 }
 0x9f5   :  { %3621 = vmatpush.msra.mxu3 %v7045_v61 }
 0x9f7   :  { %3622 = vmatpush.msra.mxu3 %v7048_v36 }
 0x9f9   :  { %3623 = vmatpush.msra.mxu3 %v7051_v52 }
 0x9fb   :  { %3426 = vmatmul.f32.vlgmr.msrb.gmra.mxu0 %v7032_v34  ;;  %3624 = vmatpush.msra.mxu3 %v7054_v32 }
 0x9fd   :  { %3625 = vmatpush.msra.mxu3 %v7061_v12 }
 0x9ff   :  { %3626 = vmatpush.msra.mxu3 %v7064_v28 }
 0xa01   :  { %3627 = vmatpush.msra.mxu3 %v7071_v35 }
 0xa03   :  { %3429 = vmatmul.f32.gmra.mxu0 %v7035_v31  ;;  %3628 = vmatpush.msra.mxu3 %v7073_v48 }
 0xa0b   :  { %3432 = vmatmul.f32.gmra.mxu0 %v6844_v7  ;;  %v3215_v7 = vld [vmem:[#allocation12 + $0x2a8] sm:$0xff] }
 0xa0c   :  { %3257 = vmatpush.msra.mxu2 %v3215_v7 }
 0xa0e   :  { %3258 = vmatpush.msra.mxu2 %v3212_v54  ;;  %v7076_v54 = vld [vmem:[#allocation12 + $0x390] sm:$0xff] }
 0xa0f   :  { %3629 = vmatpush.msra.mxu3 %v7076_v54 }
 0xa10   :  { %3259 = vmatpush.msra.mxu2 %v3209_v1 }
 0xa11   :  { %3630 = vmatpush.msra.mxu3 %v7079_v15 }
 0xa12   :  { %3260 = vmatpush.msra.mxu2 %v3206_v21  ;;  %v3382_v21 = vld [vmem:[#allocation11 + $0x3e8] sm:$0xff] }
 0xa13   :  { %3435 = vmatmul.f32.gmra.mxu0 %v6961_v63 }
 0xa14   :  { %3261 = vmatpush.msra.mxu2 %v3203_v44  ;;  %v3378_v44 = vld [vmem:[#allocation11 + $0x3c8] sm:$0xff] }
 0xa15   :  { %3458 = vmatpush.msra.mxu1 %v3378_v44 }
 0xa16   :  { %3262 = vmatpush.msra.mxu2 %v3200_v18  ;;  %v7082_v18 = vld [vmem:[#allocation12 + $0x360] sm:$0xff] }
 0xa17   :  { %3631 = vmatpush.msra.mxu3 %v7082_v18  ;;  %3459 = vmatpush.msra.mxu1 %v3375_v55 }
 0xa18   :  { %3263 = vmatpush.msra.mxu2 %v3197_v10  ;;  %v3376_v10 = vld [vmem:[#allocation11 + $0x3b8] sm:$0xff] }
 0xa19   :  { %3632 = vmatpush.msra.mxu3 %v7085_v51 }
 0xa1a   :  { %3264 = vmatpush.msra.mxu2 %v3194_v4  ;;  %v3372_v4 = vld [vmem:[#allocation11 + $0x398] sm:$0xff] }
 0xa1b   :  { %3438 = vmatmul.f32.gmra.mxu0 %v6992_v17  ;;  %3460 = vmatpush.msra.mxu1 %v3372_v4 }
 0xa1c   :  { %3265 = vmatpush.msra.mxu2 %v3191_v38  ;;  %v7088_v38 = vld [vmem:[#allocation12 + $0x330] sm:$0xff] }
 0xa1d   :  { %3633 = vmatpush.msra.mxu3 %v7088_v38 }
 0xa1e   :  { %3266 = vmatpush.msra.mxu2 %v3188_v50  ;;  %v3369_v50 = vld [vmem:[#allocation11 + $0x380] sm:$0xff] }
 0xa1f   :  { %3461 = vmatpush.msra.mxu1 %v3369_v50 }
 0xa20   :  { %3267 = vmatpush.msra.mxu2 %v3185_v42 }
 0xa22   :  { %3268 = vmatpush.msra.mxu2 %v3182_v59  ;;  %v7091_v59 = vld [vmem:[#allocation12 + $0x318] sm:$0xff] }
 0xa23   :  { %3441 = vmatmul.f32.gmra.mxu0 %v7026_v56  ;;  %3634 = vmatpush.msra.mxu3 %v7091_v59 }
 0xa24   :  { %3269 = vmatpush.msra.mxu2 %v3179_v46  ;;  %v3366_v46 = vld [vmem:[#allocation11 + $0x368] sm:$0xff] }
 0xa25   :  { %3462 = vmatpush.msra.mxu1 %v3366_v46 }
 0xa26   :  { %3492 = vmatpush.msrb.mxu2 %v3400_v6  ;;  %v7094_v6 = vld [vmem:[#allocation12 + $0x300] sm:$0xff] }
 0xa27   :  { %3635 = vmatpush.msra.mxu3 %v7094_v6 }
 0xa28   :  { %3493 = vmatpush.msrb.mxu2 %v3397_v19  ;;  %v3361_v19 = vld [vmem:[#allocation11 + $0x340] sm:$0xff] }
 0xa2a   :  { %3494 = vmatpush.msrb.mxu2 %v3394_v62  ;;  %v3357_v62 = vld [vmem:[#allocation11 + $0x320] sm:$0xff] }
 0xa2c   :  { %3495 = vmatpush.msrb.mxu2 %v3391_v39 }
 0xa2e   :  { %3496 = vmatpush.msrb.mxu2 %v3388_v22 }
 0xa30   :  { %3497 = vmatpush.msrb.mxu2 %v3385_v13 }
 0xa32   :  { %3498 = vmatpush.msrb.mxu2 %v3382_v21 }
 0xa34   :  { %3499 = vmatpush.msrb.mxu2 %v3379_v5  ;;  %v7808_v5 = vld [vmem:[#allocation34_spill] sm:$0xff] }
 0xa35   :  { %v1973_v55 = vadd.f32 %v7808_v5, %v6609_v49  ;;  %v7213_v5 = vld [vmem:[#allocation12 + $0x3e8] sm:$0xff] }
 0xa36   :  { %3500 = vmatpush.msrb.mxu2 %v3376_v10 }
 0xa38   :  { %3501 = vmatpush.msrb.mxu2 %v3373_v43 }
 0xa3a   :  { %3502 = vmatpush.msrb.mxu2 %v3370_v58 }
 0xa3c   :  { %3503 = vmatpush.msrb.mxu2 %v3367_v11 }
 0xa75   :  { %v3084_v47 = vpop.f32.mrf.mxu2  ;;  %v3104_v14 = vpop.f32.mrf.mxu3 }
 0xa76   :  { %v3085_v9 = vadd.f32 %v3084_v47, %v3061_v41  ;;  %v3105_v60 = vadd.f32 %v3104_v14, %v3062_v29  ;;  %v3363_v41 = vld [vmem:[#allocation11 + $0x350] sm:$0xff]  ;;  %v3364_v29 = vld [vmem:[#allocation11 + $0x358] sm:$0xff]  ;;  %v3358_v47 = vld [vmem:[#allocation11 + $0x328] sm:$0xff] }
 0xa77   :  { %3463 = vmatpush.msra.mxu1 %v3363_v41  ;;  %3504 = vmatpush.msrb.mxu2 %v3364_v29  ;;  %v7104_v29 = vld [vmem:[#allocation12 + $0x470] sm:$0xff] }
 0xa78   :  { %v3127_v0 = vadd.f32 %v3085_v9, %v1891_v24  ;;  %v3147_v7 = vadd.f32 %v3105_v60, %v1932_v26  ;;  %v3354_v26 = vld [vmem:[#allocation11 + $0x308] sm:$0xff]  ;;  %v3355_v9 = vld [vmem:[#allocation11 + $0x310] sm:$0xff] }
 0xa79   :  { %3464 = vmatpush.msra.mxu1 %v3360_v40  ;;  %3505 = vmatpush.msrb.mxu2 %v3361_v19  ;;  %v7115_v40 = vld [vmem:[#allocation12 + $0x440] sm:$0xff]  ;;  %v7120_v19 = vld [vmem:[#allocation12 + $0x428] sm:$0xff] }
 0xa7a   :  { %v5011_v2 = vmul.f32 -1.442695, %v3127_v0  ;;  %v5012_v1 = vmul.f32 -1.442695, %v3147_v7  ;;  %v3124_v7 = vpop.f32.mrf.mxu0 }
 0xa7b   :  { %3465 = vmatpush.msra.mxu1 %v3357_v62  ;;  %3506 = vmatpush.msrb.mxu2 %v3358_v47  ;;  %v7127_v62 = vld [vmem:[#allocation12 + $0x410] sm:$0xff]  ;;  %v3576_v47 = vld [vmem:[#allocation12 + $0x368] sm:$0xff] }
 0xa7c   :  { %5189 = vpow2.f32 %v5011_v2 }
 0xa7d   :  { %5191 = vpow2.f32 %v5012_v1  ;;  %3466 = vmatpush.msra.mxu1 %v3354_v26  ;;  %3507 = vmatpush.msrb.mxu2 %v3355_v9  ;;  %v3125_v1 = vadd.f32 %v3124_v7, %v3063_v8  ;;  %v3564_v26 = vld [vmem:[#allocation12 + $0x308] sm:$0xff] }
 0xa82   :  { %v5190_v57 = vpop.eup %5189 }
 0xa83   :  { %v5192_v42 = vpop.eup %5191  ;;  %v3131_v37 = vadd.f32 1.0, %v5190_v57 }
 0xa84   :  { %v3151_v27 = vadd.f32 1.0, %v5192_v42 }
 0xa85   :  { %5193 = vrcp.f32 %v3131_v37  ;;  %v3143_v3 = vand.u32 2147483648, %v3131_v37  ;;  %v3141_v0 = vand.u32 2147483647, %v3131_v37  ;;  %vm3137_vm1 = vweird.f32 %v3131_v37 }
 0xa86   :  { %5195 = vrcp.f32 %v3151_v27  ;;  %v3163_v20 = vand.u32 2147483648, %v3151_v27  ;;  %vm3157_vm5 = vweird.f32 %v3151_v27  ;;  %v3161_v4 = vand.u32 2147483647, %v3151_v27 }
 0xa87   :  { %v3144_v2 = vor.u32 1.1754944e-38, %v3143_v3  ;;  %vm3142_vm3 = vcmp.eq.f32.partialorder %v3141_v0, 8.507059e+37  ;;  %v7195_v0 = vld [vmem:[#allocation12 + $0x430] sm:$0xff] }
 0xa88   :  { %v3164_v50 = vor.u32 1.1754944e-38, %v3163_v20  ;;  %vm3162_vm7 = vcmp.eq.f32.partialorder %v3161_v4, 8.507059e+37  ;;  %v7223_v20 = vld [vmem:[#allocation12 + $0x3b8] sm:$0xff] }
 0xa8b   :  { %v5194_v30 = vpop.eup %5193 }
 0xa8c   :  { %v5196_v14 = vpop.eup %5195  ;;  %v3133_v24 = vmul.f32 %v5194_v30, %v3131_v37  ;;  %vm3138_vm0 = vweird.f32 %v5194_v30 }
 0xa8d   :  { %v3153_v33 = vmul.f32 %v5196_v14, %v3151_v27  ;;  %vm3139_vm2 = vmor %vm3137_vm1, %vm3138_vm0  ;;  %vm3158_vm4 = vweird.f32 %v5196_v14  ;;  %v7110_v27 = vld [vmem:[#allocation12 + $0x458] sm:$0xff] }
 0xa8e   :  { %v3134_v60 = vsub.f32 1.0, %v3133_v24  ;;  %vm3159_vm6 = vmor %vm3157_vm5, %vm3158_vm4  ;;  %v3570_v24 = vld [vmem:[#allocation12 + $0x338] sm:$0xff] }
 0xa8f   :  { %v3154_v39 = vsub.f32 1.0, %v3153_v33  ;;  %v3567_v33 = vld [vmem:[#allocation12 + $0x320] sm:$0xff] }
 0xa90   :  { %v3135_v22 = vmul.f32 %v5194_v30, %v3134_v60  ;;  %v7189_v60 = vld [vmem:[#allocation12 + $0x448] sm:$0xff] }
 0xa91   :  { %v3155_v23 = vmul.f32 %v5196_v14, %v3154_v39  ;;  %v7809_v39 = vld [vmem:[#allocation30_spill] sm:$0xff] }
 0xa92   :  { %v3136_v13 = vadd.f32 %v5194_v30, %v3135_v22  ;;  %v1894_v8 = vadd.f32 %v7809_v39, %v6593_v16 }
 0xa93   :  { %v3156_v44 = vadd.f32 %v5196_v14, %v3155_v23 }
 0xa94   :  { %v3140_v25 = vsel %vm3139_vm2, %v5194_v30, %v3136_v13  ;;  %v7124_v30 = vld [vmem:[#allocation9 + $0x10] sm:$0xff] }
 0xa95   :  { %v3145_v21 = vsel %vm3142_vm3, %v3144_v2, %v3140_v25  ;;  %v3160_v57 = vsel %vm3159_vm6, %v5196_v14, %v3156_v44  ;;  %v3573_v14 = vld [vmem:[#allocation12 + $0x350] sm:$0xff]  ;;  %v7201_v13 = vld [vmem:[#allocation12 + $0x418] sm:$0xff]  ;;  %v7206_v2 = vld [vmem:[#allocation12 + $0x400] sm:$0xff] }
 0xa96   :  { %v3167_v10 = vmul.f32 %v3145_v21, %v3125_v1  ;;  %v3165_v58 = vsel %vm3162_vm7, %v3164_v50, %v3160_v57  ;;  %v7810_v25 = vld [vmem:[#allocation35_spill] sm:$0xff] }
 0xa97   :  { %v3170_v42 = vsub.f32 1.0, %v3165_v58  ;;  %v3172_v11 = vmul.f32 %v3165_v58, %v7026_v56  ;;  %v1935_v21 = vadd.f32 %v7810_v25, %v6596_v45  ;;  %v7233_v50 = vld [vmem:[#allocation12 + $0x388] sm:$0xff]  ;;  %v7238_v58 = vld [vmem:[#allocation12 + $0x370] sm:$0xff] }
 0xa98   :  { %v3168_v43 = vadd.f32 %v3167_v10, %v1973_v55  ;;  %v7218_v10 = vld [vmem:[#allocation12 + $0x3d0] sm:$0xff] }
 0xa9a   :  { %5197 = vtanh.f32 %v3168_v43  ;;  %v7228_v43 = vld [vmem:[#allocation12 + $0x3a0] sm:$0xff] }
 0xaa0   :  { %v5198_v37 = vpop.eup %5197 }
 0xaa1   :  { %v3171_v46 = vmul.f32 %v5198_v37, %v3170_v42  ;;  %v7243_v37 = vld [vmem:[#allocation12 + $0x358] sm:$0xff] }
 0xaa3   :  { %v7102_v41 = vadd.f32 %v3172_v11, %v3171_v46  ;;  %v7248_v11 = vld [vmem:[#allocation12 + $0x340] sm:$0xff] }
 0xaa5   :  { %3174 = vst [vmem:[#allocation2 + $0x30] sm:$0xff] %v7102_v41  ;;  %3250 = vmatmul.f32.vlgmr.msrb.gmra.mxu1 %v7102_v41  ;;  %3270 = vmatmul.f32.vlgmr.msra.gmra.mxu2 %v7102_v41 }
 0xaa6   :  { %3290 = vmatmul.f32.vlgmr.msrb.gmra.mxu3 %v7102_v41  ;;  %3444 = vmatmul.f32.gmra.mxu0 %v7102_v41 }
 0xaa7   :  { %3640 = vmatpush.msrb.mxu3 %v7104_v29  ;;  %3787 = vmatpush.msrb.mxu1 %v7042_v53  ;;  %v7134_v53 = vld [vmem:[#allocation12 + $0x3f8] sm:$0xff] }
 0xaa8   :  { %3807 = vmatpush.msra.mxu2 %v7104_v29 }
 0xaa9   :  { %3641 = vmatpush.msrb.mxu3 %v7110_v27  ;;  %3788 = vmatpush.msrb.mxu1 %v7045_v61  ;;  %v7138_v61 = vld [vmem:[#allocation12 + $0x3e0] sm:$0xff] }
 0xaaa   :  { %3808 = vmatpush.msra.mxu2 %v7110_v27 }
 0xaab   :  { %3642 = vmatpush.msrb.mxu3 %v7115_v40  ;;  %3789 = vmatpush.msrb.mxu1 %v7048_v36  ;;  %v3588_v36 = vld [vmem:[#allocation12 + $0x3c8] sm:$0xff] }
 0xaac   :  { %3809 = vmatpush.msra.mxu2 %v7115_v40 }
 0xaad   :  { %3643 = vmatpush.msrb.mxu3 %v7120_v19  ;;  %3467 = vmatmul.f32.vlgmr.msra.gmra.mxu1 %v7032_v34 }
 0xaae   :  { %3508 = vmatmul.f32.vlgmr.msrb.gmra.mxu2 %v7032_v34  ;;  %3636 = vmatmul.f32.vlgmr.msra.gmra.mxu3 %v7124_v30  ;;  %v3585_v34 = vld [vmem:[#allocation12 + $0x3b0] sm:$0xff] }
 0xaaf   :  { %3644 = vmatpush.msrb.mxu3 %v7127_v62  ;;  %3790 = vmatpush.msrb.mxu1 %v7051_v52  ;;  %v3582_v52 = vld [vmem:[#allocation12 + $0x398] sm:$0xff] }
 0xab0   :  { %3810 = vmatpush.msra.mxu2 %v7120_v19 }
 0xab1   :  { %3645 = vmatpush.msrb.mxu3 %v7134_v53  ;;  %3791 = vmatpush.msrb.mxu1 %v7054_v32  ;;  %v3579_v32 = vld [vmem:[#allocation12 + $0x380] sm:$0xff] }
 0xab2   :  { %3811 = vmatpush.msra.mxu2 %v7127_v62 }
 0xab3   :  { %3646 = vmatpush.msrb.mxu3 %v7138_v61  ;;  %3792 = vmatpush.msrb.mxu1 %v7061_v12 }
 0xab4   :  { %3812 = vmatpush.msra.mxu2 %v7134_v53 }
 0xab5   :  { %3647 = vmatpush.msrb.mxu3 %v3588_v36  ;;  %3470 = vmatmul.f32.gmra.mxu1 %v7035_v31 }
 0xab6   :  { %3511 = vmatmul.f32.gmra.mxu2 %v7035_v31  ;;  %3793 = vmatpush.msrb.mxu1 %v7064_v28  ;;  %v5289_v31 = vld [vmem:[#allocation2 + $0x10] sm:$0xff] }
 0xab7   :  { %3648 = vmatpush.msrb.mxu3 %v3585_v34  ;;  %3813 = vmatpush.msra.mxu2 %v7138_v61 }
 0xab8   :  { %3794 = vmatpush.msrb.mxu1 %v7071_v35 }
 0xab9   :  { %3649 = vmatpush.msrb.mxu3 %v3582_v52  ;;  %3814 = vmatpush.msra.mxu2 %v3588_v36 }
 0xaba   :  { %3795 = vmatpush.msrb.mxu1 %v7073_v48 }
 0xabb   :  { %3650 = vmatpush.msrb.mxu3 %v3579_v32  ;;  %3815 = vmatpush.msra.mxu2 %v3585_v34 }
 0xabc   :  { %3796 = vmatpush.msrb.mxu1 %v7076_v54 }
 0xabd   :  { %3651 = vmatpush.msrb.mxu3 %v3576_v47  ;;  %3473 = vmatmul.f32.gmra.mxu1 %v5289_v31 }
 0xabe   :  { %3514 = vmatmul.f32.gmra.mxu2 %v5289_v31  ;;  %3797 = vmatpush.msrb.mxu1 %v7079_v15 }
 0xabf   :  { %3652 = vmatpush.msrb.mxu3 %v3573_v14  ;;  %3816 = vmatpush.msra.mxu2 %v3582_v52 }
 0xac0   :  { %3798 = vmatpush.msrb.mxu1 %v7082_v18 }
 0xac1   :  { %3653 = vmatpush.msrb.mxu3 %v3570_v24  ;;  %3817 = vmatpush.msra.mxu2 %v3579_v32 }
 0xac2   :  { %3799 = vmatpush.msrb.mxu1 %v7085_v51 }
 0xac3   :  { %3654 = vmatpush.msrb.mxu3 %v3567_v33  ;;  %3818 = vmatpush.msra.mxu2 %v3576_v47 }
 0xac4   :  { %3800 = vmatpush.msrb.mxu1 %v7088_v38 }
 0xac5   :  { %3655 = vmatpush.msrb.mxu3 %v3564_v26  ;;  %3476 = vmatmul.f32.gmra.mxu1 %v6961_v63 }
 0xac6   :  { %3656 = vmatmul.f32.vlgmr.msrb.gmra.mxu3 %v7124_v30  ;;  %3517 = vmatmul.f32.gmra.mxu2 %v6961_v63  ;;  %v7176_v63 = vld [vmem:[#allocation12 + $0x478] sm:$0xff] }
 0xac7   :  { %3819 = vmatpush.msra.mxu2 %v3573_v14  ;;  %3801 = vmatpush.msrb.mxu1 %v7091_v59 }
 0xac8   :  { %3660 = vmatpush.msra.mxu0 %v7176_v63  ;;  %3827 = vmatpush.msra.mxu3 %v7176_v63 }
 0xac9   :  { %3820 = vmatpush.msra.mxu2 %v3570_v24  ;;  %3802 = vmatpush.msrb.mxu1 %v7094_v6 }
 0xacb   :  { %3975 = vmatpush.msra.mxu1 %v7104_v29  ;;  %3821 = vmatpush.msra.mxu2 %v3567_v33 }
 0xacd   :  { %3976 = vmatpush.msra.mxu1 %v7110_v27  ;;  %3822 = vmatpush.msra.mxu2 %v3564_v26 }
 0xace   :  { %3479 = vmatmul.f32.gmra.mxu1 %v6992_v17  ;;  %3520 = vmatmul.f32.gmra.mxu2 %v6992_v17  ;;  %v7178_v17 = vld [vmem:[#allocation12 + $0x460] sm:$0xff] }
 0xacf   :  { %3977 = vmatpush.msra.mxu1 %v7115_v40  ;;  %3995 = vmatpush.msrb.mxu2 %v7176_v63  ;;  %v7253_v40 = vld [vmem:[#allocation12 + $0x328] sm:$0xff] }
 0xad0   :  { %3661 = vmatpush.msra.mxu0 %v7178_v17  ;;  %3828 = vmatpush.msra.mxu3 %v7178_v17 }
 0xad1   :  { %3978 = vmatpush.msra.mxu1 %v7120_v19  ;;  %3996 = vmatpush.msrb.mxu2 %v7178_v17 }
 0xad2   :  { %3662 = vmatpush.msra.mxu0 %v7189_v60  ;;  %3829 = vmatpush.msra.mxu3 %v7189_v60 }
 0xad3   :  { %3979 = vmatpush.msra.mxu1 %v7127_v62  ;;  %3997 = vmatpush.msrb.mxu2 %v7189_v60  ;;  %v7258_v62 = vld [vmem:[#allocation12 + $0x310] sm:$0xff] }
 0xad4   :  { %3663 = vmatpush.msra.mxu0 %v7195_v0  ;;  %3830 = vmatpush.msra.mxu3 %v7195_v0 }
 0xad5   :  { %3980 = vmatpush.msra.mxu1 %v7134_v53  ;;  %3998 = vmatpush.msrb.mxu2 %v7195_v0 }
 0xad6   :  { %3482 = vmatmul.f32.gmra.mxu1 %v7026_v56  ;;  %3523 = vmatmul.f32.gmra.mxu2 %v7026_v56  ;;  %v7186_v56 = vld [vmem:[#allocation15 + $0x3] sm:$0x7] }
 0xad7   :  { %3981 = vmatpush.msra.mxu1 %v7138_v61  ;;  %v3228_v9 = vperm.slane %v7186_v56, 0  ;;  %v3229_v23 = vperm.slane %v7186_v56, 1  ;;  %3664 = vmatpush.msra.mxu0 %v7201_v13  ;;  %v3230_v61 = vperm.slane %v7186_v56, 2 }
 0xad8   :  { %3831 = vmatpush.msra.mxu3 %v7201_v13  ;;  %3999 = vmatpush.msrb.mxu2 %v7201_v13 }
 0xad9   :  { %3982 = vmatpush.msra.mxu1 %v3588_v36  ;;  %3665 = vmatpush.msra.mxu0 %v7206_v2 }
 0xada   :  { %3832 = vmatpush.msra.mxu3 %v7206_v2  ;;  %4000 = vmatpush.msrb.mxu2 %v7206_v2 }
 0xadb   :  { %3983 = vmatpush.msra.mxu1 %v3585_v34  ;;  %3666 = vmatpush.msra.mxu0 %v7213_v5 }
 0xadc   :  { %3833 = vmatpush.msra.mxu3 %v7213_v5  ;;  %4001 = vmatpush.msrb.mxu2 %v7213_v5 }
 0xadd   :  { %3984 = vmatpush.msra.mxu1 %v3582_v52  ;;  %3667 = vmatpush.msra.mxu0 %v7218_v10 }
 0xade   :  { %3485 = vmatmul.f32.gmra.mxu1 %v7102_v41  ;;  %3526 = vmatmul.f32.gmra.mxu2 %v7102_v41 }
 0xadf   :  { %3985 = vmatpush.msra.mxu1 %v3579_v32  ;;  %3834 = vmatpush.msra.mxu3 %v7218_v10 }
 0xae0   :  { %4002 = vmatpush.msrb.mxu2 %v7218_v10  ;;  %3668 = vmatpush.msra.mxu0 %v7223_v20 }
 0xae1   :  { %3986 = vmatpush.msra.mxu1 %v3576_v47  ;;  %3835 = vmatpush.msra.mxu3 %v7223_v20 }
 0xae2   :  { %4003 = vmatpush.msrb.mxu2 %v7223_v20  ;;  %3669 = vmatpush.msra.mxu0 %v7228_v43 }
 0xae3   :  { %3987 = vmatpush.msra.mxu1 %v3573_v14  ;;  %3836 = vmatpush.msra.mxu3 %v7228_v43 }
 0xae4   :  { %4004 = vmatpush.msrb.mxu2 %v7228_v43  ;;  %3670 = vmatpush.msra.mxu0 %v7233_v50 }
 0xae5   :  { %3988 = vmatpush.msra.mxu1 %v3570_v24  ;;  %3837 = vmatpush.msra.mxu3 %v7233_v50 }
 0xae6   :  { %4005 = vmatpush.msrb.mxu2 %v7233_v50  ;;  %3671 = vmatpush.msra.mxu0 %v7238_v58 }
 0xae7   :  { %3989 = vmatpush.msra.mxu1 %v3567_v33  ;;  %3838 = vmatpush.msra.mxu3 %v7238_v58 }
 0xae8   :  { %4006 = vmatpush.msrb.mxu2 %v7238_v58  ;;  %3672 = vmatpush.msra.mxu0 %v7243_v37 }
 0xae9   :  { %3990 = vmatpush.msra.mxu1 %v3564_v26  ;;  %3839 = vmatpush.msra.mxu3 %v7243_v37 }
 0xaea   :  { %4007 = vmatpush.msrb.mxu2 %v7243_v37  ;;  %3673 = vmatpush.msra.mxu0 %v7248_v11 }
 0xaeb   :  { %3840 = vmatpush.msra.mxu3 %v7248_v11 }
 0xaec   :  { %4008 = vmatpush.msrb.mxu2 %v7248_v11  ;;  %3674 = vmatpush.msra.mxu0 %v7253_v40 }
 0xaed   :  { %3841 = vmatpush.msra.mxu3 %v7253_v40 }
 0xaee   :  { %4009 = vmatpush.msrb.mxu2 %v7253_v40  ;;  %3675 = vmatpush.msra.mxu0 %v7258_v62 }
 0xaef   :  { %3842 = vmatpush.msra.mxu3 %v7258_v62 }
 0xaf0   :  { %4010 = vmatpush.msrb.mxu2 %v7258_v62 }
 0xb22   :  { %v3251_v3 = vpop.f32.mrf.mxu1 }
 0xb23   :  { %v3252_v22 = vadd.f32 %v3251_v3, %v3228_v9  ;;  %v7811_v9 = vld [vmem:[#allocation28_spill] sm:$0xff] }
 0xb24   :  { %v1976_v3 = vadd.f32 %v7811_v9, %v6609_v49 }
 0xb25   :  { %v3294_v7 = vadd.f32 %v3252_v22, %v1894_v8 }
 0xb27   :  { %v5013_v16 = vmul.f32 -1.442695, %v3294_v7 }
 0xb28   :  { %v3271_v1 = vpop.f32.mrf.mxu2 }
 0xb29   :  { %5199 = vpow2.f32 %v5013_v16  ;;  %v3272_v44 = vadd.f32 %v3271_v1, %v3229_v23  ;;  %v3291_v32 = vpop.f32.mrf.mxu3 }
 0xb2a   :  { %v3292_v33 = vadd.f32 %v3291_v32, %v3230_v61 }
 0xb2b   :  { %v3314_v55 = vadd.f32 %v3272_v44, %v1935_v21 }
 0xb2d   :  { %v5014_v45 = vmul.f32 -1.442695, %v3314_v55 }
 0xb2f   :  { %v5200_v4 = vpop.eup %5199  ;;  %5201 = vpow2.f32 %v5014_v45 }
 0xb30   :  { %v3298_v57 = vadd.f32 1.0, %v5200_v4 }
 0xb32   :  { %5203 = vrcp.f32 %v3298_v57  ;;  %v3310_v53 = vand.u32 2147483648, %v3298_v57  ;;  %v3308_v34 = vand.u32 2147483647, %v3298_v57  ;;  %vm3304_vm9 = vweird.f32 %v3298_v57 }
 0xb34   :  { %v3311_v31 = vor.u32 1.1754944e-38, %v3310_v53  ;;  %vm3309_vm11 = vcmp.eq.f32.partialorder %v3308_v34, 8.507059e+37 }
 0xb35   :  { %v5202_v42 = vpop.eup %5201 }
 0xb36   :  { %v3318_v46 = vadd.f32 1.0, %v5202_v42 }
 0xb38   :  { %v5204_v29 = vpop.eup %5203  ;;  %5205 = vrcp.f32 %v3318_v46  ;;  %v3330_v8 = vand.u32 2147483648, %v3318_v46  ;;  %v3328_v7 = vand.u32 2147483647, %v3318_v46  ;;  %vm3324_vm13 = vweird.f32 %v3318_v46 }
 0xb39   :  { %v3300_v27 = vmul.f32 %v5204_v29, %v3298_v57  ;;  %vm3305_vm8 = vweird.f32 %v5204_v29  ;;  %v3427_v57 = vpop.f32.mrf.mxu0 }
 0xb3a   :  { %vm3306_vm10 = vmor %vm3304_vm9, %vm3305_vm8  ;;  %v3331_v1 = vor.u32 1.1754944e-38, %v3330_v8  ;;  %vm3329_vm15 = vcmp.eq.f32.partialorder %v3328_v7, 8.507059e+37 }
 0xb3b   :  { %v3301_v19 = vsub.f32 1.0, %v3300_v27 }
 0xb3d   :  { %v3302_v36 = vmul.f32 %v5204_v29, %v3301_v19  ;;  %v3637_v19 = vpop.f32.mrf.mxu3 }
 0xb3e   :  { %v5206_v52 = vpop.eup %5205 }
 0xb3f   :  { %v3320_v47 = vmul.f32 %v5206_v52, %v3318_v46  ;;  %v3303_v14 = vadd.f32 %v5204_v29, %v3302_v36  ;;  %vm3325_vm12 = vweird.f32 %v5206_v52  ;;  %v3612_v46 = vld [vmem:[#allocation15 + $0x6] sm:$0x7] }
 0xb40   :  { %vm3326_vm14 = vmor %vm3324_vm13, %vm3325_vm12  ;;  %v3614_v27 = vperm.slane %v3612_v46, 0  ;;  %v3615_v34 = vperm.slane %v3612_v46, 1 }
 0xb41   :  { %v3321_v24 = vsub.f32 1.0, %v3320_v47  ;;  %v3307_v26 = vsel %vm3306_vm10, %v5204_v29, %v3303_v14  ;;  %v7269_v42 = vpop.f32.mrf.mxu0  ;;  %v3402_v29 = vld [vmem:[#allocation14 + $0x6] sm:$0x7]  ;;  %v3468_v14 = vpop.f32.mrf.mxu1 }
 0xb42   :  { %v3312_v56 = vsel %vm3309_vm11, %v3311_v31, %v3307_v26  ;;  %v7273_v61 = vperm.slane %v3402_v29, 0  ;;  %v7276_v47 = vperm.slane %v3402_v29, 1 }
 0xb43   :  { %v3322_v39 = vmul.f32 %v5206_v52, %v3321_v24  ;;  %v3334_v22 = vmul.f32 %v3312_v56, %v3292_v33 }
 0xb44   :  { %v3428_v36 = vadd.f32 %v3427_v57, %v7273_v61  ;;  %v3469_v26 = vadd.f32 %v3468_v14, %v7276_v47 }
 0xb45   :  { %v3323_v23 = vadd.f32 %v5206_v52, %v3322_v39  ;;  %v3335_v16 = vadd.f32 %v3334_v22, %v1976_v3 }
 0xb47   :  { %v3327_v25 = vsel %vm3326_vm14, %v5206_v52, %v3323_v23  ;;  %5207 = vtanh.f32 %v3335_v16 }
 0xb48   :  { %v3332_v21 = vsel %vm3329_vm15, %v3331_v1, %v3327_v25 }
 0xb49   :  { %v3337_v44 = vsub.f32 1.0, %v3332_v21  ;;  %v3339_v49 = vmul.f32 %v3332_v21, %v7102_v41  ;;  %v7271_v53 = vpop.f32.mrf.mxu0  ;;  %v3638_v41 = vadd.f32 %v3637_v19, %v3614_v27  ;;  %v3657_v32 = vpop.f32.mrf.mxu3  ;;  %v3616_v19 = vperm.slane %v3612_v46, 2 }
 0xb4a   :  { %v3658_v24 = vadd.f32 %v3657_v32, %v3615_v34  ;;  %v7289_v34 = vperm.slane %v3402_v29, 2  ;;  %v3509_v32 = vpop.f32.mrf.mxu2 }
 0xb4b   :  { %v3680_v52 = vadd.f32 %v3638_v41, %v3428_v36 }
 0xb4c   :  { %v3700_v9 = vadd.f32 %v3658_v24, %v3469_v26 }
 0xb4d   :  { %v5208_v55 = vpop.eup %5207  ;;  %v5015_v33 = vmul.f32 -1.442695, %v3680_v52 }
 0xb4e   :  { %v3338_v45 = vmul.f32 %v5208_v55, %v3337_v44  ;;  %v5016_v3 = vmul.f32 -1.442695, %v3700_v9 }
 0xb4f   :  { %5209 = vpow2.f32 %v5015_v33 }
 0xb50   :  { %v3340_v4 = vadd.f32 %v3339_v49, %v3338_v45  ;;  %5211 = vpow2.f32 %v5016_v3  ;;  %v3510_v3 = vadd.f32 %v3509_v32, %v7289_v34 }
 0xb51   :  { %v7278_v31 = vpop.f32.mrf.mxu0 }
 0xb52   :  { %3341 = vst [vmem:[#allocation2 + $0x38] sm:$0xff] %v3340_v4  ;;  %3447 = vmatmul.f32.gmra.mxu0 %v3340_v4  ;;  %3488 = vmatmul.f32.gmra.mxu1 %v3340_v4 }
 0xb53   :  { %3343 = vst [vmem:[#allocation18 + $0x8] sm:$0xff] %v3340_v4  ;;  %3529 = vmatmul.f32.gmra.mxu2 %v3340_v4 }
 0xb55   :  { %v5210_v39 = vpop.eup %5209 }
 0xb56   :  { %v3684_v8 = vadd.f32 1.0, %v5210_v39  ;;  %v5212_v22 = vpop.eup %5211 }
 0xb57   :  { %v3704_v23 = vadd.f32 1.0, %v5212_v22 }
 0xb58   :  { %5213 = vrcp.f32 %v3684_v8  ;;  %v3696_v27 = vand.u32 2147483648, %v3684_v8  ;;  %vm3690_vm1 = vweird.f32 %v3684_v8  ;;  %v3694_v41 = vand.u32 2147483647, %v3684_v8 }
 0xb59   :  { %v7281_v56 = vpop.f32.mrf.mxu0  ;;  %5215 = vrcp.f32 %v3704_v23  ;;  %v3716_v39 = vand.u32 2147483648, %v3704_v23  ;;  %vm3710_vm5 = vweird.f32 %v3704_v23  ;;  %v3714_v46 = vand.u32 2147483647, %v3704_v23 }
 0xb5a   :  { %3676 = vmatmul.f32.vlgmr.msra.gmra.mxu0 %v7124_v30  ;;  %v3697_v24 = vor.u32 1.1754944e-38, %v3696_v27  ;;  %vm3695_vm3 = vcmp.eq.f32.partialorder %v3694_v41, 8.507059e+37 }
 0xb5b   :  { %v3717_v29 = vor.u32 1.1754944e-38, %v3716_v39  ;;  %vm3715_vm7 = vcmp.eq.f32.partialorder %v3714_v46, 8.507059e+37 }
 0xb5e   :  { %v5214_v16 = vpop.eup %5213 }
 0xb5f   :  { %v3686_v1 = vmul.f32 %v5214_v16, %v3684_v8  ;;  %v5216_v21 = vpop.eup %5215  ;;  %vm3691_vm0 = vweird.f32 %v5214_v16 }
 0xb60   :  { %v3706_v55 = vmul.f32 %v5216_v21, %v3704_v23  ;;  %vm3692_vm2 = vmor %vm3690_vm1, %vm3691_vm0  ;;  %vm3711_vm4 = vweird.f32 %v5216_v21  ;;  %v7353_v23 = vld [vmem:[#allocation12 + $0x420] sm:$0xff] }
 0xb61   :  { %v7283_v7 = vpop.f32.mrf.mxu0  ;;  %v3687_v44 = vsub.f32 1.0, %v3686_v1  ;;  %vm3712_vm6 = vmor %vm3710_vm5, %vm3711_vm4 }
 0xb62   :  { %v3707_v4 = vsub.f32 1.0, %v3706_v55 }
 0xb63   :  { %v3688_v45 = vmul.f32 %v5214_v16, %v3687_v44 }
 0xb64   :  { %v3708_v36 = vmul.f32 %v5216_v21, %v3707_v4 }
 0xb65   :  { %v3689_v57 = vadd.f32 %v5214_v16, %v3688_v45 }
 0xb66   :  { %v3709_v9 = vadd.f32 %v5216_v21, %v3708_v36  ;;  %v3431_v36 = vadd.f32 %v7269_v42, %v7273_v61 }
 0xb67   :  { %v3693_v52 = vsel %vm3692_vm2, %v5214_v16, %v3689_v57 }
 0xb68   :  { %v3698_v26 = vsel %vm3695_vm3, %v3697_v24, %v3693_v52  ;;  %v3713_v1 = vsel %vm3712_vm6, %v5216_v21, %v3709_v9  ;;  %v7358_v21 = vld [vmem:[#allocation12 + $0x408] sm:$0xff] }
 0xb69   :  { %v7285_v25 = vpop.f32.mrf.mxu0  ;;  %v3718_v16 = vsel %vm3715_vm7, %v3717_v29, %v3713_v1 }
 0xb6a   :  { %v3723_v44 = vsub.f32 1.0, %v3718_v16  ;;  %v3725_v4 = vmul.f32 %v3718_v16, %v7124_v30  ;;  %v3471_v30 = vpop.f32.mrf.mxu1 }
 0xbcf   :  { %v7287_v49 = vpop.f32.mrf.mxu0 }
 0xbd0   :  { %7812 = vst [vmem:[#allocation29_spill] sm:$0xff] %v7287_v49 }
 0xbd7   :  { %v3677_v14 = vpop.f32.mrf.mxu0 }
 0xbd8   :  { %v3678_v33 = vadd.f32 %v3677_v14, %v3616_v19 }
 0xbda   :  { %v3720_v22 = vmul.f32 %v3698_v26, %v3678_v33  ;;  %v3472_v26 = vadd.f32 %v3471_v30, %v7276_v47 }
 0xbdc   :  { %v3721_v8 = vadd.f32 %v3720_v22, %v3510_v3 }
 0xbde   :  { %5217 = vtanh.f32 %v3721_v8 }
 0xbe4   :  { %v5218_v55 = vpop.eup %5217 }
 0xbe5   :  { %v3724_v45 = vmul.f32 %v5218_v55, %v3723_v44 }
 0xbe7   :  { %v7293_v57 = vadd.f32 %v3725_v4, %v3724_v45 }
 0xbe9   :  { %3803 = vmatmul.f32.vlgmr.msrb.gmra.mxu1 %v7293_v57  ;;  %3727 = vst [vmem:[#allocation17] sm:$0xff] %v7293_v57  ;;  %3823 = vmatmul.f32.vlgmr.msra.gmra.mxu2 %v7293_v57 }
 0xbea   :  { %3843 = vmatmul.f32.vlgmr.msra.gmra.mxu3 %v7293_v57  ;;  %4163 = vmatpush.msrb.mxu1 %v7176_v63  ;;  %v7315_v63 = vpop.f32.mrf.mxu2 }
 0xbeb   :  { %v3513_v55 = vadd.f32 %v7315_v63, %v7289_v34 }
 0xbec   :  { %4164 = vmatpush.msrb.mxu1 %v7178_v17  ;;  %v7317_v17 = vpop.f32.mrf.mxu1 }
 0xbee   :  { %4165 = vmatpush.msrb.mxu1 %v7189_v60 }
 0xbf0   :  { %4166 = vmatpush.msrb.mxu1 %v7195_v0 }
 0xbf2   :  { %4167 = vmatpush.msrb.mxu1 %v7201_v13  ;;  %v7319_v60 = vpop.f32.mrf.mxu2 }
 0xbf4   :  { %4168 = vmatpush.msrb.mxu1 %v7206_v2  ;;  %v7321_v0 = vpop.f32.mrf.mxu1 }
 0xbf6   :  { %4169 = vmatpush.msrb.mxu1 %v7213_v5 }
 0xbf8   :  { %4170 = vmatpush.msrb.mxu1 %v7218_v10 }
 0xbfa   :  { %4171 = vmatpush.msrb.mxu1 %v7223_v20  ;;  %v7323_v13 = vpop.f32.mrf.mxu2 }
 0xbfc   :  { %4172 = vmatpush.msrb.mxu1 %v7228_v43  ;;  %v7325_v2 = vpop.f32.mrf.mxu1 }
 0xbfe   :  { %4173 = vmatpush.msrb.mxu1 %v7233_v50  ;;  %v7335_v50 = vld [vmem:[#allocation12 + $0x468] sm:$0xff] }
 0xbff   :  { %3955 = vmatpush.msrb.mxu0 %v7335_v50  ;;  %4123 = vmatpush.msrb.mxu3 %v7335_v50 }
 0xc00   :  { %4174 = vmatpush.msrb.mxu1 %v7238_v58  ;;  %4291 = vmatpush.msra.mxu2 %v7335_v50 }
 0xc02   :  { %4175 = vmatpush.msrb.mxu1 %v7243_v37  ;;  %v7327_v5 = vpop.f32.mrf.mxu2  ;;  %v7341_v37 = vld [vmem:[#allocation12 + $0x450] sm:$0xff] }
 0xc03   :  { %3956 = vmatpush.msrb.mxu0 %v7341_v37  ;;  %4124 = vmatpush.msrb.mxu3 %v7341_v37 }
 0xc04   :  { %4176 = vmatpush.msrb.mxu1 %v7248_v11  ;;  %v7329_v10 = vpop.f32.mrf.mxu1  ;;  %4292 = vmatpush.msra.mxu2 %v7341_v37 }
 0xc06   :  { %4177 = vmatpush.msrb.mxu1 %v7253_v40  ;;  %v7348_v40 = vld [vmem:[#allocation12 + $0x438] sm:$0xff] }
 0xc07   :  { %3957 = vmatpush.msrb.mxu0 %v7348_v40  ;;  %4125 = vmatpush.msrb.mxu3 %v7348_v40 }
 0xc08   :  { %4178 = vmatpush.msrb.mxu1 %v7258_v62  ;;  %v3779_v62 = vld [vmem:[#allocation15 + $0x6] sm:$0x7]  ;;  %4293 = vmatpush.msra.mxu2 %v7348_v40 }
 0xc09   :  { %3958 = vmatpush.msrb.mxu0 %v7353_v23  ;;  %4126 = vmatpush.msrb.mxu3 %v7353_v23  ;;  %v3781_v27 = vperm.slane %v3779_v62, 0  ;;  %v3782_v14 = vperm.slane %v3779_v62, 1 }
 0xc0a   :  { %v7331_v20 = vpop.f32.mrf.mxu2  ;;  %4294 = vmatpush.msra.mxu2 %v7353_v23 }
 0xc0b   :  { %3959 = vmatpush.msrb.mxu0 %v7358_v21  ;;  %4127 = vmatpush.msrb.mxu3 %v7358_v21 }
 0xc0c   :  { %v7333_v43 = vpop.f32.mrf.mxu1  ;;  %4295 = vmatpush.msra.mxu2 %v7358_v21 }
 0xc0d   :  { %3960 = vmatpush.msrb.mxu0 %v7061_v12 }
 0xc0f   :  { %3961 = vmatpush.msrb.mxu0 %v7064_v28 }
 0xc11   :  { %3962 = vmatpush.msrb.mxu0 %v7071_v35 }
 0xc12   :  { %v7339_v58 = vpop.f32.mrf.mxu2 }
 0xc13   :  { %3963 = vmatpush.msrb.mxu0 %v7073_v48 }
 0xc14   :  { %v7346_v11 = vpop.f32.mrf.mxu1 }
 0xc15   :  { %3964 = vmatpush.msrb.mxu0 %v7076_v54 }
 0xc17   :  { %3965 = vmatpush.msrb.mxu0 %v7079_v15 }
 0xc19   :  { %3966 = vmatpush.msrb.mxu0 %v7082_v18  ;;  %v3783_v18 = vperm.slane %v3779_v62, 2 }
 0xc1a   :  { %v7363_v19 = vpop.f32.mrf.mxu2 }
 0xc1b   :  { %7813 = vst [vmem:[#allocation36_spill] sm:$0xff] %v7363_v19  ;;  %3967 = vmatpush.msrb.mxu0 %v7085_v51 }
 0xc1d   :  { %3968 = vmatpush.msrb.mxu0 %v7088_v38 }
 0xc1f   :  { %3969 = vmatpush.msrb.mxu0 %v7091_v59 }
 0xc21   :  { %3970 = vmatpush.msrb.mxu0 %v7094_v6 }
 0xc66   :  { %v3804_v41 = vpop.f32.mrf.mxu1 }
 0xc67   :  { %v3805_v52 = vadd.f32 %v3804_v41, %v3781_v27 }
 0xc69   :  { %v3847_v32 = vadd.f32 %v3805_v52, %v3431_v36 }
 0xc6b   :  { %v5017_v24 = vmul.f32 -1.442695, %v3847_v32 }
 0xc6c   :  { %v3824_v33 = vpop.f32.mrf.mxu2 }
 0xc6d   :  { %5219 = vpow2.f32 %v5017_v24  ;;  %v3825_v9 = vadd.f32 %v3824_v33, %v3782_v14  ;;  %v3844_v1 = vpop.f32.mrf.mxu3 }
 0xc6e   :  { %v3845_v44 = vadd.f32 %v3844_v1, %v3783_v18 }
 0xc6f   :  { %v3867_v12 = vadd.f32 %v3825_v9, %v3472_v26 }
 0xc71   :  { %v5018_v42 = vmul.f32 -1.442695, %v3867_v12  ;;  %v7397_v12 = vld [vmem:[#allocation12 + $0x458] sm:$0xff] }
 0xc73   :  { %v5220_v28 = vpop.eup %5219  ;;  %5221 = vpow2.f32 %v5018_v42  ;;  %v7400_v42 = vld [vmem:[#allocation12 + $0x440] sm:$0xff] }
 0xc74   :  { %v3851_v35 = vadd.f32 1.0, %v5220_v28  ;;  %v7413_v28 = vld [vmem:[#allocation12 + $0x3f0] sm:$0xff] }
 0xc75   :  { %4128 = vmatpush.msrb.mxu3 %v7413_v28  ;;  %4296 = vmatpush.msra.mxu2 %v7413_v28 }
 0xc76   :  { %5223 = vrcp.f32 %v3851_v35  ;;  %v3863_v22 = vand.u32 2147483648, %v3851_v35  ;;  %v3861_v8 = vand.u32 2147483647, %v3851_v35  ;;  %vm3857_vm9 = vweird.f32 %v3851_v35 }
 0xc78   :  { %v3864_v59 = vor.u32 1.1754944e-38, %v3863_v22  ;;  %vm3862_vm11 = vcmp.eq.f32.partialorder %v3861_v8, 8.507059e+37  ;;  %v3475_v22 = vadd.f32 %v7317_v17, %v7276_v47  ;;  %v7433_v8 = vld [vmem:[#allocation12 + $0x3c8] sm:$0xff] }
 0xc79   :  { %v5222_v48 = vpop.eup %5221  ;;  %v7439_v17 = vld [vmem:[#allocation12 + $0x3a8] sm:$0xff] }
 0xc7a   :  { %v3871_v54 = vadd.f32 1.0, %v5222_v48  ;;  %v3434_v48 = vadd.f32 %v7271_v53, %v7273_v61  ;;  %v7431_v53 = vld [vmem:[#allocation12 + $0x3c0] sm:$0xff] }
 0xc7c   :  { %v5224_v3 = vpop.eup %5223  ;;  %5225 = vrcp.f32 %v3871_v54  ;;  %v3883_v30 = vand.u32 2147483648, %v3871_v54  ;;  %v3881_v27 = vand.u32 2147483647, %v3871_v54  ;;  %vm3877_vm13 = vweird.f32 %v3871_v54 }
 0xc7d   :  { %v3853_v15 = vmul.f32 %v5224_v3, %v3851_v35  ;;  %vm3858_vm8 = vweird.f32 %v5224_v3  ;;  %v7415_v35 = vld [vmem:[#allocation12 + $0x3f8] sm:$0xff] }
 0xc7e   :  { %vm3859_vm10 = vmor %vm3857_vm9, %vm3858_vm8  ;;  %v3884_v52 = vor.u32 1.1754944e-38, %v3883_v30  ;;  %vm3882_vm15 = vcmp.eq.f32.partialorder %v3881_v27, 8.507059e+37  ;;  %v7471_v30 = vld [vmem:[#allocation12 + $0x348] sm:$0xff]  ;;  %v7475_v27 = vld [vmem:[#allocation12 + $0x330] sm:$0xff] }
 0xc7f   :  { %v3854_v39 = vsub.f32 1.0, %v3853_v15  ;;  %v7421_v15 = vld [vmem:[#allocation12 + $0x3d8] sm:$0xff] }
 0xc80   :  { %4129 = vmatpush.msrb.mxu3 %v7421_v15  ;;  %4297 = vmatpush.msra.mxu2 %v7421_v15 }
 0xc81   :  { %v3855_v46 = vmul.f32 %v5224_v3, %v3854_v39  ;;  %v7423_v39 = vld [vmem:[#allocation12 + $0x3e0] sm:$0xff] }
 0xc82   :  { %v5226_v51 = vpop.eup %5225  ;;  %4130 = vmatpush.msrb.mxu3 %v7431_v53  ;;  %4298 = vmatpush.msra.mxu2 %v7431_v53 }
 0xc83   :  { %v3873_v29 = vmul.f32 %v5226_v51, %v3871_v54  ;;  %v3856_v38 = vadd.f32 %v5224_v3, %v3855_v46  ;;  %vm3878_vm12 = vweird.f32 %v5226_v51 }
 0xc84   :  { %vm3879_vm14 = vmor %vm3877_vm13, %vm3878_vm12  ;;  %4131 = vmatpush.msrb.mxu3 %v7439_v17  ;;  %4299 = vmatpush.msra.mxu2 %v7439_v17 }
 0xc85   :  { %v3874_v16 = vsub.f32 1.0, %v3873_v29  ;;  %v3860_v6 = vsel %vm3859_vm10, %v5224_v3, %v3856_v38  ;;  %v7441_v29 = vld [vmem:[#allocation12 + $0x3b0] sm:$0xff] }
 0xc86   :  { %v3865_v45 = vsel %vm3862_vm11, %v3864_v59, %v3860_v6  ;;  %v7455_v6 = vld [vmem:[#allocation12 + $0x378] sm:$0xff] }
 0xc87   :  { %v3875_v4 = vmul.f32 %v5226_v51, %v3874_v16  ;;  %v3887_v62 = vmul.f32 %v3865_v45, %v3845_v44  ;;  %v7447_v16 = vld [vmem:[#allocation12 + $0x390] sm:$0xff]  ;;  %v7449_v44 = vld [vmem:[#allocation12 + $0x398] sm:$0xff]  ;;  %v7463_v45 = vld [vmem:[#allocation12 + $0x360] sm:$0xff] }
 0xc88   :  { %4132 = vmatpush.msrb.mxu3 %v7447_v16  ;;  %4300 = vmatpush.msra.mxu2 %v7447_v16 }
 0xc89   :  { %v3876_v41 = vadd.f32 %v5226_v51, %v3875_v4  ;;  %v3888_v36 = vadd.f32 %v3887_v62, %v3513_v55  ;;  %v7457_v55 = vld [vmem:[#allocation12 + $0x380] sm:$0xff]  ;;  %v7465_v4 = vld [vmem:[#allocation12 + $0x368] sm:$0xff]  ;;  %v7473_v62 = vld [vmem:[#allocation12 + $0x350] sm:$0xff] }
 0xc8a   :  { %4133 = vmatpush.msrb.mxu3 %v7455_v6  ;;  %4301 = vmatpush.msra.mxu2 %v7455_v6 }
 0xc8b   :  { %v3880_v32 = vsel %vm3879_vm14, %v5226_v51, %v3876_v41  ;;  %5227 = vtanh.f32 %v3888_v36  ;;  %v7481_v36 = vld [vmem:[#allocation12 + $0x338] sm:$0xff] }
 0xc8c   :  { %v3885_v14 = vsel %vm3882_vm15, %v3884_v52, %v3880_v32  ;;  %4134 = vmatpush.msrb.mxu3 %v7463_v45  ;;  %4302 = vmatpush.msra.mxu2 %v7463_v45 }
 0xc8d   :  { %v3890_v24 = vsub.f32 1.0, %v3885_v14  ;;  %v3892_v63 = vmul.f32 %v3885_v14, %v7293_v57  ;;  %v7394_v57 = vld [vmem:[#allocation12 + $0x470] sm:$0xff]  ;;  %v7483_v14 = vld [vmem:[#allocation12 + $0x318] sm:$0xff] }
 0xc8e   :  { %4143 = vmatpush.msra.mxu0 %v7394_v57  ;;  %4135 = vmatpush.msrb.mxu3 %v7471_v30 }
 0xc8f   :  { %4303 = vmatpush.msra.mxu2 %v7471_v30 }
 0xc90   :  { %4144 = vmatpush.msra.mxu0 %v7397_v12  ;;  %4136 = vmatpush.msrb.mxu3 %v7475_v27 }
 0xc91   :  { %v5228_v33 = vpop.eup %5227  ;;  %4304 = vmatpush.msra.mxu2 %v7475_v27 }
 0xc92   :  { %v3891_v26 = vmul.f32 %v5228_v33, %v3890_v24  ;;  %4145 = vmatpush.msra.mxu0 %v7400_v42  ;;  %v7485_v24 = vld [vmem:[#allocation12 + $0x320] sm:$0xff]  ;;  %4137 = vmatpush.msrb.mxu3 %v7483_v14 }
 0xc93   :  { %4305 = vmatpush.msra.mxu2 %v7483_v14 }
 0xc94   :  { %v7383_v9 = vadd.f32 %v3892_v63, %v3891_v26  ;;  %v7493_v26 = vld [vmem:[#allocation12 + $0x300] sm:$0xff]  ;;  %v7495_v63 = vld [vmem:[#allocation12 + $0x308] sm:$0xff] }
 0xc95   :  { %4138 = vmatpush.msrb.mxu3 %v7493_v26  ;;  %4306 = vmatpush.msra.mxu2 %v7493_v26 }
 0xc96   :  { %3971 = vmatmul.f32.vlgmr.msrb.gmra.mxu0 %v7383_v9  ;;  %3895 = vst [vmem:[#allocation17 + $0x8] sm:$0xff] %v7383_v9  ;;  %3991 = vmatmul.f32.vlgmr.msra.gmra.mxu1 %v7383_v9 }
 0xc97   :  { %4011 = vmatmul.f32.vlgmr.msrb.gmra.mxu2 %v7383_v9  ;;  %4459 = vmatpush.msra.mxu1 %v7335_v50  ;;  %v7403_v50 = vld [vmem:[#allocation15 + $0x6] sm:$0x7] }
 0xc98   :  { %4311 = vmatpush.msra.mxu3 %v7394_v57  ;;  %4479 = vmatpush.msrb.mxu2 %v7394_v57 }
 0xc99   :  { %4460 = vmatpush.msra.mxu1 %v7341_v37  ;;  %v7405_v37 = vld [vmem:[#allocation12 + $0x428] sm:$0xff] }
 0xc9a   :  { %4146 = vmatpush.msra.mxu0 %v7405_v37  ;;  %4312 = vmatpush.msra.mxu3 %v7397_v12 }
 0xc9b   :  { %4461 = vmatpush.msra.mxu1 %v7348_v40  ;;  %v7408_v40 = vld [vmem:[#allocation12 + $0x410] sm:$0xff]  ;;  %4480 = vmatpush.msrb.mxu2 %v7397_v12 }
 0xc9c   :  { %4147 = vmatpush.msra.mxu0 %v7408_v40  ;;  %4313 = vmatpush.msra.mxu3 %v7400_v42 }
 0xc9d   :  { %4462 = vmatpush.msra.mxu1 %v7353_v23  ;;  %v3949_v23 = vperm.slane %v7403_v50, 0  ;;  %4481 = vmatpush.msrb.mxu2 %v7400_v42 }
 0xc9e   :  { %4148 = vmatpush.msra.mxu0 %v7415_v35  ;;  %4314 = vmatpush.msra.mxu3 %v7405_v37 }
 0xc9f   :  { %4463 = vmatpush.msra.mxu1 %v7358_v21  ;;  %v3950_v21 = vperm.slane %v7403_v50, 1  ;;  %4482 = vmatpush.msrb.mxu2 %v7405_v37 }
 0xca0   :  { %4149 = vmatpush.msra.mxu0 %v7423_v39  ;;  %4315 = vmatpush.msra.mxu3 %v7408_v40 }
 0xca1   :  { %4464 = vmatpush.msra.mxu1 %v7413_v28  ;;  %4483 = vmatpush.msrb.mxu2 %v7408_v40 }
 0xca2   :  { %4150 = vmatpush.msra.mxu0 %v7433_v8  ;;  %4316 = vmatpush.msra.mxu3 %v7415_v35 }
 0xca3   :  { %4465 = vmatpush.msra.mxu1 %v7421_v15  ;;  %4484 = vmatpush.msrb.mxu2 %v7415_v35 }
 0xca4   :  { %4151 = vmatpush.msra.mxu0 %v7441_v29  ;;  %4317 = vmatpush.msra.mxu3 %v7423_v39 }
 0xca5   :  { %4466 = vmatpush.msra.mxu1 %v7431_v53  ;;  %4485 = vmatpush.msrb.mxu2 %v7423_v39 }
 0xca6   :  { %4152 = vmatpush.msra.mxu0 %v7449_v44  ;;  %4318 = vmatpush.msra.mxu3 %v7433_v8 }
 0xca7   :  { %4467 = vmatpush.msra.mxu1 %v7439_v17  ;;  %4486 = vmatpush.msrb.mxu2 %v7433_v8 }
 0xca8   :  { %4153 = vmatpush.msra.mxu0 %v7457_v55  ;;  %4319 = vmatpush.msra.mxu3 %v7441_v29 }
 0xca9   :  { %4468 = vmatpush.msra.mxu1 %v7447_v16  ;;  %4487 = vmatpush.msrb.mxu2 %v7441_v29 }
 0xcaa   :  { %4154 = vmatpush.msra.mxu0 %v7465_v4  ;;  %4320 = vmatpush.msra.mxu3 %v7449_v44 }
 0xcab   :  { %4469 = vmatpush.msra.mxu1 %v7455_v6  ;;  %4488 = vmatpush.msrb.mxu2 %v7449_v44 }
 0xcac   :  { %4155 = vmatpush.msra.mxu0 %v7473_v62  ;;  %4321 = vmatpush.msra.mxu3 %v7457_v55 }
 0xcad   :  { %4470 = vmatpush.msra.mxu1 %v7463_v45  ;;  %4489 = vmatpush.msrb.mxu2 %v7457_v55 }
 0xcae   :  { %4156 = vmatpush.msra.mxu0 %v7481_v36  ;;  %4322 = vmatpush.msra.mxu3 %v7465_v4 }
 0xcaf   :  { %4471 = vmatpush.msra.mxu1 %v7471_v30  ;;  %4490 = vmatpush.msrb.mxu2 %v7465_v4 }
 0xcb0   :  { %4157 = vmatpush.msra.mxu0 %v7485_v24  ;;  %4323 = vmatpush.msra.mxu3 %v7473_v62 }
 0xcb1   :  { %4472 = vmatpush.msra.mxu1 %v7475_v27  ;;  %4491 = vmatpush.msrb.mxu2 %v7473_v62 }
 0xcb2   :  { %4158 = vmatpush.msra.mxu0 %v7495_v63  ;;  %4324 = vmatpush.msra.mxu3 %v7481_v36 }
 0xcb3   :  { %4473 = vmatpush.msra.mxu1 %v7483_v14  ;;  %4492 = vmatpush.msrb.mxu2 %v7481_v36 }
 0xcb4   :  { %4325 = vmatpush.msra.mxu3 %v7485_v24 }
 0xcb5   :  { %4474 = vmatpush.msra.mxu1 %v7493_v26  ;;  %4493 = vmatpush.msrb.mxu2 %v7485_v24 }
 0xcb6   :  { %4326 = vmatpush.msra.mxu3 %v7495_v63 }
 0xcb7   :  { %4494 = vmatpush.msrb.mxu2 %v7495_v63 }
 0xd13   :  { %v3972_v54 = vpop.f32.mrf.mxu0  ;;  %v3992_v3 = vpop.f32.mrf.mxu1 }
 0xd14   :  { %v3973_v18 = vadd.f32 %v3972_v54, %v3949_v23  ;;  %v3993_v46 = vadd.f32 %v3992_v3, %v3950_v21 }
 0xd16   :  { %v4015_v51 = vadd.f32 %v3973_v18, %v3434_v48  ;;  %v4035_v1 = vadd.f32 %v3993_v46, %v3475_v22  ;;  %v3951_v46 = vperm.slane %v7403_v50, 2 }
 0xd18   :  { %v5019_v38 = vmul.f32 -1.442695, %v4015_v51  ;;  %v5020_v59 = vmul.f32 -1.442695, %v4035_v1 }
 0xd1a   :  { %5229 = vpow2.f32 %v5019_v38 }
 0xd1b   :  { %5231 = vpow2.f32 %v5020_v59  ;;  %v4012_v59 = vpop.f32.mrf.mxu2 }
 0xd20   :  { %v5230_v41 = vpop.eup %5229 }
 0xd21   :  { %v5232_v52 = vpop.eup %5231  ;;  %v4019_v32 = vadd.f32 1.0, %v5230_v41 }
 0xd22   :  { %v7489_v33 = vadd.f32 1.0, %v5232_v52 }
 0xd23   :  { %5233 = vrcp.f32 %v4019_v32  ;;  %v4031_v18 = vand.u32 2147483648, %v4019_v32  ;;  %v4029_v1 = vand.u32 2147483647, %v4019_v32  ;;  %vm4025_vm1 = vweird.f32 %v4019_v32 }
 0xd24   :  { %5235 = vrcp.f32 %v7489_v33  ;;  %vm4045_vm5 = vweird.f32 %v7489_v33 }
 0xd25   :  { %v4032_v52 = vor.u32 1.1754944e-38, %v4031_v18  ;;  %vm4030_vm3 = vcmp.eq.f32.partialorder %v4029_v1, 8.507059e+37 }
 0xd29   :  { %v5234_v23 = vpop.eup %5233 }
 0xd2a   :  { %v5236_v21 = vpop.eup %5235  ;;  %v4021_v48 = vmul.f32 %v5234_v23, %v4019_v32  ;;  %vm4026_vm0 = vweird.f32 %v5234_v23  ;;  %v4051_v32 = vand.u32 2147483648, %v7489_v33 }
 0xd2b   :  { %v4041_v54 = vmul.f32 %v5236_v21, %v7489_v33  ;;  %vm4027_vm2 = vmor %vm4025_vm1, %vm4026_vm0  ;;  %vm4046_vm4 = vweird.f32 %v5236_v21 }
 0xd2c   :  { %v4022_v3 = vsub.f32 1.0, %v4021_v48  ;;  %v4013_v48 = vadd.f32 %v4012_v59, %v3951_v46  ;;  %vm4047_vm6 = vmor %vm4045_vm5, %vm4046_vm4  ;;  %v4052_v1 = vor.u32 1.1754944e-38, %v4051_v32 }
 0xd2d   :  { %v4042_v22 = vsub.f32 1.0, %v4041_v54 }
 0xd2e   :  { %v4023_v51 = vmul.f32 %v5234_v23, %v4022_v3 }
 0xd2f   :  { %v4043_v38 = vmul.f32 %v5236_v21, %v4042_v22  ;;  %v3516_v22 = vadd.f32 %v7319_v60, %v7289_v34 }
 0xd30   :  { %v4024_v41 = vadd.f32 %v5234_v23, %v4023_v51 }
 0xd31   :  { %v4044_v3 = vadd.f32 %v5236_v21, %v4043_v38 }
 0xd32   :  { %v4028_v54 = vsel %vm4027_vm2, %v5234_v23, %v4024_v41  ;;  %v4049_v23 = vand.u32 2147483647, %v7489_v33 }
 0xd33   :  { %v4033_v50 = vsel %vm4030_vm3, %v4032_v52, %v4028_v54  ;;  %v4048_v46 = vsel %vm4047_vm6, %v5236_v21, %v4044_v3  ;;  %v7605_v52 = vld [vmem:[#allocation12 + $0x3d0] sm:$0xff] }
 0xd34   :  { %v4055_v51 = vmul.f32 %v4033_v50, %v4013_v48  ;;  %vm4050_vm7 = vcmp.eq.f32.partialorder %v4049_v23, 8.507059e+37  ;;  %v7608_v48 = vld [vmem:[#allocation12 + $0x3b8] sm:$0xff]  ;;  %v7612_v50 = vld [vmem:[#allocation12 + $0x3a0] sm:$0xff] }
 0xd35   :  { %v4053_v60 = vsel %vm4050_vm7, %v4052_v1, %v4048_v46  ;;  %v7624_v23 = vld [vmem:[#allocation12 + $0x358] sm:$0xff] }
 0xd36   :  { %v4056_v18 = vadd.f32 %v4055_v51, %v3516_v22  ;;  %v4058_v33 = vsub.f32 1.0, %v4053_v60  ;;  %v4060_v59 = vmul.f32 %v4053_v60, %v7383_v9  ;;  %v7570_v9 = vld [vmem:[#allocation15 + $0x6] sm:$0x7]  ;;  %v7632_v60 = vld [vmem:[#allocation12 + $0x328] sm:$0xff] }
 0xd37   :  { %v7620_v51 = vld [vmem:[#allocation12 + $0x370] sm:$0xff] }
 0xd38   :  { %5237 = vtanh.f32 %v4056_v18  ;;  %v7628_v18 = vld [vmem:[#allocation12 + $0x340] sm:$0xff] }
 0xd3e   :  { %v5238_v21 = vpop.eup %5237 }
 0xd3f   :  { %v4059_v38 = vmul.f32 %v5238_v21, %v4058_v33  ;;  %v7636_v33 = vld [vmem:[#allocation12 + $0x310] sm:$0xff] }
 0xd41   :  { %v7542_v41 = vadd.f32 %v4060_v59, %v4059_v38 }
 0xd43   :  { %4139 = vmatmul.f32.vlgmr.msrb.gmra.mxu3 %v7542_v41  ;;  %4063 = vst [vmem:[#allocation17 + $0x10] sm:$0xff] %v7542_v41  ;;  %4159 = vmatmul.f32.vlgmr.msra.gmra.mxu0 %v7542_v41 }
 0xd44   :  { %4179 = vmatmul.f32.vlgmr.msrb.gmra.mxu1 %v7542_v41 }
 0xd45   :  { %4647 = vmatpush.msrb.mxu1 %v7394_v57  ;;  %v7572_v57 = vld [vmem:[#allocation12 + $0x478] sm:$0xff] }
 0xd46   :  { %4331 = vmatpush.msrb.mxu0 %v7572_v57  ;;  %4499 = vmatpush.msrb.mxu3 %v7572_v57 }
 0xd47   :  { %4648 = vmatpush.msrb.mxu1 %v7397_v12  ;;  %v7576_v12 = vld [vmem:[#allocation12 + $0x460] sm:$0xff] }
 0xd48   :  { %4332 = vmatpush.msrb.mxu0 %v7576_v12  ;;  %4500 = vmatpush.msrb.mxu3 %v7576_v12 }
 0xd49   :  { %4649 = vmatpush.msrb.mxu1 %v7400_v42  ;;  %v4118_v42 = vperm.slane %v7570_v9, 1 }
 0xd4b   :  { %4650 = vmatpush.msrb.mxu1 %v7405_v37  ;;  %v7581_v37 = vld [vmem:[#allocation12 + $0x448] sm:$0xff] }
 0xd4c   :  { %4333 = vmatpush.msrb.mxu0 %v7581_v37  ;;  %4501 = vmatpush.msrb.mxu3 %v7581_v37 }
 0xd4d   :  { %4651 = vmatpush.msrb.mxu1 %v7408_v40 }
 0xd4f   :  { %4652 = vmatpush.msrb.mxu1 %v7415_v35  ;;  %v7585_v35 = vld [vmem:[#allocation12 + $0x430] sm:$0xff] }
 0xd50   :  { %4334 = vmatpush.msrb.mxu0 %v7585_v35  ;;  %4502 = vmatpush.msrb.mxu3 %v7585_v35 }
 0xd51   :  { %4653 = vmatpush.msrb.mxu1 %v7423_v39  ;;  %v3478_v39 = vadd.f32 %v7321_v0, %v7276_v47 }
 0xd53   :  { %4654 = vmatpush.msrb.mxu1 %v7433_v8 }
 0xd55   :  { %4655 = vmatpush.msrb.mxu1 %v7441_v29  ;;  %v7591_v29 = vld [vmem:[#allocation12 + $0x418] sm:$0xff] }
 0xd56   :  { %4335 = vmatpush.msrb.mxu0 %v7591_v29  ;;  %4503 = vmatpush.msrb.mxu3 %v7591_v29 }
 0xd57   :  { %4656 = vmatpush.msrb.mxu1 %v7449_v44 }
 0xd59   :  { %4657 = vmatpush.msrb.mxu1 %v7457_v55  ;;  %v4117_v55 = vperm.slane %v7570_v9, 0 }
 0xd5b   :  { %4658 = vmatpush.msrb.mxu1 %v7465_v4  ;;  %v7596_v4 = vld [vmem:[#allocation12 + $0x400] sm:$0xff] }
 0xd5c   :  { %4336 = vmatpush.msrb.mxu0 %v7596_v4  ;;  %4504 = vmatpush.msrb.mxu3 %v7596_v4 }
 0xd5d   :  { %4659 = vmatpush.msrb.mxu1 %v7473_v62 }
 0xd5f   :  { %4660 = vmatpush.msrb.mxu1 %v7481_v36  ;;  %v7600_v36 = vld [vmem:[#allocation12 + $0x3e8] sm:$0xff] }
 0xd60   :  { %4337 = vmatpush.msrb.mxu0 %v7600_v36  ;;  %4505 = vmatpush.msrb.mxu3 %v7600_v36 }
 0xd61   :  { %4661 = vmatpush.msrb.mxu1 %v7485_v24  ;;  %v3437_v24 = vadd.f32 %v7278_v31, %v7273_v61  ;;  %v7616_v31 = vld [vmem:[#allocation12 + $0x388] sm:$0xff] }
 0xd62   :  { %4338 = vmatpush.msrb.mxu0 %v7605_v52  ;;  %4506 = vmatpush.msrb.mxu3 %v7605_v52 }
 0xd63   :  { %4662 = vmatpush.msrb.mxu1 %v7495_v63 }
 0xd64   :  { %4339 = vmatpush.msrb.mxu0 %v7608_v48  ;;  %4507 = vmatpush.msrb.mxu3 %v7608_v48 }
 0xd66   :  { %4340 = vmatpush.msrb.mxu0 %v7612_v50  ;;  %4508 = vmatpush.msrb.mxu3 %v7612_v50 }
 0xd68   :  { %4341 = vmatpush.msrb.mxu0 %v7616_v31  ;;  %4509 = vmatpush.msrb.mxu3 %v7616_v31 }
 0xd6a   :  { %4342 = vmatpush.msrb.mxu0 %v7620_v51  ;;  %4510 = vmatpush.msrb.mxu3 %v7620_v51 }
 0xd6c   :  { %4343 = vmatpush.msrb.mxu0 %v7624_v23  ;;  %4511 = vmatpush.msrb.mxu3 %v7624_v23 }
 0xd6e   :  { %4344 = vmatpush.msrb.mxu0 %v7628_v18  ;;  %4512 = vmatpush.msrb.mxu3 %v7628_v18 }
 0xd70   :  { %4345 = vmatpush.msrb.mxu0 %v7632_v60  ;;  %4513 = vmatpush.msrb.mxu3 %v7632_v60 }
 0xd72   :  { %4346 = vmatpush.msrb.mxu0 %v7636_v33  ;;  %4514 = vmatpush.msrb.mxu3 %v7636_v33 }
 0xdc0   :  { %v4160_v40 = vpop.f32.mrf.mxu0 }
 0xdc1   :  { %v4161_v8 = vadd.f32 %v4160_v40, %v4118_v42 }
 0xdc3   :  { %v4203_v44 = vadd.f32 %v4161_v8, %v3478_v39 }
 0xdc5   :  { %v5022_v62 = vmul.f32 -1.442695, %v4203_v44  ;;  %v4119_v44 = vperm.slane %v7570_v9, 2 }
 0xdc6   :  { %v4140_v0 = vpop.f32.mrf.mxu3 }
 0xdc7   :  { %5239 = vpow2.f32 %v5022_v62  ;;  %v4141_v63 = vadd.f32 %v4140_v0, %v4117_v55 }
 0xdc9   :  { %v4183_v54 = vadd.f32 %v4141_v63, %v3437_v24  ;;  %v4180_v24 = vpop.f32.mrf.mxu1 }
 0xdcb   :  { %v5021_v3 = vmul.f32 -1.442695, %v4183_v54 }
 0xdcd   :  { %v5240_v22 = vpop.eup %5239  ;;  %5241 = vpow2.f32 %v5021_v3  ;;  %v4181_v3 = vadd.f32 %v4180_v24, %v4119_v44  ;;  %v3481_v24 = vadd.f32 %v7325_v2, %v7276_v47 }
 0xdce   :  { %v4207_v32 = vadd.f32 1.0, %v5240_v22 }
 0xdd0   :  { %5243 = vrcp.f32 %v4207_v32  ;;  %vm4213_vm13 = vweird.f32 %v4207_v32 }
 0xdd3   :  { %v5242_v46 = vpop.eup %5241 }
 0xdd4   :  { %v4187_v1 = vadd.f32 1.0, %v5242_v46 }
 0xdd6   :  { %5245 = vrcp.f32 %v4187_v1  ;;  %v5244_v21 = vpop.eup %5243  ;;  %v4199_v8 = vand.u32 2147483648, %v4187_v1  ;;  %v4197_v62 = vand.u32 2147483647, %v4187_v1  ;;  %vm4193_vm9 = vweird.f32 %v4187_v1 }
 0xdd7   :  { %v4209_v38 = vmul.f32 %v5244_v21, %v4207_v32  ;;  %vm4214_vm12 = vweird.f32 %v5244_v21 }
 0xdd8   :  { %v4200_v54 = vor.u32 1.1754944e-38, %v4199_v8  ;;  %vm4198_vm11 = vcmp.eq.f32.partialorder %v4197_v62, 8.507059e+37  ;;  %vm4215_vm14 = vmor %vm4213_vm13, %vm4214_vm12 }
 0xdd9   :  { %v4210_v40 = vsub.f32 1.0, %v4209_v38  ;;  %v3519_v38 = vadd.f32 %v7323_v13, %v7289_v34 }
 0xddb   :  { %v4211_v0 = vmul.f32 %v5244_v21, %v4210_v40 }
 0xddc   :  { %v5246_v59 = vpop.eup %5245 }
 0xddd   :  { %v4189_v42 = vmul.f32 %v5246_v59, %v4187_v1  ;;  %vm4194_vm8 = vweird.f32 %v5246_v59  ;;  %v4212_v19 = vadd.f32 %v5244_v21, %v4211_v0 }
 0xdde   :  { %vm4195_vm10 = vmor %vm4193_vm9, %vm4194_vm8 }
 0xddf   :  { %v4190_v39 = vsub.f32 1.0, %v4189_v42  ;;  %v4219_v42 = vand.u32 2147483648, %v4207_v32  ;;  %v4216_v49 = vsel %vm4215_vm14, %v5244_v21, %v4212_v19  ;;  %v3440_v21 = vadd.f32 %v7281_v56, %v7273_v61 }
 0xde1   :  { %v4191_v55 = vmul.f32 %v5246_v59, %v4190_v39  ;;  %v4217_v39 = vand.u32 2147483647, %v4207_v32 }
 0xde3   :  { %v4192_v63 = vadd.f32 %v5246_v59, %v4191_v55  ;;  %v4220_v55 = vor.u32 1.1754944e-38, %v4219_v42  ;;  %vm4218_vm15 = vcmp.eq.f32.partialorder %v4217_v39, 8.507059e+37 }
 0xde5   :  { %v4196_v22 = vsel %vm4195_vm10, %v5246_v59, %v4192_v63  ;;  %v4221_v1 = vsel %vm4218_vm15, %v4220_v55, %v4216_v49  ;;  %v4283_v49 = vld [vmem:[#allocation15 + $0x6] sm:$0x7] }
 0xde6   :  { %v4201_v46 = vsel %vm4198_vm11, %v4200_v54, %v4196_v22  ;;  %v4226_v8 = vsub.f32 1.0, %v4221_v1  ;;  %v4228_v62 = vmul.f32 %v4221_v1, %v7542_v41  ;;  %v4285_v13 = vperm.slane %v4283_v49, 0 }
 0xde7   :  { %v4223_v9 = vmul.f32 %v4201_v46, %v4181_v3  ;;  %v4286_v19 = vperm.slane %v4283_v49, 1 }
 0xde9   :  { %v4224_v40 = vadd.f32 %v4223_v9, %v3519_v38 }
 0xdeb   :  { %5247 = vtanh.f32 %v4224_v40 }
 0xdf1   :  { %v5248_v59 = vpop.eup %5247 }
 0xdf2   :  { %v4227_v44 = vmul.f32 %v5248_v59, %v4226_v8 }
 0xdf4   :  { %v7646_v0 = vadd.f32 %v4228_v62, %v4227_v44  ;;  %v4287_v62 = vperm.slane %v4283_v49, 2 }
 0xdf6   :  { %4307 = vmatmul.f32.vlgmr.msra.gmra.mxu2 %v7646_v0  ;;  %4231 = vst [vmem:[#allocation17 + $0x18] sm:$0xff] %v7646_v0  ;;  %4327 = vmatmul.f32.vlgmr.msra.gmra.mxu3 %v7646_v0 }
 0xdf7   :  { %4347 = vmatmul.f32.vlgmr.msrb.gmra.mxu0 %v7646_v0  ;;  %4667 = vmatpush.msra.mxu2 %v7572_v57 }
 0xdf9   :  { %4668 = vmatpush.msra.mxu2 %v7576_v12 }
 0xdfb   :  { %4669 = vmatpush.msra.mxu2 %v7581_v37 }
 0xdfd   :  { %4670 = vmatpush.msra.mxu2 %v7585_v35 }
 0xdff   :  { %4671 = vmatpush.msra.mxu2 %v7591_v29 }
 0xe01   :  { %4672 = vmatpush.msra.mxu2 %v7596_v4 }
 0xe03   :  { %4673 = vmatpush.msra.mxu2 %v7600_v36 }
 0xe05   :  { %4674 = vmatpush.msra.mxu2 %v7605_v52 }
 0xe07   :  { %4675 = vmatpush.msra.mxu2 %v7608_v48 }
 0xe09   :  { %4676 = vmatpush.msra.mxu2 %v7612_v50 }
 0xe0b   :  { %4677 = vmatpush.msra.mxu2 %v7616_v31 }
 0xe0d   :  { %4678 = vmatpush.msra.mxu2 %v7620_v51 }
 0xe0f   :  { %4679 = vmatpush.msra.mxu2 %v7624_v23 }
 0xe11   :  { %4680 = vmatpush.msra.mxu2 %v7628_v18 }
 0xe13   :  { %4681 = vmatpush.msra.mxu2 %v7632_v60 }
 0xe15   :  { %4682 = vmatpush.msra.mxu2 %v7636_v33 }
 0xe79   :  { %v4308_v41 = vpop.f32.mrf.mxu2  ;;  %v4328_v32 = vpop.f32.mrf.mxu3 }
 0xe7a   :  { %v4309_v63 = vadd.f32 %v4308_v41, %v4285_v13  ;;  %v4329_v54 = vadd.f32 %v4328_v32, %v4286_v19  ;;  %v4348_v41 = vpop.f32.mrf.mxu0 }
 0xe7c   :  { %v4351_v3 = vadd.f32 %v4309_v63, %v3440_v21  ;;  %v4371_v22 = vadd.f32 %v4329_v54, %v3481_v24  ;;  %v4349_v63 = vadd.f32 %v4348_v41, %v4287_v62 }
 0xe7e   :  { %v5023_v46 = vmul.f32 -1.442695, %v4351_v3  ;;  %v5024_v38 = vmul.f32 -1.442695, %v4371_v22 }
 0xe80   :  { %5249 = vpow2.f32 %v5023_v46  ;;  %v3522_v46 = vadd.f32 %v7327_v5, %v7289_v34  ;;  %v4616_v5 = vld [vmem:[#allocation12 + $0x468] sm:$0xff] }
 0xe81   :  { %5251 = vpow2.f32 %v5024_v38  ;;  %4627 = vmatpush.msra.mxu0 %v4616_v5  ;;  %4795 = vmatpush.msra.mxu3 %v4616_v5  ;;  %v7721_v5 = vld [vmem:[#allocation15 + $0x6] sm:$0x7] }
 0xe86   :  { %v5250_v42 = vpop.eup %5249 }
 0xe87   :  { %v5252_v9 = vpop.eup %5251  ;;  %v4355_v39 = vadd.f32 1.0, %v5250_v42 }
 0xe88   :  { %v4375_v40 = vadd.f32 1.0, %v5252_v9 }
 0xe89   :  { %5253 = vrcp.f32 %v4355_v39  ;;  %v4367_v2 = vand.u32 2147483648, %v4355_v39  ;;  %v4365_v19 = vand.u32 2147483647, %v4355_v39  ;;  %vm4361_vm1 = vweird.f32 %v4355_v39 }
 0xe8a   :  { %5255 = vrcp.f32 %v4375_v40  ;;  %v4387_v49 = vand.u32 2147483648, %v4375_v40  ;;  %vm4381_vm5 = vweird.f32 %v4375_v40  ;;  %v4385_v42 = vand.u32 2147483647, %v4375_v40 }
 0xe8b   :  { %v4368_v24 = vor.u32 1.1754944e-38, %v4367_v2  ;;  %vm4366_vm3 = vcmp.eq.f32.partialorder %v4365_v19, 8.507059e+37 }
 0xe8c   :  { %vm4386_vm7 = vcmp.eq.f32.partialorder %v4385_v42, 8.507059e+37 }
 0xe8f   :  { %v5254_v55 = vpop.eup %5253 }
 0xe90   :  { %v5256_v1 = vpop.eup %5255  ;;  %v4357_v56 = vmul.f32 %v5254_v55, %v4355_v39  ;;  %vm4362_vm0 = vweird.f32 %v5254_v55 }
 0xe91   :  { %v4377_v8 = vmul.f32 %v5256_v1, %v4375_v40  ;;  %vm4363_vm2 = vmor %vm4361_vm1, %vm4362_vm0  ;;  %vm4382_vm4 = vweird.f32 %v5256_v1 }
 0xe92   :  { %v4358_v59 = vsub.f32 1.0, %v4357_v56  ;;  %vm4383_vm6 = vmor %vm4381_vm5, %vm4382_vm4 }
 0xe93   :  { %v4378_v44 = vsub.f32 1.0, %v4377_v8  ;;  %v4388_v8 = vor.u32 1.1754944e-38, %v4387_v49 }
 0xe94   :  { %v4359_v13 = vmul.f32 %v5254_v55, %v4358_v59 }
 0xe95   :  { %v4379_v32 = vmul.f32 %v5256_v1, %v4378_v44 }
 0xe96   :  { %v4360_v21 = vadd.f32 %v5254_v55, %v4359_v13 }
 0xe97   :  { %v4380_v22 = vadd.f32 %v5256_v1, %v4379_v32 }
 0xe98   :  { %v4364_v54 = vsel %vm4363_vm2, %v5254_v55, %v4360_v21  ;;  %v3525_v21 = vadd.f32 %v7331_v20, %v7289_v34 }
 0xe99   :  { %v4369_v3 = vsel %vm4366_vm3, %v4368_v24, %v4364_v54  ;;  %v4384_v56 = vsel %vm4383_vm6, %v5256_v1, %v4380_v22 }
 0xe9a   :  { %v4391_v38 = vmul.f32 %v4369_v3, %v4349_v63  ;;  %v4389_v39 = vsel %vm4386_vm7, %v4388_v8, %v4384_v56 }
 0xe9b   :  { %v4394_v59 = vsub.f32 1.0, %v4389_v39  ;;  %v4396_v44 = vmul.f32 %v4389_v39, %v7646_v0 }
 0xe9c   :  { %v4392_v9 = vadd.f32 %v4391_v38, %v3522_v46 }
 0xe9e   :  { %5257 = vtanh.f32 %v4392_v9 }
 0xea4   :  { %v5258_v55 = vpop.eup %5257 }
 0xea5   :  { %v4395_v2 = vmul.f32 %v5258_v55, %v4394_v59  ;;  %v4785_v55 = vld [vmem:[#allocation12 + $0x470] sm:$0xff] }
 0xea7   :  { %v7675_v62 = vadd.f32 %v4396_v44, %v4395_v2  ;;  %v4782_v2 = vld [vmem:[#allocation12 + $0x458] sm:$0xff]  ;;  %v4779_v44 = vld [vmem:[#allocation12 + $0x440] sm:$0xff] }
 0xea9   :  { %4475 = vmatmul.f32.vlgmr.msra.gmra.mxu1 %v7675_v62  ;;  %4399 = vst [vmem:[#allocation17 + $0x20] sm:$0xff] %v7675_v62  ;;  %4495 = vmatmul.f32.vlgmr.msrb.gmra.mxu2 %v7675_v62 }
 0xeaa   :  { %4515 = vmatmul.f32.vlgmr.msrb.gmra.mxu3 %v7675_v62  ;;  %4835 = vmatpush.msra.mxu1 %v7572_v57  ;;  %v4613_v57 = vld [vmem:[#allocation12 + $0x450] sm:$0xff] }
 0xeab   :  { %4628 = vmatpush.msra.mxu0 %v4613_v57  ;;  %4796 = vmatpush.msra.mxu3 %v4613_v57  ;;  %v4776_v57 = vld [vmem:[#allocation12 + $0x428] sm:$0xff] }
 0xeac   :  { %4836 = vmatpush.msra.mxu1 %v7576_v12  ;;  %v4610_v12 = vld [vmem:[#allocation12 + $0x438] sm:$0xff] }
 0xead   :  { %4629 = vmatpush.msra.mxu0 %v4610_v12  ;;  %4797 = vmatpush.msra.mxu3 %v4610_v12  ;;  %v4621_v12 = vperm.slane %v7721_v5, 0 }
 0xeae   :  { %4837 = vmatpush.msra.mxu1 %v7581_v37  ;;  %v4451_v37 = vld [vmem:[#allocation15 + $0x6] sm:$0x7] }
 0xeb0   :  { %4838 = vmatpush.msra.mxu1 %v7585_v35  ;;  %v4607_v35 = vld [vmem:[#allocation12 + $0x420] sm:$0xff] }
 0xeb1   :  { %4630 = vmatpush.msra.mxu0 %v4607_v35  ;;  %4798 = vmatpush.msra.mxu3 %v4607_v35  ;;  %v4769_v35 = vld [vmem:[#allocation12 + $0x3f0] sm:$0xff] }
 0xeb2   :  { %4839 = vmatpush.msra.mxu1 %v7591_v29  ;;  %v4604_v29 = vld [vmem:[#allocation12 + $0x408] sm:$0xff] }
 0xeb3   :  { %4631 = vmatpush.msra.mxu0 %v4604_v29  ;;  %4799 = vmatpush.msra.mxu3 %v4604_v29  ;;  %v4770_v29 = vld [vmem:[#allocation12 + $0x3f8] sm:$0xff] }
 0xeb4   :  { %4840 = vmatpush.msra.mxu1 %v7596_v4  ;;  %v4453_v4 = vperm.slane %v4451_v37, 0 }
 0xeb5   :  { %4632 = vmatpush.msra.mxu0 %v7413_v28  ;;  %4800 = vmatpush.msra.mxu3 %v4769_v35 }
 0xeb6   :  { %4841 = vmatpush.msra.mxu1 %v7600_v36 }
 0xeb7   :  { %4633 = vmatpush.msra.mxu0 %v7421_v15 }
 0xeb8   :  { %4842 = vmatpush.msra.mxu1 %v7605_v52  ;;  %v3443_v52 = vadd.f32 %v7283_v7, %v7273_v61 }
 0xeb9   :  { %4634 = vmatpush.msra.mxu0 %v7431_v53 }
 0xeba   :  { %4843 = vmatpush.msra.mxu1 %v7608_v48 }
 0xebb   :  { %4635 = vmatpush.msra.mxu0 %v7439_v17 }
 0xebc   :  { %4844 = vmatpush.msra.mxu1 %v7612_v50 }
 0xebd   :  { %4636 = vmatpush.msra.mxu0 %v7447_v16 }
 0xebe   :  { %4845 = vmatpush.msra.mxu1 %v7616_v31  ;;  %v4454_v31 = vperm.slane %v4451_v37, 1 }
 0xebf   :  { %4637 = vmatpush.msra.mxu0 %v7455_v6 }
 0xec0   :  { %4846 = vmatpush.msra.mxu1 %v7620_v51 }
 0xec1   :  { %4638 = vmatpush.msra.mxu0 %v7463_v45  ;;  %v4455_v45 = vperm.slane %v4451_v37, 2  ;;  %v4622_v37 = vperm.slane %v7721_v5, 1 }
 0xec2   :  { %4847 = vmatpush.msra.mxu1 %v7624_v23 }
 0xec3   :  { %4639 = vmatpush.msra.mxu0 %v7471_v30 }
 0xec4   :  { %4848 = vmatpush.msra.mxu1 %v7628_v18  ;;  %v3484_v18 = vadd.f32 %v7329_v10, %v7276_v47 }
 0xec5   :  { %4640 = vmatpush.msra.mxu0 %v7475_v27 }
 0xec6   :  { %4849 = vmatpush.msra.mxu1 %v7632_v60 }
 0xec7   :  { %4641 = vmatpush.msra.mxu0 %v7483_v14 }
 0xec8   :  { %4850 = vmatpush.msra.mxu1 %v7636_v33 }
 0xec9   :  { %4642 = vmatpush.msra.mxu0 %v7493_v26 }
 0xecb   :  { %4815 = vmatpush.msrb.mxu0 %v4785_v55 }
 0xecd   :  { %4816 = vmatpush.msrb.mxu0 %v4782_v2 }
 0xecf   :  { %4817 = vmatpush.msrb.mxu0 %v4779_v44 }
 0xed1   :  { %4818 = vmatpush.msrb.mxu0 %v4776_v57 }
 0xf26   :  { %v4476_v36 = vpop.f32.mrf.mxu1 }
 0xf27   :  { %v4477_v48 = vadd.f32 %v4476_v36, %v4453_v4  ;;  %v3446_v4 = vadd.f32 %v7285_v25, %v7273_v61 }
 0xf29   :  { %v4519_v50 = vadd.f32 %v4477_v48, %v3443_v52  ;;  %v4766_v48 = vld [vmem:[#allocation12 + $0x3d8] sm:$0xff] }
 0xf2a   :  { %4801 = vmatpush.msra.mxu3 %v4766_v48 }
 0xf2b   :  { %v5025_v51 = vmul.f32 -1.442695, %v4519_v50  ;;  %v4767_v50 = vld [vmem:[#allocation12 + $0x3e0] sm:$0xff] }
 0xf2c   :  { %v4496_v23 = vpop.f32.mrf.mxu2 }
 0xf2d   :  { %5259 = vpow2.f32 %v5025_v51  ;;  %v4497_v28 = vadd.f32 %v4496_v23, %v4454_v31  ;;  %v4516_v13 = vpop.f32.mrf.mxu3  ;;  %v3487_v31 = vadd.f32 %v7333_v43, %v7276_v47  ;;  %v4754_v43 = vld [vmem:[#allocation12 + $0x378] sm:$0xff] }
 0xf2e   :  { %v4517_v32 = vadd.f32 %v4516_v13, %v4455_v45  ;;  %v4748_v45 = vld [vmem:[#allocation12 + $0x348] sm:$0xff]  ;;  %v4746_v13 = vld [vmem:[#allocation12 + $0x338] sm:$0xff] }
 0xf2f   :  { %v4539_v60 = vadd.f32 %v4497_v28, %v3484_v18  ;;  %v4763_v18 = vld [vmem:[#allocation12 + $0x3c0] sm:$0xff]  ;;  %v4764_v28 = vld [vmem:[#allocation12 + $0x3c8] sm:$0xff] }
 0xf30   :  { %4802 = vmatpush.msra.mxu3 %v4763_v18 }
 0xf31   :  { %v5026_v7 = vmul.f32 -1.442695, %v4539_v60 }
 0xf33   :  { %v5260_v15 = vpop.eup %5259  ;;  %5261 = vpow2.f32 %v5026_v7 }
 0xf34   :  { %v4523_v53 = vadd.f32 1.0, %v5260_v15  ;;  %v4760_v15 = vld [vmem:[#allocation12 + $0x3a8] sm:$0xff] }
 0xf35   :  { %4803 = vmatpush.msra.mxu3 %v4760_v15 }
 0xf36   :  { %5263 = vrcp.f32 %v4523_v53  ;;  %v4535_v0 = vand.u32 2147483648, %v4523_v53  ;;  %v4533_v1 = vand.u32 2147483647, %v4523_v53  ;;  %vm4529_vm9 = vweird.f32 %v4523_v53 }
 0xf38   :  { %v4536_v14 = vor.u32 1.1754944e-38, %v4535_v0  ;;  %vm4534_vm11 = vcmp.eq.f32.partialorder %v4533_v1, 8.507059e+37  ;;  %v4752_v0 = vld [vmem:[#allocation12 + $0x368] sm:$0xff]  ;;  %v4745_v1 = vld [vmem:[#allocation12 + $0x330] sm:$0xff] }
 0xf39   :  { %v5262_v10 = vpop.eup %5261 }
 0xf3a   :  { %v4543_v17 = vadd.f32 1.0, %v5262_v10 }
 0xf3c   :  { %v5264_v16 = vpop.eup %5263  ;;  %5265 = vrcp.f32 %v4543_v17  ;;  %v4555_v54 = vand.u32 2147483648, %v4543_v17  ;;  %v4553_v22 = vand.u32 2147483647, %v4543_v17  ;;  %vm4549_vm13 = vweird.f32 %v4543_v17 }
 0xf3d   :  { %v4525_v6 = vmul.f32 %v5264_v16, %v4523_v53  ;;  %vm4530_vm8 = vweird.f32 %v5264_v16  ;;  %v4761_v53 = vld [vmem:[#allocation12 + $0x3b0] sm:$0xff] }
 0xf3e   :  { %vm4531_vm10 = vmor %vm4529_vm9, %vm4530_vm8  ;;  %v4556_v49 = vor.u32 1.1754944e-38, %v4555_v54  ;;  %vm4554_vm15 = vcmp.eq.f32.partialorder %v4553_v22, 8.507059e+37 }
 0xf3f   :  { %v4526_v33 = vsub.f32 1.0, %v4525_v6  ;;  %v4755_v6 = vld [vmem:[#allocation12 + $0x380] sm:$0xff] }
 0xf41   :  { %v4527_v40 = vmul.f32 %v5264_v16, %v4526_v33  ;;  %v4751_v33 = vld [vmem:[#allocation12 + $0x360] sm:$0xff] }
 0xf42   :  { %v5266_v30 = vpop.eup %5265 }
 0xf43   :  { %v4545_v19 = vmul.f32 %v5266_v30, %v4543_v17  ;;  %v4528_v27 = vadd.f32 %v5264_v16, %v4527_v40  ;;  %vm4550_vm12 = vweird.f32 %v5266_v30  ;;  %v4757_v17 = vld [vmem:[#allocation12 + $0x390] sm:$0xff] }
 0xf44   :  { %vm4551_vm14 = vmor %vm4549_vm13, %vm4550_vm12  ;;  %4804 = vmatpush.msra.mxu3 %v4757_v17  ;;  %v4749_v40 = vld [vmem:[#allocation12 + $0x350] sm:$0xff] }
 0xf45   :  { %v4546_v41 = vsub.f32 1.0, %v4545_v19  ;;  %v4532_v26 = vsel %vm4531_vm10, %v5264_v16, %v4528_v27  ;;  %v4758_v16 = vld [vmem:[#allocation12 + $0x398] sm:$0xff] }
 0xf46   :  { %v4537_v24 = vsel %vm4534_vm11, %v4536_v14, %v4532_v26  ;;  %4805 = vmatpush.msra.mxu3 %v4754_v43  ;;  %v4742_v14 = vld [vmem:[#allocation12 + $0x318] sm:$0xff]  ;;  %v4739_v26 = vld [vmem:[#allocation12 + $0x300] sm:$0xff] }
 0xf47   :  { %v4547_v63 = vmul.f32 %v5266_v30, %v4546_v41  ;;  %v4559_v3 = vmul.f32 %v4537_v24, %v4517_v32  ;;  %v4743_v41 = vld [vmem:[#allocation12 + $0x320] sm:$0xff] }
 0xf48   :  { %4806 = vmatpush.msra.mxu3 %v4751_v33 }
 0xf49   :  { %v4548_v46 = vadd.f32 %v5266_v30, %v4547_v63  ;;  %v4560_v38 = vadd.f32 %v4559_v3, %v3525_v21  ;;  %v4740_v21 = vld [vmem:[#allocation12 + $0x308] sm:$0xff] }
 0xf4a   :  { %4807 = vmatpush.msra.mxu3 %v4748_v45 }
 0xf4b   :  { %v4552_v42 = vsel %vm4551_vm14, %v5266_v30, %v4548_v46  ;;  %5267 = vtanh.f32 %v4560_v38 }
 0xf4c   :  { %v4557_v9 = vsel %vm4554_vm15, %v4556_v49, %v4552_v42  ;;  %4808 = vmatpush.msra.mxu3 %v4745_v1  ;;  %v4623_v49 = vperm.slane %v7721_v5, 2 }
 0xf4d   :  { %v4562_v56 = vsub.f32 1.0, %v4557_v9  ;;  %v4564_v20 = vmul.f32 %v4557_v9, %v7675_v62  ;;  %v4773_v62 = vld [vmem:[#allocation12 + $0x410] sm:$0xff] }
 0xf4e   :  { %4819 = vmatpush.msrb.mxu0 %v4773_v62  ;;  %4809 = vmatpush.msra.mxu3 %v4742_v14  ;;  %v3528_v62 = vadd.f32 %v7339_v58, %v7289_v34  ;;  %v4787_v58 = vld [vmem:[#allocation15 + $0x6] sm:$0x7] }
 0xf4f   :  { %v4789_v15 = vperm.slane %v4787_v58, 0 }
 0xf50   :  { %4820 = vmatpush.msrb.mxu0 %v4770_v29  ;;  %4810 = vmatpush.msra.mxu3 %v4739_v26 }
 0xf51   :  { %v5268_v8 = vpop.eup %5267 }
 0xf52   :  { %v4563_v39 = vmul.f32 %v5268_v8, %v4562_v56  ;;  %4821 = vmatpush.msrb.mxu0 %v4767_v50 }
 0xf54   :  { %v7715_v59 = vadd.f32 %v4564_v20, %v4563_v39  ;;  %4822 = vmatpush.msrb.mxu0 %v4764_v28  ;;  %v3490_v28 = vadd.f32 %v7346_v11, %v7276_v47 }
 0xf56   :  { %4643 = vmatmul.f32.vlgmr.msra.gmra.mxu0 %v7715_v59  ;;  %4567 = vst [vmem:[#allocation17 + $0x28] sm:$0xff] %v7715_v59  ;;  %4663 = vmatmul.f32.vlgmr.msrb.gmra.mxu1 %v7715_v59 }
 0xf57   :  { %4683 = vmatmul.f32.vlgmr.msra.gmra.mxu2 %v7715_v59  ;;  %4823 = vmatpush.msrb.mxu0 %v4761_v53 }
 0xf59   :  { %4824 = vmatpush.msrb.mxu0 %v4758_v16 }
 0xf5b   :  { %4825 = vmatpush.msrb.mxu0 %v4755_v6 }
 0xf5d   :  { %4826 = vmatpush.msrb.mxu0 %v4752_v0 }
 0xf5f   :  { %4827 = vmatpush.msrb.mxu0 %v4749_v40 }
 0xf61   :  { %4828 = vmatpush.msrb.mxu0 %v4746_v13 }
 0xf63   :  { %4829 = vmatpush.msrb.mxu0 %v4743_v41 }
 0xf65   :  { %4830 = vmatpush.msrb.mxu0 %v4740_v21 }
 0xfd3   :  { %v4644_v36 = vpop.f32.mrf.mxu0  ;;  %v4664_v52 = vpop.f32.mrf.mxu1 }
 0xfd4   :  { %v4645_v51 = vadd.f32 %v4644_v36, %v4621_v12  ;;  %v4665_v23 = vadd.f32 %v4664_v52, %v4622_v37 }
 0xfd6   :  { %v4687_v60 = vadd.f32 %v4645_v51, %v3446_v4  ;;  %v4707_v7 = vadd.f32 %v4665_v23, %v3487_v31  ;;  %v4790_v23 = vperm.slane %v4787_v58, 1 }
 0xfd8   :  { %v5027_v25 = vmul.f32 -1.442695, %v4687_v60  ;;  %v5028_v10 = vmul.f32 -1.442695, %v4707_v7 }
 0xfda   :  { %5269 = vpow2.f32 %v5027_v25  ;;  %v4684_v8 = vpop.f32.mrf.mxu2  ;;  %v7814_v25 = vld [vmem:[#allocation29_spill] sm:$0xff] }
 0xfdb   :  { %5271 = vpow2.f32 %v5028_v10  ;;  %v4685_v55 = vadd.f32 %v4684_v8, %v4623_v49  ;;  %v3449_v10 = vadd.f32 %v7814_v25, %v7273_v61 }
 0xfe0   :  { %v5270_v30 = vpop.eup %5269 }
 0xfe1   :  { %v5272_v19 = vpop.eup %5271  ;;  %v4691_v27 = vadd.f32 1.0, %v5270_v30 }
 0xfe2   :  { %v4711_v32 = vadd.f32 1.0, %v5272_v19 }
 0xfe3   :  { %5273 = vrcp.f32 %v4691_v27  ;;  %v4703_v38 = vand.u32 2147483648, %v4691_v27  ;;  %v4701_v9 = vand.u32 2147483647, %v4691_v27  ;;  %vm4697_vm1 = vweird.f32 %v4691_v27 }
 0xfe4   :  { %5275 = vrcp.f32 %v4711_v32  ;;  %v4723_v12 = vand.u32 2147483648, %v4711_v32  ;;  %vm4717_vm5 = vweird.f32 %v4711_v32  ;;  %v4721_v37 = vand.u32 2147483647, %v4711_v32 }
 0xfe5   :  { %v4704_v20 = vor.u32 1.1754944e-38, %v4703_v38  ;;  %vm4702_vm3 = vcmp.eq.f32.partialorder %v4701_v9, 8.507059e+37 }
 0xfe6   :  { %v4724_v4 = vor.u32 1.1754944e-38, %v4723_v12  ;;  %vm4722_vm7 = vcmp.eq.f32.partialorder %v4721_v37, 8.507059e+37 }
 0xfe9   :  { %v5274_v24 = vpop.eup %5273 }
 0xfea   :  { %v5276_v63 = vpop.eup %5275  ;;  %v4693_v54 = vmul.f32 %v5274_v24, %v4691_v27  ;;  %vm4698_vm0 = vweird.f32 %v5274_v24  ;;  %v4791_v27 = vperm.slane %v4787_v58, 2 }
 0xfeb   :  { %v4713_v3 = vmul.f32 %v5276_v63, %v4711_v32  ;;  %vm4699_vm2 = vmor %vm4697_vm1, %vm4698_vm0  ;;  %vm4718_vm4 = vweird.f32 %v5276_v63 }
 0xfec   :  { %v4694_v22 = vsub.f32 1.0, %v4693_v54  ;;  %vm4719_vm6 = vmor %vm4717_vm5, %vm4718_vm4 }
 0xfed   :  { %v4714_v46 = vsub.f32 1.0, %v4713_v3 }
 0xfee   :  { %v4695_v42 = vmul.f32 %v5274_v24, %v4694_v22  ;;  %v7815_v22 = vld [vmem:[#allocation36_spill] sm:$0xff] }
 0xfef   :  { %v4715_v56 = vmul.f32 %v5276_v63, %v4714_v46  ;;  %v3531_v46 = vadd.f32 %v7815_v22, %v7289_v34 }
 0xff0   :  { %v4696_v39 = vadd.f32 %v5274_v24, %v4695_v42 }
 0xff1   :  { %v4716_v57 = vadd.f32 %v5276_v63, %v4715_v56 }
 0xff2   :  { %v4700_v2 = vsel %vm4699_vm2, %v5274_v24, %v4696_v39 }
 0xff3   :  { %v4705_v44 = vsel %vm4702_vm3, %v4704_v20, %v4700_v2  ;;  %v4720_v29 = vsel %vm4719_vm6, %v5276_v63, %v4716_v57 }
 0xff4   :  { %v4727_v5 = vmul.f32 %v4705_v44, %v4685_v55  ;;  %v4725_v36 = vsel %vm4722_vm7, %v4724_v4, %v4720_v29 }
 0xff5   :  { %v4730_v52 = vsub.f32 1.0, %v4725_v36  ;;  %v4732_v31 = vmul.f32 %v4725_v36, %v7715_v59 }
 0xff6   :  { %v4728_v35 = vadd.f32 %v4727_v5, %v3528_v62 }
 0xff8   :  { %5277 = vtanh.f32 %v4728_v35 }
 0xffe   :  { %v5278_v48 = vpop.eup %5277 }
 0xfff   :  { %v4731_v50 = vmul.f32 %v5278_v48, %v4730_v52 }
0x1001   :  { %v7733_v51 = vadd.f32 %v4732_v31, %v4731_v50 }
0x1003   :  { %4811 = vmatmul.f32.vlgmr.msra.gmra.mxu3 %v7733_v51  ;;  %4735 = vst [vmem:[#allocation17 + $0x30] sm:$0xff] %v7733_v51  ;;  %4831 = vmatmul.f32.vlgmr.msrb.gmra.mxu0 %v7733_v51 }
0x1004   :  { %4851 = vmatmul.f32.vlgmr.msra.gmra.mxu1 %v7733_v51 }
0x1080   :  { %v4832_v18 = vpop.f32.mrf.mxu0 }
0x1081   :  { %v4833_v60 = vadd.f32 %v4832_v18, %v4790_v23  ;;  %v4852_v32 = vpop.f32.mrf.mxu1 }
0x1082   :  { %v4853_v24 = vadd.f32 %v4852_v32, %v4791_v27 }
0x1083   :  { %v4875_v7 = vadd.f32 %v4833_v60, %v3490_v28 }
0x1085   :  { %v5030_v59 = vmul.f32 -1.442695, %v4875_v7 }
0x1086   :  { %v4812_v53 = vpop.f32.mrf.mxu3 }
0x1087   :  { %5279 = vpow2.f32 %v5030_v59  ;;  %v4813_v17 = vadd.f32 %v4812_v53, %v4789_v15 }
0x1089   :  { %v4855_v16 = vadd.f32 %v4813_v17, %v3449_v10 }
0x108b   :  { %v5029_v43 = vmul.f32 -1.442695, %v4855_v16 }
0x108d   :  { %v5280_v6 = vpop.eup %5279  ;;  %5281 = vpow2.f32 %v5029_v43 }
0x108e   :  { %v4879_v33 = vadd.f32 1.0, %v5280_v6 }
0x1090   :  { %5283 = vrcp.f32 %v4879_v33  ;;  %v4891_v38 = vand.u32 2147483648, %v4879_v33  ;;  %vm4885_vm13 = vweird.f32 %v4879_v33  ;;  %v4889_v42 = vand.u32 2147483647, %v4879_v33 }
0x1092   :  { %v4892_v8 = vor.u32 1.1754944e-38, %v4891_v38  ;;  %vm4890_vm15 = vcmp.eq.f32.partialorder %v4889_v42, 8.507059e+37 }
0x1093   :  { %v5282_v0 = vpop.eup %5281 }
0x1094   :  { %v4859_v45 = vadd.f32 1.0, %v5282_v0 }
0x1096   :  { %5285 = vrcp.f32 %v4859_v45  ;;  %v5284_v47 = vpop.eup %5283  ;;  %v4871_v19 = vand.u32 2147483648, %v4859_v45  ;;  %v4869_v14 = vand.u32 2147483647, %v4859_v45  ;;  %vm4865_vm9 = vweird.f32 %v4859_v45 }
0x1097   :  { %v4881_v11 = vmul.f32 %v5284_v47, %v4879_v33  ;;  %vm4886_vm12 = vweird.f32 %v5284_v47 }
0x1098   :  { %v4872_v21 = vor.u32 1.1754944e-38, %v4871_v19  ;;  %vm4870_vm11 = vcmp.eq.f32.partialorder %v4869_v14, 8.507059e+37  ;;  %vm4887_vm14 = vmor %vm4885_vm13, %vm4886_vm12 }
0x1099   :  { %v4882_v30 = vsub.f32 1.0, %v4881_v11 }
0x109b   :  { %v4883_v41 = vmul.f32 %v5284_v47, %v4882_v30 }
0x109c   :  { %v5286_v40 = vpop.eup %5285 }
0x109d   :  { %v4861_v1 = vmul.f32 %v5286_v40, %v4859_v45  ;;  %vm4866_vm8 = vweird.f32 %v5286_v40  ;;  %v4884_v54 = vadd.f32 %v5284_v47, %v4883_v41 }
0x109e   :  { %vm4867_vm10 = vmor %vm4865_vm9, %vm4866_vm8 }
0x109f   :  { %v4862_v13 = vsub.f32 1.0, %v4861_v1  ;;  %v4888_v56 = vsel %vm4887_vm14, %v5284_v47, %v4884_v54 }
0x10a0   :  { %v4893_v39 = vsel %vm4890_vm15, %v4892_v8, %v4888_v56 }
0x10a1   :  { %v4863_v61 = vmul.f32 %v5286_v40, %v4862_v13  ;;  %v4898_v20 = vsub.f32 1.0, %v4893_v39  ;;  %v4900_v34 = vmul.f32 %v4893_v39, %v7733_v51 }
0x10a3   :  { %v4864_v26 = vadd.f32 %v5286_v40, %v4863_v61 }
0x10a5   :  { %v4868_v63 = vsel %vm4867_vm10, %v5286_v40, %v4864_v26 }
0x10a6   :  { %v4873_v3 = vsel %vm4870_vm11, %v4872_v21, %v4868_v63 }
0x10a7   :  { %v4895_v49 = vmul.f32 %v4873_v3, %v4853_v24 }
0x10a9   :  { %v4896_v9 = vadd.f32 %v4895_v49, %v3531_v46 }
0x10ab   :  { %5287 = vtanh.f32 %v4896_v9 }
0x10b1   :  { %v5288_v55 = vpop.eup %5287 }
0x10b2   :  { %v4899_v2 = vmul.f32 %v5288_v55, %v4898_v20 }
0x10b4   :  { %v4901_v44 = vadd.f32 %v4900_v34, %v4899_v2 }
0x10b6   :  { %4903 = vst [vmem:[#allocation17 + $0x38] sm:$0xff] %v4901_v44 }
0x10b7   :  { %4916 = dma.vmem_to_hbm [thread:$0]  %s4912_s4, 1024, %s4914_s27, [#allocation6]   ;;  %4905 = vst [vmem:[#allocation18 + $0x10] sm:$0xff] %v4901_v44 }
0x10b8   :  { %4929 = dma.vmem_to_hbm [thread:$0]  %s4922_s0, 384, %s4924_s9, [#allocation19], %s5509_s10, %s5509_s10, %s5510_s11  }
0x10b9   :  { %5504 = dma.done.wait [#allocation6], 1024  }
0x10ba   :  { %5505 = vsyncadd [#allocation6], 4294966272 }
0x10bb   :  { %5506 = dma.done.wait [#allocation19], 384  }
0x10bc   :  { %5507 = vsyncadd [#allocation19], 4294966912 }
0x10bd   :  { %4938 = vsyncpa [#allocation5], 1 }
0x10be   :  { %4939 = vsyncpa [#allocation10], 1 }
0x10bf   :  { %4940 = vsyncpa [#allocation13], 1 }
0x10c0   :  { %4941 = vsyncpa [#allocation16], 1 }
0x10c1   :  { %4942 = vsyncpa [#allocation6], 1 }
0x10c2   :  { %4943 = vsyncpa [#allocation19], 1 }
0x10c3   :  { %4944 = vsyncpa [#allocation7], 1 }

</bundles_post_ra>
